<compile_context>
chip_gen: v6e
topology: v6e:2x2x1
jax: 0.10.0
libtpu: 0.0.40
codegen_flags: <defaults>
</compile_context>

<pallas_src>
import functools

import jax
import jax.numpy as jnp
from jax import lax
from jax.experimental import pallas as pl
from jax.experimental.pallas import tpu as pltpu


def _round_up(x, m):
    return (x + m - 1) // m * m


def _classifier_kernel(x_ref, w1t_ref, b1_ref, w2t_ref, b2_ref, anchors_ref,
                       exp_ref):
    """One (C, tile_p) pixel slab: conv1 -> ReLU -> conv2 -> softmax -> E[anchor]."""
    cdt = w1t_ref.dtype
    if cdt == jnp.float32:
        # Exact (multi-pass) f32 MXU matmul for the f32 path.
        dot = functools.partial(jnp.dot, preferred_element_type=jnp.float32,
                                precision=lax.Precision.HIGHEST)
    else:
        # bf16 operands, f32 accumulation (native MXU rate).
        dot = functools.partial(jnp.dot, preferred_element_type=jnp.float32)

    # x_ref: (1, C, TP); cast activations to the compute dtype in VMEM.
    x = x_ref[0].astype(cdt)                                    # (C, TP)

    # Conv #1 as matmul: (512, C) @ (C, TP) + (512, 1) -> (512, TP), ReLU.
    h = dot(w1t_ref[...], x) + b1_ref[...]
    h = jnp.maximum(h, 0.0)

    # Conv #2: (Bp, 512) @ (512, TP) + (Bp, 1) -> (Bp, TP).  Padded bins carry
    # a -1e9 bias so exp() underflows to exactly 0.
    logits = dot(w2t_ref[...], h.astype(cdt)) + b2_ref[...]

    # Fused softmax-over-bins + expectation:  E = sum_b(e_b * a_b) / sum_b(e_b)
    m = jnp.max(logits, axis=0, keepdims=True)                  # (1, TP)
    e = jnp.exp(logits - m)                                     # (Bp, TP)
    num = jnp.sum(e * anchors_ref[...], axis=0, keepdims=True)  # (1, TP)
    den = jnp.sum(e, axis=0, keepdims=True)                     # (1, TP)

    # Exact divide (the approx reciprocal was the accuracy culprit).
    exp_ref[0] = num / den


def prepare_classifier_params(w1, b1, w2, b2, anchor_points,
                              compute_dtype=jnp.bfloat16):
    """One-time (model-load) weight prep: transpose, pad bins to 8, cast.

    w1: (C, 512), b1: (512,), w2: (512, B), b2: (B,), anchor_points: (B,)
    """
    C, hidden = w1.shape
    B = w2.shape[1]
    Bp = _round_up(B, 8)  # full (8,128) sublane tiles for the softmax epilogue

    w1t = jnp.asarray(w1, compute_dtype).T                       # (512, C)
    b1c = jnp.asarray(b1, jnp.float32).reshape(hidden, 1)        # (512, 1)

    w2t = jnp.zeros((Bp, hidden), compute_dtype)
    w2t = w2t.at[:B].set(jnp.asarray(w2, compute_dtype).T)       # (Bp, 512)
    # Padded bins: huge negative bias -> exp()==0, anchor 0 -> no contribution.
    b2c = jnp.full((Bp, 1), -1e9, jnp.float32)
    b2c = b2c.at[:B, 0].set(jnp.asarray(b2, jnp.float32))
    anchors_c = jnp.zeros((Bp, 1), jnp.float32)
    anchors_c = anchors_c.at[:B, 0].set(jnp.asarray(anchor_points, jnp.float32))
    return w1t, b1c, w2t, b2c, anchors_c


@functools.partial(jax.jit, static_argnames=("tile_p",))
def classifier_forward(x_nchw, w1t, b1c, w2t, b2c, anchors_c, *, tile_p=None):
    """Inference-mode forward of Classifier (returns the expectation map).

    x_nchw: (N, C, H, W) backbone feature map (f32 or bf16)
    w1t/b1c/w2t/b2c/anchors_c: output of prepare_classifier_params
    returns: (N, 1, H, W) float32
    """
    N, C, H, W = x_nchw.shape
    hidden, Cw = w1t.shape
    assert Cw == C, (Cw, C)
    Bp = w2t.shape[0]
    HW = H * W

    # Pixels-on-lanes: NCHW -> (N, C, H*W) is a free, contiguous reshape.
    x = x_nchw.reshape(N, C, HW)

    x_bytes = jnp.dtype(x.dtype).itemsize
    w_bytes = jnp.dtype(w1t.dtype).itemsize

    # ---- tile selection -----------------------------------------------------
    if tile_p is None:
        # Fatter tiles when C is small (per-step overhead dominates otherwise);
        # ~8 MiB VMEM budget for the pipelined slab + intermediates.
        per_lane = 2 * C * x_bytes + hidden * (4 + w_bytes) + 8 * Bp + 16
        tile_p = int(min(4096, max(256, (8 * 1024 * 1024) // per_lane)))
        tile_p = max(256, (tile_p // 256) * 256)   # 256-lane multiple for the MXU
    tp = min(tile_p, _round_up(HW, 128))
    if N == 1 and pl.cdiv(HW, tp) < 2 and HW > 128:
        # v7x has 2 TensorCores: keep >= 2 programs on the parallel grid.
        tp = _round_up(pl.cdiv(HW, 2), 128)
    n_p = pl.cdiv(HW, tp)        # ragged tail handled by Pallas (masked writes)
    grid = (N, n_p)

    # ---- VMEM budget: raise the scoped limit only when the tiles need it ----
    est = (2 * C * tp * x_bytes                              # x slab (double-buffered)
           + hidden * tp * (4 + w_bytes)                     # h (f32) + compute-dtype copy
           + hidden * C * w_bytes + Bp * hidden * w_bytes    # resident weights
           + (hidden + 2 * Bp) * 128 * 4                     # lane-padded bias/anchor cols
           + 2 * tp * 4 + 4 * Bp * tp * 4)                   # output + softmax temporaries
    vmem_limit = None
    if est > 12 * 1024 * 1024:
        vmem_limit = int(min(max(2 * est, 32 * 1024 * 1024), 96 * 1024 * 1024))

    # Grid-invariant operands: fetched once, no need to double-buffer them.
    const = dict(pipeline_mode=pl.Buffered(1))

    exp_flat = pl.pallas_call(
        _classifier_kernel,
        out_shape=jax.ShapeDtypeStruct((N, 1, HW), jnp.float32),
        grid_spec=pltpu.PrefetchScalarGridSpec(
            num_scalar_prefetch=0,
            grid=grid,
            in_specs=[
                pl.BlockSpec((1, C, tp), lambda n, p: (n, 0, p)),         # x slab
                pl.BlockSpec((hidden, C), lambda n, p: (0, 0), **const),  # w1^T
                pl.BlockSpec((hidden, 1), lambda n, p: (0, 0), **const),  # b1
                pl.BlockSpec((Bp, hidden), lambda n, p: (0, 0), **const), # w2^T
                pl.BlockSpec((Bp, 1), lambda n, p: (0, 0), **const),      # b2
                pl.BlockSpec((Bp, 1), lambda n, p: (0, 0), **const),      # anchors
            ],
            # Lane-dense output: last dim is a multiple of 128 -> unmasked stores.
            out_specs=pl.BlockSpec((1, 1, tp), lambda n, p: (n, 0, p)),
        ),
        compiler_params=pltpu.CompilerParams(
            dimension_semantics=("parallel", "parallel"),
            vmem_limit_bytes=vmem_limit),
    )(x, w1t, b1c, w2t, b2c, anchors_c)

    return exp_flat.reshape(N, 1, H, W)


def _reference_forward(x_nchw, w1, b1, w2, b2, anchor_points):
    """Plain-JAX reference mirroring the PyTorch forward (eval mode), exact f32."""
    N, C, H, W = x_nchw.shape
    xf = jnp.transpose(x_nchw, (0, 2, 3, 1)).reshape(-1, C).astype(jnp.float32)
    h = jnp.maximum(jnp.dot(xf, w1, precision=lax.Precision.HIGHEST) + b1, 0.0)
    logits = jnp.dot(h, w2, precision=lax.Precision.HIGHEST) + b2
    probs = jax.nn.softmax(logits, axis=-1)
    exp = jnp.sum(probs * anchor_points[None, :], axis=-1, keepdims=True)
    return jnp.transpose(exp.reshape(N, H, W, 1), (0, 3, 1, 2))


if __name__ == "__main__":
    # Small shapes consistent with the module: backbone feature map N=2, C=4
    # channels (!= 512 -> two-layer head), H=W=16; 4 bins with centered anchors.
    N, C, H, W = 2, 4, 16, 16
    HIDDEN = 512
    bins = [(0.0, 1.0), (1.0, 2.0), (2.0, 3.0), (3.0, 4.0)]
    anchor_points = jnp.array([0.5, 1.5, 2.5, 3.5], dtype=jnp.float32)
    B = len(bins)

    key = jax.random.PRNGKey(0)
    kx, kw1, kb1, kw2, kb2 = jax.random.split(key, 5)

    x = jax.random.normal(kx, (N, C, H, W), dtype=jnp.float32)
    # 1x1 conv weights stored as channels-last matmul matrices (C,512), (512,B).
    w1 = jax.random.normal(kw1, (C, HIDDEN), dtype=jnp.float32) * (2.0 / C) ** 0.5
    b1 = jax.random.normal(kb1, (HIDDEN,), dtype=jnp.float32) * 0.05
    w2 = jax.random.normal(kw2, (HIDDEN, B), dtype=jnp.float32) * (2.0 / HIDDEN) ** 0.5
    b2 = jax.random.normal(kb2, (B,), dtype=jnp.float32) * 0.05

    ref = _reference_forward(x, w1, b1, w2, b2, anchor_points)

    # 1) f32 compute path: tight check against the exact f32 reference.
    p_f32 = prepare_classifier_params(w1, b1, w2, b2, anchor_points,
                                      compute_dtype=jnp.float32)
    out_f32 = jax.block_until_ready(classifier_forward(x, *p_f32))
    assert out_f32.shape == (N, 1, H, W), out_f32.shape
    assert jnp.allclose(out_f32, ref, atol=1e-3, rtol=1e-3), \
        "f32 kernel mismatch vs reference"

    # 2) bf16 fast path (production default): bf16 activations + weights with
    #    f32 accumulation; tolerance reflects the expected bf16 quantization
    #    error of the two matmuls (not a kernel bug).
    p_bf16 = prepare_classifier_params(w1, b1, w2, b2, anchor_points,
                                       compute_dtype=jnp.bfloat16)
    out_bf16 = jax.block_until_ready(
        classifier_forward(x.astype(jnp.bfloat16), *p_bf16))
    assert out_bf16.shape == (N, 1, H, W), out_bf16.shape
    assert jnp.allclose(out_bf16, ref, atol=3e-2, rtol=3e-2), \
        "bf16 kernel mismatch vs reference"

    print("KERNEL_OK")
</pallas_src>

<mosaic_0001>
module attributes {stable_mosaic.version = 11 : i64} {
  func.func @_classifier_kernel(%arg0: i32, %arg1: i32, %arg2: memref<1x4x256xf32, #tpu.memory_space<vmem>>, %arg3: memref<512x4xf32, #tpu.memory_space<vmem>>, %arg4: memref<512x1xf32, #tpu.memory_space<vmem>>, %arg5: memref<8x512xf32, #tpu.memory_space<vmem>>, %arg6: memref<8x1xf32, #tpu.memory_space<vmem>>, %arg7: memref<8x1xf32, #tpu.memory_space<vmem>>, %arg8: memref<1x1x256xf32, #tpu.memory_space<vmem>>) attributes {dimension_semantics = [#tpu.dimension_semantics<parallel>, #tpu.dimension_semantics<parallel>], iteration_bounds = array<i64: 2, 1>, scalar_prefetch = 0 : i64, scratch_operands = 0 : i64, tpu.core_type = #tpu.core_type<tc>, window_params = [{transform_indices = @transform_0, window_bounds = array<i64: 1, 4, 256>}, {pipeline_mode = #tpu.pipeline_mode<synchronous>, transform_indices = @transform_1, window_bounds = array<i64: 512, 4>}, {pipeline_mode = #tpu.pipeline_mode<synchronous>, transform_indices = @transform_2, window_bounds = array<i64: 512, 1>}, {pipeline_mode = #tpu.pipeline_mode<synchronous>, transform_indices = @transform_3, window_bounds = array<i64: 8, 512>}, {pipeline_mode = #tpu.pipeline_mode<synchronous>, transform_indices = @transform_4, window_bounds = array<i64: 8, 1>}, {pipeline_mode = #tpu.pipeline_mode<synchronous>, transform_indices = @transform_5, window_bounds = array<i64: 8, 1>}, {transform_indices = @transform_6, window_bounds = array<i64: 1, 1, 256>}]} {
    %c0 = arith.constant 0 : index
    %c0_0 = arith.constant 0 : index
    %c0_1 = arith.constant 0 : index
    %0 = vector.load %arg2[%c0, %c0_0, %c0_1] : memref<1x4x256xf32, #tpu.memory_space<vmem>>, vector<1x4x256xf32>
    %1 = vector.shape_cast %0 : vector<1x4x256xf32> to vector<4x256xf32>
    %c0_2 = arith.constant 0 : index
    %c0_3 = arith.constant 0 : index
    %2 = vector.load %arg3[%c0_2, %c0_3] : memref<512x4xf32, #tpu.memory_space<vmem>>, vector<512x4xf32>
    %cst = arith.constant dense<0.000000e+00> : vector<512x256xf32>
    %3 = tpu.matmul %2, %1, %cst {dimension_numbers = #tpu.dot_dimension_numbers<[1], [0], [0], [1], [0, 0, 1, 1], [], []>, precision = #tpu.contract_precision<fp32>} : vector<512x4xf32>, vector<4x256xf32>, vector<512x256xf32> -> vector<512x256xf32>
    %c0_4 = arith.constant 0 : index
    %c0_5 = arith.constant 0 : index
    %4 = vector.load %arg4[%c0_4, %c0_5] : memref<512x1xf32, #tpu.memory_space<vmem>>, vector<512x1xf32>
    %5 = vector.broadcast %4 : vector<512x1xf32> to vector<512x256xf32>
    %6 = arith.addf %3, %5 : vector<512x256xf32>
    %cst_6 = arith.constant 0.000000e+00 : f32
    %7 = vector.broadcast %cst_6 : f32 to vector<512x256xf32>
    %8 = arith.maximumf %6, %7 : vector<512x256xf32>
    %c0_7 = arith.constant 0 : index
    %c0_8 = arith.constant 0 : index
    %9 = vector.load %arg5[%c0_7, %c0_8] : memref<8x512xf32, #tpu.memory_space<vmem>>, vector<8x512xf32>
    %cst_9 = arith.constant dense<0.000000e+00> : vector<8x256xf32>
    %10 = tpu.matmul %9, %8, %cst_9 {dimension_numbers = #tpu.dot_dimension_numbers<[1], [0], [0], [1], [0, 0, 1, 1], [], []>, precision = #tpu.contract_precision<fp32>} : vector<8x512xf32>, vector<512x256xf32>, vector<8x256xf32> -> vector<8x256xf32>
    %c0_10 = arith.constant 0 : index
    %c0_11 = arith.constant 0 : index
    %11 = vector.load %arg6[%c0_10, %c0_11] : memref<8x1xf32, #tpu.memory_space<vmem>>, vector<8x1xf32>
    %12 = vector.broadcast %11 : vector<8x1xf32> to vector<8x256xf32>
    %13 = arith.addf %10, %12 : vector<8x256xf32>
    %cst_12 = arith.constant dense<0xFF800000> : vector<256xf32>
    %14 = vector.multi_reduction <maximumf>, %13, %cst_12 [0] : vector<8x256xf32> to vector<256xf32>
    %15 = vector.shape_cast %14 : vector<256xf32> to vector<1x256xf32>
    %16 = vector.broadcast %15 : vector<1x256xf32> to vector<8x256xf32>
    %17 = arith.subf %13, %16 : vector<8x256xf32>
    %18 = math.exp %17 : vector<8x256xf32>
    %c0_13 = arith.constant 0 : index
    %c0_14 = arith.constant 0 : index
    %19 = vector.load %arg7[%c0_13, %c0_14] : memref<8x1xf32, #tpu.memory_space<vmem>>, vector<8x1xf32>
    %20 = vector.broadcast %19 : vector<8x1xf32> to vector<8x256xf32>
    %21 = arith.mulf %18, %20 : vector<8x256xf32>
    %cst_15 = arith.constant dense<0.000000e+00> : vector<256xf32>
    %22 = vector.multi_reduction <add>, %21, %cst_15 [0] : vector<8x256xf32> to vector<256xf32>
    %23 = vector.shape_cast %22 : vector<256xf32> to vector<1x256xf32>
    %cst_16 = arith.constant dense<0.000000e+00> : vector<256xf32>
    %24 = vector.multi_reduction <add>, %18, %cst_16 [0] : vector<8x256xf32> to vector<256xf32>
    %25 = vector.shape_cast %24 : vector<256xf32> to vector<1x256xf32>
    %26 = arith.divf %23, %25 : vector<1x256xf32>
    %c0_17 = arith.constant 0 : index
    %c0_18 = arith.constant 0 : index
    %c0_19 = arith.constant 0 : index
    %27 = vector.load %arg8[%c0_17, %c0_18, %c0_19] : memref<1x1x256xf32, #tpu.memory_space<vmem>>, vector<1x1x256xf32>
    %28 = vector.shape_cast %27 : vector<1x1x256xf32> to vector<1x256xf32>
    %29 = vector.shape_cast %26 : vector<1x256xf32> to vector<1x1x256xf32>
    tpu.vector_store %arg8[%c0_17, %c0_18, %c0_19], %29 {strides = array<i32>} : memref<1x1x256xf32, #tpu.memory_space<vmem>>, vector<1x1x256xf32>,
    return
  }
  func.func @transform_0(%arg0: i32, %arg1: i32) -> (i32, i32, i32) {
    %c0_i32 = arith.constant 0 : i32
    %c0_i32_0 = arith.constant 0 : i32
    return %arg0, %c0_i32, %arg1 : i32, i32, i32
  }
  func.func @transform_1(%arg0: i32, %arg1: i32) -> (i32, i32) {
    %c0_i32 = arith.constant 0 : i32
    %c0_i32_0 = arith.constant 0 : i32
    %c0_i32_1 = arith.constant 0 : i32
    return %c0_i32, %c0_i32_0 : i32, i32
  }
  func.func @transform_2(%arg0: i32, %arg1: i32) -> (i32, i32) {
    %c0_i32 = arith.constant 0 : i32
    %c0_i32_0 = arith.constant 0 : i32
    %c0_i32_1 = arith.constant 0 : i32
    return %c0_i32, %c0_i32_0 : i32, i32
  }
  func.func @transform_3(%arg0: i32, %arg1: i32) -> (i32, i32) {
    %c0_i32 = arith.constant 0 : i32
    %c0_i32_0 = arith.constant 0 : i32
    %c0_i32_1 = arith.constant 0 : i32
    return %c0_i32, %c0_i32_0 : i32, i32
  }
  func.func @transform_4(%arg0: i32, %arg1: i32) -> (i32, i32) {
    %c0_i32 = arith.constant 0 : i32
    %c0_i32_0 = arith.constant 0 : i32
    %c0_i32_1 = arith.constant 0 : i32
    return %c0_i32, %c0_i32_0 : i32, i32
  }
  func.func @transform_5(%arg0: i32, %arg1: i32) -> (i32, i32) {
    %c0_i32 = arith.constant 0 : i32
    %c0_i32_0 = arith.constant 0 : i32
    %c0_i32_1 = arith.constant 0 : i32
    return %c0_i32, %c0_i32_0 : i32, i32
  }
  func.func @transform_6(%arg0: i32, %arg1: i32) -> (i32, i32, i32) {
    %c0_i32 = arith.constant 0 : i32
    %c0_i32_0 = arith.constant 0 : i32
    return %arg0, %c0_i32, %arg1 : i32, i32, i32
  }
}

</mosaic_0001>

<bundles_post_ra>
// kernel: classifier_forward.1
= control target key start
LH: loop header
LB: loop body
LE: loop exit
PB: predicated region body
PF: predicated region fallthrough
CT: control target
= control target key end

     0   :  { %s7465_s21 = smov 0   ;;  %s7467_s22 = smov 0   ;;  %s13274_s0 = inlined_call_operand.vmem [shape: f32[2,4,256], index: 0, kind: input, shape index: {}]   ;;  %s13275_s1 = inlined_call_operand.vmem [shape: f32[512,4], index: 1, kind: input, shape index: {}]   ;;  %s13276_s2 = inlined_call_operand.vmem [shape: f32[512,1], index: 2, kind: input, shape index: {}]   ;;  %s13277_s3 = inlined_call_operand.vmem [shape: f32[8,512], index: 3, kind: input, shape index: {}]   ;;  %s13278_s4 = inlined_call_operand.vmem [shape: f32[8,1], index: 4, kind: input, shape index: {}]   ;;  %s13279_s5 = inlined_call_operand.vmem [shape: f32[8,1], index: 5, kind: input, shape index: {}]   ;;  %s13280_s6 = inlined_call_operand.vmem [shape: f32[2,1,256], index: 6, kind: output, shape index: {}]  }
   0x1   :  { %s7469_s23 = smov 0  }
   0x2 LB: > { %s28_s24 = sadd.s32 1, %s7421_s22  ;;  %p7358_p0 = scmp.ge.s32.totalorder %s7425_s23, 1  ;;  %s7425_s23 = sphi %s7469_s23, %s16_s23   ;;  %s7421_s22 = sphi %s7467_s22, %s15883_s22   ;;  %s7417_s21 = sphi %s7465_s21, %s15882_s21  }
   0x3   : > { %p30_p1 = scmp.ge.s32.totalorder %s28_s24, 2  ;;  %p233_p2 = scmp.lt.s32.totalorder %s7425_s23, 3 }
   0x5   : > { %s15885_s24 = smov (%p30_p1, %s28_s24), 0  ;;  %p234_p3 = pnand %p7358_p0, %p233_p2 }
   0x7   : > { %237 = sbr.rel (%p234_p3) target bundleno = 1535 (0x5ff), region = 44 }
   0xc   : > { %p271_p4 = scmp.lt.s32.totalorder %s7417_s21, 1  ;;  %v290_v0 = vld [vmem:[%s13275_s1] sm:$0xff]  ;;  %vm740_vm0 = vcmask 31744   ;;  %v291_v1 = vld [vmem:[%s13275_s1 + $0x8] sm:$0xff]  ;;  %v13304_v2 = vmov 0.0   ;;  %v292_v5 = vld [vmem:[%s13275_s1 + $0x10] sm:$0xff] }
   0xd   : > { %1004 = vmatprep.mubr.f32.mxu0 %v13304_v2  ;;  %v742_v3 = vsel %vm740_vm0, %v290_v0, 0  ;;  %v745_v4 = vsel %vm740_vm0, %v291_v1, 0  ;;  %1783 = vmatprep.mubr.f32.mxu1 %v13304_v2  ;;  %v293_v6 = vld [vmem:[%s13275_s1 + $0x18] sm:$0xff]  ;;  %v748_v9 = vsel %vm740_vm0, %v292_v5, 0  ;;  %v7428_v11 = vmov 0   ;;  %v294_v13 = vld [vmem:[%s13275_s1 + $0x20] sm:$0xff] }
   0xe   : > { %s15887_s21 = smov (!%p271_p4, %s7417_s21), 1  ;;  %v7501_v7 = vand.u32 4294901760, %v742_v3  ;;  %v7503_v8 = vand.u32 4294901760, %v745_v4  ;;  %v751_v10 = vsel %vm740_vm0, %v293_v6, 0  ;;  %7393 = vset.pattern.permute.xlu1 %v7428_v11  ;;  %7392 = vset.pattern.permute.xlu0 %v7428_v11  ;;  %v7507_v12 = vand.u32 4294901760, %v748_v9  ;;  %v295_v18 = vld [vmem:[%s13275_s1 + $0x28] sm:$0xff] }
   0xf   : > { %s7364_s11 = sshll.u32 %s15887_s21, 3  ;;  %vm933_vm1 = vcmask 1043456   ;;  %v7525_v17 = vand.u32 4294901760, %v751_v10  ;;  %v367_v19 = vld [vmem:[%s13276_s2 + $0x68] sm:$0xff]  ;;  %v754_v23 = vsel %vm740_vm0, %v294_v13, 0  ;;  %v369_v24 = vld [vmem:[%s13276_s2 + $0x78] sm:$0xff] }
  0x10   : > { %14016 = vst [vmem:[#allocation2_spill] sm:$0xff] %v7501_v7  ;;  %14017 = vst [vmem:[#allocation3_spill] sm:$0xff] %v7503_v8  ;;  %v7514_v14 = vsub.f32 %v742_v3, %v7501_v7  ;;  %v7517_v15 = vsub.f32 %v745_v4, %v7503_v8  ;;  %s278_s14 = scalar_lea.vmem %s13274_s0, %s7364_s11  ;;  %v7523_v16 = vsub.f32 %v748_v9, %v7507_v12  ;;  %485 = vperm.xlu1 %7393, %v367_v19   ;;  %v366_v27 = vld [vmem:[%s13276_s2 + $0x60] sm:$0xff]  ;;  %v368_v31 = vld [vmem:[%s13276_s2 + $0x70] sm:$0xff]  ;;  %s7361_s13 = sshll.u32 %s15887_s21, 1 }
  0x11   : > { %14018 = vst [vmem:[#allocation4_spill] sm:$0xff] %v7507_v12  ;;  %14019 = vst [vmem:[#allocation5_spill] sm:$0xff] %v7525_v17  ;;  %v289_v20 = vld [vmem:[%s278_s14] sm:$0xff]  ;;  %495 = vperm.xlu0 %7392, %v369_v24   ;;  %v757_v30 = vsel %vm740_vm0, %v295_v18, 0  ;;  %v7555_v34 = vsub.f32 %v751_v10, %v7525_v17  ;;  %v7557_v35 = vand.u32 4294901760, %v754_v23  ;;  %v364_v40 = vld [vmem:[%s13276_s2 + $0x50] sm:$0xff]  ;;  %s287_s16 = scalar_lea.vmem %s13280_s6, %s7361_s13 }
  0x12   : > { %v13301_v21 = vand.u32 4294901760, %v7514_v14  ;;  %v13299_v22 = vand.u32 4294901760, %v7517_v15  ;;  %v739_v25 = vcombine.high %v289_v20, %v289_v20  ;;  %v934_v26 = vsel %vm933_vm1, %v289_v20, 0  ;;  %v296_v43 = vld [vmem:[%s13275_s1 + $0x30] sm:$0xff]  ;;  %v365_v44 = vld [vmem:[%s13276_s2 + $0x58] sm:$0xff]  ;;  %v362_v53 = vld [vmem:[%s13276_s2 + $0x40] sm:$0xff] }
  0x13   : > { %v7543_v28 = vand.u32 4294901760, %v934_v26  ;;  %v13298_v33 = vand.u32 4294901760, %v7523_v16  ;;  %14020 = vst [vmem:[#allocation6_spill] sm:$0xff] %v7557_v35  ;;  %v13297_v45 = vand.u32 4294901760, %v7555_v34  ;;  %v7582_v46 = vsub.f32 %v754_v23, %v7557_v35  ;;  %v297_v55 = vld [vmem:[%s13275_s1 + $0x38] sm:$0xff]  ;;  %v363_v56 = vld [vmem:[%s13276_s2 + $0x48] sm:$0xff] }
  0x14   : > { %v1008_v29 = vsub.f32 %v7514_v14, %v13301_v21  ;;  %v936_v32 = vsel %vm933_vm1, %v739_v25, 0  ;;  %v1019_v38 = vsub.f32 %v7517_v15, %v13299_v22  ;;  %480 = vperm.xlu1 %7393, %v366_v27   ;;  %v7584_v47 = vand.u32 4294901760, %v757_v30  ;;  %v298_v1 = vld [vmem:[%s13275_s1 + $0x40] sm:$0xff]  ;;  %v360_v5 = vld [vmem:[%s13276_s2 + $0x30] sm:$0xff]  ;;  %v361_v6 = vld [vmem:[%s13276_s2 + $0x38] sm:$0xff] }
  0x15   : > { %v7559_v36 = vand.u32 4294901760, %v936_v32  ;;  %v7565_v39 = vsub.f32 %v934_v26, %v7543_v28  ;;  %490 = vperm.xlu0 %7392, %v368_v31   ;;  %v1030_v51 = vsub.f32 %v7523_v16, %v13298_v33  ;;  %v760_v52 = vsel %vm740_vm0, %v296_v43, 0  ;;  %v299_v18 = vld [vmem:[%s13275_s1 + $0x48] sm:$0xff]  ;;  %v358_v23 = vld [vmem:[%s13276_s2 + $0x20] sm:$0xff] }
  0x16   : > { %v1009_v37 = vand.u32 4294901760, %v1008_v29  ;;  %14021 = vst [vmem:[#allocation7_spill] sm:$0xff] %v7584_v47  ;;  %v1020_v48 = vand.u32 4294901760, %v1019_v38  ;;  %v13295_v58 = vand.u32 4294901760, %v7582_v46  ;;  %v7605_v59 = vsub.f32 %v757_v30, %v7584_v47  ;;  %v359_v24 = vld [vmem:[%s13276_s2 + $0x28] sm:$0xff]  ;;  %v300_v30 = vld [vmem:[%s13275_s1 + $0x50] sm:$0xff] }
  0x17   : > { %969 = vmatprep.subr.mxu0 %v7559_v36  ;;  %v1740_v41 = vsub.f32 %v936_v32, %v7559_v36  ;;  %v13302_v42 = vand.u32 4294901760, %v7565_v39  ;;  %v1031_v61 = vand.u32 4294901760, %v1030_v51  ;;  %v1041_v62 = vsub.f32 %v7555_v34, %v13297_v45  ;;  %v356_v32 = vld [vmem:[%s13276_s2 + $0x10] sm:$0xff]  ;;  %v354_v51 = vld [vmem:[%s13276_s2] sm:$0xff]  ;;  %v315_v22 = vld [vmem:[%s13275_s1 + $0xc8] sm:$0xff] }
  0x18   : > { %971 = vmatpush1.msra.mxu0 %v7543_v28  ;;  %470 = vperm.xlu1 %7393, %v364_v40   ;;  %v7611_v63 = vand.u32 4294901760, %v760_v52  ;;  %v763_v0 = vsel %vm740_vm0, %v297_v55, 0  ;;  %v1052_v3 = vsub.f32 %v7582_v46, %v13295_v58  ;;  %v13293_v4 = vand.u32 4294901760, %v7605_v59  ;;  %v395_v58 = vld [vmem:[%s13276_s2 + $0x148] sm:$0xff] }
  0x19   : > { %1010 = vmatmul.mubr.f32.vlgmr.msra.gmra.mxu0 %v1009_v37  ;;  %v1741_v49 = vand.u32 4294901760, %v1740_v41  ;;  %v1748_v50 = vsub.f32 %v7565_v39, %v13302_v42  ;;  %475 = vperm.xlu0 %7392, %v365_v44   ;;  %v1042_v9 = vand.u32 4294901760, %v1041_v62  ;;  %v7632_v11 = vand.u32 4294901760, %v763_v0  ;;  %v357_v37 = vld [vmem:[%s13276_s2 + $0x18] sm:$0xff]  ;;  %v391_v21 = vld [vmem:[%s13276_s2 + $0x128] sm:$0xff] }
  0x1a   : > { %1015 = vmatprep.mubr.f32.mxu0 %v13304_v2  ;;  %2264 = vmatprep.subr.mxu0 %v1740_v41  ;;  %14022 = vst [vmem:[#allocation8_spill] sm:$0xff] %v7611_v63  ;;  %v7630_v10 = vsub.f32 %v760_v52, %v7611_v63  ;;  %v766_v13 = vsel %vm740_vm0, %v298_v1, 0  ;;  %v1053_v19 = vand.u32 4294901760, %v1052_v3  ;;  %v1063_v20 = vsub.f32 %v7605_v59, %v13293_v4  ;;  %v301_v44 = vld [vmem:[%s13275_s1 + $0x58] sm:$0xff]  ;;  %v355_v52 = vld [vmem:[%s13276_s2 + $0x8] sm:$0xff] }
  0x1b   : > { %v1742_v54 = vsub.f32 %v1740_v41, %v1741_v49  ;;  %v1749_v57 = vand.u32 4294901760, %v1748_v50  ;;  %2267 = vmatpush1.msra.mxu0 %v7565_v39  ;;  %14023 = vst [vmem:[#allocation9_spill] sm:$0xff] %v7632_v11  ;;  %v7653_v26 = vsub.f32 %v763_v0, %v7632_v11  ;;  %v7655_v27 = vand.u32 4294901760, %v766_v13  ;;  %v313_v4 = vld [vmem:[%s13275_s1 + $0xb8] sm:$0xff] }
  0x1c   : > { %460 = vperm.xlu1 %7393, %v362_v53   ;;  %3489 = vmatprep.subr.mxu0 %v1741_v49  ;;  %v13292_v25 = vand.u32 4294901760, %v7630_v10  ;;  %v769_v29 = vsel %vm740_vm0, %v299_v18, 0  ;;  %v1064_v38 = vand.u32 4294901760, %v1063_v20  ;;  %v775_v50 = vsel %vm740_vm0, %v301_v44, 0  ;;  %v383_v18 = vld [vmem:[%s13276_s2 + $0xe8] sm:$0xff] }
  0x1d   : > { %1021 = vmatmul.mubr.f32.gmra.mxu0 %v1020_v48  ;;  %v1743_v60 = vand.u32 4294901760, %v1742_v54  ;;  %465 = vperm.xlu0 %7392, %v363_v56   ;;  %14024 = vst [vmem:[#allocation10_spill] sm:$0xff] %v7655_v27  ;;  %v7663_v31 = vand.u32 4294901760, %v769_v29  ;;  %v13291_v41 = vand.u32 4294901760, %v7653_v26  ;;  %v7678_v43 = vsub.f32 %v766_v13, %v7655_v27  ;;  %v382_v13 = vld [vmem:[%s13276_s2 + $0xe0] sm:$0xff] }
  0x1e   : > { %1026 = vmatprep.mubr.f32.mxu0 %v13304_v2  ;;  %v1074_v40 = vsub.f32 %v7630_v10, %v13292_v25  ;;  %v772_v48 = vsel %vm740_vm0, %v300_v30, 0  ;;  %v304_v30 = vld [vmem:[%s13275_s1 + $0x70] sm:$0xff] }
  0x1f   : > { %1744 = vmatprep.subr.mxu1 %v1743_v60  ;;  %14025 = vst [vmem:[#allocation11_spill] sm:$0xff] %v7663_v31  ;;  %v7687_v49 = vsub.f32 %v769_v29, %v7663_v31  ;;  %v1085_v54 = vsub.f32 %v7653_v26, %v13291_v41  ;;  %v13289_v55 = vand.u32 4294901760, %v7678_v43  ;;  %v7702_v56 = vand.u32 4294901760, %v772_v48  ;;  %v384_v60 = vld [vmem:[%s13276_s2 + $0xf0] sm:$0xff]  ;;  %v397_v41 = vld [vmem:[%s13276_s2 + $0x158] sm:$0xff] }
  0x20   : > { %1750 = vmatpush1.msra.mxu1 %v1749_v57  ;;  %450 = vperm.xlu1 %7393, %v360_v5   ;;  %v1075_v53 = vand.u32 4294901760, %v1074_v40  ;;  %v7709_v57 = vand.u32 4294901760, %v775_v50 }
  0x21   : > { %1032 = vmatmul.mubr.f32.gmra.mxu0 %v1031_v61  ;;  %1785 = vmatmul.mubr.f32.vlgmr.msra.gmra.mxu1 %v7501_v7  ;;  %14026 = vst [vmem:[#allocation12_spill] sm:$0xff] %v7702_v56  ;;  %v385_v61 = vld [vmem:[%s13276_s2 + $0xf8] sm:$0xff]  ;;  %v1086_v62 = vand.u32 4294901760, %v1085_v54  ;;  %v1096_v0 = vsub.f32 %v7678_v43, %v13289_v55  ;;  %v13287_v1 = vand.u32 4294901760, %v7687_v49  ;;  %v7723_v3 = vsub.f32 %v772_v48, %v7702_v56 }
  0x22   : > { %1037 = vmatprep.mubr.f32.mxu0 %v13304_v2  ;;  %1790 = vmatprep.mubr.f32.mxu1 %v13304_v2  ;;  %14027 = vst [vmem:[#allocation13_spill] sm:$0xff] %v7709_v57 }
  0x23   : > { %455 = vperm.xlu0 %7392, %v361_v6   ;;  %2844 = vmatprep.subr.mxu1 %v7559_v36  ;;  %v303_v6 = vld [vmem:[%s13275_s1 + $0x68] sm:$0xff]  ;;  %v1107_v20 = vsub.f32 %v7687_v49, %v13287_v1 }
  0x24   : > { %440 = vperm.xlu1 %7393, %v358_v23   ;;  %2846 = vmatpush1.msra.mxu1 %v7543_v28  ;;  %v13286_v23 = vand.u32 4294901760, %v7723_v3  ;;  %v781_v29 = vsel %vm740_vm0, %v303_v6, 0  ;;  %v306_v6 = vld [vmem:[%s13275_s1 + $0x80] sm:$0xff] }
  0x25   : > { %1043 = vmatmul.mubr.f32.gmra.mxu0 %v1042_v9  ;;  %1792 = vmatmul.mubr.f32.gmra.mxu1 %v7503_v8  ;;  %v7732_v9 = vsub.f32 %v775_v50, %v7709_v57  ;;  %v1108_v40 = vand.u32 4294901760, %v1107_v20  ;;  %v7767_v50 = vand.u32 4294901760, %v781_v29 }
  0x26   : > { %1048 = vmatprep.mubr.f32.mxu0 %v13304_v2  ;;  %1797 = vmatprep.mubr.f32.mxu1 %v13304_v2  ;;  %v1118_v44 = vsub.f32 %v7723_v3, %v13286_v23 }
  0x27   : > { %445 = vperm.xlu0 %7392, %v359_v24   ;;  %4006 = vmatprep.subr.mxu1 %v7559_v36  ;;  %v302_v36 = vld [vmem:[%s13275_s1 + $0x60] sm:$0xff]  ;;  %14029 = vst [vmem:[#allocation15_spill] sm:$0xff] %v7767_v50 }
  0x28   : > { %430 = vperm.xlu1 %7393, %v356_v32   ;;  %v778_v5 = vsel %vm740_vm0, %v302_v36, 0  ;;  %v13284_v32 = vand.u32 4294901760, %v7732_v9  ;;  %v378_v36 = vld [vmem:[%s13276_s2 + $0xc0] sm:$0xff] }
  0x29   : > { %1054 = vmatmul.mubr.f32.gmra.mxu0 %v1053_v19  ;;  %1799 = vmatmul.mubr.f32.gmra.mxu1 %v7507_v12  ;;  %v1097_v19 = vand.u32 4294901760, %v1096_v0  ;;  %v7745_v24 = vand.u32 4294901760, %v778_v5  ;;  %v7788_v0 = vsub.f32 %v781_v29, %v7767_v50  ;;  %v331_v12 = vld [vmem:[%s13275_s1 + $0x148] sm:$0xff] }
  0x2a   : > { %1059 = vmatprep.mubr.f32.mxu0 %v13304_v2  ;;  %1804 = vmatprep.mubr.f32.mxu1 %v13304_v2 }
  0x2b   : > { %435 = vperm.xlu0 %7392, %v357_v37   ;;  %14028 = vst [vmem:[#allocation14_spill] sm:$0xff] %v7745_v24  ;;  %v380_v37 = vld [vmem:[%s13276_s2 + $0xd0] sm:$0xff]  ;;  %v7765_v48 = vsub.f32 %v778_v5, %v7745_v24 }
  0x2c   : > { %420 = vperm.xlu1 %7393, %v354_v51   ;;  %v305_v51 = vld [vmem:[%s13275_s1 + $0x78] sm:$0xff] }
  0x2d   : > { %1065 = vmatmul.mubr.f32.gmra.mxu0 %v1064_v38  ;;  %1806 = vmatmul.mubr.f32.gmra.mxu1 %v7525_v17  ;;  %v381_v38 = vld [vmem:[%s13276_s2 + $0xd8] sm:$0xff]  ;;  %v787_v54 = vsel %vm740_vm0, %v305_v51, 0 }
  0x2e   : > { %1070 = vmatprep.mubr.f32.mxu0 %v13304_v2  ;;  %1811 = vmatprep.mubr.f32.mxu1 %v13304_v2 }
  0x2f   : > { %425 = vperm.xlu0 %7392, %v355_v52   ;;  %v784_v52 = vsel %vm740_vm0, %v304_v30, 0  ;;  %v13281_v30 = vand.u32 4294901760, %v7788_v0 }
  0x30   : > { %570 = vperm.xlu1 %7393, %v384_v60   ;;  %v379_v60 = vld [vmem:[%s13276_s2 + $0xc8] sm:$0xff]  ;;  %v7790_v5 = vand.u32 4294901760, %v784_v52 }
  0x31   : > { %1076 = vmatmul.mubr.f32.gmra.mxu0 %v1075_v53  ;;  %1813 = vmatmul.mubr.f32.gmra.mxu1 %v7557_v35  ;;  %v1129_v53 = vsub.f32 %v7732_v9, %v13284_v32  ;;  %v329_v35 = vld [vmem:[%s13275_s1 + $0x138] sm:$0xff] }
  0x32   : > { %1081 = vmatprep.mubr.f32.mxu0 %v13304_v2  ;;  %1818 = vmatprep.mubr.f32.mxu1 %v13304_v2  ;;  %14030 = vst [vmem:[#allocation16_spill] sm:$0xff] %v7790_v5 }
  0x33   : > { %575 = vperm.xlu0 %7392, %v385_v61   ;;  %v1119_v61 = vand.u32 4294901760, %v1118_v44  ;;  %v1130_v20 = vand.u32 4294901760, %v1129_v53  ;;  %v375_v53 = vld [vmem:[%s13276_s2 + $0xa8] sm:$0xff] }
  0x34   : > { %560 = vperm.xlu1 %7393, %v382_v13   ;;  %v7797_v13 = vand.u32 4294901760, %v787_v54 }
  0x35   : > { %1087 = vmatmul.mubr.f32.gmra.mxu0 %v1086_v62  ;;  %1820 = vmatmul.mubr.f32.gmra.mxu1 %v7584_v47  ;;  %v13283_v62 = vand.u32 4294901760, %v7765_v48 }
  0x36   : > { %1092 = vmatprep.mubr.f32.mxu0 %v13304_v2  ;;  %1825 = vmatprep.mubr.f32.mxu1 %v13304_v2  ;;  %14031 = vst [vmem:[#allocation17_spill] sm:$0xff] %v7797_v13  ;;  %v7820_v44 = vsub.f32 %v787_v54, %v7797_v13 }
  0x37   : > { %565 = vperm.xlu0 %7392, %v383_v18   ;;  %v376_v18 = vld [vmem:[%s13276_s2 + $0xb0] sm:$0xff]  ;;  %v1140_v29 = vsub.f32 %v7765_v48, %v13283_v62  ;;  %v371_v62 = vld [vmem:[%s13276_s2 + $0x88] sm:$0xff] }
  0x38   : > { %550 = vperm.xlu1 %7393, %v380_v37   ;;  %v7811_v37 = vsub.f32 %v784_v52, %v7790_v5  ;;  %14032 = vst [vmem:[#allocation18_spill] sm:$0xff] %v7820_v44  ;;  %v374_v52 = vld [vmem:[%s13276_s2 + $0xa0] sm:$0xff] }
  0x39   : > { %1098 = vmatmul.mubr.f32.gmra.mxu0 %v1097_v19  ;;  %1827 = vmatmul.mubr.f32.gmra.mxu1 %v7611_v63  ;;  %v377_v19 = vld [vmem:[%s13276_s2 + $0xb8] sm:$0xff] }
  0x3a   : > { %1103 = vmatprep.mubr.f32.mxu0 %v13304_v2  ;;  %1832 = vmatprep.mubr.f32.mxu1 %v13304_v2  ;;  %v13282_v54 = vand.u32 4294901760, %v7811_v37 }
  0x3b   : > { %555 = vperm.xlu0 %7392, %v381_v38   ;;  %v307_v38 = vld [vmem:[%s13275_s1 + $0x88] sm:$0xff] }
  0x3c   : > { %540 = vperm.xlu1 %7393, %v378_v36   ;;  %v793_v51 = vsel %vm740_vm0, %v307_v38, 0  ;;  %v1141_v36 = vand.u32 4294901760, %v1140_v29  ;;  %v1162_v38 = vsub.f32 %v7811_v37, %v13282_v54 }
  0x3d   : > { %1109 = vmatmul.mubr.f32.gmra.mxu0 %v1108_v40  ;;  %1834 = vmatmul.mubr.f32.gmra.mxu1 %v7632_v11  ;;  %v790_v40 = vsel %vm740_vm0, %v306_v6, 0  ;;  %v308_v6 = vld [vmem:[%s13275_s1 + $0x90] sm:$0xff] }
  0x3e   : > { %1114 = vmatprep.mubr.f32.mxu0 %v13304_v2  ;;  %1839 = vmatprep.mubr.f32.mxu1 %v13304_v2  ;;  %v1163_v32 = vand.u32 4294901760, %v1162_v38  ;;  %v401_v38 = vld [vmem:[%s13276_s2 + $0x178] sm:$0xff] }
  0x3f   : > { %545 = vperm.xlu0 %7392, %v379_v60   ;;  %v1151_v60 = vsub.f32 %v7788_v0, %v13281_v30  ;;  %v309_v30 = vld [vmem:[%s13275_s1 + $0x98] sm:$0xff] }
  0x40   : > { %530 = vperm.xlu1 %7393, %v376_v18   ;;  %v7841_v18 = vand.u32 4294901760, %v793_v51  ;;  %v799_v54 = vsel %vm740_vm0, %v309_v30, 0  ;;  %v310_v30 = vld [vmem:[%s13275_s1 + $0xa0] sm:$0xff] }
  0x41   : > { %1120 = vmatmul.mubr.f32.gmra.mxu0 %v1119_v61  ;;  %1841 = vmatmul.mubr.f32.gmra.mxu1 %v7655_v27  ;;  %v7834_v61 = vand.u32 4294901760, %v790_v40  ;;  %v1152_v29 = vand.u32 4294901760, %v1151_v60  ;;  %v802_v1 = vsel %vm740_vm0, %v310_v30, 0 }
  0x42   : > { %1125 = vmatprep.mubr.f32.mxu0 %v13304_v2  ;;  %1846 = vmatprep.mubr.f32.mxu1 %v13304_v2  ;;  %14034 = vst [vmem:[#allocation20_spill] sm:$0xff] %v7841_v18  ;;  %v7864_v60 = vsub.f32 %v793_v51, %v7841_v18 }
  0x43   : > { %535 = vperm.xlu0 %7392, %v377_v19   ;;  %14033 = vst [vmem:[#allocation19_spill] sm:$0xff] %v7834_v61  ;;  %v372_v19 = vld [vmem:[%s13276_s2 + $0x90] sm:$0xff] }
  0x44   : > { %520 = vperm.xlu1 %7393, %v374_v52   ;;  %v13285_v52 = vand.u32 4294901760, %v7820_v44  ;;  %14036 = vst [vmem:[#allocation22_spill] sm:$0xff] %v7864_v60 }
  0x45   : > { %1131 = vmatmul.mubr.f32.gmra.mxu0 %v1130_v20  ;;  %1848 = vmatmul.mubr.f32.gmra.mxu1 %v7663_v31  ;;  %v373_v20 = vld [vmem:[%s13276_s2 + $0x98] sm:$0xff] }
  0x46   : > { %1136 = vmatprep.mubr.f32.mxu0 %v13304_v2  ;;  %1853 = vmatprep.mubr.f32.mxu1 %v13304_v2  ;;  %v325_v31 = vld [vmem:[%s13275_s1 + $0x118] sm:$0xff] }
  0x47   : > { %525 = vperm.xlu0 %7392, %v375_v53   ;;  %v7855_v53 = vsub.f32 %v790_v40, %v7834_v61  ;;  %v370_v40 = vld [vmem:[%s13276_s2 + $0x80] sm:$0xff] }
  0x48   : > { %510 = vperm.xlu1 %7393, %v372_v19  }
  0x49   : > { %1142 = vmatmul.mubr.f32.gmra.mxu0 %v1141_v36  ;;  %1855 = vmatmul.mubr.f32.gmra.mxu1 %v7702_v56  ;;  %14035 = vst [vmem:[#allocation21_spill] sm:$0xff] %v7855_v53  ;;  %v796_v36 = vsel %vm740_vm0, %v308_v6, 0  ;;  %v1173_v6 = vsub.f32 %v7820_v44, %v13285_v52  ;;  %v13288_v51 = vand.u32 4294901760, %v7855_v53 }
  0x4a   : > { %1147 = vmatprep.mubr.f32.mxu0 %v13304_v2  ;;  %1860 = vmatprep.mubr.f32.mxu1 %v13304_v2  ;;  %v7878_v19 = vand.u32 4294901760, %v796_v36 }
  0x4b   : > { %515 = vperm.xlu0 %7392, %v373_v20   ;;  %v7885_v20 = vand.u32 4294901760, %v799_v54  ;;  %v1174_v52 = vand.u32 4294901760, %v1173_v6  ;;  %v1184_v23 = vsub.f32 %v7855_v53, %v13288_v51  ;;  %v399_v51 = vld [vmem:[%s13276_s2 + $0x168] sm:$0xff] }
  0x4c   : > { %14037 = vst [vmem:[#allocation23_spill] sm:$0xff] %v7878_v19  ;;  %500 = vperm.xlu1 %7393, %v370_v40   ;;  %v7899_v40 = vsub.f32 %v796_v36, %v7878_v19  ;;  %v398_v36 = vld [vmem:[%s13276_s2 + $0x160] sm:$0xff] }
  0x4d   : > { %1153 = vmatmul.mubr.f32.gmra.mxu0 %v1152_v29  ;;  %1862 = vmatmul.mubr.f32.gmra.mxu1 %v7709_v57  ;;  %14038 = vst [vmem:[#allocation24_spill] sm:$0xff] %v7885_v20  ;;  %v400_v29 = vld [vmem:[%s13276_s2 + $0x170] sm:$0xff]  ;;  %v7908_v6 = vsub.f32 %v799_v54, %v7885_v20  ;;  %v1185_v30 = vand.u32 4294901760, %v1184_v23  ;;  %v7921_v54 = vand.u32 4294901760, %v802_v1 }
  0x4e   : > { %1158 = vmatprep.mubr.f32.mxu0 %v13304_v2  ;;  %1867 = vmatprep.mubr.f32.mxu1 %v13304_v2  ;;  %14039 = vst [vmem:[#allocation25_spill] sm:$0xff] %v7899_v40 }
  0x4f   : > { %505 = vperm.xlu0 %7392, %v371_v62   ;;  %v13290_v62 = vand.u32 4294901760, %v7864_v60  ;;  %14040 = vst [vmem:[#allocation26_spill] sm:$0xff] %v7908_v6  ;;  %14041 = vst [vmem:[#allocation27_spill] sm:$0xff] %v7921_v54  ;;  %v13296_v23 = vand.u32 4294901760, %v7908_v6 }
  0x50   : > { %650 = vperm.xlu1 %7393, %v400_v29  }
  0x51   : > { %1164 = vmatmul.mubr.f32.gmra.mxu0 %v1163_v32  ;;  %1869 = vmatmul.mubr.f32.gmra.mxu1 %v7745_v24  ;;  %v311_v32 = vld [vmem:[%s13275_s1 + $0xa8] sm:$0xff]  ;;  %v1195_v29 = vsub.f32 %v7864_v60, %v13290_v62  ;;  %v396_v62 = vld [vmem:[%s13276_s2 + $0x150] sm:$0xff] }
  0x52   : > { %1169 = vmatprep.mubr.f32.mxu0 %v13304_v2  ;;  %1874 = vmatprep.mubr.f32.mxu1 %v13304_v2  ;;  %v805_v55 = vsel %vm740_vm0, %v311_v32, 0 }
  0x53   : > { %655 = vperm.xlu0 %7392, %v401_v38   ;;  %v13294_v38 = vand.u32 4294901760, %v7899_v40  ;;  %v1196_v32 = vand.u32 4294901760, %v1195_v29  ;;  %v1217_v29 = vsub.f32 %v7908_v6, %v13296_v23 }
  0x54   : > { %640 = vperm.xlu1 %7393, %v398_v36   ;;  %v7943_v36 = vand.u32 4294901760, %v805_v55 }
  0x55   : > { %1175 = vmatmul.mubr.f32.gmra.mxu0 %v1174_v52  ;;  %1876 = vmatmul.mubr.f32.gmra.mxu1 %v7767_v50  ;;  %v312_v52 = vld [vmem:[%s13275_s1 + $0xb0] sm:$0xff]  ;;  %v1206_v25 = vsub.f32 %v7899_v40, %v13294_v38  ;;  %v394_v38 = vld [vmem:[%s13276_s2 + $0x140] sm:$0xff]  ;;  %v1218_v45 = vand.u32 4294901760, %v1217_v29 }
  0x56   : > { %1180 = vmatprep.mubr.f32.mxu0 %v13304_v2  ;;  %1881 = vmatprep.mubr.f32.mxu1 %v13304_v2  ;;  %14043 = vst [vmem:[#allocation29_spill] sm:$0xff] %v7943_v36 }
  0x57   : > { %645 = vperm.xlu0 %7392, %v399_v51   ;;  %v7941_v51 = vsub.f32 %v802_v1, %v7921_v54  ;;  %v811_v1 = vsel %vm740_vm0, %v313_v4, 0  ;;  %v314_v4 = vld [vmem:[%s13275_s1 + $0xc0] sm:$0xff] }
  0x58   : > { %630 = vperm.xlu1 %7393, %v396_v62   ;;  %v7964_v62 = vsub.f32 %v805_v55, %v7943_v36  ;;  %v393_v55 = vld [vmem:[%s13276_s2 + $0x138] sm:$0xff] }
  0x59   : > { %1186 = vmatmul.mubr.f32.gmra.mxu0 %v1185_v30  ;;  %1883 = vmatmul.mubr.f32.gmra.mxu1 %v7790_v5  ;;  %14042 = vst [vmem:[#allocation28_spill] sm:$0xff] %v7941_v51  ;;  %v808_v30 = vsel %vm740_vm0, %v312_v52, 0  ;;  %v1207_v52 = vand.u32 4294901760, %v1206_v25  ;;  %v392_v25 = vld [vmem:[%s13276_s2 + $0x130] sm:$0xff] }
  0x5a   : > { %1191 = vmatprep.mubr.f32.mxu0 %v13304_v2  ;;  %1888 = vmatprep.mubr.f32.mxu1 %v13304_v2  ;;  %14044 = vst [vmem:[#allocation30_spill] sm:$0xff] %v7964_v62  ;;  %v7966_v23 = vand.u32 4294901760, %v808_v30 }
  0x5b   : > { %635 = vperm.xlu0 %7392, %v397_v41   ;;  %v13300_v41 = vand.u32 4294901760, %v7941_v51 }
  0x5c   : > { %14045 = vst [vmem:[#allocation31_spill] sm:$0xff] %v7966_v23  ;;  %620 = vperm.xlu1 %7393, %v394_v38   ;;  %v7987_v38 = vsub.f32 %v808_v30, %v7966_v23  ;;  %v390_v30 = vld [vmem:[%s13276_s2 + $0x120] sm:$0xff] }
  0x5d   : > { %1197 = vmatmul.mubr.f32.gmra.mxu0 %v1196_v32  ;;  %1890 = vmatmul.mubr.f32.gmra.mxu1 %v7797_v13  ;;  %v7973_v32 = vand.u32 4294901760, %v811_v1  ;;  %v1228_v33 = vsub.f32 %v7941_v51, %v13300_v41  ;;  %v817_v41 = vsel %vm740_vm0, %v315_v22, 0  ;;  %v316_v22 = vld [vmem:[%s13275_s1 + $0xd0] sm:$0xff] }
  0x5e   : > { %1202 = vmatprep.mubr.f32.mxu0 %v13304_v2  ;;  %1895 = vmatprep.mubr.f32.mxu1 %v13304_v2  ;;  %14047 = vst [vmem:[#allocation33_spill] sm:$0xff] %v7987_v38 }
  0x5f   : > { %625 = vperm.xlu0 %7392, %v395_v58   ;;  %14046 = vst [vmem:[#allocation32_spill] sm:$0xff] %v7973_v32  ;;  %v13303_v58 = vand.u32 4294901760, %v7964_v62  ;;  %v7996_v29 = vsub.f32 %v811_v1, %v7973_v32  ;;  %v1229_v42 = vand.u32 4294901760, %v1228_v33  ;;  %v13310_v1 = vand.u32 4294901760, %v7987_v38  ;;  %v388_v33 = vld [vmem:[%s13276_s2 + $0x110] sm:$0xff] }
  0x60   : > { %610 = vperm.xlu1 %7393, %v392_v25  }
  0x61   : > { %1208 = vmatmul.mubr.f32.gmra.mxu0 %v1207_v52  ;;  %1897 = vmatmul.mubr.f32.gmra.mxu1 %v7834_v61  ;;  %v814_v52 = vsel %vm740_vm0, %v314_v4, 0  ;;  %14048 = vst [vmem:[#allocation34_spill] sm:$0xff] %v7996_v29  ;;  %v1239_v4 = vsub.f32 %v7964_v62, %v13303_v58  ;;  %v14052_v61 = vmov 0.0  }
  0x62   : > { %1213 = vmatprep.mubr.f32.mxu0 %v13304_v2  ;;  %1902 = vmatprep.mubr.f32.mxu1 %v13304_v2  ;;  %v8010_v25 = vand.u32 4294901760, %v814_v52 }
  0x63   : > { %615 = vperm.xlu0 %7392, %v393_v55   ;;  %v389_v55 = vld [vmem:[%s13276_s2 + $0x118] sm:$0xff]  ;;  %v1240_v58 = vand.u32 4294901760, %v1239_v4 }
  0x64   : > { %14049 = vst [vmem:[#allocation35_spill] sm:$0xff] %v8010_v25  ;;  %600 = vperm.xlu1 %7393, %v390_v30   ;;  %v8031_v30 = vsub.f32 %v814_v52, %v8010_v25  ;;  %v386_v52 = vld [vmem:[%s13276_s2 + $0x100] sm:$0xff] }
  0x65   : > { %1219 = vmatmul.mubr.f32.gmra.mxu0 %v1218_v45  ;;  %1904 = vmatmul.mubr.f32.gmra.mxu1 %v7841_v18  ;;  %v8017_v45 = vand.u32 4294901760, %v817_v41  ;;  %v317_v18 = vld [vmem:[%s13275_s1 + $0xd8] sm:$0xff] }
  0x66   : > { %1224 = vmatprep.mubr.f32.mxu0 %v13304_v2  ;;  %1909 = vmatprep.mubr.f32.mxu1 %v13304_v2  ;;  %v1250_v2 = vsub.f32 %v7987_v38, %v13310_v1  ;;  %14051 = vst [vmem:[#allocation37_spill] sm:$0xff] %v8031_v30  ;;  %v823_v1 = vsel %vm740_vm0, %v317_v18, 0  ;;  %v318_v18 = vld [vmem:[%s13275_s1 + $0xe0] sm:$0xff] }
  0x67   : > { %605 = vperm.xlu0 %7392, %v391_v21   ;;  %14050 = vst [vmem:[#allocation36_spill] sm:$0xff] %v8017_v45  ;;  %v8040_v4 = vsub.f32 %v817_v41, %v8017_v45  ;;  %v387_v21 = vld [vmem:[%s13276_s2 + $0x108] sm:$0xff]  ;;  %v13317_v41 = vand.u32 4294901760, %v8031_v30 }
  0x68   : > { %590 = vperm.xlu1 %7393, %v388_v33  }
  0x69   : > { %1230 = vmatmul.mubr.f32.gmra.mxu0 %v1229_v42  ;;  %1911 = vmatmul.mubr.f32.gmra.mxu1 %v7878_v19  ;;  %v820_v42 = vsel %vm740_vm0, %v316_v22, 0  ;;  %14053 = vst [vmem:[#allocation38_spill] sm:$0xff] %v8040_v4  ;;  %v1251_v19 = vand.u32 4294901760, %v1250_v2  ;;  %v14054_v22 = vand.u32 4294901760, %v7996_v29 }
  0x6a   : > { %1235 = vmatprep.mubr.f32.mxu0 %v14052_v61  ;;  %1916 = vmatprep.mubr.f32.mxu1 %v14052_v61 }
  0x6b   : > { %595 = vperm.xlu0 %7392, %v389_v55   ;;  %v1261_v33 = vsub.f32 %v7996_v29, %v14054_v22  ;;  %v8054_v55 = vand.u32 4294901760, %v820_v42  ;;  %v1272_v22 = vsub.f32 %v8031_v30, %v13317_v41 }
  0x6c   : > { %580 = vperm.xlu1 %7393, %v386_v52  }
  0x6d   : > { %1241 = vmatmul.mubr.f32.gmra.mxu0 %v1240_v58  ;;  %1918 = vmatmul.mubr.f32.gmra.mxu1 %v7885_v20  ;;  %14055 = vst [vmem:[#allocation39_spill] sm:$0xff] %v8054_v55  ;;  %v8061_v58 = vand.u32 4294901760, %v823_v1  ;;  %v1262_v2 = vand.u32 4294901760, %v1261_v33  ;;  %v13320_v20 = vand.u32 4294901760, %v8040_v4  ;;  %v8069_v13 = vsub.f32 %v820_v42, %v8054_v55 }
  0x6e   : > { %1246 = vmatprep.mubr.f32.mxu0 %v14052_v61  ;;  %1923 = vmatprep.mubr.f32.mxu1 %v14052_v61  ;;  %v1273_v33 = vand.u32 4294901760, %v1272_v22 }
  0x6f   : > { %585 = vperm.xlu0 %7392, %v387_v21   ;;  %14056 = vst [vmem:[#allocation40_spill] sm:$0xff] %v8061_v58  ;;  %14057 = vst [vmem:[#allocation41_spill] sm:$0xff] %v8069_v13  ;;  %v826_v21 = vsel %vm740_vm0, %v318_v18, 0  ;;  %v8078_v52 = vsub.f32 %v823_v1, %v8061_v58  ;;  %v1283_v42 = vsub.f32 %v8040_v4, %v13320_v20  ;;  %v13325_v41 = vand.u32 4294901760, %v8069_v13  ;;  %v320_v1 = vld [vmem:[%s13275_s1 + $0xf0] sm:$0xff] }
  0x71   : > { %1252 = vmatmul.mubr.f32.gmra.mxu0 %v1251_v19  ;;  %1925 = vmatmul.mubr.f32.gmra.mxu1 %v7921_v54  ;;  %v319_v19 = vld [vmem:[%s13275_s1 + $0xe8] sm:$0xff]  ;;  %14058 = vst [vmem:[#allocation42_spill] sm:$0xff] %v8078_v52  ;;  %v8085_v54 = vand.u32 4294901760, %v826_v21  ;;  %v1284_v22 = vand.u32 4294901760, %v1283_v42  ;;  %v1294_v20 = vsub.f32 %v8069_v13, %v13325_v41 }
  0x72   : > { %1257 = vmatprep.mubr.f32.mxu0 %v14052_v61  ;;  %1930 = vmatprep.mubr.f32.mxu1 %v14052_v61  ;;  %v829_v18 = vsel %vm740_vm0, %v319_v19, 0  ;;  %v321_v19 = vld [vmem:[%s13275_s1 + $0xf8] sm:$0xff] }
  0x73   : > { %14059 = vst [vmem:[#allocation43_spill] sm:$0xff] %v8085_v54  ;;  %v8101_v5 = vand.u32 4294901760, %v829_v18  ;;  %v835_v41 = vsel %vm740_vm0, %v321_v19, 0 }
  0x74   : > { %v8125_v19 = vand.u32 4294901760, %v835_v41 }
  0x75   : > { %1263 = vmatmul.mubr.f32.gmra.mxu0 %v1262_v2  ;;  %1932 = vmatmul.mubr.f32.gmra.mxu1 %v7943_v36  ;;  %v13332_v2 = vand.u32 4294901760, %v8078_v52  ;;  %v8099_v36 = vsub.f32 %v826_v21, %v8085_v54  ;;  %14061 = vst [vmem:[#allocation45_spill] sm:$0xff] %v8101_v5  ;;  %v1295_v21 = vand.u32 4294901760, %v1294_v20  ;;  %v8116_v50 = vsub.f32 %v829_v18, %v8101_v5 }
  0x76   : > { %1268 = vmatprep.mubr.f32.mxu0 %v14052_v61  ;;  %1937 = vmatprep.mubr.f32.mxu1 %v14052_v61  ;;  %14064 = vst [vmem:[#allocation48_spill] sm:$0xff] %v8125_v19 }
  0x77   : > { %14060 = vst [vmem:[#allocation44_spill] sm:$0xff] %v8099_v36  ;;  %v1305_v42 = vsub.f32 %v8078_v52, %v13332_v2  ;;  %14062 = vst [vmem:[#allocation46_spill] sm:$0xff] %v8116_v50 }
  0x79   : > { %1274 = vmatmul.mubr.f32.gmra.mxu0 %v1273_v33  ;;  %1939 = vmatmul.mubr.f32.gmra.mxu1 %v7966_v23  ;;  %v832_v33 = vsel %vm740_vm0, %v320_v1, 0  ;;  %v13335_v23 = vand.u32 4294901760, %v8099_v36  ;;  %v322_v1 = vld [vmem:[%s13275_s1 + $0x100] sm:$0xff]  ;;  %v1306_v20 = vand.u32 4294901760, %v1305_v42  ;;  %v8142_v42 = vsub.f32 %v835_v41, %v8125_v19  ;;  %v416_v41 = vld [vmem:[%s13276_s2 + $0x1f0] sm:$0xff] }
  0x7a   : > { %1279 = vmatprep.mubr.f32.mxu0 %v14052_v61  ;;  %1944 = vmatprep.mubr.f32.mxu1 %v14052_v61  ;;  %v8118_v24 = vand.u32 4294901760, %v832_v33 }
  0x7b   : > { %v1316_v18 = vsub.f32 %v8099_v36, %v13335_v23  ;;  %14066 = vst [vmem:[#allocation50_spill] sm:$0xff] %v8142_v42  ;;  %730 = vperm.xlu1 %7393, %v416_v41   ;;  %v414_v41 = vld [vmem:[%s13276_s2 + $0x1e0] sm:$0xff] }
  0x7c   : > { %14063 = vst [vmem:[#allocation47_spill] sm:$0xff] %v8118_v24  ;;  %v8133_v2 = vsub.f32 %v832_v33, %v8118_v24 }
  0x7d   : > { %1285 = vmatmul.mubr.f32.gmra.mxu0 %v1284_v22  ;;  %1946 = vmatmul.mubr.f32.gmra.mxu1 %v7973_v32  ;;  %v13342_v22 = vand.u32 4294901760, %v8116_v50  ;;  %v323_v32 = vld [vmem:[%s13275_s1 + $0x108] sm:$0xff]  ;;  %v1317_v33 = vand.u32 4294901760, %v1316_v18 }
  0x7e   : > { %1290 = vmatprep.mubr.f32.mxu0 %v14052_v61  ;;  %1951 = vmatprep.mubr.f32.mxu1 %v14052_v61  ;;  %14065 = vst [vmem:[#allocation49_spill] sm:$0xff] %v8133_v2  ;;  %v841_v23 = vsel %vm740_vm0, %v323_v32, 0  ;;  %v13347_v57 = vand.u32 4294901760, %v8133_v2  ;;  %v324_v32 = vld [vmem:[%s13275_s1 + $0x110] sm:$0xff] }
  0x7f   : > { %720 = vperm.xlu1 %7393, %v414_v41  }
  0x80   : > { %v1338_v18 = vsub.f32 %v8133_v2, %v13347_v57  ;;  %v847_v57 = vsel %vm740_vm0, %v325_v31, 0  ;;  %v326_v31 = vld [vmem:[%s13275_s1 + $0x120] sm:$0xff] }
  0x81   : > { %1296 = vmatmul.mubr.f32.gmra.mxu0 %v1295_v21  ;;  %1953 = vmatmul.mubr.f32.gmra.mxu1 %v8010_v25  ;;  %v838_v21 = vsel %vm740_vm0, %v322_v1, 0  ;;  %v1327_v25 = vsub.f32 %v8116_v50, %v13342_v22  ;;  %v8160_v1 = vand.u32 4294901760, %v841_v23 }
  0x82   : > { %1301 = vmatprep.mubr.f32.mxu0 %v14052_v61  ;;  %1958 = vmatprep.mubr.f32.mxu1 %v14052_v61  ;;  %v8150_v56 = vand.u32 4294901760, %v838_v21  ;;  %v1339_v22 = vand.u32 4294901760, %v1338_v18  ;;  %v8204_v18 = vand.u32 4294901760, %v847_v57 }
  0x83   : > { %14068 = vst [vmem:[#allocation52_spill] sm:$0xff] %v8160_v1 }
  0x84   : > { %14067 = vst [vmem:[#allocation51_spill] sm:$0xff] %v8150_v56  ;;  %14073 = vst [vmem:[#allocation56_spill] sm:$0xff] %v8204_v18 }
  0x85   : > { %1307 = vmatmul.mubr.f32.gmra.mxu0 %v1306_v20  ;;  %1960 = vmatmul.mubr.f32.gmra.mxu1 %v8017_v45  ;;  %v1328_v20 = vand.u32 4294901760, %v1327_v25  ;;  %v8168_v45 = vsub.f32 %v838_v21, %v8150_v56  ;;  %v417_v25 = vld [vmem:[%s13276_s2 + $0x1f8] sm:$0xff]  ;;  %v8183_v21 = vsub.f32 %v841_v23, %v8160_v1  ;;  %v415_v23 = vld [vmem:[%s13276_s2 + $0x1e8] sm:$0xff] }
  0x86   : > { %1312 = vmatprep.mubr.f32.mxu0 %v14052_v61  ;;  %1965 = vmatprep.mubr.f32.mxu1 %v14052_v61 }
  0x87   : > { %14069 = vst [vmem:[#allocation53_spill] sm:$0xff] %v8168_v45  ;;  %14070 = vst [vmem:[#allocation54_spill] sm:$0xff] %v8183_v21  ;;  %735 = vperm.xlu0 %7392, %v417_v25   ;;  %v13356_v27 = vand.u32 4294901760, %v8168_v45 }
  0x89   : > { %1318 = vmatmul.mubr.f32.gmra.mxu0 %v1317_v33  ;;  %1967 = vmatmul.mubr.f32.gmra.mxu1 %v8054_v55  ;;  %v844_v33 = vsel %vm740_vm0, %v324_v32, 0  ;;  %v14071_v32 = vand.u32 4294901760, %v8142_v42  ;;  %v1360_v41 = vsub.f32 %v8168_v45, %v13356_v27 }
  0x8a   : > { %1323 = vmatprep.mubr.f32.mxu0 %v14052_v61  ;;  %1972 = vmatprep.mubr.f32.mxu1 %v14052_v61  ;;  %v8191_v11 = vand.u32 4294901760, %v844_v33 }
  0x8b   : > { %v1349_v55 = vsub.f32 %v8142_v42, %v14071_v32  ;;  %725 = vperm.xlu0 %7392, %v415_v23   ;;  %v13361_v32 = vand.u32 4294901760, %v8183_v21  ;;  %v850_v23 = vsel %vm740_vm0, %v326_v31, 0  ;;  %v1361_v31 = vand.u32 4294901760, %v1360_v41  ;;  %v411_v41 = vld [vmem:[%s13276_s2 + $0x1c8] sm:$0xff] }
  0x8c   : > { %14072 = vst [vmem:[#allocation55_spill] sm:$0xff] %v8191_v11  ;;  %v8234_v63 = vand.u32 4294901760, %v850_v23 }
  0x8d   : > { %1329 = vmatmul.mubr.f32.gmra.mxu0 %v1328_v20  ;;  %1974 = vmatmul.mubr.f32.gmra.mxu1 %v8061_v58  ;;  %v412_v20 = vld [vmem:[%s13276_s2 + $0x1d0] sm:$0xff]  ;;  %v1350_v25 = vand.u32 4294901760, %v1349_v55  ;;  %v8212_v58 = vsub.f32 %v844_v33, %v8191_v11  ;;  %v413_v55 = vld [vmem:[%s13276_s2 + $0x1d8] sm:$0xff]  ;;  %v8227_v33 = vsub.f32 %v847_v57, %v8204_v18  ;;  %v1371_v27 = vsub.f32 %v8183_v21, %v13361_v32 }
  0x8e   : > { %1334 = vmatprep.mubr.f32.mxu0 %v14052_v61  ;;  %1979 = vmatprep.mubr.f32.mxu1 %v14052_v61  ;;  %14076 = vst [vmem:[#allocation59_spill] sm:$0xff] %v8234_v63 }
  0x8f   : > { %710 = vperm.xlu1 %7393, %v412_v20   ;;  %14074 = vst [vmem:[#allocation57_spill] sm:$0xff] %v8212_v58  ;;  %v410_v20 = vld [vmem:[%s13276_s2 + $0x1c0] sm:$0xff]  ;;  %14075 = vst [vmem:[#allocation58_spill] sm:$0xff] %v8227_v33  ;;  %715 = vperm.xlu0 %7392, %v413_v55   ;;  %v408_v55 = vld [vmem:[%s13276_s2 + $0x1b0] sm:$0xff] }
  0x91   : > { %1340 = vmatmul.mubr.f32.gmra.mxu0 %v1339_v22  ;;  %1981 = vmatmul.mubr.f32.gmra.mxu1 %v8085_v54  ;;  %v327_v22 = vld [vmem:[%s13275_s1 + $0x128] sm:$0xff]  ;;  %v13368_v54 = vand.u32 4294901760, %v8212_v58 }
  0x92   : > { %1345 = vmatprep.mubr.f32.mxu0 %v14052_v61  ;;  %1986 = vmatprep.mubr.f32.mxu1 %v14052_v61  ;;  %v853_v57 = vsel %vm740_vm0, %v327_v22, 0  ;;  %v1372_v22 = vand.u32 4294901760, %v1371_v27  ;;  %v409_v27 = vld [vmem:[%s13276_s2 + $0x1b8] sm:$0xff] }
  0x93   : > { %700 = vperm.xlu1 %7393, %v410_v20   ;;  %v13373_v20 = vand.u32 4294901760, %v8227_v33  ;;  %705 = vperm.xlu0 %7392, %v411_v41   ;;  %v1382_v32 = vsub.f32 %v8212_v58, %v13368_v54  ;;  %v8256_v47 = vand.u32 4294901760, %v853_v57  ;;  %v339_v58 = vld [vmem:[%s13275_s1 + $0x188] sm:$0xff] }
  0x95   : > { %1351 = vmatmul.mubr.f32.gmra.mxu0 %v1350_v25  ;;  %1988 = vmatmul.mubr.f32.gmra.mxu1 %v8101_v5  ;;  %v328_v25 = vld [vmem:[%s13275_s1 + $0x130] sm:$0xff]  ;;  %v8254_v5 = vsub.f32 %v850_v23, %v8234_v63  ;;  %14078 = vst [vmem:[#allocation61_spill] sm:$0xff] %v8256_v47  ;;  %v406_v23 = vld [vmem:[%s13276_s2 + $0x1a0] sm:$0xff]  ;;  %v1393_v41 = vsub.f32 %v8227_v33, %v13373_v20 }
  0x96   : > { %1356 = vmatprep.mubr.f32.mxu0 %v14052_v61  ;;  %1993 = vmatprep.mubr.f32.mxu1 %v14052_v61 }
  0x97   : > { %690 = vperm.xlu1 %7393, %v408_v55   ;;  %14077 = vst [vmem:[#allocation60_spill] sm:$0xff] %v8254_v5  ;;  %v859_v55 = vsel %vm740_vm0, %v329_v35, 0  ;;  %695 = vperm.xlu0 %7392, %v409_v27   ;;  %v13378_v54 = vand.u32 4294901760, %v8254_v5  ;;  %v330_v35 = vld [vmem:[%s13275_s1 + $0x140] sm:$0xff]  ;;  %v1394_v27 = vand.u32 4294901760, %v1393_v41  ;;  %v405_v41 = vld [vmem:[%s13276_s2 + $0x198] sm:$0xff] }
  0x99   : > { %1362 = vmatmul.mubr.f32.gmra.mxu0 %v1361_v31  ;;  %1995 = vmatmul.mubr.f32.gmra.mxu1 %v8118_v24  ;;  %v856_v31 = vsel %vm740_vm0, %v328_v25, 0  ;;  %v1383_v25 = vand.u32 4294901760, %v1382_v32  ;;  %v8277_v24 = vsub.f32 %v853_v57, %v8256_v47  ;;  %v404_v32 = vld [vmem:[%s13276_s2 + $0x190] sm:$0xff]  ;;  %v8292_v57 = vand.u32 4294901760, %v859_v55 }
  0x9a   : > { %1367 = vmatprep.mubr.f32.mxu0 %v14052_v61  ;;  %2000 = vmatprep.mubr.f32.mxu1 %v14052_v61  ;;  %v8279_v17 = vand.u32 4294901760, %v856_v31 }
  0x9b   : > { %680 = vperm.xlu1 %7393, %v406_v23   ;;  %14079 = vst [vmem:[#allocation62_spill] sm:$0xff] %v8277_v24  ;;  %14081 = vst [vmem:[#allocation64_spill] sm:$0xff] %v8292_v57  ;;  %v1404_v23 = vsub.f32 %v8254_v5, %v13378_v54  ;;  %v13383_v20 = vand.u32 4294901760, %v8277_v24 }
  0x9c   : > { %14080 = vst [vmem:[#allocation63_spill] sm:$0xff] %v8279_v17 }
  0x9d   : > { %1373 = vmatmul.mubr.f32.gmra.mxu0 %v1372_v22  ;;  %2002 = vmatmul.mubr.f32.gmra.mxu1 %v8125_v19  ;;  %v407_v22 = vld [vmem:[%s13276_s2 + $0x1a8] sm:$0xff]  ;;  %v8300_v19 = vsub.f32 %v856_v31, %v8279_v17  ;;  %v8315_v31 = vsub.f32 %v859_v55, %v8292_v57  ;;  %v1405_v54 = vand.u32 4294901760, %v1404_v23 }
  0x9e   : > { %1378 = vmatprep.mubr.f32.mxu0 %v14052_v61  ;;  %2007 = vmatprep.mubr.f32.mxu1 %v14052_v61  ;;  %v403_v55 = vld [vmem:[%s13276_s2 + $0x188] sm:$0xff] }
  0x9f   : > { %685 = vperm.xlu0 %7392, %v407_v22   ;;  %670 = vperm.xlu1 %7393, %v404_v32   ;;  %14082 = vst [vmem:[#allocation65_spill] sm:$0xff] %v8300_v19  ;;  %v402_v22 = vld [vmem:[%s13276_s2 + $0x180] sm:$0xff]  ;;  %14083 = vst [vmem:[#allocation66_spill] sm:$0xff] %v8315_v31  ;;  %v865_v32 = vsel %vm740_vm0, %v331_v12, 0  ;;  %v332_v12 = vld [vmem:[%s13275_s1 + $0x150] sm:$0xff] }
  0xa1   : > { %1384 = vmatmul.mubr.f32.gmra.mxu0 %v1383_v25  ;;  %2009 = vmatmul.mubr.f32.gmra.mxu1 %v8150_v56  ;;  %v862_v25 = vsel %vm740_vm0, %v330_v35, 0  ;;  %v1415_v35 = vsub.f32 %v8277_v24, %v13383_v20  ;;  %v13386_v56 = vand.u32 4294901760, %v8300_v19  ;;  %v337_v24 = vld [vmem:[%s13275_s1 + $0x178] sm:$0xff] }
  0xa2   : > { %1389 = vmatprep.mubr.f32.mxu0 %v14052_v61  ;;  %2014 = vmatprep.mubr.f32.mxu1 %v14052_v61  ;;  %v8323_v8 = vand.u32 4294901760, %v862_v25 }
  0xa3   : > { %675 = vperm.xlu0 %7392, %v405_v41   ;;  %660 = vperm.xlu1 %7393, %v402_v22   ;;  %v1416_v23 = vand.u32 4294901760, %v1415_v35  ;;  %v1426_v41 = vsub.f32 %v8300_v19, %v13386_v56  ;;  %v13391_v22 = vand.u32 4294901760, %v8315_v31 }
  0xa4   : > { %14084 = vst [vmem:[#allocation67_spill] sm:$0xff] %v8323_v8  ;;  %v8341_v20 = vsub.f32 %v862_v25, %v8323_v8 }
  0xa5   : > { %1395 = vmatmul.mubr.f32.gmra.mxu0 %v1394_v27  ;;  %2016 = vmatmul.mubr.f32.gmra.mxu1 %v8160_v1  ;;  %v8333_v27 = vand.u32 4294901760, %v865_v32  ;;  %v333_v1 = vld [vmem:[%s13275_s1 + $0x158] sm:$0xff]  ;;  %v1427_v25 = vand.u32 4294901760, %v1426_v41  ;;  %v1437_v56 = vsub.f32 %v8315_v31, %v13391_v22  ;;  %v8391_v31 = vpop.permute.xlu0 %495 }
  0xa6   : > { %1400 = vmatprep.mubr.f32.mxu0 %v14052_v61  ;;  %2021 = vmatprep.mubr.f32.mxu1 %v14052_v61  ;;  %14086 = vst [vmem:[#allocation69_spill] sm:$0xff] %v8341_v20 }
  0xa7   : > { %14085 = vst [vmem:[#allocation68_spill] sm:$0xff] %v8333_v27  ;;  %665 = vperm.xlu0 %7392, %v403_v55   ;;  %v8350_v35 = vsub.f32 %v865_v32, %v8333_v27  ;;  %v871_v55 = vsel %vm740_vm0, %v333_v1, 0  ;;  %v334_v1 = vld [vmem:[%s13275_s1 + $0x160] sm:$0xff] }
  0xa8   : > { %v8365_v32 = vand.u32 4294901760, %v871_v55 }
  0xa9   : > { %1406 = vmatmul.mubr.f32.gmra.mxu0 %v1405_v54  ;;  %2023 = vmatmul.mubr.f32.gmra.mxu1 %v8191_v11  ;;  %v868_v54 = vsel %vm740_vm0, %v332_v12, 0  ;;  %14087 = vst [vmem:[#allocation70_spill] sm:$0xff] %v8350_v35  ;;  %v13396_v11 = vand.u32 4294901760, %v8341_v20  ;;  %v1438_v12 = vand.u32 4294901760, %v1437_v56  ;;  %v13401_v41 = vand.u32 4294901760, %v8350_v35  ;;  %v335_v56 = vld [vmem:[%s13275_s1 + $0x168] sm:$0xff] }
  0xaa   : > { %1411 = vmatprep.mubr.f32.mxu0 %v14052_v61  ;;  %2028 = vmatprep.mubr.f32.mxu1 %v14052_v61  ;;  %v8358_v7 = vand.u32 4294901760, %v868_v54  ;;  %14089 = vst [vmem:[#allocation72_spill] sm:$0xff] %v8365_v32 }
  0xac   : > { %14088 = vst [vmem:[#allocation71_spill] sm:$0xff] %v8358_v7  ;;  %v8373_v22 = vsub.f32 %v868_v54, %v8358_v7 }
  0xad   : > { %1417 = vmatmul.mubr.f32.gmra.mxu0 %v1416_v23  ;;  %2030 = vmatmul.mubr.f32.gmra.mxu1 %v8204_v18  ;;  %v1448_v23 = vsub.f32 %v8341_v20, %v13396_v11  ;;  %v8375_v18 = vpop.permute.xlu1 %485  ;;  %v1459_v11 = vsub.f32 %v8350_v35, %v13401_v41 }
  0xae   : > { %1422 = vmatprep.mubr.f32.mxu0 %v14052_v61  ;;  %2035 = vmatprep.mubr.f32.mxu1 %v14052_v61  ;;  %14090 = vst [vmem:[#allocation73_spill] sm:$0xff] %v8373_v22 }
  0xaf   : > { %v1449_v54 = vand.u32 4294901760, %v1448_v23  ;;  %v336_v23 = vld [vmem:[%s13275_s1 + $0x170] sm:$0xff]  ;;  %v1460_v20 = vand.u32 4294901760, %v1459_v11  ;;  %v8419_v11 = vpop.permute.xlu0 %490 }
  0xb1   : > { %1428 = vmatmul.mubr.f32.gmra.mxu0 %v1427_v25  ;;  %2037 = vmatmul.mubr.f32.gmra.mxu1 %v8234_v63  ;;  %v874_v25 = vsel %vm740_vm0, %v334_v1, 0  ;;  %v8384_v63 = vsub.f32 %v871_v55, %v8365_v32  ;;  %v877_v55 = vsel %vm740_vm0, %v335_v56, 0 }
  0xb2   : > { %1433 = vmatprep.mubr.f32.mxu0 %v14052_v61  ;;  %2042 = vmatprep.mubr.f32.mxu1 %v14052_v61  ;;  %v8393_v1 = vand.u32 4294901760, %v874_v25  ;;  %v8411_v56 = vand.u32 4294901760, %v877_v55 }
  0xb3   : > { %14091 = vst [vmem:[#allocation74_spill] sm:$0xff] %v8384_v63  ;;  %v13418_v41 = vand.u32 4294901760, %v8384_v63 }
  0xb4   : > { %14092 = vst [vmem:[#allocation75_spill] sm:$0xff] %v8393_v1  ;;  %v8409_v19 = vsub.f32 %v874_v25, %v8393_v1  ;;  %14095 = vst [vmem:[#allocation77_spill] sm:$0xff] %v8411_v56  ;;  %v883_v25 = vsel %vm740_vm0, %v337_v24, 0  ;;  %v8430_v33 = vsub.f32 %v877_v55, %v8411_v56  ;;  %v338_v24 = vld [vmem:[%s13275_s1 + $0x180] sm:$0xff] }
  0xb5   : > { %1439 = vmatmul.mubr.f32.gmra.mxu0 %v1438_v12  ;;  %2044 = vmatmul.mubr.f32.gmra.mxu1 %v8256_v47  ;;  %v8398_v12 = vpop.permute.xlu1 %480  ;;  %v14093_v47 = vand.u32 4294901760, %v8373_v22 }
  0xb6   : > { %1444 = vmatprep.mubr.f32.mxu0 %v14052_v61  ;;  %2049 = vmatprep.mubr.f32.mxu1 %v14052_v61  ;;  %14094 = vst [vmem:[#allocation76_spill] sm:$0xff] %v8409_v19  ;;  %14096 = vst [vmem:[#allocation78_spill] sm:$0xff] %v8430_v33 }
  0xb7   : > { %v1470_v35 = vsub.f32 %v8373_v22, %v14093_v47  ;;  %v1481_v47 = vsub.f32 %v8384_v63, %v13418_v41  ;;  %v13425_v22 = vand.u32 4294901760, %v8409_v19  ;;  %v889_v41 = vsel %vm740_vm0, %v339_v58, 0 }
  0xb9   : > { %1450 = vmatmul.mubr.f32.gmra.mxu0 %v1449_v54  ;;  %2051 = vmatmul.mubr.f32.gmra.mxu1 %v8279_v17  ;;  %v880_v54 = vsel %vm740_vm0, %v336_v23, 0  ;;  %v1471_v17 = vand.u32 4294901760, %v1470_v35  ;;  %v8427_v5 = vpop.permute.xlu1 %470  ;;  %v1482_v35 = vand.u32 4294901760, %v1481_v47  ;;  %v1492_v55 = vsub.f32 %v8409_v19, %v13425_v22 }
  0xba   : > { %1455 = vmatprep.mubr.f32.mxu0 %v14052_v61  ;;  %2056 = vmatprep.mubr.f32.mxu1 %v14052_v61  ;;  %v8432_v23 = vand.u32 4294901760, %v880_v54 }
  0xbc   : > { %14097 = vst [vmem:[#allocation79_spill] sm:$0xff] %v8432_v23  ;;  %v8449_v63 = vsub.f32 %v880_v54, %v8432_v23  ;;  %v1493_v54 = vand.u32 4294901760, %v1492_v55 }
  0xbd   : > { %1461 = vmatmul.mubr.f32.gmra.mxu0 %v1460_v20  ;;  %2058 = vmatmul.mubr.f32.gmra.mxu1 %v8292_v57  ;;  %v8439_v20 = vand.u32 4294901760, %v883_v25  ;;  %v8446_v57 = vpop.permute.xlu0 %475  ;;  %v8457_v47 = vpop.permute.xlu1 %460 }
  0xbe   : > { %1466 = vmatprep.mubr.f32.mxu0 %v14052_v61  ;;  %2063 = vmatprep.mubr.f32.mxu1 %v14052_v61  ;;  %14099 = vst [vmem:[#allocation81_spill] sm:$0xff] %v8449_v63  ;;  %v13440_v21 = vand.u32 4294901760, %v8449_v63 }
  0xbf   : > { %14098 = vst [vmem:[#allocation80_spill] sm:$0xff] %v8439_v20  ;;  %v8460_v22 = vsub.f32 %v883_v25, %v8439_v20  ;;  %v8477_v25 = vand.u32 4294901760, %v889_v41 }
  0xc0   : > { %v1514_v55 = vsub.f32 %v8449_v63, %v13440_v21 }
  0xc1   : > { %1472 = vmatmul.mubr.f32.gmra.mxu0 %v1471_v17  ;;  %2065 = vmatmul.mubr.f32.gmra.mxu1 %v8323_v8  ;;  %v886_v17 = vsel %vm740_vm0, %v338_v24, 0  ;;  %14100 = vst [vmem:[#allocation82_spill] sm:$0xff] %v8460_v22  ;;  %v14101_v8 = vand.u32 4294901760, %v8430_v33  ;;  %v340_v24 = vld [vmem:[%s13275_s1 + $0x190] sm:$0xff]  ;;  %v8475_v58 = vpop.permute.xlu0 %465  ;;  %14103 = vst [vmem:[#allocation84_spill] sm:$0xff] %v8477_v25 }
  0xc2   : > { %1477 = vmatprep.mubr.f32.mxu0 %v14052_v61  ;;  %2070 = vmatprep.mubr.f32.mxu1 %v14052_v61  ;;  %v8468_v45 = vand.u32 4294901760, %v886_v17  ;;  %v1515_v21 = vand.u32 4294901760, %v1514_v55 }
  0xc3   : > { %v1503_v19 = vsub.f32 %v8430_v33, %v14101_v8  ;;  %v13447_v33 = vand.u32 4294901760, %v8460_v22 }
  0xc4   : > { %14102 = vst [vmem:[#allocation83_spill] sm:$0xff] %v8468_v45  ;;  %v8488_v42 = vsub.f32 %v886_v17, %v8468_v45 }
  0xc5   : > { %1483 = vmatmul.mubr.f32.gmra.mxu0 %v1482_v35  ;;  %2072 = vmatmul.mubr.f32.gmra.mxu1 %v8333_v27  ;;  %v892_v35 = vsel %vm740_vm0, %v340_v24, 0  ;;  %v1504_v8 = vand.u32 4294901760, %v1503_v19  ;;  %v8484_v27 = vpop.permute.xlu1 %450  ;;  %v8496_v19 = vsub.f32 %v889_v41, %v8477_v25  ;;  %v1525_v17 = vsub.f32 %v8460_v22, %v13447_v33 }
  0xc6   : > { %1488 = vmatprep.mubr.f32.mxu0 %v14052_v61  ;;  %2077 = vmatprep.mubr.f32.mxu1 %v14052_v61  ;;  %14104 = vst [vmem:[#allocation85_spill] sm:$0xff] %v8488_v42  ;;  %v8498_v24 = vand.u32 4294901760, %v892_v35 }
  0xc7   : > { %14105 = vst [vmem:[#allocation86_spill] sm:$0xff] %v8496_v19  ;;  %v1526_v63 = vand.u32 4294901760, %v1525_v17 }
  0xc8   : > { %14106 = vst [vmem:[#allocation87_spill] sm:$0xff] %v8498_v24  ;;  %v8517_v33 = vsub.f32 %v892_v35, %v8498_v24  ;;  %v14110_v35 = vand.u32 4294901760, %v8496_v19 }
  0xc9   : > { %1494 = vmatmul.mubr.f32.gmra.mxu0 %v1493_v54  ;;  %2079 = vmatmul.mubr.f32.gmra.mxu1 %v8358_v7  ;;  %v341_v54 = vld [vmem:[%s13275_s1 + $0x198] sm:$0xff]  ;;  %v8504_v7 = vpop.permute.xlu0 %455  ;;  %v8510_v2 = vpop.permute.xlu1 %440 }
  0xca   : > { %1499 = vmatprep.mubr.f32.mxu0 %v14052_v61  ;;  %2084 = vmatprep.mubr.f32.mxu1 %v14052_v61  ;;  %v895_v41 = vsel %vm740_vm0, %v341_v54, 0  ;;  %14107 = vst [vmem:[#allocation88_spill] sm:$0xff] %v8517_v33  ;;  %v1547_v17 = vsub.f32 %v8496_v19, %v14110_v35 }
  0xcb   : > { %v8523_v54 = vand.u32 4294901760, %v895_v41 }
  0xcc   : > { %v1548_v35 = vand.u32 4294901760, %v1547_v17 }
  0xcd   : > { %1505 = vmatmul.mubr.f32.gmra.mxu0 %v1504_v8  ;;  %2086 = vmatmul.mubr.f32.gmra.mxu1 %v8365_v32  ;;  %v342_v8 = vld [vmem:[%s13275_s1 + $0x1a0] sm:$0xff]  ;;  %v14108_v32 = vand.u32 4294901760, %v8488_v42  ;;  %14109 = vst [vmem:[#allocation89_spill] sm:$0xff] %v8523_v54  ;;  %v8528_v55 = vpop.permute.xlu0 %445 }
  0xce   : > { %1510 = vmatprep.mubr.f32.mxu0 %v14052_v61  ;;  %2091 = vmatprep.mubr.f32.mxu1 %v14052_v61  ;;  %v898_v50 = vsel %vm740_vm0, %v342_v8, 0  ;;  %v8541_v8 = vsub.f32 %v895_v41, %v8523_v54 }
  0xcf   : > { %v1536_v22 = vsub.f32 %v8488_v42, %v14108_v32  ;;  %v13470_v32 = vand.u32 4294901760, %v8517_v33  ;;  %v8538_v42 = vpop.permute.xlu1 %430  ;;  %v8543_v36 = vand.u32 4294901760, %v898_v50 }
  0xd0   : > { %14111 = vst [vmem:[#allocation90_spill] sm:$0xff] %v8541_v8 }
  0xd1   : > { %1516 = vmatmul.mubr.f32.gmra.mxu0 %v1515_v21  ;;  %2093 = vmatmul.mubr.f32.gmra.mxu1 %v8393_v1  ;;  %v343_v21 = vld [vmem:[%s13275_s1 + $0x1a8] sm:$0xff]  ;;  %v1537_v1 = vand.u32 4294901760, %v1536_v22  ;;  %14112 = vst [vmem:[#allocation91_spill] sm:$0xff] %v8543_v36  ;;  %v1558_v22 = vsub.f32 %v8517_v33, %v13470_v32  ;;  %v8555_v41 = vpop.permute.xlu0 %435  ;;  %v8559_v13 = vsub.f32 %v898_v50, %v8543_v36  ;;  %v14116_v50 = vand.u32 4294901760, %v8541_v8 }
  0xd2   : > { %1521 = vmatprep.mubr.f32.mxu0 %v14052_v61  ;;  %2098 = vmatprep.mubr.f32.mxu1 %v14052_v61  ;;  %v901_v52 = vsel %vm740_vm0, %v343_v21, 0 }
  0xd3   : > { %14113 = vst [vmem:[#allocation92_spill] sm:$0xff] %v8559_v13  ;;  %v8561_v21 = vand.u32 4294901760, %v901_v52  ;;  %v421_v32 = vpop.permute.xlu1 %420 }
  0xd5   : > { %1527 = vmatmul.mubr.f32.gmra.mxu0 %v1526_v63  ;;  %2100 = vmatmul.mubr.f32.gmra.mxu1 %v8411_v56  ;;  %v344_v63 = vld [vmem:[%s13275_s1 + $0x1b0] sm:$0xff]  ;;  %14114 = vst [vmem:[#allocation93_spill] sm:$0xff] %v8561_v21  ;;  %v8577_v29 = vsub.f32 %v901_v52, %v8561_v21 }
  0xd6   : > { %1532 = vmatprep.mubr.f32.mxu0 %v14052_v61  ;;  %2105 = vmatprep.mubr.f32.mxu1 %v14052_v61  ;;  %v904_v4 = vsel %vm740_vm0, %v344_v63, 0  ;;  %v1569_v63 = vsub.f32 %v8541_v8, %v14116_v50 }
  0xd7   : > { %v8569_v33 = vand.u32 4294901760, %v904_v4  ;;  %14117 = vst [vmem:[#allocation95_spill] sm:$0xff] %v8577_v29  ;;  %v13503_v6 = vand.u32 4294901760, %v8577_v29 }
  0xd9   : > { %v1011_v56 = vpop.f32.mrf.mxu0  ;;  %1538 = vmatmul.mubr.f32.gmra.mxu0 %v1537_v1  ;;  %2107 = vmatmul.mubr.f32.gmra.mxu1 %v8432_v23  ;;  %v345_v1 = vld [vmem:[%s13275_s1 + $0x1b8] sm:$0xff]  ;;  %v1559_v23 = vand.u32 4294901760, %v1558_v22  ;;  %14115 = vst [vmem:[#allocation94_spill] sm:$0xff] %v8569_v33  ;;  %v8586_v50 = vsub.f32 %v904_v4, %v8569_v33 }
  0xda   : > { %1543 = vmatprep.mubr.f32.mxu0 %v14052_v61  ;;  %2112 = vmatprep.mubr.f32.mxu1 %v14052_v61  ;;  %v907_v38 = vsel %vm740_vm0, %v345_v1, 0  ;;  %v1012_v62 = vadd.f32 %v1011_v56, %v421_v32  ;;  %v1570_v56 = vand.u32 4294901760, %v1569_v63  ;;  %v14120_v1 = vand.u32 4294901760, %v8559_v13  ;;  %v347_v63 = vld [vmem:[%s13275_s1 + $0x1c8] sm:$0xff] }
  0xdb   : > { %v1013_v17 = vpop.f32.mrf.mxu0  ;;  %14118 = vst [vmem:[#allocation96_spill] sm:$0xff] %v8586_v50  ;;  %v8588_v30 = vand.u32 4294901760, %v907_v38 }
  0xdc   : > { %v1580_v51 = vsub.f32 %v8559_v13, %v14120_v1  ;;  %v1014_v40 = vadd.f32 %v1013_v17, %v421_v32 }
  0xdd   : > { %v1022_v19 = vpop.f32.mrf.mxu0  ;;  %1549 = vmatmul.mubr.f32.gmra.mxu0 %v1548_v35  ;;  %2114 = vmatmul.mubr.f32.gmra.mxu1 %v8439_v20  ;;  %v426_v35 = vpop.permute.xlu0 %425  ;;  %v346_v20 = vld [vmem:[%s13275_s1 + $0x1c0] sm:$0xff]  ;;  %14119 = vst [vmem:[#allocation97_spill] sm:$0xff] %v8588_v30 }
  0xde   : > { %1554 = vmatprep.mubr.f32.mxu0 %v14052_v61  ;;  %2119 = vmatprep.mubr.f32.mxu1 %v14052_v61  ;;  %v1023_v53 = vadd.f32 %v1022_v19, %v426_v35  ;;  %v910_v4 = vsel %vm740_vm0, %v346_v20, 0  ;;  %v1591_v20 = vsub.f32 %v8577_v29, %v13503_v6 }
  0xdf   : > { %v1024_v22 = vpop.f32.mrf.mxu0  ;;  %v8613_v17 = vand.u32 4294901760, %v910_v4 }
  0xe1   : > { %v1033_v52 = vpop.f32.mrf.mxu0  ;;  %1560 = vmatmul.mubr.f32.gmra.mxu0 %v1559_v23  ;;  %v1786_v8 = vpop.f32.mrf.mxu1  ;;  %2121 = vmatmul.mubr.f32.gmra.mxu1 %v8468_v45  ;;  %14122 = vst [vmem:[#allocation99_spill] sm:$0xff] %v8613_v17 }
  0xe2   : > { %v8595_v60 = vadd.f32 %v1786_v8, %v1012_v62  ;;  %1565 = vmatprep.mubr.f32.mxu0 %v14052_v61  ;;  %2126 = vmatprep.mubr.f32.mxu1 %v14052_v61  ;;  %v8607_v62 = vsub.f32 %v907_v38, %v8588_v30  ;;  %v1581_v8 = vand.u32 4294901760, %v1580_v51  ;;  %v913_v38 = vsel %vm740_vm0, %v347_v63, 0  ;;  %v348_v51 = vld [vmem:[%s13275_s1 + $0x1d0] sm:$0xff] }
  0xe3   : > { %v1035_v23 = vpop.f32.mrf.mxu0  ;;  %v1788_v44 = vpop.f32.mrf.mxu1  ;;  %v1592_v63 = vand.u32 4294901760, %v1591_v20  ;;  %v8634_v29 = vand.u32 4294901760, %v913_v38 }
  0xe4   : > { %v8603_v45 = vadd.f32 %v1788_v44, %v1014_v40  ;;  %14121 = vst [vmem:[#allocation98_spill] sm:$0xff] %v8607_v62  ;;  %v1034_v44 = vadd.f32 %v1033_v52, %v8538_v42  ;;  %v1025_v40 = vadd.f32 %v1024_v22, %v426_v35 }
  0xe5   : > { %v1044_v19 = vpop.f32.mrf.mxu0  ;;  %1571 = vmatmul.mubr.f32.gmra.mxu0 %v1570_v56  ;;  %v1793_v32 = vpop.f32.mrf.mxu1  ;;  %2128 = vmatmul.mubr.f32.gmra.mxu1 %v8477_v25  ;;  %v14124_v25 = vand.u32 4294901760, %v8586_v50  ;;  %14126 = vst [vmem:[#allocation102_spill] sm:$0xff] %v8634_v29 }
  0xe6   : > { %v8616_v13 = vadd.f32 %v1793_v32, %v1023_v53  ;;  %1576 = vmatprep.mubr.f32.mxu0 %v14052_v61  ;;  %2133 = vmatprep.mubr.f32.mxu1 %v14052_v61  ;;  %v8632_v32 = vsub.f32 %v910_v4, %v8613_v17 }
  0xe7   : > { %v1046_v56 = vpop.f32.mrf.mxu0  ;;  %v1795_v1 = vpop.f32.mrf.mxu1  ;;  %v1602_v22 = vsub.f32 %v8586_v50, %v14124_v25  ;;  %v916_v25 = vsel %vm740_vm0, %v348_v51, 0 }
  0xe8   : > { %v8624_v6 = vadd.f32 %v1795_v1, %v1025_v40  ;;  %14125 = vst [vmem:[#allocation101_spill] sm:$0xff] %v8632_v32  ;;  %v1036_v1 = vadd.f32 %v1035_v23, %v8538_v42  ;;  %v1045_v40 = vadd.f32 %v1044_v19, %v8555_v41  ;;  %v14129_v42 = vand.u32 4294901760, %v8607_v62 }
  0xe9   : > { %v1055_v35 = vpop.f32.mrf.mxu0  ;;  %1582 = vmatmul.mubr.f32.gmra.mxu0 %v1581_v8  ;;  %v1800_v52 = vpop.f32.mrf.mxu1  ;;  %2135 = vmatmul.mubr.f32.gmra.mxu1 %v8498_v24  ;;  %v349_v8 = vld [vmem:[%s13275_s1 + $0x1d8] sm:$0xff]  ;;  %v1603_v24 = vand.u32 4294901760, %v1602_v22  ;;  %v8656_v50 = vand.u32 4294901760, %v916_v25  ;;  %v1047_v22 = vadd.f32 %v1046_v56, %v8555_v41 }
  0xea   : > { %14123 = vst [vmem:[#allocation100_spill] sm:$0xff] %v8624_v6  ;;  %v8638_v6 = vadd.f32 %v1800_v52, %v1034_v44  ;;  %1587 = vmatprep.mubr.f32.mxu0 %v14052_v61  ;;  %2140 = vmatprep.mubr.f32.mxu1 %v14052_v61  ;;  %v1613_v23 = vsub.f32 %v8607_v62, %v14129_v42 }
  0xeb   : > { %v1057_v4 = vpop.f32.mrf.mxu0  ;;  %v1802_v20 = vpop.f32.mrf.mxu1  ;;  %v8654_v52 = vsub.f32 %v913_v38, %v8634_v29  ;;  %14131 = vst [vmem:[#allocation106_spill] sm:$0xff] %v8656_v50  ;;  %v350_v38 = vld [vmem:[%s13275_s1 + $0x1e0] sm:$0xff] }
  0xec   : > { %14127 = vst [vmem:[#allocation103_spill] sm:$0xff] %v8638_v6  ;;  %v8646_v53 = vadd.f32 %v1802_v20, %v1036_v1  ;;  %v919_v1 = vsel %vm740_vm0, %v349_v8, 0  ;;  %v1056_v20 = vadd.f32 %v1055_v35, %v8510_v2  ;;  %v1614_v35 = vand.u32 4294901760, %v1613_v23 }
  0xed   : > { %v1066_v19 = vpop.f32.mrf.mxu0  ;;  %1593 = vmatmul.mubr.f32.gmra.mxu0 %v1592_v63  ;;  %v1807_v44 = vpop.f32.mrf.mxu1  ;;  %2142 = vmatmul.mubr.f32.gmra.mxu1 %v8523_v54  ;;  %14130 = vst [vmem:[#allocation105_spill] sm:$0xff] %v8654_v52  ;;  %v8672_v8 = vand.u32 4294901760, %v919_v1  ;;  %v13522_v62 = vand.u32 4294901760, %v8654_v52 }
  0xee   : > { %14128 = vst [vmem:[#allocation104_spill] sm:$0xff] %v8646_v53  ;;  %v8661_v53 = vadd.f32 %v1807_v44, %v1045_v40  ;;  %1598 = vmatprep.mubr.f32.mxu0 %v14052_v61  ;;  %2147 = vmatprep.mubr.f32.mxu1 %v14052_v61  ;;  %v8670_v54 = vpop.permute.xlu1 %570  ;;  %v14135_v40 = vand.u32 4294901760, %v8632_v32 }
  0xef   : > { %v1068_v63 = vpop.f32.mrf.mxu0  ;;  %v1809_v42 = vpop.f32.mrf.mxu1  ;;  %14134 = vst [vmem:[#allocation109_spill] sm:$0xff] %v8672_v8 }
  0xf0   : > { %14132 = vst [vmem:[#allocation107_spill] sm:$0xff] %v8661_v53  ;;  %v8668_v51 = vadd.f32 %v1809_v42, %v1047_v22  ;;  %v1624_v44 = vsub.f32 %v8632_v32, %v14135_v40  ;;  %v8680_v53 = vsub.f32 %v916_v25, %v8656_v50  ;;  %v1058_v22 = vadd.f32 %v1057_v4, %v8510_v2  ;;  %v351_v40 = vld [vmem:[%s13275_s1 + $0x1e8] sm:$0xff]  ;;  %v8697_v4 = vpop.permute.xlu0 %575  ;;  %v352_v32 = vld [vmem:[%s13275_s1 + $0x1f0] sm:$0xff] }
  0xf1   : > { %v1077_v41 = vpop.f32.mrf.mxu0  ;;  %1604 = vmatmul.mubr.f32.gmra.mxu0 %v1603_v24  ;;  %v1814_v56 = vpop.f32.mrf.mxu1  ;;  %2149 = vmatmul.mubr.f32.gmra.mxu1 %v8543_v36  ;;  %v1067_v42 = vadd.f32 %v1066_v19, %v8528_v55  ;;  %v922_v24 = vsel %vm740_vm0, %v350_v38, 0  ;;  %v8695_v2 = vsub.f32 %v919_v1, %v8672_v8  ;;  %v1635_v38 = vsub.f32 %v8654_v52, %v13522_v62 }
  0xf2   : > { %14133 = vst [vmem:[#allocation108_spill] sm:$0xff] %v8668_v51  ;;  %14136 = vst [vmem:[#allocation110_spill] sm:$0xff] %v8680_v53  ;;  %v8684_v51 = vadd.f32 %v1814_v56, %v1056_v20  ;;  %1609 = vmatprep.mubr.f32.mxu0 %v14052_v61  ;;  %2154 = vmatprep.mubr.f32.mxu1 %v14052_v61  ;;  %v1625_v56 = vand.u32 4294901760, %v1624_v44  ;;  %v1078_v1 = vadd.f32 %v1077_v41, %v8484_v27 }
  0xf3   : > { %v1079_v23 = vpop.f32.mrf.mxu0  ;;  %v1816_v36 = vpop.f32.mrf.mxu1  ;;  %14139 = vst [vmem:[#allocation113_spill] sm:$0xff] %v8695_v2  ;;  %v925_v44 = vsel %vm740_vm0, %v351_v40, 0 }
  0xf4   : > { %14137 = vst [vmem:[#allocation111_spill] sm:$0xff] %v8684_v51  ;;  %v8692_v25 = vadd.f32 %v1816_v36, %v1058_v22  ;;  %v8704_v51 = vand.u32 4294901760, %v922_v24  ;;  %v1069_v36 = vadd.f32 %v1068_v63, %v8528_v55 }
  0xf5   : > { %v1088_v19 = vpop.f32.mrf.mxu0  ;;  %1615 = vmatmul.mubr.f32.gmra.mxu0 %v1614_v35  ;;  %v1821_v20 = vpop.f32.mrf.mxu1  ;;  %2156 = vmatmul.mubr.f32.gmra.mxu1 %v8561_v21 }
  0xf6   : > { %14138 = vst [vmem:[#allocation112_spill] sm:$0xff] %v8692_v25  ;;  %14140 = vst [vmem:[#allocation114_spill] sm:$0xff] %v8704_v51  ;;  %v8708_v22 = vadd.f32 %v1821_v20, %v1067_v42  ;;  %1620 = vmatprep.mubr.f32.mxu0 %v14052_v61  ;;  %2161 = vmatprep.mubr.f32.mxu1 %v14052_v61  ;;  %v8712_v35 = vpop.permute.xlu1 %560  ;;  %v1636_v42 = vand.u32 4294901760, %v1635_v38  ;;  %v14143_v20 = vand.u32 4294901760, %v8680_v53  ;;  %v8728_v25 = vand.u32 4294901760, %v925_v44 }
  0xf7   : > { %v1090_v21 = vpop.f32.mrf.mxu0  ;;  %v1823_v62 = vpop.f32.mrf.mxu1  ;;  %v928_v38 = vsel %vm740_vm0, %v352_v32, 0 }
  0xf8   : > { %14141 = vst [vmem:[#allocation115_spill] sm:$0xff] %v8708_v22  ;;  %v8718_v52 = vadd.f32 %v1823_v62, %v1069_v36  ;;  %v1646_v40 = vsub.f32 %v8680_v53, %v14143_v20  ;;  %v8726_v22 = vsub.f32 %v922_v24, %v8704_v51  ;;  %14145 = vst [vmem:[#allocation118_spill] sm:$0xff] %v8728_v25  ;;  %v353_v24 = vld [vmem:[%s13275_s1 + $0x1f8] sm:$0xff]  ;;  %v8754_v6 = vand.u32 4294901760, %v928_v38 }
  0xf9   : > { %v1099_v63 = vpop.f32.mrf.mxu0  ;;  %1626 = vmatmul.mubr.f32.gmra.mxu0 %v1625_v56  ;;  %v1828_v41 = vpop.f32.mrf.mxu1  ;;  %2163 = vmatmul.mubr.f32.gmra.mxu1 %v8569_v33  ;;  %v1080_v62 = vadd.f32 %v1079_v23, %v8484_v27  ;;  %v1089_v36 = vadd.f32 %v1088_v19, %v8504_v7  ;;  %v14148_v27 = vand.u32 4294901760, %v8695_v2 }
  0xfa   : > { %14142 = vst [vmem:[#allocation116_spill] sm:$0xff] %v8718_v52  ;;  %14144 = vst [vmem:[#allocation117_spill] sm:$0xff] %v8726_v22  ;;  %v8732_v55 = vadd.f32 %v1828_v41, %v1078_v1  ;;  %1631 = vmatprep.mubr.f32.mxu0 %v14052_v61  ;;  %2168 = vmatprep.mubr.f32.mxu1 %v14052_v61  ;;  %v8736_v56 = vpop.permute.xlu0 %565  ;;  %v8747_v19 = vpop.permute.xlu1 %550  ;;  %v1647_v32 = vand.u32 4294901760, %v1646_v40  ;;  %v8752_v52 = vsub.f32 %v925_v44, %v8728_v25 }
  0xfb   : > { %v1101_v20 = vpop.f32.mrf.mxu0  ;;  %v1830_v33 = vpop.f32.mrf.mxu1  ;;  %v1657_v23 = vsub.f32 %v8695_v2, %v14148_v27  ;;  %14150 = vst [vmem:[#allocation122_spill] sm:$0xff] %v8754_v6 }
  0xfc   : > { %14146 = vst [vmem:[#allocation119_spill] sm:$0xff] %v8732_v55  ;;  %v8742_v53 = vadd.f32 %v1830_v33, %v1080_v62  ;;  %14149 = vst [vmem:[#allocation121_spill] sm:$0xff] %v8752_v52  ;;  %v1091_v33 = vadd.f32 %v1090_v21, %v8504_v7  ;;  %v1100_v62 = vadd.f32 %v1099_v63, %v8457_v47  ;;  %v14151_v21 = vand.u32 4294901760, %v8726_v22 }
  0xfd   : > { %v1110_v1 = vpop.f32.mrf.mxu0  ;;  %1637 = vmatmul.mubr.f32.gmra.mxu0 %v1636_v42  ;;  %v1835_v41 = vpop.f32.mrf.mxu1  ;;  %2170 = vmatmul.mubr.f32.gmra.mxu1 %v8588_v30  ;;  %v931_v42 = vsel %vm740_vm0, %v353_v24, 0  ;;  %v1658_v44 = vand.u32 4294901760, %v1657_v23  ;;  %v8773_v24 = vsub.f32 %v928_v38, %v8754_v6 }
  0xfe   : > { %14147 = vst [vmem:[#allocation120_spill] sm:$0xff] %v8742_v53  ;;  %v8758_v27 = vadd.f32 %v1835_v41, %v1089_v36  ;;  %1642 = vmatprep.mubr.f32.mxu0 %v14052_v61  ;;  %2175 = vmatprep.mubr.f32.mxu1 %v14052_v61  ;;  %v8765_v2 = vpop.permute.xlu0 %555  ;;  %v1668_v63 = vsub.f32 %v8726_v22, %v14151_v21  ;;  %v8775_v41 = vand.u32 4294901760, %v931_v42 }
  0xff   : > { %v1112_v40 = vpop.f32.mrf.mxu0  ;;  %v1837_v30 = vpop.f32.mrf.mxu1  ;;  %14152 = vst [vmem:[#allocation123_spill] sm:$0xff] %v8773_v24  ;;  %v1111_v23 = vadd.f32 %v1110_v1, %v8475_v58 }
 0x100   : > { %v8763_v55 = vadd.f32 %v1837_v30, %v1091_v33  ;;  %14153 = vst [vmem:[#allocation124_spill] sm:$0xff] %v8775_v41  ;;  %v1102_v30 = vadd.f32 %v1101_v20, %v8457_v47  ;;  %v1669_v47 = vand.u32 4294901760, %v1668_v63  ;;  %v14155_v20 = vand.u32 4294901760, %v8752_v52 }
 0x101   : > { %v1121_v53 = vpop.f32.mrf.mxu0  ;;  %1648 = vmatmul.mubr.f32.gmra.mxu0 %v1647_v32  ;;  %v1842_v7 = vpop.f32.mrf.mxu1  ;;  %2177 = vmatmul.mubr.f32.gmra.mxu1 %v8613_v17 }
 0x102   : > { %v8779_v33 = vadd.f32 %v1842_v7, %v1100_v62  ;;  %1653 = vmatprep.mubr.f32.mxu0 %v14052_v61  ;;  %2182 = vmatprep.mubr.f32.mxu1 %v14052_v61  ;;  %v8783_v32 = vpop.permute.xlu1 %540  ;;  %v1679_v1 = vsub.f32 %v8752_v52, %v14155_v20  ;;  %v8793_v7 = vsub.f32 %v931_v42, %v8775_v41 }
 0x103   : > { %v1123_v21 = vpop.f32.mrf.mxu0  ;;  %v1844_v17 = vpop.f32.mrf.mxu1 }
 0x104   : > { %14154 = vst [vmem:[#allocation125_spill] sm:$0xff] %v8779_v33  ;;  %v8785_v36 = vadd.f32 %v1844_v17, %v1102_v30  ;;  %14156 = vst [vmem:[#allocation126_spill] sm:$0xff] %v8793_v7  ;;  %v1113_v33 = vadd.f32 %v1112_v40, %v8475_v58  ;;  %v1122_v17 = vadd.f32 %v1121_v53, %v8427_v5  ;;  %v1680_v58 = vand.u32 4294901760, %v1679_v1 }
 0x105   : > { %v1132_v38 = vpop.f32.mrf.mxu0  ;;  %1659 = vmatmul.mubr.f32.gmra.mxu0 %v1658_v44  ;;  %v1849_v22 = vpop.f32.mrf.mxu1  ;;  %2184 = vmatmul.mubr.f32.gmra.mxu1 %v8634_v29  ;;  %v14159_v53 = vand.u32 4294901760, %v8773_v24  ;;  %v13547_v40 = vand.u32 4294901760, %v8793_v7 }
 0x106   : > { %v8797_v30 = vadd.f32 %v1849_v22, %v1111_v23  ;;  %1664 = vmatprep.mubr.f32.mxu0 %v14052_v61  ;;  %2189 = vmatprep.mubr.f32.mxu1 %v14052_v61  ;;  %v8801_v44 = vpop.permute.xlu0 %545  ;;  %v8805_v62 = vpop.permute.xlu1 %530  ;;  %v1124_v23 = vadd.f32 %v1123_v21, %v8427_v5 }
 0x107   : > { %v1134_v63 = vpop.f32.mrf.mxu0  ;;  %v1851_v29 = vpop.f32.mrf.mxu1  ;;  %v1690_v22 = vsub.f32 %v8773_v24, %v14159_v53 }
 0x108   : > { %14157 = vst [vmem:[#allocation127_spill] sm:$0xff] %v8797_v30  ;;  %v8803_v20 = vadd.f32 %v1851_v29, %v1113_v33  ;;  %v1133_v30 = vadd.f32 %v1132_v38, %v8446_v57  ;;  %v1135_v21 = vadd.f32 %v1134_v63, %v8446_v57 }
 0x109   : > { %v1143_v42 = vpop.f32.mrf.mxu0  ;;  %1670 = vmatmul.mubr.f32.gmra.mxu0 %v1669_v47  ;;  %v1856_v52 = vpop.f32.mrf.mxu1  ;;  %2191 = vmatmul.mubr.f32.gmra.mxu1 %v8656_v50  ;;  %v1691_v5 = vand.u32 4294901760, %v1690_v22 }
 0x10a   : > { %14158 = vst [vmem:[#allocation128_spill] sm:$0xff] %v8803_v20  ;;  %v8814_v29 = vadd.f32 %v1856_v52, %v1122_v17  ;;  %1675 = vmatprep.mubr.f32.mxu0 %v14052_v61  ;;  %2196 = vmatprep.mubr.f32.mxu1 %v14052_v61  ;;  %v8820_v1 = vpop.permute.xlu0 %535  ;;  %v1701_v52 = vsub.f32 %v8793_v7, %v13547_v40 }
 0x10b   : > { %v1145_v33 = vpop.f32.mrf.mxu0  ;;  %v1858_v47 = vpop.f32.mrf.mxu1  ;;  %v1144_v38 = vadd.f32 %v1143_v42, %v8398_v12 }
 0x10c   : > { %v8818_v50 = vadd.f32 %v1858_v47, %v1124_v23  ;;  %v8832_v23 = vpop.permute.xlu1 %520  ;;  %v1702_v57 = vand.u32 4294901760, %v1701_v52  ;;  %v1146_v63 = vadd.f32 %v1145_v33, %v8398_v12 }
 0x10d   : > { %v1154_v20 = vpop.f32.mrf.mxu0  ;;  %1681 = vmatmul.mubr.f32.gmra.mxu0 %v1680_v58  ;;  %v1863_v53 = vpop.f32.mrf.mxu1  ;;  %2198 = vmatmul.mubr.f32.gmra.mxu1 %v8672_v8 }
 0x10e   : > { %v8828_v17 = vadd.f32 %v1863_v53, %v1133_v30  ;;  %1686 = vmatprep.mubr.f32.mxu0 %v14052_v61  ;;  %2203 = vmatprep.mubr.f32.mxu1 %v14052_v61  ;;  %v1155_v30 = vadd.f32 %v1154_v20, %v8375_v18  ;;  %v8843_v53 = vpop.permute.xlu0 %525 }
 0x10f   : > { %v1156_v58 = vpop.f32.mrf.mxu0  ;;  %v1865_v47 = vpop.f32.mrf.mxu1 }
 0x110   : > { %v8834_v8 = vadd.f32 %v1865_v47, %v1135_v21  ;;  %v1157_v12 = vadd.f32 %v1156_v58, %v8375_v18 }
 0x111   : > { %v1165_v22 = vpop.f32.mrf.mxu0  ;;  %1692 = vmatmul.mubr.f32.gmra.mxu0 %v1691_v5  ;;  %v1870_v24 = vpop.f32.mrf.mxu1  ;;  %2205 = vmatmul.mubr.f32.gmra.mxu1 %v8704_v51 }
 0x112   : > { %v8839_v42 = vadd.f32 %v1870_v24, %v1144_v38  ;;  %1697 = vmatprep.mubr.f32.mxu0 %v14052_v61  ;;  %2210 = vmatprep.mubr.f32.mxu1 %v14052_v61  ;;  %v8847_v5 = vpop.permute.xlu1 %510  ;;  %v1166_v24 = vadd.f32 %v1165_v22, %v8419_v11 }
 0x113   : > { %v1167_v21 = vpop.f32.mrf.mxu0  ;;  %v1872_v47 = vpop.f32.mrf.mxu1 }
 0x114   : > { %v8845_v40 = vadd.f32 %v1872_v47, %v1146_v63  ;;  %v8858_v47 = vpop.permute.xlu0 %515  ;;  %v1168_v18 = vadd.f32 %v1167_v21, %v8419_v11 }
 0x115   : > { %v1176_v51 = vpop.f32.mrf.mxu0  ;;  %1703 = vmatmul.mubr.f32.gmra.mxu0 %v1702_v57  ;;  %v1877_v52 = vpop.f32.mrf.mxu1  ;;  %2212 = vmatmul.mubr.f32.gmra.mxu1 %v8728_v25 }
 0x116   : > { %v8852_v20 = vadd.f32 %v1877_v52, %v1155_v30  ;;  %2217 = vmatprep.mubr.f32.mxu1 %v14052_v61  ;;  %2300 = vmatprep.mubr.f32.mxu0 %v14052_v61  ;;  %v1177_v58 = vadd.f32 %v1176_v51, %v8391_v31  ;;  %v501_v30 = vpop.permute.xlu1 %500 }
 0x117   : > { %v1178_v33 = vpop.f32.mrf.mxu0  ;;  %v1879_v38 = vpop.f32.mrf.mxu1 }
 0x118   : > { %v8856_v63 = vadd.f32 %v1879_v38, %v1157_v12  ;;  %v14161_v38 = vand.u32 4294901760, %v7565_v39  ;;  %v1179_v11 = vadd.f32 %v1178_v33, %v8391_v31  ;;  %v506_v21 = vpop.permute.xlu0 %505 }
 0x119   : > { %v1187_v57 = vpop.f32.mrf.mxu0  ;;  %v1884_v7 = vpop.f32.mrf.mxu1  ;;  %2219 = vmatmul.mubr.f32.gmra.mxu1 %v8754_v6  ;;  %2303 = vmatmul.mubr.f32.vlgmr.msra.gmra.mxu0 %v7514_v14 }
 0x11a   : > { %14160 = vst [vmem:[#allocation129_spill] sm:$0xff] %v8856_v63  ;;  %v8864_v22 = vadd.f32 %v1884_v7, %v1166_v24  ;;  %2224 = vmatprep.mubr.f32.mxu1 %v14052_v61  ;;  %2308 = vmatprep.mubr.f32.mxu0 %v14052_v61  ;;  %v1188_v7 = vadd.f32 %v1187_v57, %v501_v30 }
 0x11b   : > { %v1189_v52 = vpop.f32.mrf.mxu0  ;;  %v1886_v12 = vpop.f32.mrf.mxu1  ;;  %3493 = vmatpush1.msra.mxu0 %v14161_v38 }
 0x11c   : > { %v8870_v25 = vadd.f32 %v1886_v12, %v1168_v18  ;;  %v1190_v31 = vadd.f32 %v1189_v52, %v501_v30 }
 0x11d   : > { %v1198_v6 = vpop.f32.mrf.mxu0  ;;  %v1891_v63 = vpop.f32.mrf.mxu1  ;;  %2226 = vmatmul.mubr.f32.gmra.mxu1 %v8775_v41  ;;  %2311 = vmatmul.mubr.f32.gmra.mxu0 %v7517_v15  ;;  %v14163_v41 = vand.u32 4294901760, %v7514_v14  ;;  %v14164_v14 = vand.u32 4294901760, %v7517_v15  ;;  %v14165_v15 = vand.u32 4294901760, %v7523_v16 }
 0x11e   : > { %v8875_v51 = vadd.f32 %v1891_v63, %v1177_v58  ;;  %2316 = vmatprep.mubr.f32.mxu0 %v14052_v61  ;;  %2879 = vmatprep.mubr.f32.mxu1 %v14052_v61  ;;  %v1199_v63 = vadd.f32 %v1198_v6, %v506_v21 }
 0x11f   : > { %v1200_v39 = vpop.f32.mrf.mxu0  ;;  %v1893_v24 = vpop.f32.mrf.mxu1 }
 0x120   : > { %v8879_v18 = vadd.f32 %v1893_v24, %v1179_v11  ;;  %v1201_v6 = vadd.f32 %v1200_v39, %v506_v21 }
 0x121   : > { %v1209_v12 = vpop.f32.mrf.mxu0  ;;  %v1898_v38 = vpop.f32.mrf.mxu1  ;;  %2319 = vmatmul.mubr.f32.gmra.mxu0 %v7523_v16  ;;  %2883 = vmatmul.mubr.f32.vlgmr.msra.gmra.mxu1 %v14163_v41  ;;  %v14166_v16 = vand.u32 4294901760, %v7555_v34 }
 0x122   : > { %14162 = vst [vmem:[#allocation130_spill] sm:$0xff] %v8879_v18  ;;  %v8884_v33 = vadd.f32 %v1898_v38, %v1188_v7  ;;  %2324 = vmatprep.mubr.f32.mxu0 %v14052_v61  ;;  %2888 = vmatprep.mubr.f32.mxu1 %v14052_v61  ;;  %v1210_v41 = vadd.f32 %v1209_v12, %v8847_v5 }
 0x123   : > { %v1211_v57 = vpop.f32.mrf.mxu0  ;;  %v1900_v58 = vpop.f32.mrf.mxu1  ;;  %4008 = vmatpush1.msra.mxu1 %v7543_v28 }
 0x124   : > { %v8889_v11 = vadd.f32 %v1900_v58, %v1190_v31  ;;  %v1212_v12 = vadd.f32 %v1211_v57, %v8847_v5 }
 0x125   : > { %v1220_v24 = vpop.f32.mrf.mxu0  ;;  %v1905_v18 = vpop.f32.mrf.mxu1  ;;  %2327 = vmatmul.mubr.f32.gmra.mxu0 %v7555_v34  ;;  %2892 = vmatmul.mubr.f32.gmra.mxu1 %v14164_v14  ;;  %v14168_v34 = vand.u32 4294901760, %v7582_v46 }
 0x126   : > { %v8895_v30 = vadd.f32 %v1905_v18, %v1199_v63  ;;  %2332 = vmatprep.mubr.f32.mxu0 %v14052_v61  ;;  %2897 = vmatprep.mubr.f32.mxu1 %v14052_v61  ;;  %v1221_v21 = vadd.f32 %v1220_v24, %v8858_v47 }
 0x127   : > { %v1222_v52 = vpop.f32.mrf.mxu0  ;;  %v1907_v28 = vpop.f32.mrf.mxu1 }
 0x128   : > { %v8899_v7 = vadd.f32 %v1907_v28, %v1201_v6  ;;  %v1223_v5 = vadd.f32 %v1222_v52, %v8858_v47 }
 0x129   : > { %v1231_v38 = vpop.f32.mrf.mxu0  ;;  %v1912_v31 = vpop.f32.mrf.mxu1  ;;  %2335 = vmatmul.mubr.f32.gmra.mxu0 %v7582_v46  ;;  %2901 = vmatmul.mubr.f32.gmra.mxu1 %v14165_v15  ;;  %v14170_v46 = vand.u32 4294901760, %v7605_v59 }
 0x12a   : > { %v8906_v39 = vadd.f32 %v1912_v31, %v1210_v41  ;;  %2340 = vmatprep.mubr.f32.mxu0 %v14052_v61  ;;  %2906 = vmatprep.mubr.f32.mxu1 %v14052_v61  ;;  %v1232_v57 = vadd.f32 %v1231_v38, %v8832_v23  ;;  %v8923_v15 = vpop.permute.xlu1 %650 }
 0x12b   : > { %v1233_v18 = vpop.f32.mrf.mxu0  ;;  %v1914_v63 = vpop.f32.mrf.mxu1 }
 0x12c   : > { %v8910_v58 = vadd.f32 %v1914_v63, %v1212_v12  ;;  %v1234_v47 = vadd.f32 %v1233_v18, %v8832_v23 }
 0x12d   : > { %v1242_v14 = vpop.f32.mrf.mxu0  ;;  %v1919_v6 = vpop.f32.mrf.mxu1  ;;  %2343 = vmatmul.mubr.f32.gmra.mxu0 %v7605_v59  ;;  %2910 = vmatmul.mubr.f32.gmra.mxu1 %v14166_v16  ;;  %v14172_v59 = vand.u32 4294901760, %v7630_v10 }
 0x12e   : > { %v8917_v24 = vadd.f32 %v1919_v6, %v1221_v21  ;;  %2348 = vmatprep.mubr.f32.mxu0 %v14052_v61  ;;  %2915 = vmatprep.mubr.f32.mxu1 %v14052_v61  ;;  %v1243_v52 = vadd.f32 %v1242_v14, %v8843_v53 }
 0x12f   : > { %v1244_v41 = vpop.f32.mrf.mxu0  ;;  %v1921_v28 = vpop.f32.mrf.mxu1 }
 0x130   : > { %v8921_v31 = vadd.f32 %v1921_v28, %v1223_v5  ;;  %v8936_v5 = vpop.permute.xlu0 %655  ;;  %v1245_v23 = vadd.f32 %v1244_v41, %v8843_v53 }
 0x131   : > { %v1253_v12 = vpop.f32.mrf.mxu0  ;;  %v1926_v63 = vpop.f32.mrf.mxu1  ;;  %2351 = vmatmul.mubr.f32.gmra.mxu0 %v7630_v10  ;;  %2919 = vmatmul.mubr.f32.gmra.mxu1 %v14168_v34 }
 0x132   : > { %14167 = vst [vmem:[#allocation131_spill] sm:$0xff] %v8921_v31  ;;  %v8930_v38 = vadd.f32 %v1926_v63, %v1232_v57  ;;  %2356 = vmatprep.mubr.f32.mxu0 %v14052_v61  ;;  %2924 = vmatprep.mubr.f32.mxu1 %v14052_v61  ;;  %v1254_v18 = vadd.f32 %v1253_v12, %v8805_v62  ;;  %v8947_v57 = vpop.permute.xlu1 %640 }
 0x133   : > { %v1255_v21 = vpop.f32.mrf.mxu0  ;;  %v1928_v6 = vpop.f32.mrf.mxu1 }
 0x134   : > { %v8934_v16 = vadd.f32 %v1928_v6, %v1234_v47  ;;  %v1256_v53 = vadd.f32 %v1255_v21, %v8805_v62  ;;  %v8960_v12 = vpop.permute.xlu0 %645  ;;  %v14175_v62 = vand.u32 4294901760, %v7653_v26 }
 0x135   : > { %v1264_v28 = vpop.f32.mrf.mxu0  ;;  %v1933_v31 = vpop.f32.mrf.mxu1  ;;  %2359 = vmatmul.mubr.f32.gmra.mxu0 %v7653_v26  ;;  %2928 = vmatmul.mubr.f32.gmra.mxu1 %v14170_v46  ;;  %v14177_v26 = vand.u32 4294901760, %v7678_v43 }
 0x136   : > { %14169 = vst [vmem:[#allocation132_spill] sm:$0xff] %v8934_v16  ;;  %v8943_v14 = vadd.f32 %v1933_v31, %v1243_v52  ;;  %2364 = vmatprep.mubr.f32.mxu0 %v14052_v61  ;;  %2933 = vmatprep.mubr.f32.mxu1 %v14052_v61  ;;  %v1265_v41 = vadd.f32 %v1264_v28, %v8820_v1 }
 0x137   : > { %v1266_v63 = vpop.f32.mrf.mxu0  ;;  %v1935_v34 = vpop.f32.mrf.mxu1 }
 0x138   : > { %v8949_v47 = vadd.f32 %v1935_v34, %v1245_v23  ;;  %v8964_v34 = vpop.permute.xlu1 %630  ;;  %v1267_v21 = vadd.f32 %v1266_v63, %v8820_v1 }
 0x139   : > { %v1275_v6 = vpop.f32.mrf.mxu0  ;;  %v1940_v16 = vpop.f32.mrf.mxu1  ;;  %2367 = vmatmul.mubr.f32.gmra.mxu0 %v7678_v43  ;;  %2937 = vmatmul.mubr.f32.gmra.mxu1 %v14172_v59  ;;  %v14179_v43 = vand.u32 4294901760, %v7687_v49 }
 0x13a   : > { %14171 = vst [vmem:[#allocation133_spill] sm:$0xff] %v8949_v47  ;;  %v8956_v31 = vadd.f32 %v1940_v16, %v1254_v18  ;;  %2372 = vmatprep.mubr.f32.mxu0 %v14052_v61  ;;  %2942 = vmatprep.mubr.f32.mxu1 %v14052_v61  ;;  %v1276_v16 = vadd.f32 %v1275_v6, %v8783_v32 }
 0x13b   : > { %v1277_v52 = vpop.f32.mrf.mxu0  ;;  %v1942_v46 = vpop.f32.mrf.mxu1 }
 0x13c   : > { %14173 = vst [vmem:[#allocation134_spill] sm:$0xff] %v8956_v31  ;;  %v8962_v23 = vadd.f32 %v1942_v46, %v1256_v53  ;;  %v1278_v1 = vadd.f32 %v1277_v52, %v8783_v32 }
 0x13d   : > { %v1286_v10 = vpop.f32.mrf.mxu0  ;;  %v1947_v59 = vpop.f32.mrf.mxu1  ;;  %2375 = vmatmul.mubr.f32.gmra.mxu0 %v7687_v49  ;;  %2946 = vmatmul.mubr.f32.gmra.mxu1 %v14175_v62 }
 0x13e   : > { %14174 = vst [vmem:[#allocation135_spill] sm:$0xff] %v8962_v23  ;;  %v8971_v28 = vadd.f32 %v1947_v59, %v1265_v41  ;;  %2380 = vmatprep.mubr.f32.mxu0 %v14052_v61  ;;  %2951 = vmatprep.mubr.f32.mxu1 %v14052_v61  ;;  %v8977_v23 = vpop.permute.xlu0 %635  ;;  %v1287_v63 = vadd.f32 %v1286_v10, %v8801_v44  ;;  %v8988_v41 = vpop.permute.xlu1 %620 }
 0x13f   : > { %v1288_v18 = vpop.f32.mrf.mxu0  ;;  %v1949_v53 = vpop.f32.mrf.mxu1 }
 0x140   : > { %v8975_v46 = vadd.f32 %v1949_v53, %v1267_v21  ;;  %v1289_v32 = vadd.f32 %v1288_v18, %v8801_v44  ;;  %v14182_v44 = vand.u32 4294901760, %v7723_v3 }
 0x141   : > { %v1297_v31 = vpop.f32.mrf.mxu0  ;;  %v1954_v47 = vpop.f32.mrf.mxu1  ;;  %2383 = vmatmul.mubr.f32.gmra.mxu0 %v7723_v3  ;;  %2955 = vmatmul.mubr.f32.gmra.mxu1 %v14177_v26  ;;  %v14185_v3 = vand.u32 4294901760, %v7732_v9 }
 0x142   : > { %14176 = vst [vmem:[#allocation136_spill] sm:$0xff] %v8975_v46  ;;  %v8984_v6 = vadd.f32 %v1954_v47, %v1276_v16  ;;  %2388 = vmatprep.mubr.f32.mxu0 %v14052_v61  ;;  %2960 = vmatprep.mubr.f32.mxu1 %v14052_v61  ;;  %v1298_v47 = vadd.f32 %v1297_v31, %v8747_v19  ;;  %v9001_v10 = vpop.permute.xlu0 %625 }
 0x143   : > { %v1299_v59 = vpop.f32.mrf.mxu0  ;;  %v1956_v62 = vpop.f32.mrf.mxu1 }
 0x144   : > { %v8990_v21 = vadd.f32 %v1956_v62, %v1278_v1  ;;  %v9005_v62 = vpop.permute.xlu1 %610  ;;  %v1300_v31 = vadd.f32 %v1299_v59, %v8747_v19 }
 0x145   : > { %v1308_v53 = vpop.f32.mrf.mxu0  ;;  %v1961_v46 = vpop.f32.mrf.mxu1  ;;  %2391 = vmatmul.mubr.f32.gmra.mxu0 %v7732_v9  ;;  %2964 = vmatmul.mubr.f32.gmra.mxu1 %v14179_v43  ;;  %v14188_v9 = vand.u32 4294901760, %v7765_v48 }
 0x146   : > { %14178 = vst [vmem:[#allocation137_spill] sm:$0xff] %v8990_v21  ;;  %v8997_v52 = vadd.f32 %v1961_v46, %v1287_v63  ;;  %2396 = vmatprep.mubr.f32.mxu0 %v14052_v61  ;;  %2969 = vmatprep.mubr.f32.mxu1 %v14052_v61  ;;  %v1309_v18 = vadd.f32 %v1308_v53, %v8765_v2 }
 0x147   : > { %v1310_v16 = vpop.f32.mrf.mxu0  ;;  %v1963_v26 = vpop.f32.mrf.mxu1 }
 0x148   : > { %14180 = vst [vmem:[#allocation138_spill] sm:$0xff] %v8997_v52  ;;  %v9003_v1 = vadd.f32 %v1963_v26, %v1289_v32  ;;  %v1311_v19 = vadd.f32 %v1310_v16, %v8765_v2 }
 0x149   : > { %v1319_v49 = vpop.f32.mrf.mxu0  ;;  %v1968_v43 = vpop.f32.mrf.mxu1  ;;  %2399 = vmatmul.mubr.f32.gmra.mxu0 %v7765_v48  ;;  %2973 = vmatmul.mubr.f32.gmra.mxu1 %v14182_v44 }
 0x14a   : > { %14181 = vst [vmem:[#allocation139_spill] sm:$0xff] %v9003_v1  ;;  %v9012_v46 = vadd.f32 %v1968_v43, %v1298_v47  ;;  %2404 = vmatprep.mubr.f32.mxu0 %v14052_v61  ;;  %2978 = vmatprep.mubr.f32.mxu1 %v14052_v61  ;;  %v9018_v1 = vpop.permute.xlu0 %615  ;;  %v1320_v59 = vadd.f32 %v1319_v49, %v8712_v35  ;;  %v9029_v47 = vpop.permute.xlu1 %600 }
 0x14b   : > { %v1321_v63 = vpop.f32.mrf.mxu0  ;;  %v1970_v32 = vpop.f32.mrf.mxu1 }
 0x14c   : > { %14183 = vst [vmem:[#allocation140_spill] sm:$0xff] %v9012_v46  ;;  %v9016_v26 = vadd.f32 %v1970_v32, %v1300_v31  ;;  %v1322_v2 = vadd.f32 %v1321_v63, %v8712_v35  ;;  %v14192_v35 = vand.u32 4294901760, %v7788_v0  ;;  %v14199_v46 = vld [vmem:[#allocation22_spill] sm:$0xff] }
 0x14d   : > { %v1330_v52 = vpop.f32.mrf.mxu0  ;;  %v1975_v21 = vpop.f32.mrf.mxu1  ;;  %2407 = vmatmul.mubr.f32.gmra.mxu0 %v7788_v0  ;;  %2982 = vmatmul.mubr.f32.gmra.mxu1 %v14185_v3  ;;  %v14195_v0 = vld [vmem:[#allocation21_spill] sm:$0xff] }
 0x14e   : > { %14184 = vst [vmem:[#allocation141_spill] sm:$0xff] %v9016_v26  ;;  %v9025_v53 = vadd.f32 %v1975_v21, %v1309_v18  ;;  %2412 = vmatprep.mubr.f32.mxu0 %v14052_v61  ;;  %2987 = vmatprep.mubr.f32.mxu1 %v14052_v61  ;;  %v1331_v21 = vadd.f32 %v1330_v52, %v8736_v56  ;;  %v9042_v49 = vpop.permute.xlu0 %605 }
 0x14f   : > { %v1332_v43 = vpop.f32.mrf.mxu0  ;;  %v1977_v44 = vpop.f32.mrf.mxu1 }
 0x150   : > { %14186 = vst [vmem:[#allocation142_spill] sm:$0xff] %v9025_v53  ;;  %v9031_v31 = vadd.f32 %v1977_v44, %v1311_v19  ;;  %v9046_v44 = vpop.permute.xlu1 %590  ;;  %v1333_v52 = vadd.f32 %v1332_v43, %v8736_v56  ;;  %v14196_v56 = vand.u32 4294901760, %v7811_v37 }
 0x151   : > { %v1341_v32 = vpop.f32.mrf.mxu0  ;;  %v1982_v26 = vpop.f32.mrf.mxu1  ;;  %2415 = vmatmul.mubr.f32.gmra.mxu0 %v7811_v37  ;;  %2991 = vmatmul.mubr.f32.gmra.mxu1 %v14188_v9 }
 0x152   : > { %14187 = vst [vmem:[#allocation143_spill] sm:$0xff] %v9031_v31  ;;  %v9038_v16 = vadd.f32 %v1982_v26, %v1320_v59  ;;  %2420 = vmatprep.mubr.f32.mxu0 %v14052_v61  ;;  %2996 = vmatprep.mubr.f32.mxu1 %v14052_v61  ;;  %v14191_v31 = vld [vmem:[#allocation18_spill] sm:$0xff]  ;;  %v1342_v63 = vadd.f32 %v1341_v32, %v8670_v54 }
 0x153   : > { %v1343_v18 = vpop.f32.mrf.mxu0  ;;  %v1984_v3 = vpop.f32.mrf.mxu1  ;;  %v14200_v37 = vand.u32 4294901760, %v14191_v31 }
 0x154   : > { %14189 = vst [vmem:[#allocation144_spill] sm:$0xff] %v9038_v16  ;;  %v9044_v19 = vadd.f32 %v1984_v3, %v1322_v2  ;;  %v1344_v43 = vadd.f32 %v1343_v18, %v8670_v54 }
 0x155   : > { %v1352_v48 = vpop.f32.mrf.mxu0  ;;  %v1989_v9 = vpop.f32.mrf.mxu1  ;;  %2423 = vmatmul.mubr.f32.gmra.mxu0 %v14191_v31  ;;  %3000 = vmatmul.mubr.f32.gmra.mxu1 %v14192_v35  ;;  %v14204_v31 = vand.u32 4294901760, %v14195_v0 }
 0x156   : > { %14190 = vst [vmem:[#allocation145_spill] sm:$0xff] %v9044_v19  ;;  %v9053_v26 = vadd.f32 %v1989_v9, %v1331_v21  ;;  %2428 = vmatprep.mubr.f32.mxu0 %v14052_v61  ;;  %3005 = vmatprep.mubr.f32.mxu1 %v14052_v61  ;;  %v9059_v19 = vpop.permute.xlu0 %595  ;;  %v1353_v32 = vadd.f32 %v1352_v48, %v8697_v4  ;;  %v581_v9 = vpop.permute.xlu1 %580 }
 0x157   : > { %v1354_v59 = vpop.f32.mrf.mxu0  ;;  %v1991_v2 = vpop.f32.mrf.mxu1 }
 0x158   : > { %14193 = vst [vmem:[#allocation18_spill] sm:$0xff] %v9053_v26  ;;  %v9057_v3 = vadd.f32 %v1991_v2, %v1333_v52  ;;  %v1355_v54 = vadd.f32 %v1354_v59, %v8697_v4 }
 0x159   : > { %v1363_v16 = vpop.f32.mrf.mxu0  ;;  %v1996_v53 = vpop.f32.mrf.mxu1  ;;  %2431 = vmatmul.mubr.f32.gmra.mxu0 %v14195_v0  ;;  %3009 = vmatmul.mubr.f32.gmra.mxu1 %v14196_v56 }
 0x15a   : > { %14194 = vst [vmem:[#allocation146_spill] sm:$0xff] %v9057_v3  ;;  %v9066_v21 = vadd.f32 %v1996_v53, %v1342_v63  ;;  %2436 = vmatprep.mubr.f32.mxu0 %v14052_v61  ;;  %3014 = vmatprep.mubr.f32.mxu1 %v14052_v61  ;;  %v1364_v18 = vadd.f32 %v1363_v16, %v581_v9  ;;  %v586_v48 = vpop.permute.xlu0 %585 }
 0x15b   : > { %v1365_v35 = vpop.f32.mrf.mxu0  ;;  %v1998_v52 = vpop.f32.mrf.mxu1 }
 0x15c   : > { %14197 = vst [vmem:[#allocation21_spill] sm:$0xff] %v9066_v21  ;;  %v9070_v2 = vadd.f32 %v1998_v52, %v1344_v43  ;;  %v14203_v21 = vld [vmem:[#allocation25_spill] sm:$0xff]  ;;  %v1366_v4 = vadd.f32 %v1365_v35, %v581_v9 }
 0x15d   : > { %v1374_v3 = vpop.f32.mrf.mxu0  ;;  %v2003_v26 = vpop.f32.mrf.mxu1  ;;  %2439 = vmatmul.mubr.f32.gmra.mxu0 %v14199_v46  ;;  %3018 = vmatmul.mubr.f32.gmra.mxu1 %v14200_v37 }
 0x15e   : > { %14198 = vst [vmem:[#allocation147_spill] sm:$0xff] %v9070_v2  ;;  %v9076_v53 = vadd.f32 %v2003_v26, %v1353_v32  ;;  %2444 = vmatprep.mubr.f32.mxu0 %v14052_v61  ;;  %3023 = vmatprep.mubr.f32.mxu1 %v14052_v61  ;;  %v1375_v16 = vadd.f32 %v1374_v3, %v586_v48 }
 0x15f   : > { %v1376_v63 = vpop.f32.mrf.mxu0  ;;  %v2005_v56 = vpop.f32.mrf.mxu1 }
 0x160   : > { %14201 = vst [vmem:[#allocation22_spill] sm:$0xff] %v9076_v53  ;;  %v9080_v43 = vadd.f32 %v2005_v56, %v1355_v54  ;;  %v14208_v53 = vand.u32 4294901760, %v14199_v46  ;;  %v1377_v9 = vadd.f32 %v1376_v63, %v586_v48  ;;  %v14212_v46 = vand.u32 4294901760, %v14203_v21 }
 0x161   : > { %v1385_v52 = vpop.f32.mrf.mxu0  ;;  %v2010_v2 = vpop.f32.mrf.mxu1  ;;  %2447 = vmatmul.mubr.f32.gmra.mxu0 %v14203_v21  ;;  %3027 = vmatmul.mubr.f32.gmra.mxu1 %v14204_v31 }
 0x162   : > { %14202 = vst [vmem:[#allocation148_spill] sm:$0xff] %v9080_v43  ;;  %v9085_v26 = vadd.f32 %v2010_v2, %v1364_v18  ;;  %2452 = vmatprep.mubr.f32.mxu0 %v14052_v61  ;;  %3032 = vmatprep.mubr.f32.mxu1 %v14052_v61  ;;  %v14207_v43 = vld [vmem:[#allocation26_spill] sm:$0xff]  ;;  %v1386_v0 = vadd.f32 %v1385_v52, %v9046_v44 }
 0x163   : > { %v1387_v59 = vpop.f32.mrf.mxu0  ;;  %v2012_v32 = vpop.f32.mrf.mxu1  ;;  %v14216_v21 = vand.u32 4294901760, %v14207_v43 }
 0x164   : > { %14205 = vst [vmem:[#allocation25_spill] sm:$0xff] %v9085_v26  ;;  %v9089_v37 = vadd.f32 %v2012_v32, %v1366_v4  ;;  %v14211_v32 = vld [vmem:[#allocation28_spill] sm:$0xff]  ;;  %v14263_v26 = vld [vmem:[#allocation54_spill] sm:$0xff] }
 0x165   : > { %v1396_v54 = vpop.f32.mrf.mxu0  ;;  %v2017_v56 = vpop.f32.mrf.mxu1  ;;  %2455 = vmatmul.mubr.f32.gmra.mxu0 %v14207_v43  ;;  %3036 = vmatmul.mubr.f32.gmra.mxu1 %v14208_v53  ;;  %v1388_v53 = vadd.f32 %v1387_v59, %v9046_v44  ;;  %v14219_v43 = vld [vmem:[#allocation33_spill] sm:$0xff] }
 0x166   : > { %14206 = vst [vmem:[#allocation149_spill] sm:$0xff] %v9089_v37  ;;  %v9095_v35 = vadd.f32 %v2017_v56, %v1375_v16  ;;  %2460 = vmatprep.mubr.f32.mxu0 %v14052_v61  ;;  %3041 = vmatprep.mubr.f32.mxu1 %v14052_v61  ;;  %v1397_v48 = vadd.f32 %v1396_v54, %v9059_v19 }
 0x167   : > { %v1398_v3 = vpop.f32.mrf.mxu0  ;;  %v2019_v2 = vpop.f32.mrf.mxu1 }
 0x168   : > { %14209 = vst [vmem:[#allocation26_spill] sm:$0xff] %v9095_v35  ;;  %v9099_v18 = vadd.f32 %v2019_v2, %v1377_v9  ;;  %v1399_v44 = vadd.f32 %v1398_v3, %v9059_v19  ;;  %v14220_v19 = vand.u32 4294901760, %v14211_v32 }
 0x169   : > { %v1407_v31 = vpop.f32.mrf.mxu0  ;;  %v2024_v4 = vpop.f32.mrf.mxu1  ;;  %2463 = vmatmul.mubr.f32.gmra.mxu0 %v14211_v32  ;;  %3045 = vmatmul.mubr.f32.gmra.mxu1 %v14212_v46  ;;  %v14223_v32 = vld [vmem:[#allocation34_spill] sm:$0xff] }
 0x16a   : > { %14210 = vst [vmem:[#allocation150_spill] sm:$0xff] %v9099_v18  ;;  %v9106_v63 = vadd.f32 %v2024_v4, %v1386_v0  ;;  %2468 = vmatprep.mubr.f32.mxu0 %v14052_v61  ;;  %3050 = vmatprep.mubr.f32.mxu1 %v14052_v61  ;;  %v14215_v18 = vld [vmem:[#allocation30_spill] sm:$0xff]  ;;  %v1408_v59 = vadd.f32 %v1407_v31, %v9029_v47 }
 0x16b   : > { %v1409_v52 = vpop.f32.mrf.mxu0  ;;  %v2026_v16 = vpop.f32.mrf.mxu1 }
 0x16c   : > { %14213 = vst [vmem:[#allocation28_spill] sm:$0xff] %v9106_v63  ;;  %v9110_v56 = vadd.f32 %v2026_v16, %v1388_v53  ;;  %v9123_v53 = vpop.permute.xlu1 %730  ;;  %v1410_v3 = vadd.f32 %v1409_v52, %v9029_v47  ;;  %v14224_v47 = vand.u32 4294901760, %v14215_v18 }
 0x16d   : > { %v1418_v9 = vpop.f32.mrf.mxu0  ;;  %v2031_v2 = vpop.f32.mrf.mxu1  ;;  %2471 = vmatmul.mubr.f32.gmra.mxu0 %v14215_v18  ;;  %3054 = vmatmul.mubr.f32.gmra.mxu1 %v14216_v21  ;;  %v14227_v18 = vld [vmem:[#allocation37_spill] sm:$0xff] }
 0x16e   : > { %14214 = vst [vmem:[#allocation151_spill] sm:$0xff] %v9110_v56  ;;  %v9117_v54 = vadd.f32 %v2031_v2, %v1397_v48  ;;  %2476 = vmatprep.mubr.f32.mxu0 %v14052_v61  ;;  %3059 = vmatprep.mubr.f32.mxu1 %v14052_v61  ;;  %v1419_v31 = vadd.f32 %v1418_v9, %v9042_v49 }
 0x16f   : > { %v1420_v0 = vpop.f32.mrf.mxu0  ;;  %v2033_v4 = vpop.f32.mrf.mxu1 }
 0x170   : > { %14217 = vst [vmem:[#allocation30_spill] sm:$0xff] %v9117_v54  ;;  %v9121_v46 = vadd.f32 %v2033_v4, %v1399_v44  ;;  %v9136_v4 = vpop.permute.xlu0 %735  ;;  %v1421_v52 = vadd.f32 %v1420_v0, %v9042_v49  ;;  %v14228_v49 = vand.u32 4294901760, %v14219_v43 }
 0x171   : > { %v1429_v16 = vpop.f32.mrf.mxu0  ;;  %v2038_v56 = vpop.f32.mrf.mxu1  ;;  %2479 = vmatmul.mubr.f32.gmra.mxu0 %v14219_v43  ;;  %3063 = vmatmul.mubr.f32.gmra.mxu1 %v14220_v19 }
 0x172   : > { %14218 = vst [vmem:[#allocation152_spill] sm:$0xff] %v9121_v46  ;;  %v9130_v48 = vadd.f32 %v2038_v56, %v1408_v59  ;;  %2484 = vmatprep.mubr.f32.mxu0 %v14052_v61  ;;  %3068 = vmatprep.mubr.f32.mxu1 %v14052_v61  ;;  %v1430_v56 = vadd.f32 %v1429_v16, %v9005_v62  ;;  %v9147_v59 = vpop.permute.xlu1 %720 }
 0x173   : > { %v1431_v2 = vpop.f32.mrf.mxu0  ;;  %v2040_v21 = vpop.f32.mrf.mxu1 }
 0x174   : > { %14221 = vst [vmem:[#allocation33_spill] sm:$0xff] %v9130_v48  ;;  %v9134_v44 = vadd.f32 %v2040_v21, %v1410_v3 }
 0x175   : > { %v1440_v46 = vpop.f32.mrf.mxu0  ;;  %v2045_v54 = vpop.f32.mrf.mxu1  ;;  %2487 = vmatmul.mubr.f32.gmra.mxu0 %v14223_v32  ;;  %3072 = vmatmul.mubr.f32.gmra.mxu1 %v14224_v47 }
 0x176   : > { %14222 = vst [vmem:[#allocation153_spill] sm:$0xff] %v9134_v44  ;;  %v9143_v9 = vadd.f32 %v2045_v54, %v1419_v31  ;;  %2492 = vmatprep.mubr.f32.mxu0 %v14052_v61  ;;  %3077 = vmatprep.mubr.f32.mxu1 %v14052_v61  ;;  %v1432_v54 = vadd.f32 %v1431_v2, %v9005_v62  ;;  %v9160_v31 = vpop.permute.xlu0 %725  ;;  %v14232_v62 = vand.u32 4294901760, %v14223_v32  ;;  %v14235_v32 = vld [vmem:[#allocation41_spill] sm:$0xff] }
 0x177   : > { %v1442_v19 = vpop.f32.mrf.mxu0  ;;  %v2047_v3 = vpop.f32.mrf.mxu1  ;;  %v1441_v0 = vadd.f32 %v1440_v46, %v9018_v1 }
 0x178   : > { %14225 = vst [vmem:[#allocation34_spill] sm:$0xff] %v9143_v9  ;;  %v9149_v21 = vadd.f32 %v2047_v3, %v1421_v52  ;;  %v14231_v9 = vld [vmem:[#allocation38_spill] sm:$0xff]  ;;  %v1443_v46 = vadd.f32 %v1442_v19, %v9018_v1  ;;  %v14236_v1 = vand.u32 4294901760, %v14227_v18 }
 0x179   : > { %v1451_v44 = vpop.f32.mrf.mxu0  ;;  %v2052_v48 = vpop.f32.mrf.mxu1  ;;  %2495 = vmatmul.mubr.f32.gmra.mxu0 %v14227_v18  ;;  %3081 = vmatmul.mubr.f32.gmra.mxu1 %v14228_v49  ;;  %v14239_v18 = vld [vmem:[#allocation42_spill] sm:$0xff] }
 0x17a   : > { %14226 = vst [vmem:[#allocation154_spill] sm:$0xff] %v9149_v21  ;;  %v9156_v16 = vadd.f32 %v2052_v48, %v1430_v56  ;;  %2500 = vmatprep.mubr.f32.mxu0 %v14052_v61  ;;  %3086 = vmatprep.mubr.f32.mxu1 %v14052_v61  ;;  %v9164_v21 = vpop.permute.xlu1 %710  ;;  %v1452_v48 = vadd.f32 %v1451_v44, %v8988_v41 }
 0x17b   : > { %v1453_v47 = vpop.f32.mrf.mxu0  ;;  %v2054_v52 = vpop.f32.mrf.mxu1 }
 0x17c   : > { %14229 = vst [vmem:[#allocation37_spill] sm:$0xff] %v9156_v16  ;;  %v9162_v3 = vadd.f32 %v2054_v52, %v1432_v54  ;;  %v1454_v44 = vadd.f32 %v1453_v47, %v8988_v41  ;;  %v14240_v41 = vand.u32 4294901760, %v14231_v9 }
 0x17d   : > { %v1462_v43 = vpop.f32.mrf.mxu0  ;;  %v2059_v49 = vpop.f32.mrf.mxu1  ;;  %2503 = vmatmul.mubr.f32.gmra.mxu0 %v14231_v9  ;;  %3090 = vmatmul.mubr.f32.gmra.mxu1 %v14232_v62 }
 0x17e   : > { %14230 = vst [vmem:[#allocation155_spill] sm:$0xff] %v9162_v3  ;;  %v9171_v2 = vadd.f32 %v2059_v49, %v1441_v0  ;;  %2508 = vmatprep.mubr.f32.mxu0 %v14052_v61  ;;  %3095 = vmatprep.mubr.f32.mxu1 %v14052_v61  ;;  %v9177_v3 = vpop.permute.xlu0 %715  ;;  %v1463_v19 = vadd.f32 %v1462_v43, %v9001_v10  ;;  %v9188_v49 = vpop.permute.xlu1 %700 }
 0x17f   : > { %v1464_v56 = vpop.f32.mrf.mxu0  ;;  %v2061_v54 = vpop.f32.mrf.mxu1 }
 0x180   : > { %14233 = vst [vmem:[#allocation38_spill] sm:$0xff] %v9171_v2  ;;  %v9175_v52 = vadd.f32 %v2061_v54, %v1443_v46 }
 0x181   : > { %v1473_v16 = vpop.f32.mrf.mxu0  ;;  %v2066_v63 = vpop.f32.mrf.mxu1  ;;  %2511 = vmatmul.mubr.f32.gmra.mxu0 %v14235_v32  ;;  %3099 = vmatmul.mubr.f32.gmra.mxu1 %v14236_v1 }
 0x182   : > { %14234 = vst [vmem:[#allocation156_spill] sm:$0xff] %v9175_v52  ;;  %v9184_v0 = vadd.f32 %v2066_v63, %v1452_v48  ;;  %2516 = vmatprep.mubr.f32.mxu0 %v14052_v61  ;;  %3104 = vmatprep.mubr.f32.mxu1 %v14052_v61  ;;  %v1465_v63 = vadd.f32 %v1464_v56, %v9001_v10  ;;  %v9201_v48 = vpop.permute.xlu0 %705  ;;  %v14244_v10 = vand.u32 4294901760, %v14235_v32  ;;  %v14247_v32 = vld [vmem:[#allocation46_spill] sm:$0xff] }
 0x183   : > { %v1475_v62 = vpop.f32.mrf.mxu0  ;;  %v2068_v46 = vpop.f32.mrf.mxu1  ;;  %v1474_v47 = vadd.f32 %v1473_v16, %v8964_v34 }
 0x184   : > { %14237 = vst [vmem:[#allocation41_spill] sm:$0xff] %v9184_v0  ;;  %v9190_v54 = vadd.f32 %v2068_v46, %v1454_v44  ;;  %v14243_v0 = vld [vmem:[#allocation44_spill] sm:$0xff]  ;;  %v1476_v16 = vadd.f32 %v1475_v62, %v8964_v34  ;;  %v14248_v34 = vand.u32 4294901760, %v14239_v18 }
 0x185   : > { %v1484_v52 = vpop.f32.mrf.mxu0  ;;  %v2073_v2 = vpop.f32.mrf.mxu1  ;;  %2519 = vmatmul.mubr.f32.gmra.mxu0 %v14239_v18  ;;  %3108 = vmatmul.mubr.f32.gmra.mxu1 %v14240_v41  ;;  %v14251_v18 = vld [vmem:[#allocation49_spill] sm:$0xff] }
 0x186   : > { %14238 = vst [vmem:[#allocation157_spill] sm:$0xff] %v9190_v54  ;;  %v9197_v43 = vadd.f32 %v2073_v2, %v1463_v19  ;;  %2524 = vmatprep.mubr.f32.mxu0 %v14052_v61  ;;  %3113 = vmatprep.mubr.f32.mxu1 %v14052_v61  ;;  %v9205_v54 = vpop.permute.xlu1 %690  ;;  %v1485_v2 = vadd.f32 %v1484_v52, %v8977_v23 }
 0x187   : > { %v1486_v1 = vpop.f32.mrf.mxu0  ;;  %v2075_v44 = vpop.f32.mrf.mxu1 }
 0x188   : > { %14241 = vst [vmem:[#allocation42_spill] sm:$0xff] %v9197_v43  ;;  %v9203_v46 = vadd.f32 %v2075_v44, %v1465_v63  ;;  %v1487_v52 = vadd.f32 %v1486_v1, %v8977_v23  ;;  %v14252_v23 = vand.u32 4294901760, %v14243_v0 }
 0x189   : > { %v1495_v9 = vpop.f32.mrf.mxu0  ;;  %v2080_v41 = vpop.f32.mrf.mxu1  ;;  %2527 = vmatmul.mubr.f32.gmra.mxu0 %v14243_v0  ;;  %3117 = vmatmul.mubr.f32.gmra.mxu1 %v14244_v10 }
 0x18a   : > { %14242 = vst [vmem:[#allocation158_spill] sm:$0xff] %v9203_v46  ;;  %v9212_v56 = vadd.f32 %v2080_v41, %v1474_v47  ;;  %2532 = vmatprep.mubr.f32.mxu0 %v14052_v61  ;;  %3122 = vmatprep.mubr.f32.mxu1 %v14052_v61  ;;  %v9218_v46 = vpop.permute.xlu0 %695  ;;  %v1496_v62 = vadd.f32 %v1495_v9, %v8947_v57  ;;  %v9229_v41 = vpop.permute.xlu1 %680 }
 0x18b   : > { %v1497_v19 = vpop.f32.mrf.mxu0  ;;  %v2082_v63 = vpop.f32.mrf.mxu1 }
 0x18c   : > { %14245 = vst [vmem:[#allocation44_spill] sm:$0xff] %v9212_v56  ;;  %v9216_v44 = vadd.f32 %v2082_v63, %v1476_v16 }
 0x18d   : > { %v1506_v43 = vpop.f32.mrf.mxu0  ;;  %v2087_v35 = vpop.f32.mrf.mxu1  ;;  %2535 = vmatmul.mubr.f32.gmra.mxu0 %v14247_v32  ;;  %3126 = vmatmul.mubr.f32.gmra.mxu1 %v14248_v34 }
 0x18e   : > { %14246 = vst [vmem:[#allocation159_spill] sm:$0xff] %v9216_v44  ;;  %v9225_v47 = vadd.f32 %v2087_v35, %v1485_v2  ;;  %2540 = vmatprep.mubr.f32.mxu0 %v14052_v61  ;;  %3131 = vmatprep.mubr.f32.mxu1 %v14052_v61  ;;  %v1498_v35 = vadd.f32 %v1497_v19, %v8947_v57  ;;  %v9242_v2 = vpop.permute.xlu0 %685  ;;  %v14256_v57 = vand.u32 4294901760, %v14247_v32  ;;  %v14259_v32 = vld [vmem:[#allocation53_spill] sm:$0xff] }
 0x18f   : > { %v1508_v10 = vpop.f32.mrf.mxu0  ;;  %v2089_v16 = vpop.f32.mrf.mxu1  ;;  %v1507_v1 = vadd.f32 %v1506_v43, %v8960_v12 }
 0x190   : > { %14249 = vst [vmem:[#allocation46_spill] sm:$0xff] %v9225_v47  ;;  %v9231_v63 = vadd.f32 %v2089_v16, %v1487_v52  ;;  %v14255_v47 = vld [vmem:[#allocation50_spill] sm:$0xff]  ;;  %v1509_v43 = vadd.f32 %v1508_v10, %v8960_v12  ;;  %v14260_v12 = vand.u32 4294901760, %v14251_v18 }
 0x191   : > { %v1517_v44 = vpop.f32.mrf.mxu0  ;;  %v2094_v56 = vpop.f32.mrf.mxu1  ;;  %2543 = vmatmul.mubr.f32.gmra.mxu0 %v14251_v18  ;;  %3135 = vmatmul.mubr.f32.gmra.mxu1 %v14252_v23  ;;  %v14264_v18 = vand.u32 4294901760, %v14255_v47 }
 0x192   : > { %14250 = vst [vmem:[#allocation160_spill] sm:$0xff] %v9231_v63  ;;  %v9238_v9 = vadd.f32 %v2094_v56, %v1496_v62  ;;  %2548 = vmatprep.mubr.f32.mxu0 %v14052_v61  ;;  %3140 = vmatprep.mubr.f32.mxu1 %v14052_v61  ;;  %v9246_v63 = vpop.permute.xlu1 %670  ;;  %v1518_v56 = vadd.f32 %v1517_v44, %v8923_v15 }
 0x193   : > { %v1519_v34 = vpop.f32.mrf.mxu0  ;;  %v2096_v52 = vpop.f32.mrf.mxu1 }
 0x194   : > { %14253 = vst [vmem:[#allocation49_spill] sm:$0xff] %v9238_v9  ;;  %v9244_v16 = vadd.f32 %v2096_v52, %v1498_v35  ;;  %v1520_v44 = vadd.f32 %v1519_v34, %v8923_v15 }
 0x195   : > { %v1528_v0 = vpop.f32.mrf.mxu0  ;;  %v2101_v23 = vpop.f32.mrf.mxu1  ;;  %2551 = vmatmul.mubr.f32.gmra.mxu0 %v14255_v47  ;;  %3144 = vmatmul.mubr.f32.gmra.mxu1 %v14256_v57  ;;  %v14268_v47 = vand.u32 4294901760, %v14259_v32 }
 0x196   : > { %14254 = vst [vmem:[#allocation161_spill] sm:$0xff] %v9244_v16  ;;  %v9253_v19 = vadd.f32 %v2101_v23, %v1507_v1  ;;  %2556 = vmatprep.mubr.f32.mxu0 %v14052_v61  ;;  %3149 = vmatprep.mubr.f32.mxu1 %v14052_v61  ;;  %v9259_v16 = vpop.permute.xlu0 %675  ;;  %v1529_v10 = vadd.f32 %v1528_v0, %v8936_v5  ;;  %v661_v23 = vpop.permute.xlu1 %660 }
 0x197   : > { %v1530_v62 = vpop.f32.mrf.mxu0  ;;  %v2103_v35 = vpop.f32.mrf.mxu1 }
 0x198   : > { %14257 = vst [vmem:[#allocation50_spill] sm:$0xff] %v9253_v19  ;;  %v9257_v52 = vadd.f32 %v2103_v35, %v1509_v43  ;;  %v1531_v15 = vadd.f32 %v1530_v62, %v8936_v5 }
 0x199   : > { %v1539_v9 = vpop.f32.mrf.mxu0  ;;  %v2108_v37 = vpop.f32.mrf.mxu1  ;;  %2559 = vmatmul.mubr.f32.gmra.mxu0 %v14259_v32  ;;  %3153 = vmatmul.mubr.f32.gmra.mxu1 %v14260_v12 }
 0x19a   : > { %14258 = vst [vmem:[#allocation162_spill] sm:$0xff] %v9257_v52  ;;  %v9266_v1 = vadd.f32 %v2108_v37, %v1518_v56  ;;  %2564 = vmatprep.mubr.f32.mxu0 %v14052_v61  ;;  %3158 = vmatprep.mubr.f32.mxu1 %v14052_v61  ;;  %v1540_v34 = vadd.f32 %v1539_v9, %v661_v23  ;;  %v666_v0 = vpop.permute.xlu0 %665 }
 0x19b   : > { %v1541_v57 = vpop.f32.mrf.mxu0  ;;  %v2110_v43 = vpop.f32.mrf.mxu1 }
 0x19c   : > { %14261 = vst [vmem:[#allocation53_spill] sm:$0xff] %v9266_v1  ;;  %v9270_v35 = vadd.f32 %v2110_v43, %v1520_v44  ;;  %v14267_v1 = vld [vmem:[#allocation57_spill] sm:$0xff]  ;;  %v1542_v5 = vadd.f32 %v1541_v57, %v661_v23 }
 0x19d   : > { %v1550_v52 = vpop.f32.mrf.mxu0  ;;  %v2115_v19 = vpop.f32.mrf.mxu1  ;;  %2567 = vmatmul.mubr.f32.gmra.mxu0 %v14263_v26  ;;  %3162 = vmatmul.mubr.f32.gmra.mxu1 %v14264_v18 }
 0x19e   : > { %14262 = vst [vmem:[#allocation163_spill] sm:$0xff] %v9270_v35  ;;  %v9276_v37 = vadd.f32 %v2115_v19, %v1529_v10  ;;  %2572 = vmatprep.mubr.f32.mxu0 %v14052_v61  ;;  %3167 = vmatprep.mubr.f32.mxu1 %v14052_v61  ;;  %v1551_v9 = vadd.f32 %v1550_v52, %v666_v0 }
 0x19f   : > { %v1552_v56 = vpop.f32.mrf.mxu0  ;;  %v2117_v12 = vpop.f32.mrf.mxu1 }
 0x1a0   : > { %14265 = vst [vmem:[#allocation54_spill] sm:$0xff] %v9276_v37  ;;  %v9280_v44 = vadd.f32 %v2117_v12, %v1531_v15  ;;  %v14270_v37 = vand.u32 4294901760, %v14263_v26  ;;  %v1553_v23 = vadd.f32 %v1552_v56, %v666_v0  ;;  %v14273_v26 = vand.u32 4294901760, %v14267_v1 }
 0x1a1   : > { %v1561_v43 = vpop.f32.mrf.mxu0  ;;  %v2122_v35 = vpop.f32.mrf.mxu1  ;;  %2575 = vmatmul.mubr.f32.gmra.mxu0 %v14267_v1  ;;  %3171 = vmatmul.mubr.f32.gmra.mxu1 %v14268_v47 }
 0x1a2   : > { %14266 = vst [vmem:[#allocation164_spill] sm:$0xff] %v9280_v44  ;;  %v9285_v19 = vadd.f32 %v2122_v35, %v1540_v34  ;;  %2580 = vmatprep.mubr.f32.mxu0 %v14052_v61  ;;  %3176 = vmatprep.mubr.f32.mxu1 %v14052_v61  ;;  %v14269_v44 = vld [vmem:[#allocation58_spill] sm:$0xff]  ;;  %v1562_v32 = vadd.f32 %v1561_v43, %v9246_v63 }
 0x1a3   : > { %v1563_v62 = vpop.f32.mrf.mxu0  ;;  %v2124_v10 = vpop.f32.mrf.mxu1  ;;  %v14276_v1 = vand.u32 4294901760, %v14269_v44 }
 0x1a4   : > { %v9289_v18 = vadd.f32 %v2124_v10, %v1542_v5  ;;  %v14272_v10 = vld [vmem:[#allocation60_spill] sm:$0xff] }
 0x1a5   : > { %v1572_v15 = vpop.f32.mrf.mxu0  ;;  %v2129_v12 = vpop.f32.mrf.mxu1  ;;  %2583 = vmatmul.mubr.f32.gmra.mxu0 %v14269_v44  ;;  %3180 = vmatmul.mubr.f32.gmra.mxu1 %v14270_v37  ;;  %v1564_v37 = vadd.f32 %v1563_v62, %v9246_v63  ;;  %v14279_v44 = vand.u32 4294901760, %v14272_v10 }
 0x1a6   : > { %v9295_v57 = vadd.f32 %v2129_v12, %v1551_v9  ;;  %2588 = vmatprep.mubr.f32.mxu0 %v14052_v61  ;;  %3185 = vmatprep.mubr.f32.mxu1 %v14052_v61  ;;  %v1573_v0 = vadd.f32 %v1572_v15, %v9259_v16 }
 0x1a7   : > { %v1574_v52 = vpop.f32.mrf.mxu0  ;;  %v2131_v35 = vpop.f32.mrf.mxu1 }
 0x1a8   : > { %v9299_v34 = vadd.f32 %v2131_v35, %v1553_v23  ;;  %v1575_v63 = vadd.f32 %v1574_v52, %v9259_v16 }
 0x1a9   : > { %v1583_v47 = vpop.f32.mrf.mxu0  ;;  %v2136_v5 = vpop.f32.mrf.mxu1  ;;  %2591 = vmatmul.mubr.f32.gmra.mxu0 %v14272_v10  ;;  %3189 = vmatmul.mubr.f32.gmra.mxu1 %v14273_v26 }
 0x1aa   : > { %14271 = vst [vmem:[#allocation57_spill] sm:$0xff] %v9299_v34  ;;  %v9306_v56 = vadd.f32 %v2136_v5, %v1562_v32  ;;  %2596 = vmatprep.mubr.f32.mxu0 %v14052_v61  ;;  %3194 = vmatprep.mubr.f32.mxu1 %v14052_v61  ;;  %v14275_v34 = vld [vmem:[#allocation62_spill] sm:$0xff]  ;;  %v1584_v62 = vadd.f32 %v1583_v47, %v9229_v41 }
 0x1ab   : > { %v1585_v43 = vpop.f32.mrf.mxu0  ;;  %v2138_v9 = vpop.f32.mrf.mxu1  ;;  %v14282_v10 = vand.u32 4294901760, %v14275_v34 }
 0x1ac   : > { %v9310_v12 = vadd.f32 %v2138_v9, %v1564_v37  ;;  %v1586_v16 = vadd.f32 %v1585_v43, %v9229_v41 }
 0x1ad   : > { %v1594_v23 = vpop.f32.mrf.mxu0  ;;  %v2143_v35 = vpop.f32.mrf.mxu1  ;;  %2599 = vmatmul.mubr.f32.gmra.mxu0 %v14275_v34  ;;  %3198 = vmatmul.mubr.f32.gmra.mxu1 %v14276_v1 }
 0x1ae   : > { %14274 = vst [vmem:[#allocation58_spill] sm:$0xff] %v9310_v12  ;;  %v9317_v15 = vadd.f32 %v2143_v35, %v1573_v0  ;;  %2604 = vmatprep.mubr.f32.mxu0 %v14052_v61  ;;  %3203 = vmatprep.mubr.f32.mxu1 %v14052_v61  ;;  %v14278_v12 = vld [vmem:[#allocation65_spill] sm:$0xff]  ;;  %v1595_v52 = vadd.f32 %v1594_v23, %v9242_v2 }
 0x1af   : > { %v1596_v32 = vpop.f32.mrf.mxu0  ;;  %v2145_v5 = vpop.f32.mrf.mxu1  ;;  %v14285_v34 = vand.u32 4294901760, %v14278_v12 }
 0x1b0   : > { %v9321_v26 = vadd.f32 %v2145_v5, %v1575_v63  ;;  %v1597_v41 = vadd.f32 %v1596_v32, %v9242_v2 }
 0x1b1   : > { %v1605_v37 = vpop.f32.mrf.mxu0  ;;  %v2150_v9 = vpop.f32.mrf.mxu1  ;;  %2607 = vmatmul.mubr.f32.gmra.mxu0 %v14278_v12  ;;  %3207 = vmatmul.mubr.f32.gmra.mxu1 %v14279_v44 }
 0x1b2   : > { %14277 = vst [vmem:[#allocation60_spill] sm:$0xff] %v9321_v26  ;;  %v9328_v47 = vadd.f32 %v2150_v9, %v1584_v62  ;;  %2612 = vmatprep.mubr.f32.mxu0 %v14052_v61  ;;  %3212 = vmatprep.mubr.f32.mxu1 %v14052_v61  ;;  %v14281_v26 = vld [vmem:[#allocation66_spill] sm:$0xff]  ;;  %v1606_v43 = vadd.f32 %v1605_v37, %v9205_v54 }
 0x1b3   : > { %v1607_v0 = vpop.f32.mrf.mxu0  ;;  %v2152_v35 = vpop.f32.mrf.mxu1  ;;  %v14288_v12 = vand.u32 4294901760, %v14281_v26 }
 0x1b4   : > { %v9332_v1 = vadd.f32 %v2152_v35, %v1586_v16  ;;  %v1608_v2 = vadd.f32 %v1607_v0, %v9205_v54 }
 0x1b5   : > { %v1616_v63 = vpop.f32.mrf.mxu0  ;;  %v2157_v5 = vpop.f32.mrf.mxu1  ;;  %2615 = vmatmul.mubr.f32.gmra.mxu0 %v14281_v26  ;;  %3216 = vmatmul.mubr.f32.gmra.mxu1 %v14282_v10 }
 0x1b6   : > { %14280 = vst [vmem:[#allocation62_spill] sm:$0xff] %v9332_v1  ;;  %v9339_v23 = vadd.f32 %v2157_v5, %v1595_v52  ;;  %2620 = vmatprep.mubr.f32.mxu0 %v14052_v61  ;;  %3221 = vmatprep.mubr.f32.mxu1 %v14052_v61  ;;  %v14284_v1 = vld [vmem:[#allocation69_spill] sm:$0xff]  ;;  %v1617_v32 = vadd.f32 %v1616_v63, %v9218_v46 }
 0x1b7   : > { %v1618_v62 = vpop.f32.mrf.mxu0  ;;  %v2159_v9 = vpop.f32.mrf.mxu1  ;;  %v14291_v26 = vand.u32 4294901760, %v14284_v1 }
 0x1b8   : > { %v9343_v44 = vadd.f32 %v2159_v9, %v1597_v41  ;;  %v1619_v54 = vadd.f32 %v1618_v62, %v9218_v46 }
 0x1b9   : > { %v1627_v16 = vpop.f32.mrf.mxu0  ;;  %v2164_v35 = vpop.f32.mrf.mxu1  ;;  %2623 = vmatmul.mubr.f32.gmra.mxu0 %v14284_v1  ;;  %3225 = vmatmul.mubr.f32.gmra.mxu1 %v14285_v34 }
 0x1ba   : > { %14283 = vst [vmem:[#allocation65_spill] sm:$0xff] %v9343_v44  ;;  %v9350_v37 = vadd.f32 %v2164_v35, %v1606_v43  ;;  %2628 = vmatprep.mubr.f32.mxu0 %v14052_v61  ;;  %3230 = vmatprep.mubr.f32.mxu1 %v14052_v61  ;;  %v14287_v44 = vld [vmem:[#allocation70_spill] sm:$0xff]  ;;  %v1628_v0 = vadd.f32 %v1627_v16, %v9188_v49 }
 0x1bb   : > { %v1629_v52 = vpop.f32.mrf.mxu0  ;;  %v2166_v5 = vpop.f32.mrf.mxu1  ;;  %v14294_v1 = vand.u32 4294901760, %v14287_v44 }
 0x1bc   : > { %v9354_v10 = vadd.f32 %v2166_v5, %v1608_v2  ;;  %v1630_v46 = vadd.f32 %v1629_v52, %v9188_v49 }
 0x1bd   : > { %v1638_v41 = vpop.f32.mrf.mxu0  ;;  %v2171_v9 = vpop.f32.mrf.mxu1  ;;  %2631 = vmatmul.mubr.f32.gmra.mxu0 %v14287_v44  ;;  %3234 = vmatmul.mubr.f32.gmra.mxu1 %v14288_v12 }
 0x1be   : > { %14286 = vst [vmem:[#allocation66_spill] sm:$0xff] %v9354_v10  ;;  %v9361_v63 = vadd.f32 %v2171_v9, %v1617_v32  ;;  %2636 = vmatprep.mubr.f32.mxu0 %v14052_v61  ;;  %3239 = vmatprep.mubr.f32.mxu1 %v14052_v61  ;;  %v14290_v10 = vld [vmem:[#allocation73_spill] sm:$0xff]  ;;  %v1639_v62 = vadd.f32 %v1638_v41, %v9201_v48 }
 0x1bf   : > { %v1640_v43 = vpop.f32.mrf.mxu0  ;;  %v2173_v35 = vpop.f32.mrf.mxu1  ;;  %v14297_v44 = vand.u32 4294901760, %v14290_v10 }
 0x1c0   : > { %v9365_v34 = vadd.f32 %v2173_v35, %v1619_v54  ;;  %v1641_v49 = vadd.f32 %v1640_v43, %v9201_v48 }
 0x1c1   : > { %v1649_v2 = vpop.f32.mrf.mxu0  ;;  %v2178_v5 = vpop.f32.mrf.mxu1  ;;  %2639 = vmatmul.mubr.f32.gmra.mxu0 %v14290_v10  ;;  %3243 = vmatmul.mubr.f32.gmra.mxu1 %v14291_v26 }
 0x1c2   : > { %14289 = vst [vmem:[#allocation69_spill] sm:$0xff] %v9365_v34  ;;  %v9372_v16 = vadd.f32 %v2178_v5, %v1628_v0  ;;  %2644 = vmatprep.mubr.f32.mxu0 %v14052_v61  ;;  %3248 = vmatprep.mubr.f32.mxu1 %v14052_v61  ;;  %v14293_v34 = vld [vmem:[#allocation74_spill] sm:$0xff]  ;;  %v1650_v52 = vadd.f32 %v1649_v2, %v9164_v21 }
 0x1c3   : > { %v1651_v32 = vpop.f32.mrf.mxu0  ;;  %v2180_v9 = vpop.f32.mrf.mxu1  ;;  %v14300_v10 = vand.u32 4294901760, %v14293_v34 }
 0x1c4   : > { %v9376_v12 = vadd.f32 %v2180_v9, %v1630_v46  ;;  %v1652_v48 = vadd.f32 %v1651_v32, %v9164_v21 }
 0x1c5   : > { %v1660_v54 = vpop.f32.mrf.mxu0  ;;  %v2185_v35 = vpop.f32.mrf.mxu1  ;;  %2647 = vmatmul.mubr.f32.gmra.mxu0 %v14293_v34  ;;  %3252 = vmatmul.mubr.f32.gmra.mxu1 %v14294_v1 }
 0x1c6   : > { %14292 = vst [vmem:[#allocation70_spill] sm:$0xff] %v9376_v12  ;;  %v9383_v41 = vadd.f32 %v2185_v35, %v1639_v62  ;;  %2652 = vmatprep.mubr.f32.mxu0 %v14052_v61  ;;  %3257 = vmatprep.mubr.f32.mxu1 %v14052_v61  ;;  %v14296_v12 = vld [vmem:[#allocation76_spill] sm:$0xff]  ;;  %v1661_v43 = vadd.f32 %v1660_v54, %v9177_v3 }
 0x1c7   : > { %v1662_v0 = vpop.f32.mrf.mxu0  ;;  %v2187_v5 = vpop.f32.mrf.mxu1  ;;  %v14303_v34 = vand.u32 4294901760, %v14296_v12 }
 0x1c8   : > { %v9387_v26 = vadd.f32 %v2187_v5, %v1641_v49  ;;  %v1663_v21 = vadd.f32 %v1662_v0, %v9177_v3 }
 0x1c9   : > { %v1671_v46 = vpop.f32.mrf.mxu0  ;;  %v2192_v9 = vpop.f32.mrf.mxu1  ;;  %2655 = vmatmul.mubr.f32.gmra.mxu0 %v14296_v12  ;;  %3261 = vmatmul.mubr.f32.gmra.mxu1 %v14297_v44 }
 0x1ca   : > { %14295 = vst [vmem:[#allocation73_spill] sm:$0xff] %v9387_v26  ;;  %v9394_v2 = vadd.f32 %v2192_v9, %v1650_v52  ;;  %2660 = vmatprep.mubr.f32.mxu0 %v14052_v61  ;;  %3266 = vmatprep.mubr.f32.mxu1 %v14052_v61  ;;  %v14299_v26 = vld [vmem:[#allocation78_spill] sm:$0xff]  ;;  %v1672_v32 = vadd.f32 %v1671_v46, %v9147_v59 }
 0x1cb   : > { %v1673_v62 = vpop.f32.mrf.mxu0  ;;  %v2194_v35 = vpop.f32.mrf.mxu1  ;;  %v14306_v12 = vand.u32 4294901760, %v14299_v26 }
 0x1cc   : > { %v9398_v1 = vadd.f32 %v2194_v35, %v1652_v48  ;;  %v1674_v3 = vadd.f32 %v1673_v62, %v9147_v59 }
 0x1cd   : > { %v1682_v49 = vpop.f32.mrf.mxu0  ;;  %v2199_v5 = vpop.f32.mrf.mxu1  ;;  %2663 = vmatmul.mubr.f32.gmra.mxu0 %v14299_v26  ;;  %3270 = vmatmul.mubr.f32.gmra.mxu1 %v14300_v10  ;;  %v14307_v26 = vld [vmem:[#allocation85_spill] sm:$0xff] }
 0x1ce   : > { %14298 = vst [vmem:[#allocation74_spill] sm:$0xff] %v9398_v1  ;;  %v9405_v54 = vadd.f32 %v2199_v5, %v1661_v43  ;;  %2668 = vmatprep.mubr.f32.mxu0 %v14052_v61  ;;  %3275 = vmatprep.mubr.f32.mxu1 %v14052_v61  ;;  %v14302_v1 = vld [vmem:[#allocation81_spill] sm:$0xff]  ;;  %v1683_v0 = vadd.f32 %v1682_v49, %v9160_v31 }
 0x1cf   : > { %v1684_v52 = vpop.f32.mrf.mxu0  ;;  %v2201_v9 = vpop.f32.mrf.mxu1 }
 0x1d0   : > { %v9409_v44 = vadd.f32 %v2201_v9, %v1663_v21  ;;  %v1685_v59 = vadd.f32 %v1684_v52, %v9160_v31  ;;  %v14308_v31 = vand.u32 4294901760, %v14302_v1 }
 0x1d1   : > { %v1693_v48 = vpop.f32.mrf.mxu0  ;;  %v2206_v35 = vpop.f32.mrf.mxu1  ;;  %2671 = vmatmul.mubr.f32.gmra.mxu0 %v14302_v1  ;;  %3279 = vmatmul.mubr.f32.gmra.mxu1 %v14303_v34  ;;  %v14310_v1 = vld [vmem:[#allocation86_spill] sm:$0xff] }
 0x1d2   : > { %14301 = vst [vmem:[#allocation76_spill] sm:$0xff] %v9409_v44  ;;  %v9416_v46 = vadd.f32 %v2206_v35, %v1672_v32  ;;  %2676 = vmatprep.mubr.f32.mxu0 %v14052_v61  ;;  %3284 = vmatprep.mubr.f32.mxu1 %v14052_v61  ;;  %v14305_v44 = vld [vmem:[#allocation82_spill] sm:$0xff]  ;;  %v1694_v62 = vadd.f32 %v1693_v48, %v9123_v53 }
 0x1d3   : > { %v1695_v43 = vpop.f32.mrf.mxu0  ;;  %v2208_v5 = vpop.f32.mrf.mxu1 }
 0x1d4   : > { %v9420_v10 = vadd.f32 %v2208_v5, %v1674_v3  ;;  %v1696_v3 = vadd.f32 %v1695_v43, %v9123_v53 }
 0x1d5   : > { %v1704_v21 = vpop.f32.mrf.mxu0  ;;  %v2213_v9 = vpop.f32.mrf.mxu1  ;;  %2679 = vmatmul.mubr.f32.gmra.mxu0 %v14305_v44  ;;  %3288 = vmatmul.mubr.f32.gmra.mxu1 %v14306_v12 }
 0x1d6   : > { %14304 = vst [vmem:[#allocation78_spill] sm:$0xff] %v9420_v10  ;;  %v9427_v49 = vadd.f32 %v2213_v9, %v1683_v0  ;;  %2684 = vmatprep.mubr.f32.mxu0 %v14052_v61  ;;  %3293 = vmatprep.mubr.f32.mxu1 %v14052_v61  ;;  %v1705_v52 = vadd.f32 %v1704_v21, %v9136_v4  ;;  %v14311_v21 = vand.u32 4294901760, %v14305_v44 }
 0x1d7   : > { %v1706_v32 = vpop.f32.mrf.mxu0  ;;  %v2215_v35 = vpop.f32.mrf.mxu1 }
 0x1d8   : > { %v9431_v34 = vadd.f32 %v2215_v35, %v1685_v59 }
 0x1d9   : > { %v2220_v5 = vpop.f32.mrf.mxu1  ;;  %v2304_v10 = vpop.f32.mrf.mxu0  ;;  %2687 = vmatmul.mubr.f32.gmra.mxu0 %v14307_v26  ;;  %3297 = vmatmul.mubr.f32.gmra.mxu1 %v14308_v31  ;;  %v14313_v31 = vld [vmem:[#allocation100_spill] sm:$0xff] }
 0x1da   : > { %v9438_v48 = vadd.f32 %v2220_v5, %v1694_v62  ;;  %v2305_v0 = vadd.f32 %v2304_v10, %v8595_v60  ;;  %2692 = vmatprep.mubr.f32.mxu0 %v14052_v61  ;;  %3302 = vmatprep.mubr.f32.mxu1 %v14052_v61  ;;  %v1707_v62 = vadd.f32 %v1706_v32, %v9136_v4  ;;  %v14315_v4 = vand.u32 4294901760, %v14307_v26  ;;  %v14316_v32 = vld [vmem:[#allocation103_spill] sm:$0xff] }
 0x1db   : > { %v2222_v9 = vpop.f32.mrf.mxu1  ;;  %v2306_v12 = vpop.f32.mrf.mxu0  ;;  %v14321_v26 = vand.u32 4294901760, %v14310_v1 }
 0x1dc   : > { %v9443_v53 = vadd.f32 %v2222_v9, %v1696_v3  ;;  %v2307_v43 = vadd.f32 %v2306_v12, %v8603_v45 }
 0x1dd   : > { %v2227_v59 = vpop.f32.mrf.mxu1  ;;  %v2312_v35 = vpop.f32.mrf.mxu0  ;;  %2695 = vmatmul.mubr.f32.gmra.mxu0 %v14310_v1  ;;  %3306 = vmatmul.mubr.f32.gmra.mxu1 %v14311_v21  ;;  %v14318_v21 = vld [vmem:[#allocation104_spill] sm:$0xff] }
 0x1de   : > { %14309 = vst [vmem:[#allocation81_spill] sm:$0xff] %v9443_v53  ;;  %v9450_v60 = vadd.f32 %v2227_v59, %v1705_v52  ;;  %v2313_v10 = vadd.f32 %v2312_v35, %v8616_v13  ;;  %2700 = vmatprep.mubr.f32.mxu0 %v14052_v61  ;;  %3311 = vmatprep.mubr.f32.mxu1 %v14052_v61  ;;  %v14314_v53 = vld [vmem:[#allocation88_spill] sm:$0xff] }
 0x1df   : > { %v2229_v3 = vpop.f32.mrf.mxu1  ;;  %v2314_v5 = vpop.f32.mrf.mxu0  ;;  %v14327_v1 = vand.u32 4294901760, %v14314_v53 }
 0x1e0   : > { %v9455_v45 = vadd.f32 %v2229_v3, %v1707_v62  ;;  %v2315_v9 = vadd.f32 %v2314_v5, %v14313_v31  ;;  %v14320_v31 = vld [vmem:[#allocation90_spill] sm:$0xff] }
 0x1e1   : > { %v2320_v12 = vpop.f32.mrf.mxu0  ;;  %2703 = vmatmul.mubr.f32.gmra.mxu0 %v14314_v53  ;;  %v2884_v44 = vpop.f32.mrf.mxu1  ;;  %3315 = vmatmul.mubr.f32.gmra.mxu1 %v14315_v4  ;;  %v14333_v53 = vand.u32 4294901760, %v14320_v31 }
 0x1e2   : > { %14312 = vst [vmem:[#allocation82_spill] sm:$0xff] %v9455_v45  ;;  %v2321_v52 = vadd.f32 %v2320_v12, %v14316_v32  ;;  %v9462_v13 = vadd.f32 %v2884_v44, %v2305_v0  ;;  %2708 = vmatprep.mubr.f32.mxu0 %v14052_v61  ;;  %3320 = vmatprep.mubr.f32.mxu1 %v14052_v61  ;;  %v14322_v12 = vld [vmem:[#allocation107_spill] sm:$0xff] }
 0x1e3   : > { %v2322_v59 = vpop.f32.mrf.mxu0  ;;  %v2886_v35 = vpop.f32.mrf.mxu1 }
 0x1e4   : > { %14317 = vst [vmem:[#allocation85_spill] sm:$0xff] %v9462_v13  ;;  %v2323_v62 = vadd.f32 %v2322_v59, %v14318_v21  ;;  %v9467_v3 = vadd.f32 %v2886_v35, %v2307_v43  ;;  %v14324_v59 = vld [vmem:[#allocation108_spill] sm:$0xff] }
 0x1e5   : > { %v2328_v5 = vpop.f32.mrf.mxu0  ;;  %2711 = vmatmul.mubr.f32.gmra.mxu0 %v14320_v31  ;;  %v2893_v45 = vpop.f32.mrf.mxu1  ;;  %3324 = vmatmul.mubr.f32.gmra.mxu1 %v14321_v26 }
 0x1e6   : > { %14319 = vst [vmem:[#allocation86_spill] sm:$0xff] %v9467_v3  ;;  %v2329_v0 = vadd.f32 %v2328_v5, %v14322_v12  ;;  %v9473_v44 = vadd.f32 %v2893_v45, %v2313_v10  ;;  %2716 = vmatprep.mubr.f32.mxu0 %v14052_v61  ;;  %3329 = vmatprep.mubr.f32.mxu1 %v14052_v61  ;;  %v14326_v3 = vld [vmem:[#allocation92_spill] sm:$0xff]  ;;  %v14328_v5 = vld [vmem:[#allocation111_spill] sm:$0xff] }
 0x1e7   : > { %v2330_v4 = vpop.f32.mrf.mxu0  ;;  %v2895_v32 = vpop.f32.mrf.mxu1  ;;  %v14339_v31 = vand.u32 4294901760, %v14326_v3 }
 0x1e8   : > { %14323 = vst [vmem:[#allocation100_spill] sm:$0xff] %v9473_v44  ;;  %v2331_v43 = vadd.f32 %v2330_v4, %v14324_v59  ;;  %v9478_v35 = vadd.f32 %v2895_v32, %v2315_v9  ;;  %v14330_v4 = vld [vmem:[#allocation112_spill] sm:$0xff] }
 0x1e9   : > { %v2336_v21 = vpop.f32.mrf.mxu0  ;;  %2719 = vmatmul.mubr.f32.gmra.mxu0 %v14326_v3  ;;  %v2902_v13 = vpop.f32.mrf.mxu1  ;;  %3333 = vmatmul.mubr.f32.gmra.mxu1 %v14327_v1 }
 0x1ea   : > { %14325 = vst [vmem:[#allocation88_spill] sm:$0xff] %v9478_v35  ;;  %v2337_v10 = vadd.f32 %v2336_v21, %v14328_v5  ;;  %v9484_v45 = vadd.f32 %v2902_v13, %v2321_v52  ;;  %2724 = vmatprep.mubr.f32.mxu0 %v14052_v61  ;;  %3338 = vmatprep.mubr.f32.mxu1 %v14052_v61  ;;  %v14332_v35 = vld [vmem:[#allocation95_spill] sm:$0xff] }
 0x1eb   : > { %v2338_v26 = vpop.f32.mrf.mxu0  ;;  %v2904_v12 = vpop.f32.mrf.mxu1  ;;  %v14334_v21 = vld [vmem:[#allocation115_spill] sm:$0xff]  ;;  %v14343_v3 = vand.u32 4294901760, %v14332_v35 }
 0x1ec   : > { %14329 = vst [vmem:[#allocation103_spill] sm:$0xff] %v9484_v45  ;;  %v2339_v9 = vadd.f32 %v2338_v26, %v14330_v4  ;;  %v9489_v32 = vadd.f32 %v2904_v12, %v2323_v62  ;;  %v14336_v26 = vld [vmem:[#allocation116_spill] sm:$0xff] }
 0x1ed   : > { %v2344_v59 = vpop.f32.mrf.mxu0  ;;  %2727 = vmatmul.mubr.f32.gmra.mxu0 %v14332_v35  ;;  %v2911_v44 = vpop.f32.mrf.mxu1  ;;  %3342 = vmatmul.mubr.f32.gmra.mxu1 %v14333_v53 }
 0x1ee   : > { %14331 = vst [vmem:[#allocation104_spill] sm:$0xff] %v9489_v32  ;;  %v2345_v52 = vadd.f32 %v2344_v59, %v14334_v21  ;;  %v9495_v13 = vadd.f32 %v2911_v44, %v2329_v0  ;;  %2732 = vmatprep.mubr.f32.mxu0 %v14052_v61  ;;  %3347 = vmatprep.mubr.f32.mxu1 %v14052_v61  ;;  %v14338_v32 = vld [vmem:[#allocation96_spill] sm:$0xff]  ;;  %v14340_v59 = vld [vmem:[#allocation119_spill] sm:$0xff] }
 0x1ef   : > { %v2346_v1 = vpop.f32.mrf.mxu0  ;;  %v2913_v5 = vpop.f32.mrf.mxu1  ;;  %v14347_v35 = vand.u32 4294901760, %v14338_v32 }
 0x1f0   : > { %14335 = vst [vmem:[#allocation90_spill] sm:$0xff] %v9495_v13  ;;  %v2347_v62 = vadd.f32 %v2346_v1, %v14336_v26  ;;  %v9500_v12 = vadd.f32 %v2913_v5, %v2331_v43  ;;  %v14341_v1 = vld [vmem:[#allocation120_spill] sm:$0xff] }
 0x1f1   : > { %v2352_v4 = vpop.f32.mrf.mxu0  ;;  %2735 = vmatmul.mubr.f32.gmra.mxu0 %v14338_v32  ;;  %v2920_v45 = vpop.f32.mrf.mxu1  ;;  %3351 = vmatmul.mubr.f32.gmra.mxu1 %v14339_v31 }
 0x1f2   : > { %14337 = vst [vmem:[#allocation107_spill] sm:$0xff] %v9500_v12  ;;  %v2353_v0 = vadd.f32 %v2352_v4, %v14340_v59  ;;  %v9506_v44 = vadd.f32 %v2920_v45, %v2337_v10  ;;  %2740 = vmatprep.mubr.f32.mxu0 %v14052_v61  ;;  %3356 = vmatprep.mubr.f32.mxu1 %v14052_v61  ;;  %v14342_v12 = vld [vmem:[#allocation98_spill] sm:$0xff] }
 0x1f3   : > { %v2354_v53 = vpop.f32.mrf.mxu0  ;;  %v2922_v21 = vpop.f32.mrf.mxu1  ;;  %v14351_v32 = vand.u32 4294901760, %v14342_v12 }
 0x1f4   : > { %v2355_v43 = vadd.f32 %v2354_v53, %v14341_v1  ;;  %v9511_v5 = vadd.f32 %v2922_v21, %v2339_v9  ;;  %v14346_v21 = vld [vmem:[#allocation101_spill] sm:$0xff] }
 0x1f5   : > { %v2360_v26 = vpop.f32.mrf.mxu0  ;;  %2743 = vmatmul.mubr.f32.gmra.mxu0 %v14342_v12  ;;  %v2929_v13 = vpop.f32.mrf.mxu1  ;;  %3360 = vmatmul.mubr.f32.gmra.mxu1 %v14343_v3  ;;  %v14355_v12 = vand.u32 4294901760, %v14346_v21 }
 0x1f6   : > { %v2361_v10 = vadd.f32 %v2360_v26, %v8758_v27  ;;  %v9517_v45 = vadd.f32 %v2929_v13, %v2345_v52  ;;  %2748 = vmatprep.mubr.f32.mxu0 %v14052_v61  ;;  %3365 = vmatprep.mubr.f32.mxu1 %v14052_v61  ;;  %v14348_v27 = vld [vmem:[#allocation125_spill] sm:$0xff] }
 0x1f7   : > { %v2362_v4 = vpop.f32.mrf.mxu0  ;;  %v2931_v31 = vpop.f32.mrf.mxu1 }
 0x1f8   : > { %14344 = vst [vmem:[#allocation108_spill] sm:$0xff] %v9517_v45  ;;  %v2363_v9 = vadd.f32 %v2362_v4, %v8763_v55  ;;  %v9522_v59 = vadd.f32 %v2931_v31, %v2347_v62  ;;  %v14350_v31 = vld [vmem:[#allocation105_spill] sm:$0xff]  ;;  %v14354_v45 = vld [vmem:[#allocation110_spill] sm:$0xff] }
 0x1f9   : > { %v2368_v53 = vpop.f32.mrf.mxu0  ;;  %2751 = vmatmul.mubr.f32.gmra.mxu0 %v14346_v21  ;;  %v2938_v1 = vpop.f32.mrf.mxu1  ;;  %3369 = vmatmul.mubr.f32.gmra.mxu1 %v14347_v35  ;;  %v14357_v21 = vand.u32 4294901760, %v14350_v31 }
 0x1fa   : > { %14345 = vst [vmem:[#allocation92_spill] sm:$0xff] %v9522_v59  ;;  %v2369_v52 = vadd.f32 %v2368_v53, %v14348_v27  ;;  %v9528_v13 = vadd.f32 %v2938_v1, %v2353_v0  ;;  %2756 = vmatprep.mubr.f32.mxu0 %v14052_v61  ;;  %3374 = vmatprep.mubr.f32.mxu1 %v14052_v61  ;;  %v14352_v53 = vld [vmem:[#allocation127_spill] sm:$0xff] }
 0x1fb   : > { %v2370_v26 = vpop.f32.mrf.mxu0  ;;  %v2940_v3 = vpop.f32.mrf.mxu1 }
 0x1fc   : > { %v2371_v55 = vadd.f32 %v2370_v26, %v8785_v36  ;;  %v9533_v62 = vadd.f32 %v2940_v3, %v2355_v43  ;;  %v14353_v36 = vld [vmem:[#allocation128_spill] sm:$0xff] }
 0x1fd   : > { %v2376_v4 = vpop.f32.mrf.mxu0  ;;  %2759 = vmatmul.mubr.f32.gmra.mxu0 %v14350_v31  ;;  %v2947_v59 = vpop.f32.mrf.mxu1  ;;  %3378 = vmatmul.mubr.f32.gmra.mxu1 %v14351_v32  ;;  %v14359_v31 = vand.u32 4294901760, %v14354_v45 }
 0x1fe   : > { %14349 = vst [vmem:[#allocation111_spill] sm:$0xff] %v9533_v62  ;;  %v2377_v0 = vadd.f32 %v2376_v4, %v14352_v53  ;;  %v9539_v1 = vadd.f32 %v2947_v59, %v2361_v10  ;;  %2764 = vmatprep.mubr.f32.mxu0 %v14052_v61  ;;  %3383 = vmatprep.mubr.f32.mxu1 %v14052_v61 }
 0x1ff   : > { %v2378_v35 = vpop.f32.mrf.mxu0  ;;  %v2949_v27 = vpop.f32.mrf.mxu1 }
 0x200   : > { %v2379_v43 = vadd.f32 %v2378_v35, %v14353_v36  ;;  %v9544_v26 = vadd.f32 %v2949_v27, %v2363_v9  ;;  %v14356_v27 = vld [vmem:[#allocation113_spill] sm:$0xff] }
 0x201   : > { %v2384_v3 = vpop.f32.mrf.mxu0  ;;  %2767 = vmatmul.mubr.f32.gmra.mxu0 %v14354_v45  ;;  %v2956_v62 = vpop.f32.mrf.mxu1  ;;  %3387 = vmatmul.mubr.f32.gmra.mxu1 %v14355_v12  ;;  %v14362_v45 = vand.u32 4294901760, %v14356_v27 }
 0x202   : > { %v2385_v10 = vadd.f32 %v2384_v3, %v8814_v29  ;;  %v9550_v59 = vadd.f32 %v2956_v62, %v2369_v52  ;;  %2772 = vmatprep.mubr.f32.mxu0 %v14052_v61  ;;  %3392 = vmatprep.mubr.f32.mxu1 %v14052_v61 }
 0x203   : > { %v2386_v4 = vpop.f32.mrf.mxu0  ;;  %v2958_v32 = vpop.f32.mrf.mxu1 }
 0x204   : > { %v2387_v9 = vadd.f32 %v2386_v4, %v8818_v50  ;;  %v9555_v53 = vadd.f32 %v2958_v32, %v2371_v55  ;;  %v14358_v4 = vld [vmem:[#allocation117_spill] sm:$0xff] }
 0x205   : > { %v2392_v35 = vpop.f32.mrf.mxu0  ;;  %2775 = vmatmul.mubr.f32.gmra.mxu0 %v14356_v27  ;;  %v2965_v36 = vpop.f32.mrf.mxu1  ;;  %3396 = vmatmul.mubr.f32.gmra.mxu1 %v14357_v21  ;;  %v14365_v27 = vand.u32 4294901760, %v14358_v4 }
 0x206   : > { %v2393_v29 = vadd.f32 %v2392_v35, %v8828_v17  ;;  %v9561_v52 = vadd.f32 %v2965_v36, %v2377_v0  ;;  %2780 = vmatprep.mubr.f32.mxu0 %v14052_v61  ;;  %3401 = vmatprep.mubr.f32.mxu1 %v14052_v61 }
 0x207   : > { %v2394_v62 = vpop.f32.mrf.mxu0  ;;  %v2967_v3 = vpop.f32.mrf.mxu1 }
 0x208   : > { %v2395_v50 = vadd.f32 %v2394_v62, %v8834_v8  ;;  %v9566_v55 = vadd.f32 %v2967_v3, %v2379_v43  ;;  %v14361_v62 = vld [vmem:[#allocation121_spill] sm:$0xff] }
 0x209   : > { %v2400_v12 = vpop.f32.mrf.mxu0  ;;  %2783 = vmatmul.mubr.f32.gmra.mxu0 %v14358_v4  ;;  %v2974_v32 = vpop.f32.mrf.mxu1  ;;  %3405 = vmatmul.mubr.f32.gmra.mxu1 %v14359_v31  ;;  %v14368_v4 = vand.u32 4294901760, %v14361_v62 }
 0x20a   : > { %v2401_v17 = vadd.f32 %v2400_v12, %v8839_v42  ;;  %v9572_v0 = vadd.f32 %v2974_v32, %v2385_v10  ;;  %2788 = vmatprep.mubr.f32.mxu0 %v14052_v61  ;;  %3410 = vmatprep.mubr.f32.mxu1 %v14052_v61 }
 0x20b   : > { %v2402_v35 = vpop.f32.mrf.mxu0  ;;  %v2976_v36 = vpop.f32.mrf.mxu1 }
 0x20c   : > { %v2403_v8 = vadd.f32 %v2402_v35, %v8845_v40  ;;  %v9577_v43 = vadd.f32 %v2976_v36, %v2387_v9  ;;  %v14363_v40 = vld [vmem:[#allocation129_spill] sm:$0xff]  ;;  %v14364_v36 = vld [vmem:[#allocation123_spill] sm:$0xff] }
 0x20d   : > { %v2408_v21 = vpop.f32.mrf.mxu0  ;;  %2791 = vmatmul.mubr.f32.gmra.mxu0 %v14361_v62  ;;  %v2983_v3 = vpop.f32.mrf.mxu1  ;;  %3414 = vmatmul.mubr.f32.gmra.mxu1 %v14362_v45  ;;  %v14371_v62 = vld [vmem:[#allocation2_spill] sm:$0xff] }
 0x20e   : > { %14360 = vst [vmem:[#allocation112_spill] sm:$0xff] %v9577_v43  ;;  %v2409_v42 = vadd.f32 %v2408_v21, %v8852_v20  ;;  %v9583_v10 = vadd.f32 %v2983_v3, %v2393_v29  ;;  %2796 = vmatprep.mubr.f32.mxu0 %v14052_v61  ;;  %3419 = vmatprep.mubr.f32.mxu1 %v14052_v61 }
 0x20f   : > { %v2410_v12 = vpop.f32.mrf.mxu0  ;;  %v2985_v32 = vpop.f32.mrf.mxu1 }
 0x210   : > { %v2411_v9 = vadd.f32 %v2410_v12, %v14363_v40  ;;  %v9588_v31 = vadd.f32 %v2985_v32, %v2395_v50  ;;  %v14367_v32 = vld [vmem:[#allocation126_spill] sm:$0xff] }
 0x211   : > { %v2416_v35 = vpop.f32.mrf.mxu0  ;;  %2799 = vmatmul.mubr.f32.gmra.mxu0 %v14364_v36  ;;  %v2992_v43 = vpop.f32.mrf.mxu1  ;;  %3423 = vmatmul.mubr.f32.gmra.mxu1 %v14365_v27 }
 0x212   : > { %v2417_v20 = vadd.f32 %v2416_v35, %v8864_v22  ;;  %v9594_v29 = vadd.f32 %v2992_v43, %v2401_v17  ;;  %2804 = vmatprep.mubr.f32.mxu0 %v14052_v61  ;;  %3428 = vmatprep.mubr.f32.mxu1 %v14052_v61 }
 0x213   : > { %v2418_v21 = vpop.f32.mrf.mxu0  ;;  %v2994_v3 = vpop.f32.mrf.mxu1 }
 0x214   : > { %v2419_v50 = vadd.f32 %v2418_v21, %v8870_v25  ;;  %v9599_v45 = vadd.f32 %v2994_v3, %v2403_v8  ;;  %v14369_v25 = vld [vmem:[#allocation130_spill] sm:$0xff] }
 0x215   : > { %v2424_v12 = vpop.f32.mrf.mxu0  ;;  %2807 = vmatmul.mubr.f32.gmra.mxu0 %v14367_v32  ;;  %v3001_v40 = vpop.f32.mrf.mxu1  ;;  %3432 = vmatmul.mubr.f32.gmra.mxu1 %v14368_v4 }
 0x216   : > { %14366 = vst [vmem:[#allocation95_spill] sm:$0xff] %v9599_v45  ;;  %v2425_v22 = vadd.f32 %v2424_v12, %v8875_v51  ;;  %v9605_v17 = vadd.f32 %v3001_v40, %v2409_v42  ;;  %3437 = vmatprep.mubr.f32.mxu1 %v14052_v61  ;;  %3526 = vmatprep.mubr.f32.mxu0 %v14052_v61  ;;  %v14370_v45 = vand.u32 4294901760, %v14364_v36 }
 0x217   : > { %v2426_v43 = vpop.f32.mrf.mxu0  ;;  %v3003_v35 = vpop.f32.mrf.mxu1 }
 0x218   : > { %v2427_v8 = vadd.f32 %v2426_v43, %v14369_v25  ;;  %v9610_v27 = vadd.f32 %v3003_v35, %v2411_v9  ;;  %v4622_v9 = vld [vmem:[%s13278_s4] sm:$0xff] }
 0x219   : > { %v2432_v21 = vpop.f32.mrf.mxu0  ;;  %v3010_v3 = vpop.f32.mrf.mxu1  ;;  %3441 = vmatmul.mubr.f32.gmra.mxu1 %v14370_v45  ;;  %3528 = vmatmul.mubr.f32.vlgmr.msra.gmra.mxu0 %v14371_v62 }
 0x21a   : > { %v2433_v51 = vadd.f32 %v2432_v21, %v8884_v33  ;;  %v9616_v42 = vadd.f32 %v3010_v3, %v2417_v20  ;;  %3446 = vmatprep.mubr.f32.mxu1 %v14052_v61  ;;  %3533 = vmatprep.mubr.f32.mxu0 %v14052_v61  ;;  %v14372_v33 = vand.u32 4294901760, %v14367_v32  ;;  %v14373_v20 = vld [vmem:[#allocation3_spill] sm:$0xff]  ;;  %v14376_v32 = vld [vmem:[#allocation4_spill] sm:$0xff] }
 0x21b   : > { %v2434_v12 = vpop.f32.mrf.mxu0  ;;  %v3012_v40 = vpop.f32.mrf.mxu1  ;;  %4625 = vperm.xlu0 %7392, %v4622_v9  }
 0x21c   : > { %v2435_v36 = vadd.f32 %v2434_v12, %v8889_v11  ;;  %v9624_v45 = vadd.f32 %v3012_v40, %v2419_v50 }
 0x21d   : > { %v2440_v4 = vpop.f32.mrf.mxu0  ;;  %v3019_v43 = vpop.f32.mrf.mxu1  ;;  %3450 = vmatmul.mubr.f32.gmra.mxu1 %v14372_v33  ;;  %3535 = vmatmul.mubr.f32.gmra.mxu0 %v14373_v20 }
 0x21e   : > { %v2441_v35 = vadd.f32 %v2440_v4, %v8895_v30  ;;  %v9630_v25 = vadd.f32 %v3019_v43, %v2425_v22  ;;  %3540 = vmatprep.mubr.f32.mxu0 %v14052_v61  ;;  %4041 = vmatprep.mubr.f32.mxu1 %v14052_v61 }
 0x21f   : > { %v2442_v21 = vpop.f32.mrf.mxu0  ;;  %v3021_v3 = vpop.f32.mrf.mxu1 }
 0x220   : > { %14374 = vst [vmem:[#allocation115_spill] sm:$0xff] %v9630_v25  ;;  %v2443_v11 = vadd.f32 %v2442_v21, %v8899_v7  ;;  %v9635_v50 = vadd.f32 %v3021_v3, %v2427_v8  ;;  %v14379_v21 = vld [vmem:[#allocation5_spill] sm:$0xff] }
 0x221   : > { %v2448_v9 = vpop.f32.mrf.mxu0  ;;  %v3028_v12 = vpop.f32.mrf.mxu1  ;;  %3542 = vmatmul.mubr.f32.gmra.mxu0 %v14376_v32  ;;  %4043 = vmatmul.mubr.f32.vlgmr.msra.gmra.mxu1 %v14371_v62 }
 0x222   : > { %14375 = vst [vmem:[#allocation116_spill] sm:$0xff] %v9635_v50  ;;  %v2449_v30 = vadd.f32 %v2448_v9, %v8906_v39  ;;  %v9640_v22 = vadd.f32 %v3028_v12, %v2433_v51  ;;  %3547 = vmatprep.mubr.f32.mxu0 %v14052_v61  ;;  %4048 = vmatprep.mubr.f32.mxu1 %v14052_v61  ;;  %v14381_v9 = vld [vmem:[#allocation131_spill] sm:$0xff] }
 0x223   : > { %v2450_v40 = vpop.f32.mrf.mxu0  ;;  %v3030_v4 = vpop.f32.mrf.mxu1 }
 0x224   : > { %14377 = vst [vmem:[#allocation96_spill] sm:$0xff] %v9640_v22  ;;  %v2451_v7 = vadd.f32 %v2450_v40, %v8910_v58  ;;  %v9645_v8 = vadd.f32 %v3030_v4, %v2435_v36  ;;  %v14383_v4 = vld [vmem:[#allocation6_spill] sm:$0xff] }
 0x225   : > { %v2456_v43 = vpop.f32.mrf.mxu0  ;;  %v3037_v33 = vpop.f32.mrf.mxu1  ;;  %3549 = vmatmul.mubr.f32.gmra.mxu0 %v14379_v21  ;;  %4050 = vmatmul.mubr.f32.gmra.mxu1 %v14373_v20  ;;  %v14626_v22 = vld [vmem:[#allocation114_spill] sm:$0xff] }
 0x226   : > { %14378 = vst [vmem:[#allocation119_spill] sm:$0xff] %v9645_v8  ;;  %v2457_v39 = vadd.f32 %v2456_v43, %v8917_v24  ;;  %v9650_v62 = vadd.f32 %v3037_v33, %v2441_v35  ;;  %3554 = vmatprep.mubr.f32.mxu0 %v14052_v61  ;;  %4055 = vmatprep.mubr.f32.mxu1 %v14052_v61  ;;  %v7214_v35 = vld [vmem:[%s13279_s5] sm:$0xff]  ;;  %v14385_v33 = vld [vmem:[#allocation132_spill] sm:$0xff] }
 0x227   : > { %v2458_v51 = vpop.f32.mrf.mxu0  ;;  %v3039_v3 = vpop.f32.mrf.mxu1  ;;  %7217 = vperm.xlu1 %7393, %v7214_v35   ;;  %v14623_v8 = vld [vmem:[#allocation108_spill] sm:$0xff] }
 0x228   : > { %14380 = vst [vmem:[#allocation120_spill] sm:$0xff] %v9650_v62  ;;  %v2459_v58 = vadd.f32 %v2458_v51, %v14381_v9  ;;  %v9655_v36 = vadd.f32 %v3039_v3, %v2443_v11 }
 0x229   : > { %v2464_v12 = vpop.f32.mrf.mxu0  ;;  %v3046_v40 = vpop.f32.mrf.mxu1  ;;  %3556 = vmatmul.mubr.f32.gmra.mxu0 %v14383_v4  ;;  %4057 = vmatmul.mubr.f32.gmra.mxu1 %v14376_v32 }
 0x22a   : > { %14382 = vst [vmem:[#allocation98_spill] sm:$0xff] %v9655_v36  ;;  %v2465_v24 = vadd.f32 %v2464_v12, %v8930_v38  ;;  %v9660_v20 = vadd.f32 %v3046_v40, %v2449_v30  ;;  %3561 = vmatprep.mubr.f32.mxu0 %v14052_v61  ;;  %4062 = vmatprep.mubr.f32.mxu1 %v14052_v61  ;;  %v14387_v38 = vld [vmem:[#allocation7_spill] sm:$0xff] }
 0x22b   : > { %v2466_v11 = vpop.f32.mrf.mxu0  ;;  %v3048_v43 = vpop.f32.mrf.mxu1 }
 0x22c   : > { %14384 = vst [vmem:[#allocation101_spill] sm:$0xff] %v9660_v20  ;;  %v2467_v51 = vadd.f32 %v2466_v11, %v14385_v33  ;;  %v9668_v3 = vadd.f32 %v3048_v43, %v2451_v7  ;;  %v14389_v20 = vld [vmem:[#allocation133_spill] sm:$0xff] }
 0x22d   : > { %v2472_v32 = vpop.f32.mrf.mxu0  ;;  %v3055_v9 = vpop.f32.mrf.mxu1  ;;  %3563 = vmatmul.mubr.f32.gmra.mxu0 %v14387_v38  ;;  %4064 = vmatmul.mubr.f32.gmra.mxu1 %v14379_v21  ;;  %v14392_v21 = vld [vmem:[#allocation134_spill] sm:$0xff] }
 0x22e   : > { %14386 = vst [vmem:[#allocation125_spill] sm:$0xff] %v9668_v3  ;;  %v2473_v30 = vadd.f32 %v2472_v32, %v8943_v14  ;;  %v9673_v12 = vadd.f32 %v3055_v9, %v2457_v39  ;;  %3568 = vmatprep.mubr.f32.mxu0 %v14052_v61  ;;  %4069 = vmatprep.mubr.f32.mxu1 %v14052_v61  ;;  %v14391_v3 = vld [vmem:[#allocation8_spill] sm:$0xff] }
 0x22f   : > { %v2474_v40 = vpop.f32.mrf.mxu0  ;;  %v3057_v35 = vpop.f32.mrf.mxu1 }
 0x230   : > { %14388 = vst [vmem:[#allocation105_spill] sm:$0xff] %v9673_v12  ;;  %v2475_v11 = vadd.f32 %v2474_v40, %v14389_v20  ;;  %v9678_v7 = vadd.f32 %v3057_v35, %v2459_v58  ;;  %v14394_v12 = vld [vmem:[#allocation135_spill] sm:$0xff] }
 0x231   : > { %v2480_v43 = vpop.f32.mrf.mxu0  ;;  %v3064_v33 = vpop.f32.mrf.mxu1  ;;  %3570 = vmatmul.mubr.f32.gmra.mxu0 %v14391_v3  ;;  %4071 = vmatmul.mubr.f32.gmra.mxu1 %v14383_v4 }
 0x232   : > { %14390 = vst [vmem:[#allocation127_spill] sm:$0xff] %v9678_v7  ;;  %v2481_v14 = vadd.f32 %v2480_v43, %v14392_v21  ;;  %v9683_v39 = vadd.f32 %v3064_v33, %v2465_v24  ;;  %3575 = vmatprep.mubr.f32.mxu0 %v14052_v61  ;;  %4076 = vmatprep.mubr.f32.mxu1 %v14052_v61  ;;  %v14396_v7 = vld [vmem:[#allocation9_spill] sm:$0xff]  ;;  %v14398_v21 = vld [vmem:[#allocation136_spill] sm:$0xff] }
 0x233   : > { %v2482_v32 = vpop.f32.mrf.mxu0  ;;  %v3066_v9 = vpop.f32.mrf.mxu1 }
 0x234   : > { %14393 = vst [vmem:[#allocation128_spill] sm:$0xff] %v9683_v39  ;;  %v2483_v20 = vadd.f32 %v2482_v32, %v14394_v12  ;;  %v9688_v58 = vadd.f32 %v3066_v9, %v2467_v51  ;;  %v14615_v39 = vld [vmem:[#allocation109_spill] sm:$0xff] }
 0x235   : > { %v2488_v40 = vpop.f32.mrf.mxu0  ;;  %v3073_v35 = vpop.f32.mrf.mxu1  ;;  %3577 = vmatmul.mubr.f32.gmra.mxu0 %v14396_v7  ;;  %4078 = vmatmul.mubr.f32.gmra.mxu1 %v14387_v38 }
 0x236   : > { %14395 = vst [vmem:[#allocation110_spill] sm:$0xff] %v9688_v58  ;;  %v2489_v4 = vadd.f32 %v2488_v40, %v8971_v28  ;;  %v9693_v24 = vadd.f32 %v3073_v35, %v2473_v30  ;;  %3582 = vmatprep.mubr.f32.mxu0 %v14052_v61  ;;  %4083 = vmatprep.mubr.f32.mxu1 %v14052_v61  ;;  %v14400_v58 = vld [vmem:[#allocation10_spill] sm:$0xff]  ;;  %v14402_v35 = vld [vmem:[#allocation137_spill] sm:$0xff] }
 0x237   : > { %v2490_v43 = vpop.f32.mrf.mxu0  ;;  %v3075_v33 = vpop.f32.mrf.mxu1 }
 0x238   : > { %14397 = vst [vmem:[#allocation113_spill] sm:$0xff] %v9693_v24  ;;  %v2491_v12 = vadd.f32 %v2490_v43, %v14398_v21  ;;  %v9698_v51 = vadd.f32 %v3075_v33, %v2475_v11 }
 0x239   : > { %v2496_v32 = vpop.f32.mrf.mxu0  ;;  %v3082_v9 = vpop.f32.mrf.mxu1  ;;  %3584 = vmatmul.mubr.f32.gmra.mxu0 %v14400_v58  ;;  %4085 = vmatmul.mubr.f32.gmra.mxu1 %v14391_v3  ;;  %v14405_v3 = vld [vmem:[#allocation138_spill] sm:$0xff] }
 0x23a   : > { %14399 = vst [vmem:[#allocation117_spill] sm:$0xff] %v9698_v51  ;;  %v2497_v28 = vadd.f32 %v2496_v32, %v8984_v6  ;;  %v9703_v38 = vadd.f32 %v3082_v9, %v2481_v14  ;;  %3589 = vmatprep.mubr.f32.mxu0 %v14052_v61  ;;  %4090 = vmatprep.mubr.f32.mxu1 %v14052_v61  ;;  %v14404_v51 = vld [vmem:[#allocation11_spill] sm:$0xff] }
 0x23b   : > { %v2498_v30 = vpop.f32.mrf.mxu0  ;;  %v3084_v40 = vpop.f32.mrf.mxu1 }
 0x23c   : > { %14401 = vst [vmem:[#allocation121_spill] sm:$0xff] %v9703_v38  ;;  %v2499_v43 = vadd.f32 %v2498_v30, %v14402_v35  ;;  %v9708_v11 = vadd.f32 %v3084_v40, %v2483_v20  ;;  %v14407_v38 = vld [vmem:[#allocation139_spill] sm:$0xff] }
 0x23d   : > { %v2504_v33 = vpop.f32.mrf.mxu0  ;;  %v3091_v21 = vpop.f32.mrf.mxu1  ;;  %3591 = vmatmul.mubr.f32.gmra.mxu0 %v14404_v51  ;;  %4092 = vmatmul.mubr.f32.gmra.mxu1 %v14396_v7  ;;  %v14410_v7 = vld [vmem:[#allocation140_spill] sm:$0xff] }
 0x23e   : > { %14403 = vst [vmem:[#allocation129_spill] sm:$0xff] %v9708_v11  ;;  %v2505_v6 = vadd.f32 %v2504_v33, %v14405_v3  ;;  %v9713_v14 = vadd.f32 %v3091_v21, %v2489_v4  ;;  %3596 = vmatprep.mubr.f32.mxu0 %v14052_v61  ;;  %4097 = vmatprep.mubr.f32.mxu1 %v14052_v61  ;;  %v14409_v11 = vld [vmem:[#allocation12_spill] sm:$0xff] }
 0x23f   : > { %v2506_v32 = vpop.f32.mrf.mxu0  ;;  %v3093_v9 = vpop.f32.mrf.mxu1 }
 0x240   : > { %14406 = vst [vmem:[#allocation123_spill] sm:$0xff] %v9713_v14  ;;  %v2507_v30 = vadd.f32 %v2506_v32, %v14407_v38  ;;  %v9718_v20 = vadd.f32 %v3093_v9, %v2491_v12  ;;  %v14412_v14 = vld [vmem:[#allocation141_spill] sm:$0xff] }
 0x241   : > { %v2512_v40 = vpop.f32.mrf.mxu0  ;;  %v3100_v35 = vpop.f32.mrf.mxu1  ;;  %3598 = vmatmul.mubr.f32.gmra.mxu0 %v14409_v11  ;;  %4099 = vmatmul.mubr.f32.gmra.mxu1 %v14400_v58  ;;  %v14415_v58 = vld [vmem:[#allocation142_spill] sm:$0xff] }
 0x242   : > { %14408 = vst [vmem:[#allocation126_spill] sm:$0xff] %v9718_v20  ;;  %v2513_v33 = vadd.f32 %v2512_v40, %v14410_v7  ;;  %v9723_v4 = vadd.f32 %v3100_v35, %v2497_v28  ;;  %3603 = vmatprep.mubr.f32.mxu0 %v14052_v61  ;;  %4104 = vmatprep.mubr.f32.mxu1 %v14052_v61  ;;  %v14414_v20 = vld [vmem:[#allocation13_spill] sm:$0xff] }
 0x243   : > { %v2514_v21 = vpop.f32.mrf.mxu0  ;;  %v3102_v3 = vpop.f32.mrf.mxu1 }
 0x244   : > { %14411 = vst [vmem:[#allocation130_spill] sm:$0xff] %v9723_v4  ;;  %v2515_v38 = vadd.f32 %v2514_v21, %v14412_v14  ;;  %v9728_v12 = vadd.f32 %v3102_v3, %v2499_v43  ;;  %v14417_v4 = vld [vmem:[#allocation143_spill] sm:$0xff] }
 0x245   : > { %v2520_v32 = vpop.f32.mrf.mxu0  ;;  %v3109_v9 = vpop.f32.mrf.mxu1  ;;  %3605 = vmatmul.mubr.f32.gmra.mxu0 %v14414_v20  ;;  %4106 = vmatmul.mubr.f32.gmra.mxu1 %v14404_v51  ;;  %v14420_v51 = vld [vmem:[#allocation144_spill] sm:$0xff] }
 0x246   : > { %14413 = vst [vmem:[#allocation2_spill] sm:$0xff] %v9728_v12  ;;  %v2521_v40 = vadd.f32 %v2520_v32, %v14415_v58  ;;  %v9733_v28 = vadd.f32 %v3109_v9, %v2505_v6  ;;  %3610 = vmatprep.mubr.f32.mxu0 %v14052_v61  ;;  %4111 = vmatprep.mubr.f32.mxu1 %v14052_v61  ;;  %v14419_v12 = vld [vmem:[#allocation14_spill] sm:$0xff] }
 0x247   : > { %v2522_v35 = vpop.f32.mrf.mxu0  ;;  %v3111_v7 = vpop.f32.mrf.mxu1 }
 0x248   : > { %14416 = vst [vmem:[#allocation3_spill] sm:$0xff] %v9733_v28  ;;  %v2523_v14 = vadd.f32 %v2522_v35, %v14417_v4  ;;  %v9738_v43 = vadd.f32 %v3111_v7, %v2507_v30  ;;  %v14422_v28 = vld [vmem:[#allocation145_spill] sm:$0xff] }
 0x249   : > { %v2528_v21 = vpop.f32.mrf.mxu0  ;;  %v3118_v3 = vpop.f32.mrf.mxu1  ;;  %3612 = vmatmul.mubr.f32.gmra.mxu0 %v14419_v12  ;;  %4113 = vmatmul.mubr.f32.gmra.mxu1 %v14409_v11  ;;  %v14425_v11 = vld [vmem:[#allocation18_spill] sm:$0xff] }
 0x24a   : > { %14418 = vst [vmem:[#allocation4_spill] sm:$0xff] %v9738_v43  ;;  %v2529_v32 = vadd.f32 %v2528_v21, %v14420_v51  ;;  %v9743_v6 = vadd.f32 %v3118_v3, %v2513_v33  ;;  %3617 = vmatprep.mubr.f32.mxu0 %v14052_v61  ;;  %4118 = vmatprep.mubr.f32.mxu1 %v14052_v61  ;;  %v14424_v43 = vld [vmem:[#allocation15_spill] sm:$0xff] }
 0x24b   : > { %v2530_v9 = vpop.f32.mrf.mxu0  ;;  %v3120_v58 = vpop.f32.mrf.mxu1 }
 0x24c   : > { %14421 = vst [vmem:[#allocation5_spill] sm:$0xff] %v9743_v6  ;;  %v2531_v4 = vadd.f32 %v2530_v9, %v14422_v28  ;;  %v9748_v30 = vadd.f32 %v3120_v58, %v2515_v38  ;;  %v14427_v6 = vld [vmem:[#allocation146_spill] sm:$0xff] }
 0x24d   : > { %v2536_v35 = vpop.f32.mrf.mxu0  ;;  %v3127_v7 = vpop.f32.mrf.mxu1  ;;  %3619 = vmatmul.mubr.f32.gmra.mxu0 %v14424_v43  ;;  %4120 = vmatmul.mubr.f32.gmra.mxu1 %v14414_v20  ;;  %v14430_v20 = vld [vmem:[#allocation21_spill] sm:$0xff] }
 0x24e   : > { %14423 = vst [vmem:[#allocation131_spill] sm:$0xff] %v9748_v30  ;;  %v2537_v21 = vadd.f32 %v2536_v35, %v14425_v11  ;;  %v9753_v33 = vadd.f32 %v3127_v7, %v2521_v40  ;;  %3624 = vmatprep.mubr.f32.mxu0 %v14052_v61  ;;  %4125 = vmatprep.mubr.f32.mxu1 %v14052_v61  ;;  %v14429_v30 = vld [vmem:[#allocation16_spill] sm:$0xff] }
 0x24f   : > { %v2538_v3 = vpop.f32.mrf.mxu0  ;;  %v3129_v51 = vpop.f32.mrf.mxu1 }
 0x250   : > { %14426 = vst [vmem:[#allocation6_spill] sm:$0xff] %v9753_v33  ;;  %v2539_v28 = vadd.f32 %v2538_v3, %v14427_v6  ;;  %v9758_v38 = vadd.f32 %v3129_v51, %v2523_v14  ;;  %v14432_v33 = vld [vmem:[#allocation147_spill] sm:$0xff] }
 0x251   : > { %v2544_v9 = vpop.f32.mrf.mxu0  ;;  %v3136_v58 = vpop.f32.mrf.mxu1  ;;  %3626 = vmatmul.mubr.f32.gmra.mxu0 %v14429_v30  ;;  %4127 = vmatmul.mubr.f32.gmra.mxu1 %v14419_v12  ;;  %v14435_v12 = vld [vmem:[#allocation22_spill] sm:$0xff] }
 0x252   : > { %14428 = vst [vmem:[#allocation132_spill] sm:$0xff] %v9758_v38  ;;  %v2545_v35 = vadd.f32 %v2544_v9, %v14430_v20  ;;  %v9763_v40 = vadd.f32 %v3136_v58, %v2529_v32  ;;  %3631 = vmatprep.mubr.f32.mxu0 %v14052_v61  ;;  %4132 = vmatprep.mubr.f32.mxu1 %v14052_v61  ;;  %v14434_v38 = vld [vmem:[#allocation17_spill] sm:$0xff] }
 0x253   : > { %v2546_v7 = vpop.f32.mrf.mxu0  ;;  %v3138_v11 = vpop.f32.mrf.mxu1 }
 0x254   : > { %14431 = vst [vmem:[#allocation7_spill] sm:$0xff] %v9763_v40  ;;  %v2547_v6 = vadd.f32 %v2546_v7, %v14432_v33  ;;  %v9768_v14 = vadd.f32 %v3138_v11, %v2531_v4  ;;  %v14437_v40 = vld [vmem:[#allocation148_spill] sm:$0xff] }
 0x255   : > { %v2552_v3 = vpop.f32.mrf.mxu0  ;;  %v3145_v51 = vpop.f32.mrf.mxu1  ;;  %3633 = vmatmul.mubr.f32.gmra.mxu0 %v14434_v38  ;;  %4134 = vmatmul.mubr.f32.gmra.mxu1 %v14424_v43  ;;  %v14440_v43 = vld [vmem:[#allocation25_spill] sm:$0xff] }
 0x256   : > { %14433 = vst [vmem:[#allocation133_spill] sm:$0xff] %v9768_v14  ;;  %v2553_v9 = vadd.f32 %v2552_v3, %v14435_v12  ;;  %v9773_v32 = vadd.f32 %v3145_v51, %v2537_v21  ;;  %3638 = vmatprep.mubr.f32.mxu0 %v14052_v61  ;;  %4139 = vmatprep.mubr.f32.mxu1 %v14052_v61  ;;  %v14439_v14 = vld [vmem:[#allocation19_spill] sm:$0xff] }
 0x257   : > { %v2554_v58 = vpop.f32.mrf.mxu0  ;;  %v3147_v20 = vpop.f32.mrf.mxu1 }
 0x258   : > { %14436 = vst [vmem:[#allocation8_spill] sm:$0xff] %v9773_v32  ;;  %v2555_v33 = vadd.f32 %v2554_v58, %v14437_v40  ;;  %v9778_v4 = vadd.f32 %v3147_v20, %v2539_v28  ;;  %v14442_v32 = vld [vmem:[#allocation149_spill] sm:$0xff] }
 0x259   : > { %v2560_v7 = vpop.f32.mrf.mxu0  ;;  %v3154_v11 = vpop.f32.mrf.mxu1  ;;  %3640 = vmatmul.mubr.f32.gmra.mxu0 %v14439_v14  ;;  %4141 = vmatmul.mubr.f32.gmra.mxu1 %v14429_v30  ;;  %v14445_v30 = vld [vmem:[#allocation26_spill] sm:$0xff] }
 0x25a   : > { %14438 = vst [vmem:[#allocation134_spill] sm:$0xff] %v9778_v4  ;;  %v2561_v3 = vadd.f32 %v2560_v7, %v14440_v43  ;;  %v9783_v21 = vadd.f32 %v3154_v11, %v2545_v35  ;;  %3645 = vmatprep.mubr.f32.mxu0 %v14052_v61  ;;  %4146 = vmatprep.mubr.f32.mxu1 %v14052_v61  ;;  %v14444_v4 = vld [vmem:[#allocation20_spill] sm:$0xff] }
 0x25b   : > { %v2562_v51 = vpop.f32.mrf.mxu0  ;;  %v3156_v12 = vpop.f32.mrf.mxu1 }
 0x25c   : > { %14441 = vst [vmem:[#allocation135_spill] sm:$0xff] %v9783_v21  ;;  %v2563_v40 = vadd.f32 %v2562_v51, %v14442_v32  ;;  %v9788_v28 = vadd.f32 %v3156_v12, %v2547_v6  ;;  %v14447_v21 = vld [vmem:[#allocation150_spill] sm:$0xff] }
 0x25d   : > { %v2568_v58 = vpop.f32.mrf.mxu0  ;;  %v3163_v20 = vpop.f32.mrf.mxu1  ;;  %3647 = vmatmul.mubr.f32.gmra.mxu0 %v14444_v4  ;;  %4148 = vmatmul.mubr.f32.gmra.mxu1 %v14434_v38  ;;  %v14450_v38 = vld [vmem:[#allocation28_spill] sm:$0xff] }
 0x25e   : > { %14443 = vst [vmem:[#allocation9_spill] sm:$0xff] %v9788_v28  ;;  %v2569_v7 = vadd.f32 %v2568_v58, %v14445_v30  ;;  %v9793_v35 = vadd.f32 %v3163_v20, %v2553_v9  ;;  %3652 = vmatprep.mubr.f32.mxu0 %v14052_v61  ;;  %4153 = vmatprep.mubr.f32.mxu1 %v14052_v61  ;;  %v14449_v28 = vld [vmem:[#allocation23_spill] sm:$0xff] }
 0x25f   : > { %v2570_v11 = vpop.f32.mrf.mxu0  ;;  %v3165_v43 = vpop.f32.mrf.mxu1 }
 0x260   : > { %14446 = vst [vmem:[#allocation136_spill] sm:$0xff] %v9793_v35  ;;  %v2571_v32 = vadd.f32 %v2570_v11, %v14447_v21  ;;  %v9798_v6 = vadd.f32 %v3165_v43, %v2555_v33  ;;  %v14452_v35 = vld [vmem:[#allocation151_spill] sm:$0xff] }
 0x261   : > { %v2576_v51 = vpop.f32.mrf.mxu0  ;;  %v3172_v12 = vpop.f32.mrf.mxu1  ;;  %3654 = vmatmul.mubr.f32.gmra.mxu0 %v14449_v28  ;;  %4155 = vmatmul.mubr.f32.gmra.mxu1 %v14439_v14  ;;  %v14455_v14 = vld [vmem:[#allocation30_spill] sm:$0xff] }
 0x262   : > { %14448 = vst [vmem:[#allocation10_spill] sm:$0xff] %v9798_v6  ;;  %v2577_v58 = vadd.f32 %v2576_v51, %v14450_v38  ;;  %v9803_v9 = vadd.f32 %v3172_v12, %v2561_v3  ;;  %3659 = vmatprep.mubr.f32.mxu0 %v14052_v61  ;;  %4160 = vmatprep.mubr.f32.mxu1 %v14052_v61  ;;  %v14454_v6 = vld [vmem:[#allocation24_spill] sm:$0xff] }
 0x263   : > { %v2578_v20 = vpop.f32.mrf.mxu0  ;;  %v3174_v30 = vpop.f32.mrf.mxu1 }
 0x264   : > { %14451 = vst [vmem:[#allocation137_spill] sm:$0xff] %v9803_v9  ;;  %v2579_v21 = vadd.f32 %v2578_v20, %v14452_v35  ;;  %v9808_v33 = vadd.f32 %v3174_v30, %v2563_v40  ;;  %v14457_v9 = vld [vmem:[#allocation152_spill] sm:$0xff] }
 0x265   : > { %v2584_v11 = vpop.f32.mrf.mxu0  ;;  %v3181_v43 = vpop.f32.mrf.mxu1  ;;  %3661 = vmatmul.mubr.f32.gmra.mxu0 %v14454_v6  ;;  %4162 = vmatmul.mubr.f32.gmra.mxu1 %v14444_v4  ;;  %v14460_v4 = vld [vmem:[#allocation33_spill] sm:$0xff] }
 0x266   : > { %14453 = vst [vmem:[#allocation11_spill] sm:$0xff] %v9808_v33  ;;  %v2585_v51 = vadd.f32 %v2584_v11, %v14455_v14  ;;  %v9813_v3 = vadd.f32 %v3181_v43, %v2569_v7  ;;  %3666 = vmatprep.mubr.f32.mxu0 %v14052_v61  ;;  %4167 = vmatprep.mubr.f32.mxu1 %v14052_v61  ;;  %v14459_v33 = vld [vmem:[#allocation27_spill] sm:$0xff] }
 0x267   : > { %v2586_v12 = vpop.f32.mrf.mxu0  ;;  %v3183_v38 = vpop.f32.mrf.mxu1 }
 0x268   : > { %14456 = vst [vmem:[#allocation138_spill] sm:$0xff] %v9813_v3  ;;  %v2587_v35 = vadd.f32 %v2586_v12, %v14457_v9  ;;  %v9818_v40 = vadd.f32 %v3183_v38, %v2571_v32  ;;  %v14462_v3 = vld [vmem:[#allocation153_spill] sm:$0xff] }
 0x269   : > { %v2592_v20 = vpop.f32.mrf.mxu0  ;;  %v3190_v30 = vpop.f32.mrf.mxu1  ;;  %3668 = vmatmul.mubr.f32.gmra.mxu0 %v14459_v33  ;;  %4169 = vmatmul.mubr.f32.gmra.mxu1 %v14449_v28  ;;  %v14465_v28 = vld [vmem:[#allocation34_spill] sm:$0xff] }
 0x26a   : > { %14458 = vst [vmem:[#allocation139_spill] sm:$0xff] %v9818_v40  ;;  %v2593_v11 = vadd.f32 %v2592_v20, %v14460_v4  ;;  %v9823_v7 = vadd.f32 %v3190_v30, %v2577_v58  ;;  %3673 = vmatprep.mubr.f32.mxu0 %v14052_v61  ;;  %4174 = vmatprep.mubr.f32.mxu1 %v14052_v61  ;;  %v14464_v40 = vld [vmem:[#allocation29_spill] sm:$0xff] }
 0x26b   : > { %v2594_v43 = vpop.f32.mrf.mxu0  ;;  %v3192_v14 = vpop.f32.mrf.mxu1 }
 0x26c   : > { %14461 = vst [vmem:[#allocation12_spill] sm:$0xff] %v9823_v7  ;;  %v2595_v9 = vadd.f32 %v2594_v43, %v14462_v3  ;;  %v9828_v32 = vadd.f32 %v3192_v14, %v2579_v21  ;;  %v14467_v7 = vld [vmem:[#allocation154_spill] sm:$0xff] }
 0x26d   : > { %v2600_v12 = vpop.f32.mrf.mxu0  ;;  %v3199_v38 = vpop.f32.mrf.mxu1  ;;  %3675 = vmatmul.mubr.f32.gmra.mxu0 %v14464_v40  ;;  %4176 = vmatmul.mubr.f32.gmra.mxu1 %v14454_v6  ;;  %v14470_v6 = vld [vmem:[#allocation37_spill] sm:$0xff] }
 0x26e   : > { %14463 = vst [vmem:[#allocation140_spill] sm:$0xff] %v9828_v32  ;;  %v2601_v20 = vadd.f32 %v2600_v12, %v14465_v28  ;;  %v9833_v58 = vadd.f32 %v3199_v38, %v2585_v51  ;;  %3680 = vmatprep.mubr.f32.mxu0 %v14052_v61  ;;  %4181 = vmatprep.mubr.f32.mxu1 %v14052_v61  ;;  %v14469_v32 = vld [vmem:[#allocation31_spill] sm:$0xff] }
 0x26f   : > { %v2602_v30 = vpop.f32.mrf.mxu0  ;;  %v3201_v4 = vpop.f32.mrf.mxu1 }
 0x270   : > { %14466 = vst [vmem:[#allocation141_spill] sm:$0xff] %v9833_v58  ;;  %v2603_v3 = vadd.f32 %v2602_v30, %v14467_v7  ;;  %v9838_v21 = vadd.f32 %v3201_v4, %v2587_v35  ;;  %v14472_v58 = vld [vmem:[#allocation155_spill] sm:$0xff] }
 0x271   : > { %v2608_v43 = vpop.f32.mrf.mxu0  ;;  %v3208_v14 = vpop.f32.mrf.mxu1  ;;  %3682 = vmatmul.mubr.f32.gmra.mxu0 %v14469_v32  ;;  %4183 = vmatmul.mubr.f32.gmra.mxu1 %v14459_v33  ;;  %v14475_v33 = vld [vmem:[#allocation38_spill] sm:$0xff] }
 0x272   : > { %14468 = vst [vmem:[#allocation13_spill] sm:$0xff] %v9838_v21  ;;  %v2609_v12 = vadd.f32 %v2608_v43, %v14470_v6  ;;  %v9843_v51 = vadd.f32 %v3208_v14, %v2593_v11  ;;  %3687 = vmatprep.mubr.f32.mxu0 %v14052_v61  ;;  %4188 = vmatprep.mubr.f32.mxu1 %v14052_v61  ;;  %v14474_v21 = vld [vmem:[#allocation32_spill] sm:$0xff] }
 0x273   : > { %v2610_v38 = vpop.f32.mrf.mxu0  ;;  %v3210_v28 = vpop.f32.mrf.mxu1 }
 0x274   : > { %14471 = vst [vmem:[#allocation142_spill] sm:$0xff] %v9843_v51  ;;  %v2611_v7 = vadd.f32 %v2610_v38, %v14472_v58  ;;  %v9848_v35 = vadd.f32 %v3210_v28, %v2595_v9  ;;  %v14477_v51 = vld [vmem:[#allocation156_spill] sm:$0xff] }
 0x275   : > { %v2616_v30 = vpop.f32.mrf.mxu0  ;;  %v3217_v4 = vpop.f32.mrf.mxu1  ;;  %3689 = vmatmul.mubr.f32.gmra.mxu0 %v14474_v21  ;;  %4190 = vmatmul.mubr.f32.gmra.mxu1 %v14464_v40  ;;  %v14480_v40 = vld [vmem:[#allocation41_spill] sm:$0xff] }
 0x276   : > { %14473 = vst [vmem:[#allocation143_spill] sm:$0xff] %v9848_v35  ;;  %v2617_v43 = vadd.f32 %v2616_v30, %v14475_v33  ;;  %v9853_v11 = vadd.f32 %v3217_v4, %v2601_v20  ;;  %3694 = vmatprep.mubr.f32.mxu0 %v14052_v61  ;;  %4195 = vmatprep.mubr.f32.mxu1 %v14052_v61  ;;  %v14479_v35 = vld [vmem:[#allocation35_spill] sm:$0xff] }
 0x277   : > { %v2618_v14 = vpop.f32.mrf.mxu0  ;;  %v3219_v6 = vpop.f32.mrf.mxu1 }
 0x278   : > { %14476 = vst [vmem:[#allocation14_spill] sm:$0xff] %v9853_v11  ;;  %v2619_v58 = vadd.f32 %v2618_v14, %v14477_v51  ;;  %v9858_v9 = vadd.f32 %v3219_v6, %v2603_v3  ;;  %v14482_v11 = vld [vmem:[#allocation157_spill] sm:$0xff] }
 0x279   : > { %v2624_v38 = vpop.f32.mrf.mxu0  ;;  %v3226_v28 = vpop.f32.mrf.mxu1  ;;  %3696 = vmatmul.mubr.f32.gmra.mxu0 %v14479_v35  ;;  %4197 = vmatmul.mubr.f32.gmra.mxu1 %v14469_v32  ;;  %v14485_v32 = vld [vmem:[#allocation42_spill] sm:$0xff] }
 0x27a   : > { %14478 = vst [vmem:[#allocation144_spill] sm:$0xff] %v9858_v9  ;;  %v2625_v30 = vadd.f32 %v2624_v38, %v14480_v40  ;;  %v9863_v20 = vadd.f32 %v3226_v28, %v2609_v12  ;;  %3701 = vmatprep.mubr.f32.mxu0 %v14052_v61  ;;  %4202 = vmatprep.mubr.f32.mxu1 %v14052_v61  ;;  %v14484_v9 = vld [vmem:[#allocation36_spill] sm:$0xff] }
 0x27b   : > { %v2626_v4 = vpop.f32.mrf.mxu0  ;;  %v3228_v33 = vpop.f32.mrf.mxu1 }
 0x27c   : > { %14481 = vst [vmem:[#allocation145_spill] sm:$0xff] %v9863_v20  ;;  %v2627_v51 = vadd.f32 %v2626_v4, %v14482_v11  ;;  %v9868_v3 = vadd.f32 %v3228_v33, %v2611_v7  ;;  %v14487_v20 = vld [vmem:[#allocation158_spill] sm:$0xff] }
 0x27d   : > { %v2632_v14 = vpop.f32.mrf.mxu0  ;;  %v3235_v6 = vpop.f32.mrf.mxu1  ;;  %3703 = vmatmul.mubr.f32.gmra.mxu0 %v14484_v9  ;;  %4204 = vmatmul.mubr.f32.gmra.mxu1 %v14474_v21  ;;  %v14490_v21 = vld [vmem:[#allocation44_spill] sm:$0xff] }
 0x27e   : > { %14483 = vst [vmem:[#allocation15_spill] sm:$0xff] %v9868_v3  ;;  %v2633_v38 = vadd.f32 %v2632_v14, %v14485_v32  ;;  %v9873_v12 = vadd.f32 %v3235_v6, %v2617_v43  ;;  %3708 = vmatprep.mubr.f32.mxu0 %v14052_v61  ;;  %4209 = vmatprep.mubr.f32.mxu1 %v14052_v61  ;;  %v14489_v3 = vld [vmem:[#allocation39_spill] sm:$0xff] }
 0x27f   : > { %v2634_v28 = vpop.f32.mrf.mxu0  ;;  %v3237_v40 = vpop.f32.mrf.mxu1 }
 0x280   : > { %14486 = vst [vmem:[#allocation18_spill] sm:$0xff] %v9873_v12  ;;  %v2635_v11 = vadd.f32 %v2634_v28, %v14487_v20  ;;  %v9878_v7 = vadd.f32 %v3237_v40, %v2619_v58  ;;  %v14492_v12 = vld [vmem:[#allocation159_spill] sm:$0xff] }
 0x281   : > { %v2640_v4 = vpop.f32.mrf.mxu0  ;;  %v3244_v33 = vpop.f32.mrf.mxu1  ;;  %3710 = vmatmul.mubr.f32.gmra.mxu0 %v14489_v3  ;;  %4211 = vmatmul.mubr.f32.gmra.mxu1 %v14479_v35  ;;  %v14495_v35 = vld [vmem:[#allocation46_spill] sm:$0xff] }
 0x282   : > { %14488 = vst [vmem:[#allocation146_spill] sm:$0xff] %v9878_v7  ;;  %v2641_v14 = vadd.f32 %v2640_v4, %v14490_v21  ;;  %v9883_v43 = vadd.f32 %v3244_v33, %v2625_v30  ;;  %3715 = vmatprep.mubr.f32.mxu0 %v14052_v61  ;;  %4216 = vmatprep.mubr.f32.mxu1 %v14052_v61  ;;  %v14494_v7 = vld [vmem:[#allocation40_spill] sm:$0xff] }
 0x283   : > { %v2642_v6 = vpop.f32.mrf.mxu0  ;;  %v3246_v32 = vpop.f32.mrf.mxu1 }
 0x284   : > { %14491 = vst [vmem:[#allocation16_spill] sm:$0xff] %v9883_v43  ;;  %v2643_v20 = vadd.f32 %v2642_v6, %v14492_v12  ;;  %v9888_v58 = vadd.f32 %v3246_v32, %v2627_v51  ;;  %v14497_v43 = vld [vmem:[#allocation160_spill] sm:$0xff] }
 0x285   : > { %v2648_v28 = vpop.f32.mrf.mxu0  ;;  %v3253_v40 = vpop.f32.mrf.mxu1  ;;  %3717 = vmatmul.mubr.f32.gmra.mxu0 %v14494_v7  ;;  %4218 = vmatmul.mubr.f32.gmra.mxu1 %v14484_v9  ;;  %v14500_v9 = vld [vmem:[#allocation49_spill] sm:$0xff] }
 0x286   : > { %14493 = vst [vmem:[#allocation21_spill] sm:$0xff] %v9888_v58  ;;  %v2649_v4 = vadd.f32 %v2648_v28, %v14495_v35  ;;  %v9893_v30 = vadd.f32 %v3253_v40, %v2633_v38  ;;  %3722 = vmatprep.mubr.f32.mxu0 %v14052_v61  ;;  %4223 = vmatprep.mubr.f32.mxu1 %v14052_v61  ;;  %v14499_v58 = vld [vmem:[#allocation43_spill] sm:$0xff] }
 0x287   : > { %v2650_v33 = vpop.f32.mrf.mxu0  ;;  %v3255_v21 = vpop.f32.mrf.mxu1 }
 0x288   : > { %14496 = vst [vmem:[#allocation147_spill] sm:$0xff] %v9893_v30  ;;  %v2651_v12 = vadd.f32 %v2650_v33, %v14497_v43  ;;  %v9898_v51 = vadd.f32 %v3255_v21, %v2635_v11  ;;  %v14502_v30 = vld [vmem:[#allocation161_spill] sm:$0xff] }
 0x289   : > { %v2656_v6 = vpop.f32.mrf.mxu0  ;;  %v3262_v32 = vpop.f32.mrf.mxu1  ;;  %3724 = vmatmul.mubr.f32.gmra.mxu0 %v14499_v58  ;;  %4225 = vmatmul.mubr.f32.gmra.mxu1 %v14489_v3  ;;  %v14505_v3 = vld [vmem:[#allocation50_spill] sm:$0xff] }
 0x28a   : > { %14498 = vst [vmem:[#allocation17_spill] sm:$0xff] %v9898_v51  ;;  %v2657_v28 = vadd.f32 %v2656_v6, %v14500_v9  ;;  %v9903_v38 = vadd.f32 %v3262_v32, %v2641_v14  ;;  %3729 = vmatprep.mubr.f32.mxu0 %v14052_v61  ;;  %4230 = vmatprep.mubr.f32.mxu1 %v14052_v61  ;;  %v14504_v51 = vld [vmem:[#allocation45_spill] sm:$0xff] }
 0x28b   : > { %v2658_v40 = vpop.f32.mrf.mxu0  ;;  %v3264_v35 = vpop.f32.mrf.mxu1 }
 0x28c   : > { %14501 = vst [vmem:[#allocation22_spill] sm:$0xff] %v9903_v38  ;;  %v2659_v43 = vadd.f32 %v2658_v40, %v14502_v30  ;;  %v9908_v11 = vadd.f32 %v3264_v35, %v2643_v20  ;;  %v14507_v38 = vld [vmem:[#allocation162_spill] sm:$0xff] }
 0x28d   : > { %v2664_v33 = vpop.f32.mrf.mxu0  ;;  %v3271_v21 = vpop.f32.mrf.mxu1  ;;  %3731 = vmatmul.mubr.f32.gmra.mxu0 %v14504_v51  ;;  %4232 = vmatmul.mubr.f32.gmra.mxu1 %v14494_v7  ;;  %v14510_v7 = vld [vmem:[#allocation53_spill] sm:$0xff] }
 0x28e   : > { %14503 = vst [vmem:[#allocation148_spill] sm:$0xff] %v9908_v11  ;;  %v2665_v6 = vadd.f32 %v2664_v33, %v14505_v3  ;;  %v9913_v14 = vadd.f32 %v3271_v21, %v2649_v4  ;;  %3736 = vmatprep.mubr.f32.mxu0 %v14052_v61  ;;  %4237 = vmatprep.mubr.f32.mxu1 %v14052_v61  ;;  %v14509_v11 = vld [vmem:[#allocation47_spill] sm:$0xff] }
 0x28f   : > { %v2666_v32 = vpop.f32.mrf.mxu0  ;;  %v3273_v9 = vpop.f32.mrf.mxu1 }
 0x290   : > { %14506 = vst [vmem:[#allocation19_spill] sm:$0xff] %v9913_v14  ;;  %v2667_v30 = vadd.f32 %v2666_v32, %v14507_v38  ;;  %v9918_v20 = vadd.f32 %v3273_v9, %v2651_v12  ;;  %v14512_v14 = vld [vmem:[#allocation163_spill] sm:$0xff] }
 0x291   : > { %v2672_v40 = vpop.f32.mrf.mxu0  ;;  %v3280_v35 = vpop.f32.mrf.mxu1  ;;  %3738 = vmatmul.mubr.f32.gmra.mxu0 %v14509_v11  ;;  %4239 = vmatmul.mubr.f32.gmra.mxu1 %v14499_v58  ;;  %v14515_v58 = vld [vmem:[#allocation54_spill] sm:$0xff] }
 0x292   : > { %14508 = vst [vmem:[#allocation25_spill] sm:$0xff] %v9918_v20  ;;  %v2673_v33 = vadd.f32 %v2672_v40, %v14510_v7  ;;  %v9923_v4 = vadd.f32 %v3280_v35, %v2657_v28  ;;  %3743 = vmatprep.mubr.f32.mxu0 %v14052_v61  ;;  %4244 = vmatprep.mubr.f32.mxu1 %v14052_v61  ;;  %v14514_v20 = vld [vmem:[#allocation48_spill] sm:$0xff] }
 0x293   : > { %v2674_v21 = vpop.f32.mrf.mxu0  ;;  %v3282_v3 = vpop.f32.mrf.mxu1 }
 0x294   : > { %14511 = vst [vmem:[#allocation149_spill] sm:$0xff] %v9923_v4  ;;  %v2675_v38 = vadd.f32 %v2674_v21, %v14512_v14  ;;  %v9928_v12 = vadd.f32 %v3282_v3, %v2659_v43  ;;  %v14517_v4 = vld [vmem:[#allocation164_spill] sm:$0xff] }
 0x295   : > { %v2680_v32 = vpop.f32.mrf.mxu0  ;;  %v3289_v9 = vpop.f32.mrf.mxu1  ;;  %3745 = vmatmul.mubr.f32.gmra.mxu0 %v14514_v20  ;;  %4246 = vmatmul.mubr.f32.gmra.mxu1 %v14504_v51 }
 0x296   : > { %14513 = vst [vmem:[#allocation20_spill] sm:$0xff] %v9928_v12  ;;  %v2681_v40 = vadd.f32 %v2680_v32, %v14515_v58  ;;  %v9933_v28 = vadd.f32 %v3289_v9, %v2665_v6  ;;  %3750 = vmatprep.mubr.f32.mxu0 %v14052_v61  ;;  %4251 = vmatprep.mubr.f32.mxu1 %v14052_v61  ;;  %v14519_v12 = vld [vmem:[#allocation51_spill] sm:$0xff] }
 0x297   : > { %v2682_v35 = vpop.f32.mrf.mxu0  ;;  %v3291_v7 = vpop.f32.mrf.mxu1 }
 0x298   : > { %14516 = vst [vmem:[#allocation26_spill] sm:$0xff] %v9933_v28  ;;  %v2683_v14 = vadd.f32 %v2682_v35, %v14517_v4  ;;  %v9938_v43 = vadd.f32 %v3291_v7, %v2667_v30  ;;  %v14522_v7 = vld [vmem:[#allocation52_spill] sm:$0xff] }
 0x299   : > { %v2688_v21 = vpop.f32.mrf.mxu0  ;;  %v3298_v3 = vpop.f32.mrf.mxu1  ;;  %3752 = vmatmul.mubr.f32.gmra.mxu0 %v14519_v12  ;;  %4253 = vmatmul.mubr.f32.gmra.mxu1 %v14509_v11  ;;  %v14546_v28 = vld [vmem:[#allocation64_spill] sm:$0xff] }
 0x29a   : > { %14518 = vst [vmem:[#allocation150_spill] sm:$0xff] %v9938_v43  ;;  %v2689_v51 = vadd.f32 %v2688_v21, %v9285_v19  ;;  %v9943_v6 = vadd.f32 %v3298_v3, %v2673_v33  ;;  %3757 = vmatprep.mubr.f32.mxu0 %v14052_v61  ;;  %4258 = vmatprep.mubr.f32.mxu1 %v14052_v61  ;;  %v14524_v3 = vld [vmem:[#allocation57_spill] sm:$0xff]  ;;  %v14542_v43 = vld [vmem:[#allocation63_spill] sm:$0xff] }
 0x29b   : > { %v2690_v32 = vpop.f32.mrf.mxu0  ;;  %v3300_v9 = vpop.f32.mrf.mxu1 }
 0x29c   : > { %14520 = vst [vmem:[#allocation23_spill] sm:$0xff] %v9943_v6  ;;  %v2691_v4 = vadd.f32 %v2690_v32, %v9289_v18  ;;  %v9948_v30 = vadd.f32 %v3300_v9, %v2675_v38  ;;  %v14538_v6 = vld [vmem:[#allocation61_spill] sm:$0xff] }
 0x29d   : > { %v2696_v58 = vpop.f32.mrf.mxu0  ;;  %v3307_v35 = vpop.f32.mrf.mxu1  ;;  %3759 = vmatmul.mubr.f32.gmra.mxu0 %v14522_v7  ;;  %4260 = vmatmul.mubr.f32.gmra.mxu1 %v14514_v20 }
 0x29e   : > { %14521 = vst [vmem:[#allocation28_spill] sm:$0xff] %v9948_v30  ;;  %v2697_v19 = vadd.f32 %v2696_v58, %v9295_v57  ;;  %v9953_v11 = vadd.f32 %v3307_v35, %v2681_v40  ;;  %3764 = vmatprep.mubr.f32.mxu0 %v14052_v61  ;;  %4265 = vmatprep.mubr.f32.mxu1 %v14052_v61  ;;  %v14526_v30 = vld [vmem:[#allocation55_spill] sm:$0xff]  ;;  %v14528_v35 = vld [vmem:[#allocation58_spill] sm:$0xff] }
 0x29f   : > { %v2698_v33 = vpop.f32.mrf.mxu0  ;;  %v3309_v21 = vpop.f32.mrf.mxu1 }
 0x2a0   : > { %14523 = vst [vmem:[#allocation151_spill] sm:$0xff] %v9953_v11  ;;  %v2699_v18 = vadd.f32 %v2698_v33, %v14524_v3  ;;  %v9958_v38 = vadd.f32 %v3309_v21, %v2683_v14  ;;  %v14534_v11 = vld [vmem:[#allocation59_spill] sm:$0xff] }
 0x2a1   : > { %v2704_v32 = vpop.f32.mrf.mxu0  ;;  %v3316_v9 = vpop.f32.mrf.mxu1  ;;  %3766 = vmatmul.mubr.f32.gmra.mxu0 %v14526_v30  ;;  %4267 = vmatmul.mubr.f32.gmra.mxu1 %v14519_v12 }
 0x2a2   : > { %14525 = vst [vmem:[#allocation24_spill] sm:$0xff] %v9958_v38  ;;  %v2705_v57 = vadd.f32 %v2704_v32, %v9306_v56  ;;  %v9963_v20 = vadd.f32 %v3316_v9, %v2689_v51  ;;  %3771 = vmatprep.mubr.f32.mxu0 %v14052_v61  ;;  %4272 = vmatprep.mubr.f32.mxu1 %v14052_v61  ;;  %v14530_v38 = vld [vmem:[#allocation56_spill] sm:$0xff] }
 0x2a3   : > { %v2706_v40 = vpop.f32.mrf.mxu0  ;;  %v3318_v58 = vpop.f32.mrf.mxu1  ;;  %v14532_v9 = vld [vmem:[#allocation60_spill] sm:$0xff] }
 0x2a4   : > { %14527 = vst [vmem:[#allocation30_spill] sm:$0xff] %v9963_v20  ;;  %v2707_v33 = vadd.f32 %v2706_v40, %v14528_v35  ;;  %v9968_v14 = vadd.f32 %v3318_v58, %v2691_v4 }
 0x2a5   : > { %v2712_v21 = vpop.f32.mrf.mxu0  ;;  %v3325_v3 = vpop.f32.mrf.mxu1  ;;  %3773 = vmatmul.mubr.f32.gmra.mxu0 %v14530_v38  ;;  %4274 = vmatmul.mubr.f32.gmra.mxu1 %v14522_v7 }
 0x2a6   : > { %14529 = vst [vmem:[#allocation152_spill] sm:$0xff] %v9968_v14  ;;  %v2713_v56 = vadd.f32 %v2712_v21, %v9317_v15  ;;  %v9973_v12 = vadd.f32 %v3325_v3, %v2697_v19  ;;  %3778 = vmatprep.mubr.f32.mxu0 %v14052_v61  ;;  %4279 = vmatprep.mubr.f32.mxu1 %v14052_v61  ;;  %v14536_v3 = vld [vmem:[#allocation62_spill] sm:$0xff] }
 0x2a7   : > { %v2714_v51 = vpop.f32.mrf.mxu0  ;;  %v3327_v32 = vpop.f32.mrf.mxu1 }
 0x2a8   : > { %14531 = vst [vmem:[#allocation27_spill] sm:$0xff] %v9973_v12  ;;  %v2715_v40 = vadd.f32 %v2714_v51, %v14532_v9  ;;  %v9978_v4 = vadd.f32 %v3327_v32, %v2699_v18 }
 0x2a9   : > { %v2720_v58 = vpop.f32.mrf.mxu0  ;;  %v3334_v35 = vpop.f32.mrf.mxu1  ;;  %3780 = vmatmul.mubr.f32.gmra.mxu0 %v14534_v11  ;;  %4281 = vmatmul.mubr.f32.gmra.mxu1 %v14526_v30 }
 0x2aa   : > { %14533 = vst [vmem:[#allocation33_spill] sm:$0xff] %v9978_v4  ;;  %v2721_v15 = vadd.f32 %v2720_v58, %v9328_v47  ;;  %v9983_v7 = vadd.f32 %v3334_v35, %v2705_v57  ;;  %3785 = vmatprep.mubr.f32.mxu0 %v14052_v61  ;;  %4286 = vmatprep.mubr.f32.mxu1 %v14052_v61  ;;  %v14540_v35 = vld [vmem:[#allocation65_spill] sm:$0xff] }
 0x2ab   : > { %v2722_v19 = vpop.f32.mrf.mxu0  ;;  %v3336_v21 = vpop.f32.mrf.mxu1 }
 0x2ac   : > { %14535 = vst [vmem:[#allocation153_spill] sm:$0xff] %v9983_v7  ;;  %v2723_v51 = vadd.f32 %v2722_v19, %v14536_v3  ;;  %v9988_v18 = vadd.f32 %v3336_v21, %v2707_v33 }
 0x2ad   : > { %v2728_v32 = vpop.f32.mrf.mxu0  ;;  %v3343_v9 = vpop.f32.mrf.mxu1  ;;  %3787 = vmatmul.mubr.f32.gmra.mxu0 %v14538_v6  ;;  %4288 = vmatmul.mubr.f32.gmra.mxu1 %v14530_v38 }
 0x2ae   : > { %14537 = vst [vmem:[#allocation29_spill] sm:$0xff] %v9988_v18  ;;  %v2729_v47 = vadd.f32 %v2728_v32, %v9339_v23  ;;  %v9993_v30 = vadd.f32 %v3343_v9, %v2713_v56  ;;  %3792 = vmatprep.mubr.f32.mxu0 %v14052_v61  ;;  %4293 = vmatprep.mubr.f32.mxu1 %v14052_v61  ;;  %v14544_v9 = vld [vmem:[#allocation66_spill] sm:$0xff] }
 0x2af   : > { %v2730_v57 = vpop.f32.mrf.mxu0  ;;  %v3345_v58 = vpop.f32.mrf.mxu1 }
 0x2b0   : > { %14539 = vst [vmem:[#allocation34_spill] sm:$0xff] %v9993_v30  ;;  %v2731_v19 = vadd.f32 %v2730_v57, %v14540_v35  ;;  %v9998_v33 = vadd.f32 %v3345_v58, %v2715_v40 }
 0x2b1   : > { %v2736_v21 = vpop.f32.mrf.mxu0  ;;  %v3352_v3 = vpop.f32.mrf.mxu1  ;;  %3794 = vmatmul.mubr.f32.gmra.mxu0 %v14542_v43  ;;  %4295 = vmatmul.mubr.f32.gmra.mxu1 %v14534_v11 }
 0x2b2   : > { %14541 = vst [vmem:[#allocation154_spill] sm:$0xff] %v9998_v33  ;;  %v2737_v23 = vadd.f32 %v2736_v21, %v9350_v37  ;;  %v10003_v38 = vadd.f32 %v3352_v3, %v2721_v15  ;;  %3799 = vmatprep.mubr.f32.mxu0 %v14052_v61  ;;  %4300 = vmatprep.mubr.f32.mxu1 %v14052_v61  ;;  %v14548_v3 = vld [vmem:[#allocation69_spill] sm:$0xff] }
 0x2b3   : > { %v2738_v56 = vpop.f32.mrf.mxu0  ;;  %v3354_v32 = vpop.f32.mrf.mxu1 }
 0x2b4   : > { %14543 = vst [vmem:[#allocation31_spill] sm:$0xff] %v10003_v38  ;;  %v2739_v57 = vadd.f32 %v2738_v56, %v14544_v9  ;;  %v10008_v40 = vadd.f32 %v3354_v32, %v2723_v51  ;;  %v14606_v38 = vld [vmem:[#allocation102_spill] sm:$0xff] }
 0x2b5   : > { %v2744_v58 = vpop.f32.mrf.mxu0  ;;  %v3361_v35 = vpop.f32.mrf.mxu1  ;;  %3801 = vmatmul.mubr.f32.gmra.mxu0 %v14546_v28  ;;  %4302 = vmatmul.mubr.f32.gmra.mxu1 %v14538_v6 }
 0x2b6   : > { %14545 = vst [vmem:[#allocation37_spill] sm:$0xff] %v10008_v40  ;;  %v2745_v37 = vadd.f32 %v2744_v58, %v9361_v63  ;;  %v10013_v11 = vadd.f32 %v3361_v35, %v2729_v47  ;;  %3806 = vmatprep.mubr.f32.mxu0 %v14052_v61  ;;  %4307 = vmatprep.mubr.f32.mxu1 %v14052_v61  ;;  %v14550_v40 = vld [vmem:[#allocation67_spill] sm:$0xff]  ;;  %v14552_v35 = vld [vmem:[#allocation70_spill] sm:$0xff] }
 0x2b7   : > { %v2746_v15 = vpop.f32.mrf.mxu0  ;;  %v3363_v21 = vpop.f32.mrf.mxu1 }
 0x2b8   : > { %14547 = vst [vmem:[#allocation155_spill] sm:$0xff] %v10013_v11  ;;  %v2747_v56 = vadd.f32 %v2746_v15, %v14548_v3  ;;  %v10018_v51 = vadd.f32 %v3363_v21, %v2731_v19 }
 0x2b9   : > { %v2752_v32 = vpop.f32.mrf.mxu0  ;;  %v3370_v9 = vpop.f32.mrf.mxu1  ;;  %3808 = vmatmul.mubr.f32.gmra.mxu0 %v14550_v40  ;;  %4309 = vmatmul.mubr.f32.gmra.mxu1 %v14542_v43 }
 0x2ba   : > { %14549 = vst [vmem:[#allocation32_spill] sm:$0xff] %v10018_v51  ;;  %v2753_v63 = vadd.f32 %v2752_v32, %v9372_v16  ;;  %v10023_v6 = vadd.f32 %v3370_v9, %v2737_v23  ;;  %3813 = vmatprep.mubr.f32.mxu0 %v14052_v61  ;;  %4314 = vmatprep.mubr.f32.mxu1 %v14052_v61  ;;  %v14554_v51 = vld [vmem:[#allocation68_spill] sm:$0xff]  ;;  %v14556_v9 = vld [vmem:[#allocation73_spill] sm:$0xff] }
 0x2bb   : > { %v2754_v47 = vpop.f32.mrf.mxu0  ;;  %v3372_v58 = vpop.f32.mrf.mxu1 }
 0x2bc   : > { %14551 = vst [vmem:[#allocation38_spill] sm:$0xff] %v10023_v6  ;;  %v2755_v15 = vadd.f32 %v2754_v47, %v14552_v35  ;;  %v10028_v19 = vadd.f32 %v3372_v58, %v2739_v57  ;;  %v14558_v6 = vld [vmem:[#allocation71_spill] sm:$0xff] }
 0x2bd   : > { %v2760_v21 = vpop.f32.mrf.mxu0  ;;  %v3379_v3 = vpop.f32.mrf.mxu1  ;;  %3815 = vmatmul.mubr.f32.gmra.mxu0 %v14554_v51  ;;  %4316 = vmatmul.mubr.f32.gmra.mxu1 %v14546_v28 }
 0x2be   : > { %14553 = vst [vmem:[#allocation156_spill] sm:$0xff] %v10028_v19  ;;  %v2761_v16 = vadd.f32 %v2760_v21, %v9383_v41  ;;  %v10033_v43 = vadd.f32 %v3379_v3, %v2745_v37  ;;  %3820 = vmatprep.mubr.f32.mxu0 %v14052_v61  ;;  %4321 = vmatprep.mubr.f32.mxu1 %v14052_v61  ;;  %v14560_v3 = vld [vmem:[#allocation74_spill] sm:$0xff] }
 0x2bf   : > { %v2762_v23 = vpop.f32.mrf.mxu0  ;;  %v3381_v32 = vpop.f32.mrf.mxu1 }
 0x2c0   : > { %14555 = vst [vmem:[#allocation35_spill] sm:$0xff] %v10033_v43  ;;  %v2763_v47 = vadd.f32 %v2762_v23, %v14556_v9  ;;  %v10038_v57 = vadd.f32 %v3381_v32, %v2747_v56 }
 0x2c1   : > { %v2768_v58 = vpop.f32.mrf.mxu0  ;;  %v3388_v35 = vpop.f32.mrf.mxu1  ;;  %3822 = vmatmul.mubr.f32.gmra.mxu0 %v14558_v6  ;;  %4323 = vmatmul.mubr.f32.gmra.mxu1 %v14550_v40 }
 0x2c2   : > { %14557 = vst [vmem:[#allocation41_spill] sm:$0xff] %v10038_v57  ;;  %v2769_v41 = vadd.f32 %v2768_v58, %v9394_v2  ;;  %v10043_v28 = vadd.f32 %v3388_v35, %v2753_v63  ;;  %3827 = vmatprep.mubr.f32.mxu0 %v14052_v61  ;;  %4328 = vmatprep.mubr.f32.mxu1 %v14052_v61  ;;  %v14562_v57 = vld [vmem:[#allocation72_spill] sm:$0xff] }
 0x2c3   : > { %v2770_v37 = vpop.f32.mrf.mxu0  ;;  %v3390_v21 = vpop.f32.mrf.mxu1  ;;  %v14564_v35 = vld [vmem:[#allocation76_spill] sm:$0xff] }
 0x2c4   : > { %14559 = vst [vmem:[#allocation157_spill] sm:$0xff] %v10043_v28  ;;  %v2771_v23 = vadd.f32 %v2770_v37, %v14560_v3  ;;  %v10048_v56 = vadd.f32 %v3390_v21, %v2755_v15 }
 0x2c5   : > { %v2776_v32 = vpop.f32.mrf.mxu0  ;;  %v3397_v9 = vpop.f32.mrf.mxu1  ;;  %3829 = vmatmul.mubr.f32.gmra.mxu0 %v14562_v57  ;;  %4330 = vmatmul.mubr.f32.gmra.mxu1 %v14554_v51 }
 0x2c6   : > { %14561 = vst [vmem:[#allocation36_spill] sm:$0xff] %v10048_v56  ;;  %v2777_v2 = vadd.f32 %v2776_v32, %v9405_v54  ;;  %v10053_v40 = vadd.f32 %v3397_v9, %v2761_v16  ;;  %3834 = vmatprep.mubr.f32.mxu0 %v14052_v61  ;;  %4335 = vmatprep.mubr.f32.mxu1 %v14052_v61  ;;  %v14566_v56 = vld [vmem:[#allocation75_spill] sm:$0xff]  ;;  %v14568_v9 = vld [vmem:[#allocation78_spill] sm:$0xff] }
 0x2c7   : > { %v2778_v63 = vpop.f32.mrf.mxu0  ;;  %v3399_v58 = vpop.f32.mrf.mxu1 }
 0x2c8   : > { %14563 = vst [vmem:[#allocation42_spill] sm:$0xff] %v10053_v40  ;;  %v2779_v37 = vadd.f32 %v2778_v63, %v14564_v35  ;;  %v10058_v15 = vadd.f32 %v3399_v58, %v2763_v47  ;;  %v14596_v40 = vld [vmem:[#allocation107_spill] sm:$0xff] }
 0x2c9   : > { %v2784_v21 = vpop.f32.mrf.mxu0  ;;  %v3406_v3 = vpop.f32.mrf.mxu1  ;;  %3836 = vmatmul.mubr.f32.gmra.mxu0 %v14566_v56  ;;  %4337 = vmatmul.mubr.f32.gmra.mxu1 %v14558_v6 }
 0x2ca   : > { %14565 = vst [vmem:[#allocation158_spill] sm:$0xff] %v10058_v15  ;;  %v2785_v54 = vadd.f32 %v2784_v21, %v9416_v46  ;;  %v10063_v51 = vadd.f32 %v3406_v3, %v2769_v41  ;;  %3841 = vmatprep.mubr.f32.mxu0 %v14052_v61  ;;  %4342 = vmatprep.mubr.f32.mxu1 %v14052_v61  ;;  %v14570_v15 = vld [vmem:[#allocation77_spill] sm:$0xff] }
 0x2cb   : > { %v2786_v16 = vpop.f32.mrf.mxu0  ;;  %v3408_v32 = vpop.f32.mrf.mxu1 }
 0x2cc   : > { %14567 = vst [vmem:[#allocation39_spill] sm:$0xff] %v10063_v51  ;;  %v2787_v63 = vadd.f32 %v2786_v16, %v14568_v9  ;;  %v10068_v47 = vadd.f32 %v3408_v32, %v2771_v23  ;;  %v14573_v9 = vld [vmem:[#allocation79_spill] sm:$0xff] }
 0x2cd   : > { %v2792_v58 = vpop.f32.mrf.mxu0  ;;  %v3415_v35 = vpop.f32.mrf.mxu1  ;;  %3843 = vmatmul.mubr.f32.gmra.mxu0 %v14570_v15  ;;  %4344 = vmatmul.mubr.f32.gmra.mxu1 %v14562_v57 }
 0x2ce   : > { %14569 = vst [vmem:[#allocation44_spill] sm:$0xff] %v10068_v47  ;;  %v2793_v46 = vadd.f32 %v2792_v58, %v9427_v49  ;;  %v10073_v6 = vadd.f32 %v3415_v35, %v2777_v2  ;;  %3848 = vmatprep.mubr.f32.mxu0 %v14052_v61  ;;  %4349 = vmatprep.mubr.f32.mxu1 %v14052_v61  ;;  %v14575_v35 = vld [vmem:[#allocation81_spill] sm:$0xff]  ;;  %v14577_v47 = vld [vmem:[#allocation80_spill] sm:$0xff] }
 0x2cf   : > { %v2794_v41 = vpop.f32.mrf.mxu0  ;;  %v3417_v21 = vpop.f32.mrf.mxu1 }
 0x2d0   : > { %14571 = vst [vmem:[#allocation159_spill] sm:$0xff] %v10073_v6  ;;  %v2795_v3 = vadd.f32 %v2794_v41, %v9431_v34  ;;  %v10078_v23 = vadd.f32 %v3417_v21, %v2779_v37  ;;  %v14581_v6 = vld [vmem:[#allocation83_spill] sm:$0xff] }
 0x2d1   : > { %v2800_v16 = vpop.f32.mrf.mxu0  ;;  %v3424_v32 = vpop.f32.mrf.mxu1  ;;  %3850 = vmatmul.mubr.f32.gmra.mxu0 %v14573_v9  ;;  %4351 = vmatmul.mubr.f32.gmra.mxu1 %v14566_v56 }
 0x2d2   : > { %14572 = vst [vmem:[#allocation40_spill] sm:$0xff] %v10078_v23  ;;  %v2801_v49 = vadd.f32 %v2800_v16, %v9438_v48  ;;  %v10083_v57 = vadd.f32 %v3424_v32, %v2785_v54  ;;  %3855 = vmatprep.mubr.f32.mxu0 %v14052_v61  ;;  %4356 = vmatprep.mubr.f32.mxu1 %v14052_v61  ;;  %v14579_v32 = vld [vmem:[#allocation82_spill] sm:$0xff]  ;;  %v14586_v23 = vld [vmem:[#allocation84_spill] sm:$0xff] }
 0x2d3   : > { %v2802_v2 = vpop.f32.mrf.mxu0  ;;  %v3426_v58 = vpop.f32.mrf.mxu1 }
 0x2d4   : > { %14574 = vst [vmem:[#allocation46_spill] sm:$0xff] %v10083_v57  ;;  %v2803_v34 = vadd.f32 %v2802_v2, %v14575_v35  ;;  %v10088_v37 = vadd.f32 %v3426_v58, %v2787_v63  ;;  %v14591_v57 = vld [vmem:[#allocation87_spill] sm:$0xff] }
 0x2d5   : > { %v2808_v41 = vpop.f32.mrf.mxu0  ;;  %v3433_v21 = vpop.f32.mrf.mxu1  ;;  %3857 = vmatmul.mubr.f32.gmra.mxu0 %v14577_v47  ;;  %4358 = vmatmul.mubr.f32.gmra.mxu1 %v14570_v15 }
 0x2d6   : > { %14576 = vst [vmem:[#allocation160_spill] sm:$0xff] %v10088_v37  ;;  %v2809_v48 = vadd.f32 %v2808_v41, %v9450_v60  ;;  %v10093_v56 = vadd.f32 %v3433_v21, %v2793_v46  ;;  %3862 = vmatprep.mubr.f32.mxu0 %v14052_v61  ;;  %4363 = vmatprep.mubr.f32.mxu1 %v14052_v61  ;;  %v14583_v60 = vld [vmem:[#allocation85_spill] sm:$0xff] }
 0x2d7   : > { %v2810_v54 = vpop.f32.mrf.mxu0  ;;  %v3435_v16 = vpop.f32.mrf.mxu1 }
 0x2d8   : > { %14578 = vst [vmem:[#allocation43_spill] sm:$0xff] %v10093_v56  ;;  %v2811_v2 = vadd.f32 %v2810_v54, %v14579_v32  ;;  %v10098_v63 = vadd.f32 %v3435_v16, %v2795_v3  ;;  %v14585_v3 = vld [vmem:[#allocation86_spill] sm:$0xff] }
 0x2d9   : > { %v3442_v58 = vpop.f32.mrf.mxu1  ;;  %v3529_v35 = vpop.f32.mrf.mxu0  ;;  %3864 = vmatmul.mubr.f32.gmra.mxu0 %v14581_v6  ;;  %4365 = vmatmul.mubr.f32.gmra.mxu1 %v14573_v9 }
 0x2da   : > { %14580 = vst [vmem:[#allocation49_spill] sm:$0xff] %v10098_v63  ;;  %v10102_v15 = vadd.f32 %v3442_v58, %v2801_v49  ;;  %v3530_v46 = vadd.f32 %v3529_v35, %v14583_v60  ;;  %3869 = vmatprep.mubr.f32.mxu0 %v14052_v61  ;;  %4370 = vmatprep.mubr.f32.mxu1 %v14052_v61  ;;  %v14588_v49 = vld [vmem:[#allocation100_spill] sm:$0xff] }
 0x2db   : > { %v3444_v41 = vpop.f32.mrf.mxu1  ;;  %v3531_v21 = vpop.f32.mrf.mxu0 }
 0x2dc   : > { %14582 = vst [vmem:[#allocation161_spill] sm:$0xff] %v10102_v15  ;;  %v10107_v51 = vadd.f32 %v3444_v41, %v2803_v34  ;;  %v3532_v54 = vadd.f32 %v3531_v21, %v14585_v3  ;;  %v14590_v41 = vld [vmem:[#allocation88_spill] sm:$0xff] }
 0x2dd   : > { %v3451_v16 = vpop.f32.mrf.mxu1  ;;  %v3536_v32 = vpop.f32.mrf.mxu0  ;;  %3871 = vmatmul.mubr.f32.gmra.mxu0 %v14586_v23  ;;  %4372 = vmatmul.mubr.f32.gmra.mxu1 %v14577_v47  ;;  %v14592_v47 = vld [vmem:[#allocation103_spill] sm:$0xff] }
 0x2de   : > { %14584 = vst [vmem:[#allocation45_spill] sm:$0xff] %v10107_v51  ;;  %v10112_v9 = vadd.f32 %v3451_v16, %v2809_v48  ;;  %v3537_v58 = vadd.f32 %v3536_v32, %v14588_v49  ;;  %3876 = vmatprep.mubr.f32.mxu0 %v14052_v61  ;;  %4377 = vmatprep.mubr.f32.mxu1 %v14052_v61 }
 0x2df   : > { %v3453_v35 = vpop.f32.mrf.mxu1  ;;  %v3538_v60 = vpop.f32.mrf.mxu0 }
 0x2e0   : > { %14587 = vst [vmem:[#allocation50_spill] sm:$0xff] %v10112_v9  ;;  %v10117_v34 = vadd.f32 %v3453_v35, %v2811_v2  ;;  %v3539_v21 = vadd.f32 %v3538_v60, %v14590_v41  ;;  %v14593_v2 = vld [vmem:[#allocation104_spill] sm:$0xff]  ;;  %v14594_v41 = vld [vmem:[#allocation89_spill] sm:$0xff]  ;;  %v14602_v9 = vld [vmem:[#allocation99_spill] sm:$0xff] }
 0x2e1   : > { %v3543_v3 = vpop.f32.mrf.mxu0  ;;  %3878 = vmatmul.mubr.f32.gmra.mxu0 %v14591_v57  ;;  %v4044_v37 = vpop.f32.mrf.mxu1  ;;  %4379 = vmatmul.mubr.f32.gmra.mxu1 %v14581_v6  ;;  %v14595_v6 = vld [vmem:[#allocation90_spill] sm:$0xff] }
 0x2e2   : > { %14589 = vst [vmem:[#allocation162_spill] sm:$0xff] %v10117_v34  ;;  %v3544_v48 = vadd.f32 %v3543_v3, %v14592_v47  ;;  %v10123_v16 = vadd.f32 %v4044_v37, %v3530_v46  ;;  %3883 = vmatprep.mubr.f32.mxu0 %v14052_v61  ;;  %4384 = vmatprep.mubr.f32.mxu1 %v14052_v61 }
 0x2e3   : > { %v3545_v32 = vpop.f32.mrf.mxu0  ;;  %v4046_v49 = vpop.f32.mrf.mxu1 }
 0x2e4   : > { %v3546_v35 = vadd.f32 %v3545_v32, %v14593_v2  ;;  %v10128_v56 = vadd.f32 %v4046_v49, %v3532_v54  ;;  %v14597_v2 = vld [vmem:[#allocation91_spill] sm:$0xff] }
 0x2e5   : > { %v3550_v60 = vpop.f32.mrf.mxu0  ;;  %3885 = vmatmul.mubr.f32.gmra.mxu0 %v14594_v41  ;;  %v4051_v63 = vpop.f32.mrf.mxu1  ;;  %4386 = vmatmul.mubr.f32.gmra.mxu1 %v14586_v23 }
 0x2e6   : > { %v3551_v3 = vadd.f32 %v3550_v60, %v14595_v6  ;;  %v10133_v37 = vadd.f32 %v4051_v63, %v3537_v58  ;;  %3890 = vmatprep.mubr.f32.mxu0 %v14052_v61  ;;  %4391 = vmatprep.mubr.f32.mxu1 %v14052_v61 }
 0x2e7   : > { %v3552_v46 = vpop.f32.mrf.mxu0  ;;  %v4053_v47 = vpop.f32.mrf.mxu1 }
 0x2e8   : > { %v3553_v32 = vadd.f32 %v3552_v46, %v14596_v40  ;;  %v10138_v54 = vadd.f32 %v4053_v47, %v3539_v21  ;;  %v14598_v46 = vld [vmem:[#allocation93_spill] sm:$0xff] }
 0x2e9   : > { %v3557_v49 = vpop.f32.mrf.mxu0  ;;  %3892 = vmatmul.mubr.f32.gmra.mxu0 %v14597_v2  ;;  %v4058_v15 = vpop.f32.mrf.mxu1  ;;  %4393 = vmatmul.mubr.f32.gmra.mxu1 %v14591_v57 }
 0x2ea   : > { %v3558_v23 = vadd.f32 %v3557_v49, %v9506_v44  ;;  %3897 = vmatprep.mubr.f32.mxu0 %v14052_v61  ;;  %4398 = vmatprep.mubr.f32.mxu1 %v14052_v61  ;;  %v10145_v63 = vadd.f32 %v4058_v15, %v3544_v48 }
 0x2eb   : > { %v3559_v58 = vpop.f32.mrf.mxu0  ;;  %v4060_v60 = vpop.f32.mrf.mxu1 }
 0x2ec   : > { %v3560_v40 = vadd.f32 %v3559_v58, %v9511_v5  ;;  %v10148_v21 = vadd.f32 %v4060_v60, %v3546_v35  ;;  %v14599_v35 = vld [vmem:[#allocation94_spill] sm:$0xff] }
 0x2ed   : > { %v10150_v6 = vpop.f32.mrf.mxu0  ;;  %3899 = vmatmul.mubr.f32.gmra.mxu0 %v14598_v46  ;;  %v4065_v47 = vpop.f32.mrf.mxu1  ;;  %4400 = vmatmul.mubr.f32.gmra.mxu1 %v14594_v41 }
 0x2ee   : > { %v10154_v44 = vadd.f32 %v4065_v47, %v3551_v3  ;;  %3904 = vmatprep.mubr.f32.mxu0 %v14052_v61  ;;  %4405 = vmatprep.mubr.f32.mxu1 %v14052_v61  ;;  %v4495_v14 = vmax.f32 %v10148_v21, 0.0 }
 0x2ef   : > { %v10158_v57 = vpop.f32.mrf.mxu0  ;;  %v4067_v15 = vpop.f32.mrf.mxu1 }
 0x2f0   : > { %v10160_v48 = vadd.f32 %v4067_v15, %v3553_v32  ;;  %v4490_v32 = vmax.f32 %v10123_v16, 0.0  ;;  %v14600_v15 = vld [vmem:[#allocation97_spill] sm:$0xff]  ;;  %v4492_v16 = vmax.f32 %v10133_v37, 0.0 }
 0x2f1   : > { %v10162_v5 = vpop.f32.mrf.mxu0  ;;  %3906 = vmatmul.mubr.f32.gmra.mxu0 %v14599_v35  ;;  %v4072_v49 = vpop.f32.mrf.mxu1  ;;  %4407 = vmatmul.mubr.f32.gmra.mxu1 %v14597_v2  ;;  %v4491_v2 = vmax.f32 %v10128_v56, 0.0 }
 0x2f2   : > { %v10166_v58 = vadd.f32 %v4072_v49, %v3558_v23  ;;  %3911 = vmatprep.mubr.f32.mxu0 %v14052_v61  ;;  %4412 = vmatprep.mubr.f32.mxu1 %v14052_v61  ;;  %v10189_v49 = vand.u32 4294901760, %v4490_v32  ;;  %v10202_v43 = vand.u32 4294901760, %v4492_v16  ;;  %v3572_v24 = vadd.f32 %v10162_v5, %v9528_v13 }
 0x2f3   : > { %v10170_v41 = vpop.f32.mrf.mxu0  ;;  %v4074_v3 = vpop.f32.mrf.mxu1  ;;  %v10195_v56 = vand.u32 4294901760, %v4491_v2 }
 0x2f4   : > { %v10172_v60 = vadd.f32 %v4074_v3, %v3560_v40  ;;  %14601 = vst [vmem:[#allocation47_spill] sm:$0xff] %v10189_v49  ;;  %14604 = vst [vmem:[#allocation163_spill] sm:$0xff] %v10202_v43  ;;  %v10205_v19 = vsub.f32 %v4490_v32, %v10189_v49  ;;  %v10224_v7 = vsub.f32 %v4492_v16, %v10202_v43 }
 0x2f5   : > { %v10175_v47 = vpop.f32.mrf.mxu0  ;;  %3913 = vmatmul.mubr.f32.gmra.mxu0 %v14600_v15  ;;  %v10178_v51 = vpop.f32.mrf.mxu1  ;;  %4414 = vmatmul.mubr.f32.gmra.mxu1 %v14598_v46  ;;  %14603 = vst [vmem:[#allocation53_spill] sm:$0xff] %v10195_v56  ;;  %v4493_v46 = vmax.f32 %v10138_v54, 0.0  ;;  %v10212_v33 = vsub.f32 %v4491_v2, %v10195_v56  ;;  %v4494_v54 = vmax.f32 %v10145_v63, 0.0  ;;  %v14610_v2 = vld [vmem:[#allocation106_spill] sm:$0xff] }
 0x2f6   : > { %3918 = vmatprep.mubr.f32.mxu0 %v14052_v61  ;;  %4419 = vmatprep.mubr.f32.mxu1 %v14052_v61  ;;  %14605 = vst [vmem:[#allocation48_spill] sm:$0xff] %v10205_v19  ;;  %14609 = vst [vmem:[#allocation51_spill] sm:$0xff] %v10224_v7  ;;  %v14613_v56 = vand.u32 4294901760, %v10205_v19  ;;  %v14621_v50 = vand.u32 4294901760, %v10224_v7  ;;  %v3579_v13 = vadd.f32 %v10175_v47, %v9539_v1  ;;  %v4498_v47 = vmax.f32 %v10166_v58, 0.0 }
 0x2f7   : > { %v10184_v23 = vpop.f32.mrf.mxu0  ;;  %v10186_v40 = vpop.f32.mrf.mxu1  ;;  %14607 = vst [vmem:[#allocation54_spill] sm:$0xff] %v10212_v33  ;;  %v10217_v30 = vand.u32 4294901760, %v4493_v46  ;;  %v10233_v12 = vand.u32 4294901760, %v4494_v54 }
 0x2f8   : > { %v10251_v21 = vsub.f32 %v10205_v19, %v14613_v56  ;;  %v14620_v19 = vld [vmem:[#allocation111_spill] sm:$0xff]  ;;  %v10281_v62 = vsub.f32 %v10224_v7, %v14621_v50 }
 0x2f9   : > { %v10191_v3 = vpop.f32.mrf.mxu0  ;;  %3920 = vmatmul.mubr.f32.gmra.mxu0 %v14602_v9  ;;  %v4086_v34 = vpop.f32.mrf.mxu1  ;;  %4421 = vmatmul.mubr.f32.gmra.mxu1 %v14599_v35  ;;  %14608 = vst [vmem:[#allocation164_spill] sm:$0xff] %v10217_v30  ;;  %14611 = vst [vmem:[#allocation52_spill] sm:$0xff] %v10233_v12 }
 0x2fa   : > { %3925 = vmatprep.mubr.f32.mxu0 %v14052_v61  ;;  %4426 = vmatprep.mubr.f32.mxu1 %v14052_v61  ;;  %14614 = vst [vmem:[#allocation55_spill] sm:$0xff] %v10251_v21  ;;  %14622 = vst [vmem:[#allocation59_spill] sm:$0xff] %v10281_v62 }
 0x2fb   : > { %v10200_v28 = vpop.f32.mrf.mxu0  ;;  %v4088_v37 = vpop.f32.mrf.mxu1 }
 0x2fd   : > { %v10207_v11 = vpop.f32.mrf.mxu0  ;;  %3927 = vmatmul.mubr.f32.gmra.mxu0 %v14606_v38  ;;  %v4093_v35 = vpop.f32.mrf.mxu1  ;;  %4428 = vmatmul.mubr.f32.gmra.mxu1 %v14600_v15  ;;  %v10240_v15 = vsub.f32 %v4493_v46, %v10217_v30  ;;  %v10258_v46 = vsub.f32 %v4494_v54, %v10233_v12  ;;  %v10260_v30 = vand.u32 4294901760, %v4495_v14 }
 0x2fe   : > { %3932 = vmatprep.mubr.f32.mxu0 %v14052_v61  ;;  %4433 = vmatprep.mubr.f32.mxu1 %v14052_v61  ;;  %v3593_v58 = vadd.f32 %v10207_v11, %v9561_v52 }
 0x2ff   : > { %v10219_v32 = vpop.f32.mrf.mxu0  ;;  %v10221_v18 = vpop.f32.mrf.mxu1  ;;  %14612 = vst [vmem:[#allocation57_spill] sm:$0xff] %v10240_v15  ;;  %14616 = vst [vmem:[#allocation58_spill] sm:$0xff] %v10258_v46  ;;  %v10304_v1 = vsub.f32 %v4495_v14, %v10260_v30  ;;  %v14628_v14 = vand.u32 4294901760, %v10240_v15 }
 0x300   : > { %14617 = vst [vmem:[#allocation56_spill] sm:$0xff] %v10260_v30 }
 0x301   : > { %v10227_v4 = vpop.f32.mrf.mxu0  ;;  %3934 = vmatmul.mubr.f32.gmra.mxu0 %v14610_v2  ;;  %v10230_v63 = vpop.f32.mrf.mxu1  ;;  %4435 = vmatmul.mubr.f32.gmra.mxu1 %v14602_v9  ;;  %v4496_v9 = vmax.f32 %v10154_v44, 0.0  ;;  %v14618_v44 = vand.u32 4294901760, %v10212_v33  ;;  %14627 = vst [vmem:[#allocation61_spill] sm:$0xff] %v10304_v1 }
 0x302   : > { %3939 = vmatprep.mubr.f32.mxu0 %v14052_v61  ;;  %4440 = vmatprep.mubr.f32.mxu1 %v14052_v61 }
 0x303   : > { %v10242_v20 = vpop.f32.mrf.mxu0  ;;  %v10244_v49 = vpop.f32.mrf.mxu1  ;;  %v10267_v56 = vsub.f32 %v10212_v33, %v14618_v44  ;;  %v3565_v44 = vadd.f32 %v10150_v6, %v14623_v8  ;;  %v10285_v33 = vand.u32 4294901760, %v4496_v9  ;;  %v13572_v6 = vand.u32 4294901760, %v10258_v46 }
 0x304   : > { %v3586_v8 = vadd.f32 %v10191_v3, %v9550_v59 }
 0x305   : > { %v10253_v43 = vpop.f32.mrf.mxu0  ;;  %3941 = vmatmul.mubr.f32.gmra.mxu0 %v14615_v39  ;;  %v4107_v16 = vpop.f32.mrf.mxu1  ;;  %4442 = vmatmul.mubr.f32.gmra.mxu1 %v14606_v38  ;;  %14619 = vst [vmem:[#allocation60_spill] sm:$0xff] %v10267_v56  ;;  %v3574_v38 = vadd.f32 %v10170_v41, %v14620_v19  ;;  %14624 = vst [vmem:[#allocation62_spill] sm:$0xff] %v10285_v33  ;;  %v14625_v19 = vld [vmem:[#allocation92_spill] sm:$0xff]  ;;  %v10291_v41 = vadd.f32 %v4086_v34, %v3572_v24  ;;  %v4497_v34 = vmax.f32 %v10160_v48, 0.0 }
 0x306   : > { %3946 = vmatprep.mubr.f32.mxu0 %v14052_v61  ;;  %4447 = vmatprep.mubr.f32.mxu1 %v14052_v61  ;;  %v3567_v5 = vadd.f32 %v10158_v57, %v14625_v19  ;;  %v10306_v57 = vadd.f32 %v4093_v35, %v3579_v13  ;;  %v10321_v35 = vsub.f32 %v10240_v15, %v14628_v14 }
 0x307   : > { %v10273_v36 = vpop.f32.mrf.mxu0  ;;  %v10275_v54 = vpop.f32.mrf.mxu1  ;;  %v10293_v25 = vadd.f32 %v4088_v37, %v3574_v38  ;;  %v4499_v37 = vmax.f32 %v10172_v60, 0.0  ;;  %v10324_v13 = vsub.f32 %v4496_v9, %v10285_v33  ;;  %v10327_v19 = vadd.f32 %v10178_v51, %v3565_v44  ;;  %v14631_v51 = vld [vmem:[#allocation118_spill] sm:$0xff] }
 0x308   : > { %14629 = vst [vmem:[#allocation65_spill] sm:$0xff] %v10321_v35  ;;  %v3581_v48 = vadd.f32 %v10184_v23, %v9544_v26  ;;  %v10334_v60 = vadd.f32 %v10186_v40, %v3567_v5  ;;  %v4502_v14 = vmax.f32 %v10291_v41, 0.0  ;;  %v3588_v26 = vadd.f32 %v10200_v28, %v9555_v53 }
 0x309   : > { %v10295_v12 = vpop.f32.mrf.mxu0  ;;  %3948 = vmatmul.mubr.f32.gmra.mxu0 %v14626_v22  ;;  %v10298_v50 = vpop.f32.mrf.mxu1  ;;  %4449 = vmatmul.mubr.f32.gmra.mxu1 %v14610_v2  ;;  %14630 = vst [vmem:[#allocation63_spill] sm:$0xff] %v10324_v13  ;;  %v4503_v9 = vmax.f32 %v10293_v25, 0.0  ;;  %v4504_v52 = vmax.f32 %v10306_v57, 0.0  ;;  %v10352_v59 = vadd.f32 %v4107_v16, %v3593_v58  ;;  %v10356_v25 = vand.u32 4294901760, %v4497_v34  ;;  %v14638_v58 = vld [vmem:[#allocation122_spill] sm:$0xff] }
 0x30a   : > { %3953 = vmatprep.mubr.f32.mxu0 %v14052_v61  ;;  %4454 = vmatprep.mubr.f32.mxu1 %v14052_v61  ;;  %v10350_v11 = vadd.f32 %v10221_v18, %v3581_v48  ;;  %v10358_v23 = vand.u32 4294901760, %v4498_v47  ;;  %v10360_v40 = vand.u32 4294901760, %v4499_v37  ;;  %v10370_v18 = vsub.f32 %v10258_v46, %v13572_v6 }
 0x30b   : > { %v10314_v2 = vpop.f32.mrf.mxu0  ;;  %v10316_v38 = vpop.f32.mrf.mxu1  ;;  %14632 = vst [vmem:[#allocation66_spill] sm:$0xff] %v10356_v25  ;;  %v10374_v16 = vadd.f32 %v10244_v49, %v3588_v26  ;;  %v10381_v57 = vand.u32 4294901760, %v4503_v9  ;;  %v10387_v3 = vand.u32 4294901760, %v4504_v52  ;;  %v3595_v49 = vadd.f32 %v10219_v32, %v9566_v55 }
 0x30c   : > { %14633 = vst [vmem:[#allocation64_spill] sm:$0xff] %v10358_v23  ;;  %14634 = vst [vmem:[#allocation69_spill] sm:$0xff] %v10360_v40  ;;  %v4508_v41 = vmax.f32 %v10352_v59, 0.0  ;;  %v10396_v5 = vsub.f32 %v4497_v34, %v10356_v25  ;;  %v14643_v26 = vmax.f32 %v10327_v19, 0.0  ;;  %v3600_v15 = vadd.f32 %v10227_v4, %v9572_v0  ;;  %v14650_v0 = vld [vmem:[#allocation124_spill] sm:$0xff] }
 0x30d   : > { %v10340_v24 = vpop.f32.mrf.mxu0  ;;  %3955 = vmatmul.mubr.f32.gmra.mxu0 %v14631_v51  ;;  %v10343_v44 = vpop.f32.mrf.mxu1  ;;  %4456 = vmatmul.mubr.f32.gmra.mxu1 %v14615_v39  ;;  %v10363_v39 = vadd.f32 %v10230_v63, %v3586_v8  ;;  %14635 = vst [vmem:[#allocation67_spill] sm:$0xff] %v10370_v18  ;;  %v10379_v8 = vand.u32 4294901760, %v4502_v14  ;;  %14637 = vst [vmem:[#allocation68_spill] sm:$0xff] %v10381_v57  ;;  %v10399_v63 = vsub.f32 %v4498_v47, %v10358_v23 }
 0x30e   : > { %3960 = vmatprep.mubr.f32.mxu0 %v14052_v61  ;;  %4461 = vmatprep.mubr.f32.mxu1 %v14052_v61  ;;  %14639 = vst [vmem:[#allocation73_spill] sm:$0xff] %v10387_v3  ;;  %14640 = vst [vmem:[#allocation71_spill] sm:$0xff] %v10396_v5  ;;  %v10407_v59 = vand.u32 4294901760, %v14643_v26  ;;  %v10413_v46 = vadd.f32 %v10275_v54, %v3595_v49  ;;  %v14645_v47 = vmax.f32 %v10334_v60, 0.0  ;;  %v14649_v26 = vld [vmem:[#allocation112_spill] sm:$0xff]  ;;  %v14652_v49 = vmax.f32 %v10350_v11, 0.0 }
 0x30f   : > { %v3622_v53 = vpop.f32.mrf.mxu0  ;;  %v10365_v28 = vpop.f32.mrf.mxu1  ;;  %14636 = vst [vmem:[#allocation70_spill] sm:$0xff] %v10379_v8  ;;  %14641 = vst [vmem:[#allocation74_spill] sm:$0xff] %v10399_v63  ;;  %v10420_v7 = vsub.f32 %v4502_v14, %v10379_v8  ;;  %v10423_v21 = vsub.f32 %v4503_v9, %v10381_v57  ;;  %v3602_v56 = vadd.f32 %v10242_v20, %v14649_v26  ;;  %v10436_v14 = vand.u32 4294901760, %v4508_v41 }
 0x310   : > { %14644 = vst [vmem:[#allocation76_spill] sm:$0xff] %v10407_v59  ;;  %v10430_v54 = vsub.f32 %v4504_v52, %v10387_v3  ;;  %v10439_v9 = vadd.f32 %v10298_v50, %v3600_v15  ;;  %v14655_v20 = vmax.f32 %v10363_v39, 0.0  ;;  %v14657_v35 = vmax.f32 %v10374_v16, 0.0 }
 0x311   : > { %v3627_v48 = vpop.f32.mrf.mxu0  ;;  %3962 = vmatmul.mubr.f32.gmra.mxu0 %v14638_v58  ;;  %v10384_v6 = vpop.f32.mrf.mxu1  ;;  %4463 = vmatmul.mubr.f32.gmra.mxu1 %v14626_v22  ;;  %v10402_v22 = vsub.f32 %v4499_v37, %v10360_v40  ;;  %v10417_v37 = vand.u32 4294901760, %v14645_v47  ;;  %14647 = vst [vmem:[#allocation78_spill] sm:$0xff] %v10420_v7  ;;  %14648 = vst [vmem:[#allocation77_spill] sm:$0xff] %v10423_v21  ;;  %v10434_v47 = vand.u32 4294901760, %v14652_v49 }
 0x312   : > { %3967 = vmatprep.mubr.f32.mxu0 %v14052_v61  ;;  %4468 = vmatprep.mubr.f32.mxu1 %v14052_v61  ;;  %14651 = vst [vmem:[#allocation79_spill] sm:$0xff] %v10430_v54  ;;  %14654 = vst [vmem:[#allocation80_spill] sm:$0xff] %v10436_v14  ;;  %v10444_v26 = vand.u32 4294901760, %v14655_v20  ;;  %v10449_v52 = vadd.f32 %v10316_v38, %v3602_v56  ;;  %v3623_v49 = vadd.f32 %v3622_v53, %v9610_v27 }
 0x313   : > { %14642 = vst [vmem:[#allocation72_spill] sm:$0xff] %v10402_v22  ;;  %v3629_v55 = vpop.f32.mrf.mxu0  ;;  %v4130_v32 = vpop.f32.mrf.mxu1  ;;  %14646 = vst [vmem:[#allocation75_spill] sm:$0xff] %v10417_v37  ;;  %v10454_v15 = vand.u32 4294901760, %v14657_v35  ;;  %v3609_v50 = vadd.f32 %v10273_v36, %v9588_v31  ;;  %v13585_v20 = vmax.f32 %v10413_v46, 0.0  ;;  %v3614_v30 = vadd.f32 %v10295_v12, %v9594_v29  ;;  %v14661_v12 = vld [vmem:[#allocation96_spill] sm:$0xff]  ;;  %v14664_v36 = vld [vmem:[#allocation119_spill] sm:$0xff] }
 0x314   : > { %14653 = vst [vmem:[#allocation81_spill] sm:$0xff] %v10434_v47  ;;  %14656 = vst [vmem:[#allocation82_spill] sm:$0xff] %v10444_v26  ;;  %v3621_v27 = vadd.f32 %v10340_v24, %v9605_v17  ;;  %v3628_v56 = vadd.f32 %v3627_v48, %v9616_v42  ;;  %v10470_v31 = vsub.f32 %v4508_v41, %v10436_v14  ;;  %v13586_v17 = vmax.f32 %v10449_v52, 0.0 }
 0x315   : > { %v3634_v18 = vpop.f32.mrf.mxu0  ;;  %3969 = vmatmul.mubr.f32.gmra.mxu0 %v14650_v0  ;;  %v4135_v4 = vpop.f32.mrf.mxu1  ;;  %4470 = vmatmul.mubr.f32.gmra.mxu1 %v14631_v51  ;;  %v3607_v51 = vadd.f32 %v10253_v43, %v9583_v10  ;;  %14658 = vst [vmem:[#allocation83_spill] sm:$0xff] %v10454_v15  ;;  %v14659_v10 = vld [vmem:[#allocation95_spill] sm:$0xff]  ;;  %v3630_v29 = vadd.f32 %v3629_v55, %v9624_v45  ;;  %v10481_v41 = vand.u32 4294901760, %v13585_v20 }
 0x316   : > { %4475 = vmatprep.mubr.f32.mxu1 %v14052_v61  ;;  %v3616_v43 = vadd.f32 %v10314_v2, %v14659_v10  ;;  %14660 = vst [vmem:[#allocation85_spill] sm:$0xff] %v10470_v31 }
 0x317   : > { %v3636_v34 = vpop.f32.mrf.mxu0  ;;  %v4137_v62 = vpop.f32.mrf.mxu1  ;;  %14662 = vst [vmem:[#allocation86_spill] sm:$0xff] %v10481_v41 }
 0x318   : > { %v10466_v38 = vadd.f32 %v4137_v62, %v3623_v49  ;;  %v10477_v42 = vadd.f32 %v4130_v32, %v3616_v43  ;;  %v4136_v62 = vadd.f32 %v4135_v4, %v3621_v27 }
 0x319   : > { %v3641_v35 = vpop.f32.mrf.mxu0  ;;  %v4142_v53 = vpop.f32.mrf.mxu1  ;;  %4477 = vmatmul.mubr.f32.gmra.mxu1 %v14638_v58  ;;  %v14663_v58 = vld [vmem:[#allocation115_spill] sm:$0xff] }
 0x31a   : > { %v3642_v2 = vadd.f32 %v3641_v35, %v14661_v12  ;;  %4482 = vmatprep.mubr.f32.mxu1 %v14052_v61  ;;  %v4143_v24 = vadd.f32 %v4142_v53, %v3628_v56  ;;  %v3635_v10 = vadd.f32 %v3634_v18, %v14663_v58  ;;  %v10486_v35 = vadd.f32 %v10343_v44, %v3607_v51  ;;  %v14665_v53 = vld [vmem:[#allocation120_spill] sm:$0xff] }
 0x31b   : > { %v3643_v48 = vpop.f32.mrf.mxu0  ;;  %v4144_v49 = vpop.f32.mrf.mxu1  ;;  %v10489_v61 = vadd.f32 %v10384_v6, %v3614_v30  ;;  %v4517_v32 = vmax.f32 %v10466_v38, 0.0  ;;  %v10494_v56 = vadd.f32 %v10365_v28, %v3609_v50  ;;  %v10499_v44 = vand.u32 4294901760, %v13586_v17  ;;  %v14667_v51 = vld [vmem:[#allocation116_spill] sm:$0xff]  ;;  %v14670_v50 = vld [vmem:[#allocation98_spill] sm:$0xff]  ;;  %v14680_v17 = vld [vmem:[#allocation125_spill] sm:$0xff] }
 0x31c   : > { %v3644_v45 = vadd.f32 %v3643_v48, %v14664_v36  ;;  %v4145_v55 = vadd.f32 %v4144_v49, %v3630_v29  ;;  %v4518_v4 = vmax.f32 %v4143_v24, 0.0  ;;  %v4515_v30 = vmax.f32 %v10477_v42, 0.0 }
 0x31d   : > { %v3648_v43 = vpop.f32.mrf.mxu0  ;;  %v4149_v27 = vpop.f32.mrf.mxu1  ;;  %4484 = vmatmul.mubr.f32.gmra.mxu1 %v14650_v0  ;;  %14666 = vst [vmem:[#allocation84_spill] sm:$0xff] %v10499_v44  ;;  %v4516_v6 = vmax.f32 %v4136_v62, 0.0  ;;  %v3637_v38 = vadd.f32 %v3636_v34, %v14667_v51  ;;  %v4512_v58 = vmax.f32 %v10486_v35, 0.0  ;;  %v4513_v34 = vmax.f32 %v10494_v56, 0.0 }
 0x31e   : > { %v4519_v18 = vmax.f32 %v4145_v55, 0.0  ;;  %v3649_v36 = vadd.f32 %v3648_v43, %v14665_v53  ;;  %v4150_v29 = vadd.f32 %v4149_v27, %v3635_v10  ;;  %v10503_v48 = vand.u32 4294901760, %v4518_v4  ;;  %v14673_v53 = vld [vmem:[#allocation101_spill] sm:$0xff] }
 0x31f   : > { %v3650_v12 = vpop.f32.mrf.mxu0  ;;  %v4151_v24 = vpop.f32.mrf.mxu1  ;;  %v4514_v10 = vmax.f32 %v10489_v61, 0.0  ;;  %v10510_v55 = vand.u32 4294901760, %v4517_v32  ;;  %v10545_v23 = vand.u32 4294901760, %v4512_v58 }
 0x320   : > { %14668 = vst [vmem:[#allocation100_spill] sm:$0xff] %v10503_v48  ;;  %v10505_v0 = vand.u32 4294901760, %v4519_v18  ;;  %v4520_v28 = vmax.f32 %v4150_v29, 0.0  ;;  %v3651_v49 = vadd.f32 %v3650_v12, %v14670_v50  ;;  %v4152_v43 = vadd.f32 %v4151_v24, %v3637_v38 }
 0x321   : > { %14671 = vst [vmem:[#allocation87_spill] sm:$0xff] %v10510_v55  ;;  %v3655_v42 = vpop.f32.mrf.mxu0  ;;  %v4156_v62 = vpop.f32.mrf.mxu1  ;;  %v10518_v29 = vand.u32 4294901760, %v4515_v30  ;;  %v10520_v12 = vand.u32 4294901760, %v4516_v6  ;;  %v10526_v24 = vsub.f32 %v4518_v4, %v10503_v48  ;;  %v10538_v33 = vand.u32 4294901760, %v4514_v10  ;;  %14687 = vst [vmem:[#allocation109_spill] sm:$0xff] %v10545_v23 }
 0x322   : > { %14669 = vst [vmem:[#allocation88_spill] sm:$0xff] %v10505_v0  ;;  %v10513_v27 = vand.u32 4294901760, %v4520_v28  ;;  %v3656_v51 = vadd.f32 %v3655_v42, %v14673_v53  ;;  %v10516_v20 = vadd.f32 %v4156_v62, %v3642_v2  ;;  %v10523_v35 = vsub.f32 %v4519_v18, %v10505_v0 }
 0x323   : > { %14675 = vst [vmem:[#allocation89_spill] sm:$0xff] %v10518_v29  ;;  %14676 = vst [vmem:[#allocation90_spill] sm:$0xff] %v10520_v12  ;;  %v4521_v61 = vmax.f32 %v4152_v43, 0.0  ;;  %v3657_v50 = vpop.f32.mrf.mxu0  ;;  %v4158_v38 = vpop.f32.mrf.mxu1  ;;  %v14682_v62 = vmax.f32 %v10439_v9, 0.0  ;;  %v10541_v18 = vsub.f32 %v4517_v32, %v10510_v55 }
 0x324   : > { %14672 = vst [vmem:[#allocation103_spill] sm:$0xff] %v10513_v27  ;;  %14674 = vst [vmem:[#allocation104_spill] sm:$0xff] %v10516_v20  ;;  %v10529_v56 = vsub.f32 %v4520_v28, %v10513_v27  ;;  %v3658_v42 = vadd.f32 %v3657_v50, %v14680_v17  ;;  %v10532_v2 = vadd.f32 %v4158_v38, %v3644_v45  ;;  %v10547_v28 = vand.u32 4294901760, %v4513_v34  ;;  %v14689_v45 = vld [vmem:[#allocation105_spill] sm:$0xff] }
 0x325   : > { %14677 = vst [vmem:[#allocation107_spill] sm:$0xff] %v10523_v35  ;;  %14678 = vst [vmem:[#allocation91_spill] sm:$0xff] %v10526_v24  ;;  %v10536_v53 = vand.u32 4294901760, %v14682_v62  ;;  %v10543_v43 = vand.u32 4294901760, %v4521_v61  ;;  %v3662_v4 = vpop.f32.mrf.mxu0  ;;  %v4163_v25 = vpop.f32.mrf.mxu1  ;;  %v10552_v38 = vsub.f32 %v4516_v6, %v10520_v12  ;;  %v14692_v20 = vmax.f32 %v10449_v52, 0.0  ;;  %v14699_v6 = vld [vmem:[#allocation128_spill] sm:$0xff] }
 0x326   : > { %14679 = vst [vmem:[#allocation93_spill] sm:$0xff] %v10529_v56  ;;  %14681 = vst [vmem:[#allocation94_spill] sm:$0xff] %v10532_v2  ;;  %v3663_v50 = vadd.f32 %v3662_v4, %v14689_v45  ;;  %v10557_v32 = vadd.f32 %v4163_v25, %v3649_v36  ;;  %v10567_v4 = vsub.f32 %v4515_v30, %v10518_v29 }
 0x327   : > { %14683 = vst [vmem:[#allocation97_spill] sm:$0xff] %v10536_v53  ;;  %14684 = vst [vmem:[#allocation99_spill] sm:$0xff] %v10538_v33  ;;  %v10555_v62 = vsub.f32 %v4521_v61, %v10543_v43  ;;  %4629 = vmatprep.subr.mxu0 %v10543_v43  ;;  %v3664_v13 = vpop.f32.mrf.mxu0  ;;  %v4165_v40 = vpop.f32.mrf.mxu1  ;;  %v10564_v17 = vsub.f32 %v14692_v20, %v10499_v44  ;;  %v14695_v61 = vld [vmem:[#allocation127_spill] sm:$0xff]  ;;  %v10573_v25 = vsub.f32 %v4514_v10, %v10538_v33 }
 0x328   : > { %14685 = vst [vmem:[#allocation102_spill] sm:$0xff] %v10541_v18  ;;  %14686 = vst [vmem:[#allocation106_spill] sm:$0xff] %v10543_v43  ;;  %v3665_v45 = vadd.f32 %v3664_v13, %v14695_v61  ;;  %4631 = vmatpush1.msra.mxu0 %v10513_v27  ;;  %v10575_v36 = vadd.f32 %v4165_v40, %v3651_v49  ;;  %v10581_v43 = vsub.f32 %v4513_v34, %v10547_v28 }
 0x329   : > { %14688 = vst [vmem:[#allocation111_spill] sm:$0xff] %v10547_v28  ;;  %14690 = vst [vmem:[#allocation108_spill] sm:$0xff] %v10552_v38  ;;  %4633 = vmatprep.subr.mxu0 %v10505_v0  ;;  %v3669_v2 = vpop.f32.mrf.mxu0  ;;  %v4170_v52 = vpop.f32.mrf.mxu1  ;;  %v13607_v20 = vand.u32 4294901760, %v10555_v62  ;;  %v14698_v13 = vand.u32 4294901760, %v10529_v56  ;;  %v10591_v40 = vsub.f32 %v4512_v58, %v10545_v23  ;;  %v14703_v58 = vld [vmem:[#allocation110_spill] sm:$0xff]  ;;  %v14709_v49 = vmax.f32 %v10363_v39, 0.0 }
 0x32a   : > { %14691 = vst [vmem:[#allocation92_spill] sm:$0xff] %v10555_v62  ;;  %14693 = vst [vmem:[#allocation114_spill] sm:$0xff] %v10564_v17  ;;  %v3670_v10 = vadd.f32 %v3669_v2, %v14699_v6  ;;  %v10587_v27 = vadd.f32 %v4170_v52, %v3656_v51  ;;  %4635 = vmatpush1.msra.mxu0 %v10503_v48  ;;  %v14702_v2 = vand.u32 4294901760, %v10526_v24 }
 0x32b   : > { %14694 = vst [vmem:[#allocation118_spill] sm:$0xff] %v10567_v4  ;;  %14696 = vst [vmem:[#allocation122_spill] sm:$0xff] %v10573_v25  ;;  %v4782_v61 = vsub.f32 %v10529_v56, %v14698_v13  ;;  %4637 = vmatprep.subr.mxu0 %v10510_v55  ;;  %v3671_v30 = vpop.f32.mrf.mxu0  ;;  %v4172_v34 = vpop.f32.mrf.mxu1  ;;  %v4776_v0 = vsub.f32 %v10555_v62, %v13607_v20  ;;  %v14701_v13 = vand.u32 4294901760, %v10523_v35  ;;  %v14704_v55 = vmax.f32 %v10439_v9, 0.0 }
 0x32c   : > { %14697 = vst [vmem:[#allocation112_spill] sm:$0xff] %v10581_v43  ;;  %14700 = vst [vmem:[#allocation124_spill] sm:$0xff] %v10591_v40  ;;  %v4794_v6 = vsub.f32 %v10526_v24, %v14702_v2  ;;  %v3672_v52 = vadd.f32 %v3671_v30, %v14703_v58  ;;  %v10605_v48 = vadd.f32 %v4172_v34, %v3658_v42  ;;  %4639 = vmatpush1.msra.mxu0 %v10520_v12 }
 0x32d   : > { %v4788_v51 = vsub.f32 %v10523_v35, %v14701_v13  ;;  %v10612_v20 = vsub.f32 %v14704_v55, %v10536_v53  ;;  %4641 = vmatprep.subr.mxu0 %v10518_v29  ;;  %v10616_v13 = vpop.f32.mrf.mxu0  ;;  %v4177_v2 = vpop.f32.mrf.mxu1  ;;  %v4777_v24 = vand.u32 4294901760, %v4776_v0  ;;  %v14706_v42 = vand.u32 4294901760, %v10541_v18  ;;  %v14813_v35 = vld [vmem:[#allocation131_spill] sm:$0xff] }
 0x32e   : > { %v14707_v34 = vmax.f32 %v10413_v46, 0.0  ;;  %v10626_v9 = vadd.f32 %v4177_v2, %v3663_v50  ;;  %4643 = vmatpush1.msra.mxu0 %v10538_v33  ;;  %v4783_v55 = vand.u32 4294901760, %v4782_v61  ;;  %v10633_v0 = vsub.f32 %v14709_v49, %v10444_v26 }
 0x32f   : > { %14705 = vst [vmem:[#allocation95_spill] sm:$0xff] %v10612_v20  ;;  %v4800_v30 = vsub.f32 %v10541_v18, %v14706_v42  ;;  %v14711_v42 = vand.u32 4294901760, %v10552_v38  ;;  %4645 = vmatprep.subr.mxu0 %v10547_v28  ;;  %4778 = vmatprep.subr.mxu1 %v4777_v24  ;;  %v10640_v50 = vpop.f32.mrf.mxu0  ;;  %v4179_v2 = vpop.f32.mrf.mxu1  ;;  %v4789_v61 = vand.u32 4294901760, %v4788_v51  ;;  %v4795_v39 = vand.u32 4294901760, %v4794_v6  ;;  %v4619_v24 = vld [vmem:[%s13277_s3 + $0x8] sm:$0xff] }
 0x330   : > { %v10624_v58 = vsub.f32 %v14707_v34, %v10481_v41  ;;  %14710 = vst [vmem:[#allocation115_spill] sm:$0xff] %v10633_v0  ;;  %v14712_v34 = vmax.f32 %v10374_v16, 0.0  ;;  %4647 = vmatpush1.msra.mxu0 %v10545_v23  ;;  %4784 = vmatpush1.msra.mxu1 %v4783_v55  ;;  %v14714_v49 = vand.u32 4294901760, %v10567_v4  ;;  %v14715_v16 = vand.u32 4294901760, %v10573_v25 }
 0x331   : > { %v4806_v46 = vsub.f32 %v10552_v38, %v14711_v42  ;;  %v10659_v28 = vadd.f32 %v4179_v2, %v3665_v45  ;;  %4649 = vmatprep.subr.mxu0 %v10499_v44  ;;  %4790 = vmatprep.subr.mxu1 %v4789_v61  ;;  %v10662_v6 = vpop.f32.mrf.mxu0  ;;  %v4184_v55 = vpop.f32.mrf.mxu1  ;;  %v14716_v29 = vmax.f32 %v10350_v11, 0.0  ;;  %v14718_v45 = vand.u32 4294901760, %v10581_v43 }
 0x332   : > { %14708 = vst [vmem:[#allocation96_spill] sm:$0xff] %v10624_v58  ;;  %v10645_v56 = vsub.f32 %v14712_v34, %v10454_v15  ;;  %v4812_v42 = vsub.f32 %v10567_v4, %v14714_v49  ;;  %v4818_v34 = vsub.f32 %v10573_v25, %v14715_v16  ;;  %v4801_v49 = vand.u32 4294901760, %v4800_v30  ;;  %4651 = vmatpush1.msra.mxu0 %v10536_v53  ;;  %v14773_v25 = vld [vmem:[#allocation123_spill] sm:$0xff] }
 0x333   : > { %v10667_v23 = vsub.f32 %v14716_v29, %v10434_v47  ;;  %4796 = vmatpush1.msra.mxu1 %v4795_v39  ;;  %v4824_v2 = vsub.f32 %v10581_v43, %v14718_v45  ;;  %v14719_v16 = vand.u32 4294901760, %v10591_v40  ;;  %v10678_v44 = vadd.f32 %v4184_v55, %v3670_v10  ;;  %4653 = vmatprep.subr.mxu0 %v10481_v41  ;;  %v10681_v11 = vpop.f32.mrf.mxu0  ;;  %v4186_v29 = vpop.f32.mrf.mxu1 }
 0x334   : > { %14713 = vst [vmem:[#allocation119_spill] sm:$0xff] %v10645_v56  ;;  %4802 = vmatprep.subr.mxu1 %v4801_v49  ;;  %v4807_v51 = vand.u32 4294901760, %v4806_v46  ;;  %v10683_v39 = vand.u32 4294901760, %v4619_v24  ;;  %v10685_v53 = vadd.f32 %v4186_v29, %v3672_v52  ;;  %4655 = vmatpush1.msra.mxu0 %v10436_v14  ;;  %v4813_v45 = vand.u32 4294901760, %v4812_v42 }
 0x335   : > { %14717 = vst [vmem:[#allocation120_spill] sm:$0xff] %v10667_v23  ;;  %v4830_v30 = vsub.f32 %v10591_v40, %v14719_v16  ;;  %v14721_v61 = vand.u32 4294901760, %v10564_v17  ;;  %v14722_v55 = vmax.f32 %v10327_v19, 0.0  ;;  %v14724_v41 = vand.u32 4294901760, %v10612_v20  ;;  %4657 = vmatprep.subr.mxu0 %v10454_v15  ;;  %v10702_v42 = vpop.f32.mrf.mxu0  ;;  %v10704_v29 = vpop.f32.mrf.mxu1 }
 0x336   : > { %14720 = vst [vmem:[#allocation116_spill] sm:$0xff] %v10683_v39  ;;  %4808 = vmatpush1.msra.mxu1 %v4807_v51  ;;  %v14725_v10 = vmax.f32 %v10334_v60, 0.0  ;;  %4659 = vmatpush1.msra.mxu0 %v10444_v26  ;;  %v14727_v46 = vand.u32 4294901760, %v10624_v58  ;;  %v14728_v14 = vand.u32 4294901760, %v10470_v31  ;;  %v14730_v51 = vand.u32 4294901760, %v10645_v56 }
 0x337   : > { %v4836_v16 = vsub.f32 %v10564_v17, %v14721_v61  ;;  %v10695_v49 = vsub.f32 %v14722_v55, %v10407_v59  ;;  %v4842_v52 = vsub.f32 %v10612_v20, %v14724_v41  ;;  %v4819_v61 = vand.u32 4294901760, %v4818_v34  ;;  %4814 = vmatprep.subr.mxu1 %v4813_v45  ;;  %4661 = vmatprep.subr.mxu0 %v10434_v47  ;;  %v10721_v60 = vpop.f32.mrf.mxu0  ;;  %v10723_v45 = vpop.f32.mrf.mxu1 }
 0x338   : > { %v10709_v19 = vsub.f32 %v14725_v10, %v10417_v37  ;;  %v4825_v55 = vand.u32 4294901760, %v4824_v2  ;;  %v4848_v41 = vsub.f32 %v10624_v58, %v14727_v46  ;;  %v4854_v34 = vsub.f32 %v10470_v31, %v14728_v14  ;;  %4663 = vmatpush1.msra.mxu0 %v10387_v3  ;;  %5158 = vmatprep.mubr.f32.mxu1 %v10683_v39 }
 0x339   : > { %14723 = vst [vmem:[#allocation98_spill] sm:$0xff] %v10695_v49  ;;  %4820 = vmatpush1.msra.mxu1 %v4819_v61  ;;  %v4831_v2 = vand.u32 4294901760, %v4830_v30  ;;  %v10726_v10 = vsub.f32 %v4619_v24, %v10683_v39  ;;  %v4837_v15 = vand.u32 4294901760, %v4836_v16  ;;  %v4860_v14 = vsub.f32 %v10645_v56, %v14730_v51  ;;  %4665 = vmatprep.subr.mxu0 %v10381_v57  ;;  %v10738_v24 = vpop.f32.mrf.mxu0  ;;  %v10740_v30 = vpop.f32.mrf.mxu1 }
 0x33a   : > { %14726 = vst [vmem:[#allocation101_spill] sm:$0xff] %v10709_v19  ;;  %4826 = vmatprep.subr.mxu1 %v4825_v55  ;;  %v14731_v47 = vand.u32 4294901760, %v10633_v0  ;;  %v4843_v55 = vand.u32 4294901760, %v4842_v52  ;;  %v14732_v46 = vand.u32 4294901760, %v10304_v1  ;;  %4667 = vmatpush1.msra.mxu0 %v10379_v8  ;;  %v14734_v16 = vand.u32 4294901760, %v10430_v54  ;;  %v14737_v8 = vld [vmem:[#allocation104_spill] sm:$0xff] }
 0x33b   : > { %14729 = vst [vmem:[#allocation125_spill] sm:$0xff] %v10726_v10  ;;  %4832 = vmatpush1.msra.mxu1 %v4831_v2  ;;  %v14733_v2 = vand.u32 4294901760, %v10667_v23  ;;  %4669 = vmatprep.subr.mxu0 %v10417_v37  ;;  %v4861_v52 = vand.u32 4294901760, %v4860_v14  ;;  %v4524_v61 = vmax.f32 %v10557_v32, 0.0  ;;  %v4525_v37 = vmax.f32 %v10575_v36, 0.0 }
 0x33c   : > { %v4866_v26 = vsub.f32 %v10633_v0, %v14731_v47  ;;  %v10746_v51 = vsub.f32 %v10304_v1, %v14732_v46  ;;  %4838 = vmatprep.subr.mxu1 %v4837_v15  ;;  %v4849_v47 = vand.u32 4294901760, %v4848_v41  ;;  %v4878_v33 = vsub.f32 %v10430_v54, %v14734_v16  ;;  %v10759_v46 = vpop.f32.mrf.mxu0  ;;  %v10761_v15 = vpop.f32.mrf.mxu1  ;;  %4671 = vmatpush1.msra.mxu0 %v10407_v59  ;;  %v14738_v54 = vld [vmem:[#allocation94_spill] sm:$0xff]  ;;  %v14740_v59 = vld [vmem:[#allocation63_spill] sm:$0xff] }
 0x33d   : > { %v4872_v57 = vsub.f32 %v10667_v23, %v14733_v2  ;;  %4844 = vmatpush1.msra.mxu1 %v4843_v55  ;;  %v4855_v41 = vand.u32 4294901760, %v4854_v34  ;;  %v14735_v2 = vand.u32 4294901760, %v10420_v7  ;;  %v14736_v16 = vand.u32 4294901760, %v10423_v21  ;;  %v14739_v23 = vld [vmem:[#allocation69_spill] sm:$0xff]  ;;  %v14745_v0 = vld [vmem:[#allocation66_spill] sm:$0xff] }
 0x33e   : > { %4850 = vmatprep.subr.mxu1 %v4849_v47  ;;  %v4522_v1 = vmax.f32 %v14737_v8, 0.0  ;;  %v4523_v34 = vmax.f32 %v14738_v54, 0.0  ;;  %4673 = vmatprep.subr.mxu0 %v14739_v23  ;;  %v10778_v47 = vpop.f32.mrf.mxu1  ;;  %v4867_v14 = vand.u32 4294901760, %v4866_v26  ;;  %v14742_v8 = vld [vmem:[#allocation64_spill] sm:$0xff]  ;;  %v14743_v32 = vand.u32 4294901760, %v10709_v19 }
 0x33f   : > { %v4890_v3 = vsub.f32 %v10420_v7, %v14735_v2  ;;  %v4884_v55 = vsub.f32 %v10423_v21, %v14736_v16  ;;  %4856 = vmatpush1.msra.mxu1 %v4855_v41  ;;  %v10776_v2 = vpop.f32.mrf.mxu0  ;;  %v14741_v7 = vand.u32 4294901760, %v14740_v59  ;;  %4675 = vmatpush1.msra.mxu0 %v14742_v8  ;;  %v4873_v54 = vand.u32 4294901760, %v4872_v57 }
 0x340   : > { %4862 = vmatprep.subr.mxu1 %v4861_v52  ;;  %v4896_v41 = vsub.f32 %v10709_v19, %v14743_v32  ;;  %v14744_v23 = vand.u32 4294901760, %v10695_v49  ;;  %v4526_v26 = vmax.f32 %v10587_v27, 0.0  ;;  %4677 = vmatprep.subr.mxu0 %v14745_v0  ;;  %v10797_v36 = vpop.f32.mrf.mxu1  ;;  %v4879_v52 = vand.u32 4294901760, %v4878_v33 }
 0x341   : > { %v10783_v16 = vsub.f32 %v14740_v59, %v14741_v7  ;;  %4868 = vmatpush1.msra.mxu1 %v4867_v14  ;;  %v10795_v7 = vpop.f32.mrf.mxu0  ;;  %v14746_v57 = vand.u32 4294901760, %v10726_v10  ;;  %v14747_v32 = vand.u32 4294901760, %v10399_v63  ;;  %v4885_v27 = vand.u32 4294901760, %v4884_v55 }
 0x342   : > { %v4902_v21 = vsub.f32 %v10695_v49, %v14744_v23  ;;  %4874 = vmatprep.subr.mxu1 %v4873_v54  ;;  %v14748_v23 = vld [vmem:[#allocation62_spill] sm:$0xff]  ;;  %v14749_v14 = vand.u32 4294901760, %v10402_v22  ;;  %v14750_v49 = vand.u32 4294901760, %v10396_v5  ;;  %v10812_v19 = vand.u32 4294901760, %v4522_v1  ;;  %v4212_v55 = vpop.f32.mrf.mxu1 }
 0x343   : > { %v4759_v8 = vsub.f32 %v10726_v10, %v14746_v57  ;;  %v4914_v59 = vsub.f32 %v10399_v63, %v14747_v32  ;;  %4679 = vmatpush1.msra.mxu0 %v14748_v23  ;;  %v10814_v56 = vand.u32 4294901760, %v4523_v34  ;;  %v10816_v57 = vand.u32 4294901760, %v4524_v61  ;;  %4880 = vmatpush1.msra.mxu1 %v4879_v52  ;;  %v14754_v32 = vld [vmem:[#allocation56_spill] sm:$0xff]  ;;  %v10819_v54 = vpop.f32.mrf.mxu0 }
 0x344   : > { %v4908_v0 = vsub.f32 %v10402_v22, %v14749_v14  ;;  %v4920_v33 = vsub.f32 %v10396_v5, %v14750_v49  ;;  %14751 = vst [vmem:[#allocation105_spill] sm:$0xff] %v10812_v19  ;;  %4681 = vmatprep.subr.mxu0 %v14754_v32  ;;  %v4891_v10 = vand.u32 4294901760, %v4890_v3  ;;  %v10821_v23 = vand.u32 4294901760, %v4525_v37  ;;  %4886 = vmatprep.subr.mxu1 %v4885_v27  ;;  %v14756_v14 = vld [vmem:[#allocation52_spill] sm:$0xff]  ;;  %v14757_v49 = vld [vmem:[#allocation65_spill] sm:$0xff]  ;;  %v14758_v22 = vld [vmem:[#allocation59_spill] sm:$0xff]  ;;  %v4214_v58 = vpop.f32.mrf.mxu1 }
 0x345   : > { %14752 = vst [vmem:[#allocation127_spill] sm:$0xff] %v10814_v56  ;;  %14753 = vst [vmem:[#allocation128_spill] sm:$0xff] %v10816_v57  ;;  %4683 = vmatpush1.msra.mxu0 %v14756_v14  ;;  %v4897_v63 = vand.u32 4294901760, %v4896_v41  ;;  %v10826_v31 = vand.u32 4294901760, %v4526_v26  ;;  %v14760_v52 = vld [vmem:[#allocation164_spill] sm:$0xff]  ;;  %v10829_v32 = vpop.f32.mrf.mxu0  ;;  %v4903_v20 = vand.u32 4294901760, %v4902_v21  ;;  %v10842_v21 = vsub.f32 %v4523_v34, %v10814_v56 }
 0x346   : > { %14755 = vst [vmem:[#allocation110_spill] sm:$0xff] %v10821_v23  ;;  %4892 = vmatpush1.msra.mxu1 %v4891_v10  ;;  %4685 = vmatprep.subr.mxu0 %v14760_v52  ;;  %v14761_v3 = vld [vmem:[#allocation67_spill] sm:$0xff]  ;;  %v4760_v40 = vand.u32 4294901760, %v4759_v8  ;;  %v4909_v41 = vand.u32 4294901760, %v4908_v0  ;;  %v4921_v14 = vand.u32 4294901760, %v4920_v33  ;;  %v4927_v5 = vand.u32 4294901760, %v10783_v16  ;;  %v4219_v16 = vpop.f32.mrf.mxu1 }
 0x347   : > { %14759 = vst [vmem:[#allocation104_spill] sm:$0xff] %v10826_v31  ;;  %v4939_v17 = vand.u32 4294901760, %v14761_v3  ;;  %4898 = vmatprep.subr.mxu1 %v4897_v63  ;;  %v14762_v27 = vld [vmem:[#allocation163_spill] sm:$0xff]  ;;  %v4933_v12 = vand.u32 4294901760, %v10746_v51  ;;  %v4618_v10 = vld [vmem:[%s13277_s3] sm:$0xff]  ;;  %v10839_v52 = vsub.f32 %v4522_v1, %v10812_v19  ;;  %14764 = vst [vmem:[#allocation65_spill] sm:$0xff] %v10842_v21  ;;  %v10845_v63 = vsub.f32 %v4524_v61, %v10816_v57  ;;  %v10848_v8 = vpop.f32.mrf.mxu0 }
 0x348   : > { %4687 = vmatpush1.msra.mxu0 %v14762_v27  ;;  %4904 = vmatpush1.msra.mxu1 %v4903_v20  ;;  %v14766_v0 = vld [vmem:[#allocation53_spill] sm:$0xff]  ;;  %v4915_v51 = vand.u32 4294901760, %v4914_v59  ;;  %v10851_v33 = vsub.f32 %v4525_v37, %v10821_v23  ;;  %v4527_v3 = vmax.f32 %v10605_v48, 0.0  ;;  %v14770_v61 = vld [vmem:[#allocation47_spill] sm:$0xff]  ;;  %v10860_v20 = vsub.f32 %v4526_v26, %v10826_v31  ;;  %v10868_v4 = vpop.f32.mrf.mxu1 }
 0x349   : > { %14763 = vst [vmem:[#allocation94_spill] sm:$0xff] %v10839_v52  ;;  %14765 = vst [vmem:[#allocation59_spill] sm:$0xff] %v10845_v63  ;;  %4689 = vmatprep.subr.mxu0 %v14766_v0  ;;  %v14768_v1 = vld [vmem:[#allocation113_spill] sm:$0xff]  ;;  %4910 = vmatprep.subr.mxu1 %v4909_v41  ;;  %v3691_v37 = vadd.f32 %v10702_v42, %v14773_v25  ;;  %v10866_v48 = vpop.f32.mrf.mxu0  ;;  %v14775_v41 = vld [vmem:[#allocation126_spill] sm:$0xff]  ;;  %v4529_v25 = vmax.f32 %v10659_v28, 0.0 }
 0x34a   : > { %14767 = vst [vmem:[#allocation67_spill] sm:$0xff] %v10851_v33  ;;  %v3677_v27 = vadd.f32 %v10616_v13, %v14768_v1  ;;  %v14769_v34 = vld [vmem:[#allocation117_spill] sm:$0xff]  ;;  %4691 = vmatpush1.msra.mxu0 %v14770_v61  ;;  %14771 = vst [vmem:[#allocation113_spill] sm:$0xff] %v10860_v20  ;;  %4916 = vmatpush1.msra.mxu1 %v4915_v51  ;;  %v10870_v13 = vand.u32 4294901760, %v4618_v10  ;;  %v3693_v26 = vadd.f32 %v10721_v60, %v14775_v41  ;;  %v10892_v60 = vpop.f32.mrf.mxu1  ;;  %v14816_v20 = vld [vmem:[#allocation6_spill] sm:$0xff] }
 0x34b   : > { %v3679_v43 = vadd.f32 %v10640_v50, %v14769_v34  ;;  %v14772_v0 = vld [vmem:[#allocation129_spill] sm:$0xff]  ;;  %4761 = vmatprep.mubr.f32.mxu0 %v4760_v40  ;;  %v4528_v50 = vmax.f32 %v10626_v9, 0.0  ;;  %4922 = vmatprep.subr.mxu1 %v4921_v14  ;;  %v10888_v9 = vadd.f32 %v10778_v47, %v3691_v37  ;;  %v14779_v14 = vld [vmem:[#allocation3_spill] sm:$0xff]  ;;  %v4531_v47 = vmax.f32 %v10685_v53, 0.0  ;;  %v14817_v52 = vld [vmem:[#allocation132_spill] sm:$0xff] }
 0x34c   : > { %v3686_v59 = vadd.f32 %v10681_v11, %v14772_v0  ;;  %14774 = vst [vmem:[#allocation117_spill] sm:$0xff] %v10870_v13  ;;  %v14776_v11 = vld [vmem:[#allocation130_spill] sm:$0xff]  ;;  %v14777_v42 = vld [vmem:[#allocation121_spill] sm:$0xff]  ;;  %4928 = vmatpush1.msra.mxu1 %v4927_v5  ;;  %v3705_v28 = vadd.f32 %v10776_v2, %v14779_v14  ;;  %v10899_v34 = vadd.f32 %v10797_v36, %v3693_v26  ;;  %v4530_v5 = vmax.f32 %v10678_v44, 0.0  ;;  %v10912_v37 = vpop.f32.mrf.mxu1 }
 0x34d   : > { %v10876_v1 = vadd.f32 %v10723_v45, %v3679_v43  ;;  %v3698_v0 = vadd.f32 %v10738_v24, %v14776_v11  ;;  %v3684_v40 = vadd.f32 %v10662_v6, %v14777_v42  ;;  %v10890_v43 = vpop.f32.mrf.mxu0  ;;  %v14778_v45 = vld [vmem:[#allocation2_spill] sm:$0xff]  ;;  %4934 = vmatprep.subr.mxu1 %v4933_v12  ;;  %v14781_v44 = vand.u32 4294901760, %v14757_v49  ;;  %v14786_v11 = vld [vmem:[#allocation60_spill] sm:$0xff]  ;;  %v14822_v63 = vld [vmem:[#allocation133_spill] sm:$0xff] }
 0x34e   : > { %v10885_v51 = vadd.f32 %v10761_v15, %v3686_v59  ;;  %v3700_v24 = vadd.f32 %v10759_v46, %v14778_v45  ;;  %v10903_v15 = vand.u32 4294901760, %v4527_v3  ;;  %v10908_v59 = vadd.f32 %v10704_v29, %v3677_v27  ;;  %4940 = vmatpush1.msra.mxu1 %v4939_v17  ;;  %v4233_v26 = vpop.f32.mrf.mxu1  ;;  %v14823_v33 = vld [vmem:[#allocation9_spill] sm:$0xff] }
 0x34f   : > { %v10901_v6 = vadd.f32 %v4212_v55, %v3698_v0  ;;  %v10910_v46 = vpop.f32.mrf.mxu0  ;;  %v4533_v2 = vmax.f32 %v10876_v1, 0.0  ;;  %v10916_v36 = vadd.f32 %v10740_v30, %v3684_v40  ;;  %v10920_v55 = vadd.f32 %v4219_v16, %v3705_v28  ;;  %4946 = vmatprep.subr.mxu1 %v14781_v44 }
 0x350   : > { %14780 = vst [vmem:[#allocation129_spill] sm:$0xff] %v10903_v15  ;;  %v10918_v12 = vadd.f32 %v4214_v58, %v3700_v24  ;;  %v4535_v17 = vmax.f32 %v10885_v51, 0.0  ;;  %v4536_v29 = vmax.f32 %v10888_v9, 0.0  ;;  %v14782_v27 = vand.u32 4294901760, %v14758_v22  ;;  %v14791_v51 = vld [vmem:[#allocation55_spill] sm:$0xff]  ;;  %v10950_v24 = vpop.f32.mrf.mxu1 }
 0x351   : > { %v3732_v41 = vpop.f32.mrf.mxu0  ;;  %v10930_v30 = vsub.f32 %v4618_v10, %v10870_v13  ;;  %v10932_v58 = vand.u32 4294901760, %v4528_v50  ;;  %v10934_v16 = vand.u32 4294901760, %v4529_v25  ;;  %v4537_v49 = vmax.f32 %v10899_v34, 0.0 }
 0x352   : > { %4952 = vmatpush1.msra.mxu1 %v14782_v27  ;;  %v4538_v1 = vmax.f32 %v10901_v6, 0.0  ;;  %v14787_v0 = vand.u32 4294901760, %v14786_v11  ;;  %v10941_v42 = vsub.f32 %v4527_v3, %v10903_v15  ;;  %v10943_v22 = vand.u32 4294901760, %v4530_v5  ;;  %v14796_v27 = vld [vmem:[#allocation4_spill] sm:$0xff]  ;;  %v14824_v15 = vld [vmem:[#allocation137_spill] sm:$0xff] }
 0x353   : > { %14783 = vst [vmem:[#allocation123_spill] sm:$0xff] %v10930_v30  ;;  %14784 = vst [vmem:[#allocation126_spill] sm:$0xff] %v10932_v58  ;;  %v10945_v40 = vand.u32 4294901760, %v4531_v47  ;;  %v14792_v9 = vand.u32 4294901760, %v14791_v51  ;;  %v3734_v45 = vpop.f32.mrf.mxu0  ;;  %v10952_v14 = vand.u32 4294901760, %v4533_v2  ;;  %v4539_v34 = vmax.f32 %v10918_v12, 0.0  ;;  %v4240_v51 = vpop.f32.mrf.mxu1 }
 0x354   : > { %14785 = vst [vmem:[#allocation130_spill] sm:$0xff] %v10934_v16  ;;  %4958 = vmatprep.subr.mxu1 %v14787_v0  ;;  %14788 = vst [vmem:[#allocation121_spill] sm:$0xff] %v10941_v42  ;;  %v4540_v3 = vmax.f32 %v10920_v55, 0.0  ;;  %v10957_v6 = vand.u32 4294901760, %v4535_v17  ;;  %v10959_v44 = vand.u32 4294901760, %v4536_v29  ;;  %v3707_v11 = vadd.f32 %v10795_v7, %v14796_v27  ;;  %v14844_v30 = vld [vmem:[#allocation140_spill] sm:$0xff] }
 0x355   : > { %14789 = vst [vmem:[#allocation2_spill] sm:$0xff] %v10943_v22  ;;  %14790 = vst [vmem:[#allocation3_spill] sm:$0xff] %v10945_v40  ;;  %4964 = vmatpush1.msra.mxu1 %v14792_v9  ;;  %v3739_v0 = vpop.f32.mrf.mxu0  ;;  %v10965_v53 = vsub.f32 %v4528_v50, %v10932_v58  ;;  %v10968_v28 = vsub.f32 %v4529_v25, %v10934_v16  ;;  %v10970_v12 = vand.u32 4294901760, %v4537_v49  ;;  %v10972_v55 = vand.u32 4294901760, %v4538_v1  ;;  %v4242_v25 = vpop.f32.mrf.mxu1 }
 0x356   : > { %14793 = vst [vmem:[#allocation60_spill] sm:$0xff] %v10952_v14  ;;  %14794 = vst [vmem:[#allocation55_spill] sm:$0xff] %v10957_v6  ;;  %v10975_v10 = vsub.f32 %v4530_v5, %v10943_v22  ;;  %v10978_v39 = vsub.f32 %v4531_v47, %v10945_v40  ;;  %v14803_v7 = vmax.f32 %v10908_v59, 0.0  ;;  %v10985_v50 = vadd.f32 %v10868_v4, %v3707_v11  ;;  %v14812_v4 = vld [vmem:[#allocation5_spill] sm:$0xff] }
 0x357   : > { %14795 = vst [vmem:[#allocation165_spill] sm:$0xff] %v10959_v44  ;;  %14797 = vst [vmem:[#allocation4_spill] sm:$0xff] %v10965_v53  ;;  %v3741_v9 = vpop.f32.mrf.mxu0  ;;  %v10988_v61 = vsub.f32 %v4533_v2, %v10952_v14  ;;  %v14806_v13 = vmax.f32 %v10916_v36, 0.0  ;;  %v10994_v5 = vand.u32 4294901760, %v4539_v34  ;;  %v10996_v47 = vand.u32 4294901760, %v4540_v3  ;;  %v4247_v19 = vpop.f32.mrf.mxu1 }
 0x358   : > { %14798 = vst [vmem:[#allocation166_spill] sm:$0xff] %v10968_v28  ;;  %14799 = vst [vmem:[#allocation167_spill] sm:$0xff] %v10970_v12  ;;  %v10982_v27 = vand.u32 4294901760, %v14803_v7  ;;  %v10999_v18 = vsub.f32 %v4535_v17, %v10957_v6  ;;  %v11002_v7 = vsub.f32 %v4536_v29, %v10959_v44  ;;  %v3712_v11 = vadd.f32 %v10819_v54, %v14812_v4  ;;  %v14818_v54 = vld [vmem:[#allocation7_spill] sm:$0xff] }
 0x359   : > { %14800 = vst [vmem:[#allocation168_spill] sm:$0xff] %v10972_v55  ;;  %14801 = vst [vmem:[#allocation169_spill] sm:$0xff] %v10975_v10  ;;  %v10992_v38 = vand.u32 4294901760, %v14806_v13  ;;  %v3714_v2 = vadd.f32 %v10829_v32, %v14813_v35  ;;  %v3746_v62 = vpop.f32.mrf.mxu0  ;;  %v11009_v13 = vsub.f32 %v4537_v49, %v10970_v12  ;;  %v11012_v56 = vsub.f32 %v4538_v1, %v10972_v55  ;;  %v14819_v32 = vld [vmem:[#allocation134_spill] sm:$0xff]  ;;  %v4249_v23 = vpop.f32.mrf.mxu1 }
 0x35a   : > { %14802 = vst [vmem:[#allocation170_spill] sm:$0xff] %v10978_v39  ;;  %14804 = vst [vmem:[#allocation171_spill] sm:$0xff] %v10982_v27  ;;  %v3719_v17 = vadd.f32 %v10848_v8, %v14816_v20  ;;  %v3721_v29 = vadd.f32 %v10866_v48, %v14817_v52  ;;  %v3726_v4 = vadd.f32 %v10890_v43, %v14818_v54  ;;  %v14820_v20 = vld [vmem:[#allocation8_spill] sm:$0xff]  ;;  %v14821_v48 = vld [vmem:[#allocation135_spill] sm:$0xff] }
 0x35b   : > { %14805 = vst [vmem:[#allocation172_spill] sm:$0xff] %v10988_v61  ;;  %14807 = vst [vmem:[#allocation173_spill] sm:$0xff] %v10992_v38  ;;  %v11022_v35 = vadd.f32 %v10892_v60, %v3712_v11  ;;  %v3735_v49 = vadd.f32 %v3734_v45, %v14819_v32  ;;  %v3748_v57 = vpop.f32.mrf.mxu0  ;;  %v11026_v1 = vsub.f32 %v4539_v34, %v10994_v5  ;;  %v4254_v32 = vpop.f32.mrf.mxu1 }
 0x35c   : > { %14808 = vst [vmem:[#allocation174_spill] sm:$0xff] %v10994_v5  ;;  %14809 = vst [vmem:[#allocation175_spill] sm:$0xff] %v10996_v47  ;;  %v11029_v8 = vsub.f32 %v4540_v3, %v10996_v47  ;;  %v3733_v52 = vadd.f32 %v3732_v41, %v14820_v20  ;;  %v3740_v21 = vadd.f32 %v3739_v0, %v14821_v48  ;;  %v14825_v41 = vmax.f32 %v10985_v50, 0.0 }
 0x35d   : > { %14810 = vst [vmem:[#allocation176_spill] sm:$0xff] %v10999_v18  ;;  %14811 = vst [vmem:[#allocation177_spill] sm:$0xff] %v11002_v7  ;;  %v3728_v43 = vadd.f32 %v10910_v46, %v14822_v63  ;;  %v11035_v54 = vadd.f32 %v4233_v26, %v3719_v17  ;;  %v11037_v60 = vadd.f32 %v4240_v51, %v3726_v4  ;;  %v3753_v11 = vpop.f32.mrf.mxu0  ;;  %v4542_v0 = vmax.f32 %v11022_v35, 0.0  ;;  %v14827_v51 = vld [vmem:[#allocation136_spill] sm:$0xff] }
 0x35e   : > { %14814 = vst [vmem:[#allocation5_spill] sm:$0xff] %v11009_v13  ;;  %14815 = vst [vmem:[#allocation131_spill] sm:$0xff] %v11012_v56  ;;  %v4250_v45 = vadd.f32 %v4249_v23, %v3735_v49  ;;  %v3742_v34 = vadd.f32 %v3741_v9, %v14823_v33  ;;  %v4248_v31 = vadd.f32 %v4247_v19, %v3733_v52  ;;  %v11043_v20 = vand.u32 4294901760, %v14825_v41  ;;  %v4256_v23 = vpop.f32.mrf.mxu1  ;;  %v14828_v33 = vld [vmem:[#allocation11_spill] sm:$0xff] }
 0x35f   : > { %v3754_v3 = vadd.f32 %v3753_v11, %v14824_v15  ;;  %v4255_v42 = vadd.f32 %v4254_v32, %v3740_v21  ;;  %v11047_v63 = vadd.f32 %v10912_v37, %v3714_v2  ;;  %v4243_v46 = vadd.f32 %v4242_v25, %v3728_v43  ;;  %v3755_v26 = vpop.f32.mrf.mxu0  ;;  %v14829_v25 = vld [vmem:[#allocation138_spill] sm:$0xff] }
 0x360   : > { %14826 = vst [vmem:[#allocation6_spill] sm:$0xff] %v11043_v20  ;;  %v3747_v17 = vadd.f32 %v3746_v62, %v14827_v51  ;;  %v3756_v19 = vadd.f32 %v3755_v26, %v14828_v33  ;;  %v4257_v9 = vadd.f32 %v4256_v23, %v3742_v34  ;;  %v4544_v21 = vmax.f32 %v11035_v54, 0.0  ;;  %v4261_v48 = vpop.f32.mrf.mxu1  ;;  %v14831_v34 = vld [vmem:[#allocation10_spill] sm:$0xff] }
 0x361   : > { %v4550_v4 = vmax.f32 %v4255_v42, 0.0  ;;  %v4236_v15 = vadd.f32 %v10950_v24, %v3721_v29  ;;  %v4546_v49 = vmax.f32 %v11037_v60, 0.0  ;;  %v4549_v52 = vmax.f32 %v4250_v45, 0.0  ;;  %v3760_v35 = vpop.f32.mrf.mxu0  ;;  %v14834_v45 = vld [vmem:[#allocation139_spill] sm:$0xff] }
 0x362   : > { %v4548_v37 = vmax.f32 %v4248_v31, 0.0  ;;  %v4551_v2 = vmax.f32 %v4257_v9, 0.0  ;;  %v3761_v43 = vadd.f32 %v3760_v35, %v14829_v25  ;;  %v4262_v11 = vadd.f32 %v4261_v48, %v3747_v17  ;;  %v4263_v26 = vpop.f32.mrf.mxu1  ;;  %v14840_v25 = vld [vmem:[#allocation12_spill] sm:$0xff] }
 0x363   : > { %v11055_v32 = vand.u32 4294901760, %v4542_v0  ;;  %v4547_v42 = vmax.f32 %v4243_v46, 0.0  ;;  %v3749_v41 = vadd.f32 %v3748_v57, %v14831_v34  ;;  %v3762_v54 = vpop.f32.mrf.mxu0  ;;  %v11059_v24 = vand.u32 4294901760, %v4550_v4 }
 0x364   : > { %v11061_v29 = vand.u32 4294901760, %v4551_v2  ;;  %v4552_v60 = vmax.f32 %v4262_v11, 0.0  ;;  %v3763_v31 = vadd.f32 %v3762_v54, %v14834_v45  ;;  %v11064_v23 = vand.u32 4294901760, %v4544_v21  ;;  %v4268_v35 = vpop.f32.mrf.mxu1 }
 0x365   : > { %14830 = vst [vmem:[#allocation132_spill] sm:$0xff] %v11055_v32  ;;  %14832 = vst [vmem:[#allocation7_spill] sm:$0xff] %v11059_v24  ;;  %v4545_v51 = vmax.f32 %v4236_v15, 0.0  ;;  %v11066_v17 = vand.u32 4294901760, %v4549_v52  ;;  %v4264_v33 = vadd.f32 %v4263_v26, %v3749_v41  ;;  %v3767_v9 = vpop.f32.mrf.mxu0  ;;  %v11068_v46 = vand.u32 4294901760, %v4546_v49 }
 0x366   : > { %14833 = vst [vmem:[#allocation134_spill] sm:$0xff] %v11061_v29  ;;  %14835 = vst [vmem:[#allocation8_spill] sm:$0xff] %v11064_v23  ;;  %v11070_v57 = vand.u32 4294901760, %v4548_v37  ;;  %v11072_v48 = vand.u32 4294901760, %v4552_v60  ;;  %v3768_v34 = vadd.f32 %v3767_v9, %v14840_v25  ;;  %v11075_v62 = vand.u32 4294901760, %v4547_v42  ;;  %v4270_v41 = vpop.f32.mrf.mxu1 }
 0x367   : > { %14836 = vst [vmem:[#allocation135_spill] sm:$0xff] %v11066_v17  ;;  %14837 = vst [vmem:[#allocation133_spill] sm:$0xff] %v11068_v46  ;;  %v11078_v11 = vsub.f32 %v4551_v2, %v11061_v29  ;;  %v4553_v54 = vmax.f32 %v4264_v33, 0.0  ;;  %v11080_v15 = vadd.f32 %v4268_v35, %v3754_v3  ;;  %v3769_v45 = vpop.f32.mrf.mxu0  ;;  %v11083_v26 = vsub.f32 %v4550_v4, %v11059_v24 }
 0x368   : > { %14838 = vst [vmem:[#allocation9_spill] sm:$0xff] %v11070_v57  ;;  %14839 = vst [vmem:[#allocation137_spill] sm:$0xff] %v11072_v48  ;;  %v11086_v58 = vsub.f32 %v4552_v60, %v11072_v48  ;;  %v3770_v16 = vadd.f32 %v3769_v45, %v14844_v30  ;;  %v11089_v53 = vadd.f32 %v4270_v41, %v3756_v19  ;;  %v14846_v9 = vmax.f32 %v11047_v63, 0.0  ;;  %v4275_v35 = vpop.f32.mrf.mxu1  ;;  %v14851_v19 = vld [vmem:[#allocation141_spill] sm:$0xff] }
 0x369   : > { %14841 = vst [vmem:[#allocation136_spill] sm:$0xff] %v11075_v62  ;;  %14842 = vst [vmem:[#allocation11_spill] sm:$0xff] %v11080_v15  ;;  %v11095_v2 = vand.u32 4294901760, %v4545_v51  ;;  %v11098_v3 = vsub.f32 %v4549_v52, %v11066_v17  ;;  %v11100_v33 = vand.u32 4294901760, %v4553_v54  ;;  %v3774_v4 = vpop.f32.mrf.mxu0  ;;  %v11103_v60 = vsub.f32 %v4548_v37, %v11070_v57 }
 0x36a   : > { %14843 = vst [vmem:[#allocation138_spill] sm:$0xff] %v11086_v58  ;;  %14845 = vst [vmem:[#allocation10_spill] sm:$0xff] %v11089_v53  ;;  %v11093_v25 = vand.u32 4294901760, %v14846_v9  ;;  %v3775_v45 = vadd.f32 %v3774_v4, %v14851_v19  ;;  %v11107_v41 = vadd.f32 %v4275_v35, %v3761_v43  ;;  %v11110_v9 = vsub.f32 %v4542_v0, %v11055_v32  ;;  %v4277_v37 = vpop.f32.mrf.mxu1  ;;  %v14853_v4 = vld [vmem:[#allocation13_spill] sm:$0xff] }
 0x36b   : > { %14848 = vst [vmem:[#allocation12_spill] sm:$0xff] %v11095_v2  ;;  %14849 = vst [vmem:[#allocation140_spill] sm:$0xff] %v11098_v3  ;;  %v11113_v53 = vsub.f32 %v4547_v42, %v11075_v62  ;;  %v11116_v52 = vsub.f32 %v4553_v54, %v11100_v33  ;;  %4693 = vmatprep.subr.mxu0 %v11100_v33  ;;  %v3776_v15 = vpop.f32.mrf.mxu0  ;;  %v11121_v30 = vsub.f32 %v4544_v21, %v11064_v23 }
 0x36c   : > { %14847 = vst [vmem:[#allocation139_spill] sm:$0xff] %v11093_v25  ;;  %14850 = vst [vmem:[#allocation178_spill] sm:$0xff] %v11100_v33  ;;  %v11124_v43 = vsub.f32 %v4546_v49, %v11068_v46  ;;  %v3777_v42 = vadd.f32 %v3776_v15, %v14853_v4  ;;  %4695 = vmatpush2.msra.mxu0 %v11072_v48  ;;  %v11130_v54 = vsub.f32 %v4545_v51, %v11095_v2  ;;  %v4282_v22 = vpop.f32.mrf.mxu1  ;;  %v14856_v4 = vld [vmem:[#allocation142_spill] sm:$0xff] }
 0x36d   : > { %14852 = vst [vmem:[#allocation141_spill] sm:$0xff] %v11107_v41  ;;  %v11132_v35 = vadd.f32 %v4277_v37, %v3763_v31  ;;  %4697 = vmatprep.subr.mxu0 %v11061_v29  ;;  %v3781_v19 = vpop.f32.mrf.mxu0  ;;  %v14855_v0 = vand.u32 4294901760, %v11086_v58  ;;  %v11142_v51 = vadd.f32 %v4282_v22, %v3768_v34  ;;  %v14858_v31 = vmax.f32 %v11047_v63, 0.0 }
 0x36e   : > { %v3782_v48 = vadd.f32 %v3781_v19, %v14856_v4  ;;  %4699 = vmatpush2.msra.mxu0 %v11059_v24  ;;  %v4284_v21 = vpop.f32.mrf.mxu1  ;;  %v14859_v41 = vand.u32 4294901760, %v11116_v52  ;;  %v14861_v63 = vand.u32 4294901760, %v11083_v26  ;;  %v14865_v29 = vand.u32 4294901760, %v11098_v3 }
 0x36f   : > { %14854 = vst [vmem:[#allocation13_spill] sm:$0xff] %v11132_v35  ;;  %v4974_v15 = vsub.f32 %v11086_v58, %v14855_v0  ;;  %14857 = vst [vmem:[#allocation142_spill] sm:$0xff] %v11142_v51  ;;  %v11148_v37 = vsub.f32 %v14858_v31, %v11093_v25  ;;  %4701 = vmatprep.subr.mxu0 %v11066_v17  ;;  %v3783_v49 = vpop.f32.mrf.mxu0  ;;  %v14860_v0 = vand.u32 4294901760, %v11078_v11  ;;  %v14862_v31 = vld [vmem:[#allocation143_spill] sm:$0xff] }
 0x370   : > { %v4968_v35 = vsub.f32 %v11116_v52, %v14859_v41  ;;  %v4986_v4 = vsub.f32 %v11083_v26, %v14861_v63  ;;  %v3784_v51 = vadd.f32 %v3783_v49, %v14862_v31  ;;  %v11163_v17 = vadd.f32 %v4284_v21, %v3770_v16  ;;  %4703 = vmatpush2.msra.mxu0 %v11070_v57  ;;  %v4289_v34 = vpop.f32.mrf.mxu1 }
 0x371   : > { %v4980_v22 = vsub.f32 %v11078_v11, %v14860_v0  ;;  %v14864_v41 = vmax.f32 %v10985_v50, 0.0  ;;  %4705 = vmatprep.subr.mxu0 %v11075_v62  ;;  %v3788_v0 = vpop.f32.mrf.mxu0  ;;  %v4992_v63 = vsub.f32 %v11098_v3, %v14865_v29  ;;  %v14866_v21 = vand.u32 4294901760, %v11103_v60  ;;  %v14867_v50 = vld [vmem:[#allocation14_spill] sm:$0xff] }
 0x372   : > { %14863 = vst [vmem:[#allocation143_spill] sm:$0xff] %v11163_v17  ;;  %v4969_v19 = vand.u32 4294901760, %v4968_v35  ;;  %4707 = vmatpush2.msra.mxu0 %v11068_v46  ;;  %v4975_v17 = vand.u32 4294901760, %v4974_v15  ;;  %v11182_v62 = vadd.f32 %v4289_v34, %v3775_v45  ;;  %v4291_v29 = vpop.f32.mrf.mxu1  ;;  %v14869_v49 = vand.u32 4294901760, %v11113_v53  ;;  %v14871_v45 = vld [vmem:[#allocation144_spill] sm:$0xff] }
 0x373   : > { %v11169_v24 = vsub.f32 %v14864_v41, %v11043_v20  ;;  %v4998_v31 = vsub.f32 %v11103_v60, %v14866_v21  ;;  %v3789_v41 = vadd.f32 %v3788_v0, %v14867_v50  ;;  %4709 = vmatprep.subr.mxu0 %v11095_v2  ;;  %v3790_v35 = vpop.f32.mrf.mxu0  ;;  %v4981_v57 = vand.u32 4294901760, %v4980_v22 }
 0x374   : > { %14868 = vst [vmem:[#allocation14_spill] sm:$0xff] %v11182_v62  ;;  %4970 = vmatprep.subr.mxu1 %v4969_v19  ;;  %v5004_v16 = vsub.f32 %v11113_v53, %v14869_v49  ;;  %v14870_v0 = vand.u32 4294901760, %v11124_v43  ;;  %v3791_v34 = vadd.f32 %v3790_v35, %v14871_v45  ;;  %4711 = vmatpush2.msra.mxu0 %v11064_v23  ;;  %v4987_v19 = vand.u32 4294901760, %v4986_v4  ;;  %v4296_v49 = vpop.f32.mrf.mxu1 }
 0x375   : > { %4976 = vmatpush2.msra.mxu1 %v4975_v17  ;;  %v11195_v50 = vadd.f32 %v4291_v29, %v3777_v42  ;;  %4713 = vmatprep.subr.mxu0 %v11093_v25  ;;  %v3795_v22 = vpop.f32.mrf.mxu0  ;;  %v4993_v33 = vand.u32 4294901760, %v4992_v63  ;;  %v14873_v21 = vand.u32 4294901760, %v11130_v54  ;;  %v14874_v35 = vand.u32 4294901760, %v11121_v30  ;;  %v14875_v17 = vld [vmem:[#allocation145_spill] sm:$0xff] }
 0x376   : > { %v5010_v15 = vsub.f32 %v11124_v43, %v14870_v0  ;;  %4982 = vmatprep.subr.mxu1 %v4981_v57  ;;  %v11206_v4 = vadd.f32 %v3795_v22, %v14875_v17  ;;  %v11208_v42 = vadd.f32 %v4296_v49, %v3782_v48  ;;  %4715 = vmatpush2.msra.mxu0 %v11055_v32  ;;  %v4999_v57 = vand.u32 4294901760, %v4998_v31 }
 0x377   : > { %14872 = vst [vmem:[#allocation144_spill] sm:$0xff] %v11195_v50  ;;  %v5016_v62 = vsub.f32 %v11130_v54, %v14873_v21  ;;  %v5022_v45 = vsub.f32 %v11121_v30, %v14874_v35  ;;  %4988 = vmatpush2.msra.mxu1 %v4987_v19  ;;  %4717 = vmatprep.subr.mxu0 %v11043_v20  ;;  %v3797_v29 = vpop.f32.mrf.mxu0  ;;  %v4298_v21 = vpop.f32.mrf.mxu1  ;;  %v5005_v0 = vand.u32 4294901760, %v5004_v16  ;;  %v14877_v50 = vand.u32 4294901760, %v11148_v37  ;;  %v14879_v19 = vld [vmem:[#allocation15_spill] sm:$0xff] }
 0x378   : > { %14876 = vst [vmem:[#allocation145_spill] sm:$0xff] %v11208_v42  ;;  %4994 = vmatprep.subr.mxu1 %v4993_v33  ;;  %v14878_v48 = vand.u32 4294901760, %v11110_v9  ;;  %v3798_v31 = vadd.f32 %v3797_v29, %v14879_v19  ;;  %v11221_v17 = vadd.f32 %v4298_v21, %v3784_v51  ;;  %4719 = vmatpush2.msra.mxu0 %v10996_v47  ;;  %v5011_v33 = vand.u32 4294901760, %v5010_v15  ;;  %v14884_v21 = vld [vmem:[#allocation18_spill] sm:$0xff] }
 0x379   : > { %v5028_v35 = vsub.f32 %v11148_v37, %v14877_v50  ;;  %5000 = vmatpush2.msra.mxu1 %v4999_v57  ;;  %v14881_v16 = vmax.f32 %v10916_v36, 0.0  ;;  %4721 = vmatprep.subr.mxu0 %v10994_v5  ;;  %v3802_v22 = vpop.f32.mrf.mxu0  ;;  %v5017_v42 = vand.u32 4294901760, %v5016_v62  ;;  %v14883_v51 = vand.u32 4294901760, %v11169_v24 }
 0x37a   : > { %v5034_v49 = vsub.f32 %v11110_v9, %v14878_v48  ;;  %14880 = vst [vmem:[#allocation15_spill] sm:$0xff] %v11221_v17  ;;  %5006 = vmatprep.subr.mxu1 %v5005_v0  ;;  %v4303_v48 = vpop.f32.mrf.mxu1  ;;  %v3803_v57 = vadd.f32 %v3802_v22, %v14884_v21  ;;  %4723 = vmatpush2.msra.mxu0 %v10972_v55  ;;  %v5023_v36 = vand.u32 4294901760, %v5022_v45  ;;  %v14886_v0 = vmax.f32 %v10908_v59, 0.0  ;;  %v14889_v45 = vld [vmem:[#allocation146_spill] sm:$0xff] }
 0x37b   : > { %v11227_v63 = vsub.f32 %v14881_v16, %v10992_v38  ;;  %v5040_v29 = vsub.f32 %v11169_v24, %v14883_v51  ;;  %v11235_v15 = vadd.f32 %v4303_v48, %v3789_v41  ;;  %5012 = vmatpush2.msra.mxu1 %v5011_v33  ;;  %v14888_v50 = vand.u32 4294901760, %v11029_v8  ;;  %4725 = vmatprep.subr.mxu0 %v10970_v12  ;;  %v3804_v41 = vpop.f32.mrf.mxu0 }
 0x37c   : > { %v11242_v16 = vsub.f32 %v14886_v0, %v10982_v27  ;;  %5018 = vmatprep.subr.mxu1 %v5017_v42  ;;  %v4305_v22 = vpop.f32.mrf.mxu1  ;;  %v5029_v33 = vand.u32 4294901760, %v5028_v35  ;;  %v3805_v48 = vadd.f32 %v3804_v41, %v14889_v45  ;;  %4727 = vmatpush2.msra.mxu0 %v10959_v44  ;;  %v5035_v59 = vand.u32 4294901760, %v5034_v49  ;;  %v14893_v41 = vld [vmem:[#allocation16_spill] sm:$0xff]  ;;  %v14924_v44 = vld [vmem:[#allocation110_spill] sm:$0xff] }
 0x37d   : > { %14882 = vst [vmem:[#allocation179_spill] sm:$0xff] %v11227_v63  ;;  %14885 = vst [vmem:[#allocation18_spill] sm:$0xff] %v11235_v15  ;;  %v5046_v51 = vsub.f32 %v11029_v8, %v14888_v50  ;;  %5024 = vmatpush2.msra.mxu1 %v5023_v36  ;;  %v14890_v21 = vand.u32 4294901760, %v11026_v1  ;;  %v14891_v19 = vand.u32 4294901760, %v11012_v56  ;;  %v11259_v15 = vadd.f32 %v4305_v22, %v3791_v34  ;;  %v3809_v35 = vpop.f32.mrf.mxu0 }
 0x37e   : > { %14887 = vst [vmem:[#allocation180_spill] sm:$0xff] %v11242_v16  ;;  %4729 = vmatprep.subr.mxu0 %v10957_v6  ;;  %5030 = vmatprep.subr.mxu1 %v5029_v33  ;;  %v4310_v36 = vpop.f32.mrf.mxu1  ;;  %v5041_v49 = vand.u32 4294901760, %v5040_v29  ;;  %v3810_v45 = vadd.f32 %v3809_v35, %v14893_v41  ;;  %v14895_v22 = vand.u32 4294901760, %v11002_v7  ;;  %v14920_v6 = vld [vmem:[#allocation104_spill] sm:$0xff] }
 0x37f   : > { %v5052_v0 = vsub.f32 %v11026_v1, %v14890_v21  ;;  %v5058_v42 = vsub.f32 %v11012_v56, %v14891_v19  ;;  %14892 = vst [vmem:[#allocation146_spill] sm:$0xff] %v11259_v15  ;;  %4731 = vmatpush2.msra.mxu0 %v10992_v38  ;;  %5036 = vmatpush2.msra.mxu1 %v5035_v59  ;;  %v14894_v21 = vand.u32 4294901760, %v11009_v13  ;;  %v3811_v59 = vpop.f32.mrf.mxu0  ;;  %v5047_v41 = vand.u32 4294901760, %v5046_v51 }
 0x380   : > { %v5070_v33 = vsub.f32 %v11002_v7, %v14895_v22  ;;  %v11274_v29 = vadd.f32 %v4310_v36, %v11206_v4  ;;  %4733 = vmatprep.subr.mxu0 %v10952_v14  ;;  %5042 = vmatprep.subr.mxu1 %v5041_v49  ;;  %v4312_v35 = vpop.f32.mrf.mxu1  ;;  %v14899_v19 = vand.u32 4294901760, %v10999_v18  ;;  %v14900_v36 = vand.u32 4294901760, %v11227_v63 }
 0x381   : > { %v5064_v50 = vsub.f32 %v11009_v13, %v14894_v21  ;;  %v14897_v21 = vld [vmem:[#allocation21_spill] sm:$0xff]  ;;  %v11278_v62 = vadd.f32 %v4312_v35, %v3798_v31  ;;  %4735 = vmatpush2.msra.mxu0 %v10982_v27  ;;  %v5053_v34 = vand.u32 4294901760, %v5052_v0  ;;  %5048 = vmatpush2.msra.mxu1 %v5047_v41  ;;  %v3816_v51 = vpop.f32.mrf.mxu0  ;;  %v5059_v31 = vand.u32 4294901760, %v5058_v42  ;;  %v14901_v0 = vld [vmem:[#allocation147_spill] sm:$0xff]  ;;  %v14905_v41 = vld [vmem:[#allocation4_spill] sm:$0xff] }
 0x382   : > { %14896 = vst [vmem:[#allocation16_spill] sm:$0xff] %v11274_v29  ;;  %v3812_v15 = vadd.f32 %v3811_v59, %v14897_v21  ;;  %v5076_v22 = vsub.f32 %v10999_v18, %v14899_v19  ;;  %v5082_v49 = vsub.f32 %v11227_v63, %v14900_v36  ;;  %4737 = vmatprep.subr.mxu0 %v10945_v40  ;;  %v4317_v59 = vpop.f32.mrf.mxu1  ;;  %v14903_v19 = vld [vmem:[#allocation2_spill] sm:$0xff]  ;;  %v14904_v29 = vand.u32 4294901760, %v10988_v61 }
 0x383   : > { %14898 = vst [vmem:[#allocation21_spill] sm:$0xff] %v11278_v62  ;;  %5054 = vmatprep.subr.mxu1 %v5053_v34  ;;  %v3817_v21 = vadd.f32 %v3816_v51, %v14901_v0  ;;  %v11291_v62 = vadd.f32 %v4317_v59, %v3803_v57  ;;  %4739 = vmatpush2.msra.mxu0 %v14903_v19  ;;  %v5065_v4 = vand.u32 4294901760, %v5064_v50  ;;  %v14906_v40 = vand.u32 4294901760, %v11242_v16  ;;  %v14907_v35 = vld [vmem:[#allocation130_spill] sm:$0xff]  ;;  %v3818_v34 = vpop.f32.mrf.mxu0  ;;  %v14908_v59 = vld [vmem:[#allocation123_spill] sm:$0xff] }
 0x384   : > { %v5088_v36 = vsub.f32 %v10988_v61, %v14904_v29  ;;  %5060 = vmatpush2.msra.mxu1 %v5059_v31  ;;  %4741 = vmatprep.subr.mxu0 %v14907_v35  ;;  %v4319_v51 = vpop.f32.mrf.mxu1  ;;  %v5071_v57 = vand.u32 4294901760, %v5070_v33  ;;  %v14909_v0 = vand.u32 4294901760, %v14908_v59  ;;  %v14911_v29 = vld [vmem:[#allocation126_spill] sm:$0xff]  ;;  %v5077_v17 = vand.u32 4294901760, %v5076_v22  ;;  %v14913_v31 = vld [vmem:[#allocation121_spill] sm:$0xff] }
 0x385   : > { %14902 = vst [vmem:[#allocation147_spill] sm:$0xff] %v11291_v62  ;;  %v5094_v42 = vsub.f32 %v11242_v16, %v14906_v40  ;;  %5066 = vmatprep.subr.mxu1 %v5065_v4  ;;  %v14910_v62 = vld [vmem:[#allocation17_spill] sm:$0xff]  ;;  %4743 = vmatpush2.msra.mxu0 %v14911_v29  ;;  %v14912_v27 = vand.u32 4294901760, %v10978_v39  ;;  %v14914_v35 = vand.u32 4294901760, %v10975_v10  ;;  %v11314_v38 = vadd.f32 %v4319_v51, %v3805_v48  ;;  %v3823_v4 = vpop.f32.mrf.mxu0  ;;  %v14921_v48 = vld [vmem:[#allocation67_spill] sm:$0xff] }
 0x386   : > { %v4765_v50 = vsub.f32 %v14908_v59, %v14909_v0  ;;  %v3819_v19 = vadd.f32 %v3818_v34, %v14910_v62  ;;  %5072 = vmatpush2.msra.mxu1 %v5071_v57  ;;  %v14916_v0 = vld [vmem:[#allocation129_spill] sm:$0xff]  ;;  %v4324_v62 = vpop.f32.mrf.mxu1  ;;  %v5083_v34 = vand.u32 4294901760, %v5082_v49  ;;  %v14917_v22 = vand.u32 4294901760, %v10968_v28  ;;  %v14922_v57 = vld [vmem:[#allocation59_spill] sm:$0xff] }
 0x387   : > { %v5100_v40 = vsub.f32 %v10978_v39, %v14912_v27  ;;  %v5106_v33 = vsub.f32 %v10975_v10, %v14914_v35  ;;  %14915 = vst [vmem:[#allocation17_spill] sm:$0xff] %v11314_v38  ;;  %4745 = vmatprep.subr.mxu0 %v14916_v0  ;;  %5078 = vmatprep.subr.mxu1 %v5077_v17  ;;  %v14918_v27 = vld [vmem:[#allocation22_spill] sm:$0xff]  ;;  %v5089_v35 = vand.u32 4294901760, %v5088_v36  ;;  %v14923_v0 = vand.u32 4294901760, %v14905_v41  ;;  %v14927_v36 = vld [vmem:[#allocation128_spill] sm:$0xff] }
 0x388   : > { %v5112_v29 = vsub.f32 %v10968_v28, %v14917_v22  ;;  %v3824_v59 = vadd.f32 %v3823_v4, %v14918_v27  ;;  %v11321_v14 = vadd.f32 %v4324_v62, %v3810_v45  ;;  %4747 = vmatpush2.msra.mxu0 %v14920_v6  ;;  %5084 = vmatpush2.msra.mxu1 %v5083_v34  ;;  %v11330_v22 = vpop.f32.mrf.mxu0  ;;  %v4326_v17 = vpop.f32.mrf.mxu1  ;;  %v5095_v4 = vand.u32 4294901760, %v5094_v42  ;;  %v14930_v34 = vld [vmem:[#allocation94_spill] sm:$0xff]  ;;  %v14933_v42 = vld [vmem:[#allocation127_spill] sm:$0xff] }
 0x389   : > { %v5118_v49 = vsub.f32 %v14905_v41, %v14923_v0  ;;  %4749 = vmatprep.subr.mxu0 %v14924_v44  ;;  %14925 = vst [vmem:[#allocation181_spill] sm:$0xff] %v11330_v22  ;;  %v4766_v45 = vand.u32 4294901760, %v4765_v50  ;;  %5090 = vmatprep.subr.mxu1 %v5089_v35  ;;  %v11332_v62 = vadd.f32 %v4326_v17, %v3812_v15  ;;  %v5101_v27 = vand.u32 4294901760, %v5100_v40  ;;  %v14931_v44 = vld [vmem:[#allocation113_spill] sm:$0xff] }
 0x38a   : > { %14919 = vst [vmem:[#allocation22_spill] sm:$0xff] %v11321_v14  ;;  %4751 = vmatpush2.msra.mxu0 %v14927_v36  ;;  %v14928_v38 = vand.u32 4294901760, %v14913_v31  ;;  %v14929_v14 = vld [vmem:[#allocation65_spill] sm:$0xff]  ;;  %v14932_v41 = vand.u32 4294901760, %v14931_v44  ;;  %5096 = vmatpush2.msra.mxu1 %v5095_v4  ;;  %v11344_v15 = vpop.f32.mrf.mxu0  ;;  %v4331_v50 = vpop.f32.mrf.mxu1  ;;  %v5107_v35 = vand.u32 4294901760, %v5106_v33  ;;  %v5113_v17 = vand.u32 4294901760, %v5112_v29 }
 0x38b   : > { %14926 = vst [vmem:[#allocation182_spill] sm:$0xff] %v11332_v62  ;;  %4753 = vmatprep.subr.mxu0 %v14933_v42  ;;  %14934 = vst [vmem:[#allocation183_spill] sm:$0xff] %v11344_v15  ;;  %5102 = vmatprep.subr.mxu1 %v5101_v27  ;;  %v14935_v40 = vld [vmem:[#allocation105_spill] sm:$0xff]  ;;  %v14937_v6 = vand.u32 4294901760, %v14922_v57  ;;  %v5119_v33 = vand.u32 4294901760, %v5118_v49  ;;  %v14940_v27 = vld [vmem:[#allocation92_spill] sm:$0xff] }
 0x38c   : > { %v5124_v51 = vsub.f32 %v14913_v31, %v14928_v38  ;;  %v5130_v22 = vsub.f32 %v14931_v44, %v14932_v41  ;;  %4755 = vmatpush2.msra.mxu0 %v14935_v40  ;;  %v14936_v38 = vand.u32 4294901760, %v14921_v48  ;;  %v11353_v41 = vadd.f32 %v4331_v50, %v3817_v21  ;;  %5108 = vmatpush2.msra.mxu1 %v5107_v35  ;;  %v11355_v4 = vpop.f32.mrf.mxu0  ;;  %v4333_v15 = vpop.f32.mrf.mxu1 }
 0x38d   : > { %v5142_v62 = vsub.f32 %v14922_v57, %v14937_v6  ;;  %4767 = vmatmul.mubr.f32.vlgmr.msra.gmra.mxu0 %v4766_v45  ;;  %14939 = vst [vmem:[#allocation185_spill] sm:$0xff] %v11355_v4  ;;  %5114 = vmatprep.subr.mxu1 %v5113_v17  ;;  %v14941_v40 = vand.u32 4294901760, %v14929_v14  ;;  %v14942_v42 = vand.u32 4294901760, %v14930_v34  ;;  %v11364_v21 = vadd.f32 %v4333_v15, %v3819_v19  ;;  %v14944_v45 = vld [vmem:[#allocation93_spill] sm:$0xff]  ;;  %v14946_v17 = vld [vmem:[#allocation107_spill] sm:$0xff]  ;;  %v14951_v15 = vld [vmem:[#allocation102_spill] sm:$0xff] }
 0x38e   : > { %v5136_v0 = vsub.f32 %v14921_v48, %v14936_v38  ;;  %14938 = vst [vmem:[#allocation184_spill] sm:$0xff] %v11353_v41  ;;  %5168 = vmatprep.subr.mxu0 %v14940_v27  ;;  %v5125_v29 = vand.u32 4294901760, %v5124_v51  ;;  %5120 = vmatpush2.msra.mxu1 %v5119_v33  ;;  %v11367_v50 = vpop.f32.mrf.mxu0  ;;  %v4338_v49 = vpop.f32.mrf.mxu1  ;;  %v5131_v35 = vand.u32 4294901760, %v5130_v22  ;;  %v14952_v22 = vld [vmem:[#allocation108_spill] sm:$0xff] }
 0x38f   : > { %v5148_v38 = vsub.f32 %v14929_v14, %v14941_v40  ;;  %v5154_v6 = vsub.f32 %v14930_v34, %v14942_v42  ;;  %14943 = vst [vmem:[#allocation92_spill] sm:$0xff] %v11364_v21  ;;  %5171 = vmatpush1.msra.mxu0 %v14944_v45  ;;  %14945 = vst [vmem:[#allocation93_spill] sm:$0xff] %v11367_v50  ;;  %v11370_v51 = vadd.f32 %v4338_v49, %v3824_v59  ;;  %v14948_v40 = vld [vmem:[#allocation91_spill] sm:$0xff]  ;;  %v14955_v49 = vld [vmem:[#allocation118_spill] sm:$0xff] }
 0x390   : > { %5126 = vmatprep.subr.mxu1 %v5125_v29  ;;  %5174 = vmatprep.subr.mxu0 %v14946_v17  ;;  %v5137_v4 = vand.u32 4294901760, %v5136_v0  ;;  %v11373_v41 = vpop.f32.mrf.mxu0  ;;  %v11375_v19 = vpop.f32.mrf.mxu1  ;;  %v5143_v42 = vand.u32 4294901760, %v5142_v62  ;;  %v14962_v21 = vld [vmem:[#allocation124_spill] sm:$0xff]  ;;  %v14973_v50 = vld [vmem:[#allocation87_spill] sm:$0xff] }
 0x391   : > { %14947 = vst [vmem:[#allocation107_spill] sm:$0xff] %v11370_v51  ;;  %5132 = vmatpush2.msra.mxu1 %v5131_v35  ;;  %5177 = vmatpush1.msra.mxu0 %v14948_v40  ;;  %14949 = vst [vmem:[#allocation186_spill] sm:$0xff] %v11373_v41  ;;  %v5149_v33 = vand.u32 4294901760, %v5148_v38  ;;  %v5155_v0 = vand.u32 4294901760, %v5154_v6  ;;  %v14956_v35 = vld [vmem:[#allocation122_spill] sm:$0xff]  ;;  %v14960_v38 = vld [vmem:[#allocation112_spill] sm:$0xff] }
 0x392   : > { %14950 = vst [vmem:[#allocation187_spill] sm:$0xff] %v11375_v19  ;;  %5138 = vmatprep.subr.mxu1 %v5137_v4  ;;  %5180 = vmatprep.subr.mxu0 %v14951_v15  ;;  %v11379_v29 = vpop.f32.mrf.mxu0  ;;  %v11381_v59 = vpop.f32.mrf.mxu1  ;;  %v14959_v4 = vld [vmem:[#allocation117_spill] sm:$0xff]  ;;  %v14971_v41 = vld [vmem:[#allocation100_spill] sm:$0xff] }
 0x393   : > { %5144 = vmatpush2.msra.mxu1 %v5143_v42  ;;  %5183 = vmatpush1.msra.mxu0 %v14952_v22  ;;  %14953 = vst [vmem:[#allocation188_spill] sm:$0xff] %v11379_v29  ;;  %14954 = vst [vmem:[#allocation189_spill] sm:$0xff] %v11381_v59  ;;  %v14961_v42 = vld [vmem:[#allocation106_spill] sm:$0xff]  ;;  %v14967_v59 = vld [vmem:[#allocation88_spill] sm:$0xff] }
 0x394   : > { %5150 = vmatprep.subr.mxu1 %v5149_v33  ;;  %5186 = vmatprep.subr.mxu0 %v14955_v49  ;;  %v11385_v51 = vpop.f32.mrf.mxu0  ;;  %v11387_v62 = vpop.f32.mrf.mxu1  ;;  %v14965_v33 = vld [vmem:[#allocation103_spill] sm:$0xff]  ;;  %v14972_v19 = vld [vmem:[#allocation96_spill] sm:$0xff] }
 0x395   : > { %5156 = vmatpush2.msra.mxu1 %v5155_v0  ;;  %5189 = vmatpush1.msra.mxu0 %v14956_v35  ;;  %14957 = vst [vmem:[#allocation190_spill] sm:$0xff] %v11385_v51  ;;  %14958 = vst [vmem:[#allocation191_spill] sm:$0xff] %v11387_v62  ;;  %v14966_v0 = vld [vmem:[#allocation114_spill] sm:$0xff]  ;;  %v14968_v51 = vld [vmem:[#allocation95_spill] sm:$0xff] }
 0x396   : > { %5160 = vmatmul.mubr.f32.vlgmr.msra.gmra.mxu1 %v14959_v4  ;;  %5192 = vmatprep.subr.mxu0 %v14960_v38  ;;  %v11393_v29 = vpop.f32.mrf.mxu0  ;;  %v11395_v6 = vpop.f32.mrf.mxu1 }
 0x397   : > { %5370 = vmatprep.subr.mxu1 %v14961_v42  ;;  %5195 = vmatpush1.msra.mxu0 %v14962_v21  ;;  %14963 = vst [vmem:[#allocation192_spill] sm:$0xff] %v11393_v29  ;;  %14964 = vst [vmem:[#allocation193_spill] sm:$0xff] %v11395_v6  ;;  %v14974_v29 = vld [vmem:[#allocation85_spill] sm:$0xff] }
 0x398   : > { %5372 = vmatpush1.msra.mxu1 %v14965_v33  ;;  %5198 = vmatprep.subr.mxu0 %v14966_v0  ;;  %v11401_v62 = vpop.f32.mrf.mxu0  ;;  %v11403_v4 = vpop.f32.mrf.mxu1  ;;  %v14977_v0 = vld [vmem:[#allocation90_spill] sm:$0xff] }
 0x399   : > { %5374 = vmatprep.subr.mxu1 %v14967_v59  ;;  %5201 = vmatpush1.msra.mxu0 %v14968_v51  ;;  %14969 = vst [vmem:[#allocation194_spill] sm:$0xff] %v11401_v62  ;;  %14970 = vst [vmem:[#allocation195_spill] sm:$0xff] %v11403_v4  ;;  %v14978_v59 = vld [vmem:[#allocation119_spill] sm:$0xff]  ;;  %v14979_v51 = vld [vmem:[#allocation89_spill] sm:$0xff] }
 0x39a   : > { %5376 = vmatpush1.msra.mxu1 %v14971_v41  ;;  %5204 = vmatprep.subr.mxu0 %v14972_v19  ;;  %v11409_v6 = vpop.f32.mrf.mxu0  ;;  %v11411_v33 = vpop.f32.mrf.mxu1  ;;  %v14980_v62 = vld [vmem:[#allocation115_spill] sm:$0xff] }
 0x39b   : > { %5378 = vmatprep.subr.mxu1 %v14973_v50  ;;  %5207 = vmatpush1.msra.mxu0 %v14974_v29  ;;  %14975 = vst [vmem:[#allocation196_spill] sm:$0xff] %v11409_v6  ;;  %14976 = vst [vmem:[#allocation197_spill] sm:$0xff] %v11411_v33  ;;  %v14983_v19 = vld [vmem:[#allocation99_spill] sm:$0xff]  ;;  %v14984_v50 = vld [vmem:[#allocation120_spill] sm:$0xff] }
 0x39c   : > { %5380 = vmatpush1.msra.mxu1 %v14977_v0  ;;  %5210 = vmatprep.subr.mxu0 %v14978_v59  ;;  %v11417_v4 = vpop.f32.mrf.mxu0  ;;  %v11419_v41 = vpop.f32.mrf.mxu1  ;;  %v14985_v29 = vld [vmem:[#allocation111_spill] sm:$0xff]  ;;  %v14988_v59 = vld [vmem:[#allocation109_spill] sm:$0xff] }
 0x39d   : > { %5382 = vmatprep.subr.mxu1 %v14979_v51  ;;  %5213 = vmatpush1.msra.mxu0 %v14980_v62  ;;  %14981 = vst [vmem:[#allocation198_spill] sm:$0xff] %v11417_v4  ;;  %14982 = vst [vmem:[#allocation199_spill] sm:$0xff] %v11419_v41  ;;  %v14986_v6 = vld [vmem:[#allocation79_spill] sm:$0xff]  ;;  %v14989_v51 = vld [vmem:[#allocation77_spill] sm:$0xff] }
 0x39e   : > { %5384 = vmatpush1.msra.mxu1 %v14983_v19  ;;  %5216 = vmatprep.subr.mxu0 %v14984_v50  ;;  %v3865_v33 = vpop.f32.mrf.mxu0  ;;  %v11425_v0 = vpop.f32.mrf.mxu1  ;;  %v14990_v62 = vld [vmem:[#allocation30_spill] sm:$0xff]  ;;  %v14991_v4 = vld [vmem:[#allocation84_spill] sm:$0xff]  ;;  %v14994_v50 = vld [vmem:[#allocation97_spill] sm:$0xff] }
 0x39f   : > { %5386 = vmatprep.subr.mxu1 %v14985_v29  ;;  %5219 = vmatpush1.msra.mxu0 %v14986_v6  ;;  %14987 = vst [vmem:[#allocation200_spill] sm:$0xff] %v11425_v0  ;;  %v3866_v21 = vadd.f32 %v3865_v33, %v14990_v62  ;;  %v14992_v41 = vld [vmem:[#allocation78_spill] sm:$0xff]  ;;  %v14995_v29 = vld [vmem:[#allocation101_spill] sm:$0xff]  ;;  %v14996_v6 = vld [vmem:[#allocation152_spill] sm:$0xff] }
 0x3a0   : > { %5388 = vmatpush1.msra.mxu1 %v14988_v59  ;;  %5222 = vmatprep.subr.mxu0 %v14989_v51  ;;  %v3867_v19 = vpop.f32.mrf.mxu0  ;;  %v11432_v42 = vpop.f32.mrf.mxu1  ;;  %v14997_v0 = vld [vmem:[#allocation86_spill] sm:$0xff]  ;;  %v15000_v62 = vld [vmem:[#allocation80_spill] sm:$0xff] }
 0x3a1   : > { %5390 = vmatprep.subr.mxu1 %v14991_v4  ;;  %5225 = vmatpush1.msra.mxu0 %v14992_v41  ;;  %14993 = vst [vmem:[#allocation30_spill] sm:$0xff] %v11432_v42  ;;  %v3868_v38 = vadd.f32 %v3867_v19, %v14996_v6  ;;  %v14998_v59 = vld [vmem:[#allocation98_spill] sm:$0xff]  ;;  %v15001_v33 = vld [vmem:[#allocation72_spill] sm:$0xff]  ;;  %v15002_v41 = vld [vmem:[#allocation27_spill] sm:$0xff] }
 0x3a2   : > { %5392 = vmatpush1.msra.mxu1 %v14994_v50  ;;  %5228 = vmatprep.subr.mxu0 %v14995_v29  ;;  %v3872_v51 = vpop.f32.mrf.mxu0  ;;  %v11439_v35 = vpop.f32.mrf.mxu1  ;;  %v15003_v42 = vld [vmem:[#allocation83_spill] sm:$0xff]  ;;  %v15004_v50 = vld [vmem:[#allocation74_spill] sm:$0xff] }
 0x3a3   : > { %5394 = vmatprep.subr.mxu1 %v14997_v0  ;;  %5231 = vmatpush1.msra.mxu0 %v14998_v59  ;;  %14999 = vst [vmem:[#allocation152_spill] sm:$0xff] %v11439_v35  ;;  %v3873_v4 = vadd.f32 %v3872_v51, %v15002_v41  ;;  %v15006_v19 = vld [vmem:[#allocation82_spill] sm:$0xff]  ;;  %v15007_v6 = vld [vmem:[#allocation71_spill] sm:$0xff]  ;;  %v15008_v59 = vld [vmem:[#allocation33_spill] sm:$0xff] }
 0x3a4   : > { %5396 = vmatpush1.msra.mxu1 %v15000_v62  ;;  %5234 = vmatprep.subr.mxu0 %v15001_v33  ;;  %v3874_v29 = vpop.f32.mrf.mxu0  ;;  %v11446_v49 = vpop.f32.mrf.mxu1  ;;  %v15009_v35 = vld [vmem:[#allocation81_spill] sm:$0xff]  ;;  %v15010_v62 = vld [vmem:[#allocation63_spill] sm:$0xff] }
 0x3a5   : > { %5398 = vmatprep.subr.mxu1 %v15003_v42  ;;  %5237 = vmatpush1.msra.mxu0 %v15004_v50  ;;  %15005 = vst [vmem:[#allocation27_spill] sm:$0xff] %v11446_v49  ;;  %v3875_v0 = vadd.f32 %v3874_v29, %v15008_v59  ;;  %v15011_v41 = vld [vmem:[#allocation73_spill] sm:$0xff]  ;;  %v15015_v49 = vld [vmem:[#allocation68_spill] sm:$0xff]  ;;  %v15017_v59 = vld [vmem:[#allocation70_spill] sm:$0xff] }
 0x3a6   : > { %5400 = vmatpush1.msra.mxu1 %v15006_v19  ;;  %5240 = vmatprep.subr.mxu0 %v15007_v6  ;;  %v3879_v33 = vpop.f32.mrf.mxu0  ;;  %v4380_v22 = vpop.f32.mrf.mxu1  ;;  %v15012_v51 = vld [vmem:[#allocation61_spill] sm:$0xff]  ;;  %v15016_v19 = vld [vmem:[#allocation58_spill] sm:$0xff] }
 0x3a7   : > { %5402 = vmatprep.subr.mxu1 %v15009_v35  ;;  %5243 = vmatpush1.msra.mxu0 %v15010_v62  ;;  %v15013_v50 = vld [vmem:[#allocation153_spill] sm:$0xff]  ;;  %v11456_v36 = vadd.f32 %v4380_v22, %v3866_v21  ;;  %v15023_v22 = vld [vmem:[#allocation76_spill] sm:$0xff] }
 0x3a8   : > { %5404 = vmatpush1.msra.mxu1 %v15011_v41  ;;  %5246 = vmatprep.subr.mxu0 %v15012_v51  ;;  %v3880_v42 = vadd.f32 %v3879_v33, %v15013_v50  ;;  %v3881_v6 = vpop.f32.mrf.mxu0  ;;  %v4382_v29 = vpop.f32.mrf.mxu1  ;;  %v15018_v35 = vld [vmem:[#allocation57_spill] sm:$0xff]  ;;  %v15021_v41 = vld [vmem:[#allocation75_spill] sm:$0xff]  ;;  %v15024_v33 = vld [vmem:[#allocation54_spill] sm:$0xff] }
 0x3a9   : > { %15014 = vst [vmem:[#allocation33_spill] sm:$0xff] %v11456_v36  ;;  %5406 = vmatprep.subr.mxu1 %v15015_v49  ;;  %5249 = vmatpush1.msra.mxu0 %v15016_v19  ;;  %v15019_v62 = vld [vmem:[#allocation29_spill] sm:$0xff]  ;;  %v11463_v40 = vadd.f32 %v4382_v29, %v3868_v38  ;;  %v15022_v51 = vld [vmem:[#allocation51_spill] sm:$0xff]  ;;  %v15025_v36 = vld [vmem:[#allocation34_spill] sm:$0xff] }
 0x3aa   : > { %5408 = vmatpush1.msra.mxu1 %v15017_v59  ;;  %5252 = vmatprep.subr.mxu0 %v15018_v35  ;;  %v3882_v15 = vadd.f32 %v3881_v6, %v15019_v62  ;;  %v3886_v21 = vpop.f32.mrf.mxu0  ;;  %v4387_v50 = vpop.f32.mrf.mxu1  ;;  %v15027_v59 = vld [vmem:[#allocation69_spill] sm:$0xff]  ;;  %v15028_v35 = vld [vmem:[#allocation48_spill] sm:$0xff]  ;;  %v15030_v29 = vld [vmem:[#allocation154_spill] sm:$0xff] }
 0x3ab   : > { %15020 = vst [vmem:[#allocation153_spill] sm:$0xff] %v11463_v40  ;;  %5410 = vmatprep.subr.mxu1 %v15021_v41  ;;  %5255 = vmatpush1.msra.mxu0 %v15022_v51  ;;  %v3887_v19 = vadd.f32 %v3886_v21, %v15025_v36  ;;  %v11470_v49 = vadd.f32 %v4387_v50, %v3873_v4  ;;  %v15029_v6 = vld [vmem:[#allocation64_spill] sm:$0xff]  ;;  %v15031_v51 = vld [vmem:[#allocation66_spill] sm:$0xff]  ;;  %v15034_v50 = vld [vmem:[#allocation31_spill] sm:$0xff] }
 0x3ac   : > { %5412 = vmatpush1.msra.mxu1 %v15023_v22  ;;  %5258 = vmatprep.subr.mxu0 %v15024_v33  ;;  %v3888_v38 = vpop.f32.mrf.mxu0  ;;  %v4389_v62 = vpop.f32.mrf.mxu1  ;;  %v15033_v21 = vld [vmem:[#allocation62_spill] sm:$0xff] }
 0x3ad   : > { %15026 = vst [vmem:[#allocation29_spill] sm:$0xff] %v11470_v49  ;;  %5414 = vmatprep.subr.mxu1 %v15027_v59  ;;  %5261 = vmatpush1.msra.mxu0 %v15028_v35  ;;  %v3889_v40 = vadd.f32 %v3888_v38, %v15030_v29  ;;  %v11478_v22 = vadd.f32 %v4389_v62, %v3875_v0  ;;  %v15035_v35 = vld [vmem:[#allocation56_spill] sm:$0xff]  ;;  %v15038_v62 = vld [vmem:[#allocation37_spill] sm:$0xff] }
 0x3ae   : > { %5416 = vmatpush1.msra.mxu1 %v15029_v6  ;;  %5264 = vmatprep.subr.mxu0 %v11116_v52  ;;  %v3893_v36 = vpop.f32.mrf.mxu0  ;;  %v4394_v4 = vpop.f32.mrf.mxu1  ;;  %v15037_v0 = vld [vmem:[#allocation52_spill] sm:$0xff] }
 0x3af   : > { %5418 = vmatprep.subr.mxu1 %v15031_v51  ;;  %15032 = vst [vmem:[#allocation75_spill] sm:$0xff] %v11478_v22  ;;  %5267 = vmatpush2.msra.mxu0 %v11086_v58  ;;  %v3894_v49 = vadd.f32 %v3893_v36, %v15034_v50  ;;  %v11485_v6 = vadd.f32 %v4394_v4, %v3880_v42  ;;  %v15039_v58 = vld [vmem:[#allocation164_spill] sm:$0xff]  ;;  %v15041_v50 = vld [vmem:[#allocation163_spill] sm:$0xff]  ;;  %v15043_v4 = vld [vmem:[#allocation53_spill] sm:$0xff] }
 0x3b0   : > { %5420 = vmatpush1.msra.mxu1 %v15033_v21  ;;  %5270 = vmatprep.subr.mxu0 %v11078_v11  ;;  %v3895_v38 = vpop.f32.mrf.mxu0  ;;  %v4396_v29 = vpop.f32.mrf.mxu1 }
 0x3b1   : > { %5422 = vmatprep.subr.mxu1 %v15035_v35  ;;  %15036 = vst [vmem:[#allocation54_spill] sm:$0xff] %v11485_v6  ;;  %5273 = vmatpush2.msra.mxu0 %v11083_v26  ;;  %v3896_v22 = vadd.f32 %v3895_v38, %v15038_v62  ;;  %v11492_v21 = vadd.f32 %v4396_v29, %v3882_v15  ;;  %v15046_v38 = vld [vmem:[#allocation178_spill] sm:$0xff]  ;;  %v15047_v62 = vld [vmem:[#allocation137_spill] sm:$0xff] }
 0x3b2   : > { %5424 = vmatpush1.msra.mxu1 %v15037_v0  ;;  %5276 = vmatprep.subr.mxu0 %v11098_v3  ;;  %v4401_v36 = vpop.f32.mrf.mxu1  ;;  %v15044_v3 = vld [vmem:[#allocation47_spill] sm:$0xff] }
 0x3b3   : > { %5426 = vmatprep.subr.mxu1 %v15039_v58  ;;  %15040 = vst [vmem:[#allocation34_spill] sm:$0xff] %v11492_v21  ;;  %5279 = vmatpush2.msra.mxu0 %v11103_v60  ;;  %v11497_v42 = vadd.f32 %v4401_v36, %v3887_v19  ;;  %v15049_v36 = vld [vmem:[#allocation134_spill] sm:$0xff]  ;;  %v15050_v21 = vld [vmem:[#allocation7_spill] sm:$0xff] }
 0x3b4   : > { %5428 = vmatpush1.msra.mxu1 %v15041_v50  ;;  %5282 = vmatprep.subr.mxu0 %v11113_v53  ;;  %v4403_v6 = vpop.f32.mrf.mxu1 }
 0x3b5   : > { %15042 = vst [vmem:[#allocation69_spill] sm:$0xff] %v11497_v42  ;;  %5430 = vmatprep.subr.mxu1 %v15043_v4  ;;  %5285 = vmatpush2.msra.mxu0 %v11124_v43  ;;  %v11503_v15 = vadd.f32 %v4403_v6, %v3889_v40  ;;  %v15051_v40 = vld [vmem:[#allocation135_spill] sm:$0xff] }
 0x3b6   : > { %5432 = vmatpush1.msra.mxu1 %v15044_v3  ;;  %5288 = vmatprep.subr.mxu0 %v11130_v54  ;;  %v4408_v29 = vpop.f32.mrf.mxu1 }
 0x3b7   : > { %15045 = vst [vmem:[#allocation154_spill] sm:$0xff] %v11503_v15  ;;  %5434 = vmatprep.subr.mxu1 %v15046_v38  ;;  %5291 = vmatpush2.msra.mxu0 %v11121_v30  ;;  %v11509_v19 = vadd.f32 %v4408_v29, %v3894_v49  ;;  %v15053_v15 = vld [vmem:[#allocation9_spill] sm:$0xff]  ;;  %v15054_v49 = vld [vmem:[#allocation136_spill] sm:$0xff] }
 0x3b8   : > { %5436 = vmatpush2.msra.mxu1 %v15047_v62  ;;  %5294 = vmatprep.subr.mxu0 %v11148_v37  ;;  %v4410_v42 = vpop.f32.mrf.mxu1  ;;  %v15057_v29 = vld [vmem:[#allocation165_spill] sm:$0xff] }
 0x3b9   : > { %15048 = vst [vmem:[#allocation66_spill] sm:$0xff] %v11509_v19  ;;  %5438 = vmatprep.subr.mxu1 %v15049_v36  ;;  %5297 = vmatpush2.msra.mxu0 %v11110_v9  ;;  %v11516_v6 = vadd.f32 %v4410_v42, %v3896_v22  ;;  %v15055_v22 = vld [vmem:[#allocation4_spill] sm:$0xff]  ;;  %v11543_v42 = vpop.f32.mrf.mxu0  ;;  %v15058_v19 = vld [vmem:[#allocation55_spill] sm:$0xff] }
 0x3ba   : > { %5440 = vmatpush2.msra.mxu1 %v15050_v21  ;;  %5300 = vmatprep.subr.mxu0 %v11169_v24  ;;  %15056 = vst [vmem:[#allocation56_spill] sm:$0xff] %v11543_v42  ;;  %v15063_v42 = vld [vmem:[#allocation171_spill] sm:$0xff] }
 0x3bb   : > { %5442 = vmatprep.subr.mxu1 %v15051_v40  ;;  %15052 = vst [vmem:[#allocation31_spill] sm:$0xff] %v11516_v6  ;;  %5303 = vmatpush2.msra.mxu0 %v11029_v8  ;;  %v11549_v6 = vpop.f32.mrf.mxu1 }
 0x3bc   : > { %5444 = vmatpush2.msra.mxu1 %v15053_v15  ;;  %5306 = vmatprep.subr.mxu0 %v11026_v1  ;;  %15059 = vst [vmem:[#allocation52_spill] sm:$0xff] %v11549_v6  ;;  %v15066_v6 = vld [vmem:[#allocation125_spill] sm:$0xff] }
 0x3bd   : > { %5446 = vmatprep.subr.mxu1 %v15054_v49  ;;  %5309 = vmatpush2.msra.mxu0 %v11012_v56  ;;  %v15179_v49 = vld [vmem:[#allocation83_spill] sm:$0xff] }
 0x3be   : > { %5448 = vmatpush2.msra.mxu1 %v11068_v46  ;;  %5312 = vmatprep.subr.mxu0 %v11009_v13 }
 0x3bf   : > { %5450 = vmatprep.subr.mxu1 %v11095_v2  ;;  %5315 = vmatpush2.msra.mxu0 %v11002_v7 }
 0x3c0   : > { %5452 = vmatpush2.msra.mxu1 %v11064_v23  ;;  %5318 = vmatprep.subr.mxu0 %v10999_v18  ;;  %v15165_v23 = vld [vmem:[#allocation98_spill] sm:$0xff] }
 0x3c1   : > { %5454 = vmatprep.subr.mxu1 %v11093_v25  ;;  %5321 = vmatpush2.msra.mxu0 %v11227_v63  ;;  %v15159_v25 = vld [vmem:[#allocation101_spill] sm:$0xff]  ;;  %v15166_v7 = vand.u32 4294901760, %v15165_v23 }
 0x3c2   : > { %5456 = vmatpush2.msra.mxu1 %v11055_v32  ;;  %5324 = vmatprep.subr.mxu0 %v10988_v61  ;;  %v15160_v18 = vand.u32 4294901760, %v15159_v25  ;;  %v15170_v25 = vld [vmem:[#allocation147_spill] sm:$0xff] }
 0x3c3   : > { %5458 = vmatprep.subr.mxu1 %v11043_v20  ;;  %5327 = vmatpush2.msra.mxu0 %v11242_v16  ;;  %v15141_v16 = vld [vmem:[#allocation143_spill] sm:$0xff]  ;;  %v15142_v20 = vld [vmem:[#allocation16_spill] sm:$0xff] }
 0x3c4   : > { %5460 = vmatpush2.msra.mxu1 %v10996_v47  ;;  %5330 = vmatprep.subr.mxu0 %v10978_v39  ;;  %v15136_v39 = vld [vmem:[#allocation146_spill] sm:$0xff] }
 0x3c5   : > { %5462 = vmatprep.subr.mxu1 %v10994_v5  ;;  %5333 = vmatpush2.msra.mxu0 %v10975_v10  ;;  %v15060_v10 = vld [vmem:[#allocation173_spill] sm:$0xff] }
 0x3c6   : > { %5464 = vmatpush2.msra.mxu1 %v10972_v55  ;;  %5336 = vmatprep.subr.mxu0 %v10968_v28  ;;  %v15061_v28 = vld [vmem:[#allocation60_spill] sm:$0xff]  ;;  %v15129_v55 = vld [vmem:[#allocation18_spill] sm:$0xff] }
 0x3c7   : > { %5466 = vmatprep.subr.mxu1 %v10970_v12  ;;  %5339 = vmatpush2.msra.mxu0 %v15055_v22  ;;  %v11555_v22 = vpop.f32.mrf.mxu0  ;;  %v15128_v12 = vld [vmem:[#allocation15_spill] sm:$0xff] }
 0x3c8   : > { %5468 = vmatpush2.msra.mxu1 %v15057_v29  ;;  %5342 = vmatprep.subr.mxu0 %v14913_v31  ;;  %15062 = vst [vmem:[#allocation37_spill] sm:$0xff] %v11555_v22  ;;  %v15064_v31 = vld [vmem:[#allocation3_spill] sm:$0xff]  ;;  %v15071_v22 = vand.u32 4294901760, %v14940_v27  ;;  %v15124_v29 = vld [vmem:[#allocation89_spill] sm:$0xff] }
 0x3c9   : > { %5470 = vmatprep.subr.mxu1 %v15058_v19  ;;  %5345 = vmatpush2.msra.mxu0 %v14931_v44  ;;  %v11561_v44 = vpop.f32.mrf.mxu1 }
 0x3ca   : > { %5472 = vmatpush2.msra.mxu1 %v15060_v10  ;;  %5348 = vmatprep.subr.mxu0 %v14921_v48  ;;  %15065 = vst [vmem:[#allocation164_spill] sm:$0xff] %v11561_v44  ;;  %v15067_v10 = vld [vmem:[#allocation2_spill] sm:$0xff]  ;;  %v15068_v48 = vld [vmem:[#allocation123_spill] sm:$0xff] }
 0x3cb   : > { %5474 = vmatprep.subr.mxu1 %v15061_v28  ;;  %5351 = vmatpush2.msra.mxu0 %v14922_v57  ;;  %v15069_v28 = vld [vmem:[#allocation130_spill] sm:$0xff]  ;;  %v11567_v57 = vpop.f32.mrf.mxu0  ;;  %v11575_v44 = vpop.f32.mrf.mxu1 }
 0x3cc   : > { %5476 = vmatpush2.msra.mxu1 %v15063_v42  ;;  %5354 = vmatprep.subr.mxu0 %v14929_v14  ;;  %15070 = vst [vmem:[#allocation163_spill] sm:$0xff] %v11567_v57  ;;  %v15072_v14 = vld [vmem:[#allocation126_spill] sm:$0xff]  ;;  %15075 = vst [vmem:[#allocation53_spill] sm:$0xff] %v11575_v44  ;;  %v15077_v42 = vld [vmem:[#allocation104_spill] sm:$0xff] }
 0x3cd   : > { %5478 = vmatprep.subr.mxu1 %v15064_v31  ;;  %5357 = vmatpush2.msra.mxu0 %v14930_v34  ;;  %v15073_v31 = vand.u32 4294901760, %v14944_v45  ;;  %v15074_v34 = vld [vmem:[#allocation129_spill] sm:$0xff]  ;;  %v15080_v57 = vld [vmem:[#allocation110_spill] sm:$0xff]  ;;  %v11583_v27 = vpop.f32.mrf.mxu0  ;;  %v15085_v45 = vld [vmem:[#allocation108_spill] sm:$0xff] }
 0x3ce   : > { %5360 = vmatprep.mubr.f32.mxu0 %v15066_v6  ;;  %5480 = vmatpush2.msra.mxu1 %v15067_v10  ;;  %v15076_v10 = vand.u32 4294901760, %v14946_v17  ;;  %15081 = vst [vmem:[#allocation47_spill] sm:$0xff] %v11583_v27  ;;  %v15087_v44 = vld [vmem:[#allocation127_spill] sm:$0xff]  ;;  %v15089_v17 = vld [vmem:[#allocation118_spill] sm:$0xff] }
 0x3cf   : > { %5363 = vmatmul.mubr.f32.vlgmr.msra.gmra.mxu0 %v15068_v48  ;;  %5482 = vmatprep.subr.mxu1 %v15069_v28  ;;  %v15078_v28 = vld [vmem:[#allocation91_spill] sm:$0xff]  ;;  %v15093_v27 = vld [vmem:[#allocation122_spill] sm:$0xff] }
 0x3d0   : > { %5513 = vmatprep.subr.mxu0 %v15071_v22  ;;  %5484 = vmatpush2.msra.mxu1 %v15072_v14  ;;  %v15079_v19 = vand.u32 4294901760, %v15078_v28  ;;  %v15082_v22 = vld [vmem:[#allocation102_spill] sm:$0xff]  ;;  %v15091_v28 = vld [vmem:[#allocation105_spill] sm:$0xff] }
 0x3d1   : > { %5517 = vmatpush1.msra.mxu0 %v15073_v31  ;;  %5486 = vmatprep.subr.mxu1 %v15074_v34  ;;  %v15083_v14 = vand.u32 4294901760, %v15082_v22  ;;  %v15084_v31 = vld [vmem:[#allocation128_spill] sm:$0xff]  ;;  %v15086_v34 = vand.u32 4294901760, %v15085_v45  ;;  %v15094_v22 = vand.u32 4294901760, %v15093_v27  ;;  %v15096_v45 = vand.u32 4294901760, %v15068_v48 }
 0x3d2   : > { %5521 = vmatprep.subr.mxu0 %v15076_v10  ;;  %5488 = vmatpush2.msra.mxu1 %v15077_v42  ;;  %v11591_v10 = vpop.f32.mrf.mxu1  ;;  %v15090_v42 = vand.u32 4294901760, %v15089_v17  ;;  %v15100_v17 = vld [vmem:[#allocation124_spill] sm:$0xff] }
 0x3d3   : > { %5525 = vmatpush1.msra.mxu0 %v15079_v19  ;;  %5490 = vmatprep.subr.mxu1 %v15080_v57  ;;  %15088 = vst [vmem:[#allocation178_spill] sm:$0xff] %v11591_v10  ;;  %v15092_v19 = vand.u32 4294901760, %v15066_v6  ;;  %v15099_v10 = vld [vmem:[#allocation106_spill] sm:$0xff]  ;;  %v15103_v6 = vld [vmem:[#allocation103_spill] sm:$0xff] }
 0x3d4   : > { %5529 = vmatprep.subr.mxu0 %v15083_v14  ;;  %5492 = vmatpush2.msra.mxu1 %v15084_v31  ;;  %v11600_v14 = vpop.f32.mrf.mxu0 }
 0x3d5   : > { %5533 = vmatpush1.msra.mxu0 %v15086_v34  ;;  %5494 = vmatprep.subr.mxu1 %v15087_v44  ;;  %15095 = vst [vmem:[#allocation137_spill] sm:$0xff] %v11600_v14  ;;  %v15097_v34 = vld [vmem:[#allocation112_spill] sm:$0xff]  ;;  %v15107_v14 = vld [vmem:[#allocation95_spill] sm:$0xff] }
 0x3d6   : > { %5537 = vmatprep.subr.mxu0 %v15090_v42  ;;  %5496 = vmatpush2.msra.mxu1 %v15091_v28  ;;  %v15098_v44 = vand.u32 4294901760, %v15097_v34  ;;  %v15101_v42 = vand.u32 4294901760, %v15100_v17  ;;  %v11609_v28 = vpop.f32.mrf.mxu1  ;;  %v15108_v48 = vand.u32 4294901760, %v15107_v14  ;;  %v15113_v17 = vld [vmem:[#allocation11_spill] sm:$0xff] }
 0x3d7   : > { %5500 = vmatprep.mubr.f32.mxu1 %v15092_v19  ;;  %5541 = vmatpush1.msra.mxu0 %v15094_v22  ;;  %15102 = vst [vmem:[#allocation134_spill] sm:$0xff] %v11609_v28  ;;  %v15104_v19 = vld [vmem:[#allocation114_spill] sm:$0xff]  ;;  %v15106_v22 = vld [vmem:[#allocation88_spill] sm:$0xff]  ;;  %v15114_v28 = vld [vmem:[#allocation87_spill] sm:$0xff] }
 0x3d8   : > { %5504 = vmatmul.mubr.f32.vlgmr.msra.gmra.mxu1 %v15096_v45  ;;  %5545 = vmatprep.subr.mxu0 %v15098_v44  ;;  %v15105_v27 = vand.u32 4294901760, %v15104_v19  ;;  %v11617_v45 = vpop.f32.mrf.mxu0  ;;  %v15110_v44 = vld [vmem:[#allocation100_spill] sm:$0xff]  ;;  %v11626_v19 = vpop.f32.mrf.mxu1  ;;  %v15119_v14 = vld [vmem:[#allocation119_spill] sm:$0xff] }
 0x3d9   : > { %5776 = vmatprep.subr.mxu1 %v15099_v10  ;;  %5549 = vmatpush1.msra.mxu0 %v15101_v42  ;;  %15109 = vst [vmem:[#allocation7_spill] sm:$0xff] %v11617_v45  ;;  %v15111_v10 = vld [vmem:[#allocation96_spill] sm:$0xff]  ;;  %v4554_v42 = vmax.f32 %v15113_v17, 0.0  ;;  %15117 = vst [vmem:[#allocation135_spill] sm:$0xff] %v11626_v19  ;;  %v15125_v17 = vld [vmem:[#allocation115_spill] sm:$0xff]  ;;  %v4563_v19 = vmax.f32 %v15128_v12, 0.0 }
 0x3da   : > { %5778 = vmatpush1.msra.mxu1 %v15103_v6  ;;  %5553 = vmatprep.subr.mxu0 %v15105_v27  ;;  %v15112_v34 = vand.u32 4294901760, %v15111_v10  ;;  %v15115_v6 = vld [vmem:[#allocation85_spill] sm:$0xff]  ;;  %v15118_v27 = vld [vmem:[#allocation90_spill] sm:$0xff]  ;;  %v15123_v10 = vld [vmem:[#allocation144_spill] sm:$0xff]  ;;  %v11640_v5 = vpop.f32.mrf.mxu0  ;;  %v11655_v61 = vpop.f32.mrf.mxu1 }
 0x3db   : > { %5780 = vmatprep.subr.mxu1 %v15106_v22  ;;  %5557 = vmatpush1.msra.mxu0 %v15108_v48  ;;  %v15116_v31 = vand.u32 4294901760, %v15115_v6  ;;  %v15120_v22 = vand.u32 4294901760, %v15119_v14  ;;  %v15121_v48 = vld [vmem:[#allocation10_spill] sm:$0xff]  ;;  %v15127_v6 = vld [vmem:[#allocation145_spill] sm:$0xff]  ;;  %15130 = vst [vmem:[#allocation9_spill] sm:$0xff] %v11640_v5  ;;  %v15131_v14 = vld [vmem:[#allocation99_spill] sm:$0xff] }
 0x3dc   : > { %5782 = vmatpush1.msra.mxu1 %v15110_v44  ;;  %5561 = vmatprep.subr.mxu0 %v15112_v34  ;;  %v4555_v45 = vmax.f32 %v15121_v48, 0.0  ;;  %v15122_v44 = vld [vmem:[#allocation14_spill] sm:$0xff]  ;;  %v4561_v34 = vmax.f32 %v15123_v10, 0.0  ;;  %v15135_v10 = vld [vmem:[#allocation141_spill] sm:$0xff]  ;;  %v4559_v5 = vmax.f32 %v15141_v16, 0.0  ;;  %15143 = vst [vmem:[#allocation123_spill] sm:$0xff] %v11655_v61  ;;  %v11698_v13 = vpop.f32.mrf.mxu1 }
 0x3dd   : > { %5784 = vmatprep.subr.mxu1 %v15114_v28  ;;  %5565 = vmatpush1.msra.mxu0 %v15116_v31  ;;  %v4560_v57 = vmax.f32 %v15122_v44, 0.0  ;;  %v15126_v28 = vand.u32 4294901760, %v15125_v17  ;;  %v4562_v31 = vmax.f32 %v15127_v6, 0.0  ;;  %v11645_v44 = vand.u32 4294901760, %v4554_v42  ;;  %v15138_v6 = vld [vmem:[#allocation79_spill] sm:$0xff]  ;;  %v15140_v12 = vld [vmem:[#allocation142_spill] sm:$0xff] }
 0x3de   : > { %5786 = vmatpush1.msra.mxu1 %v15118_v27  ;;  %5569 = vmatprep.subr.mxu0 %v15120_v22  ;;  %v4564_v27 = vmax.f32 %v15129_v55, 0.0  ;;  %v15132_v22 = vld [vmem:[#allocation120_spill] sm:$0xff]  ;;  %v4565_v17 = vmax.f32 %v15136_v39, 0.0  ;;  %v15139_v47 = vand.u32 4294901760, %v15138_v6  ;;  %v4558_v55 = vmax.f32 %v15140_v12, 0.0  ;;  %v15152_v16 = vld [vmem:[#allocation78_spill] sm:$0xff] }
 0x3df   : > { %5788 = vmatprep.subr.mxu1 %v15124_v29  ;;  %5573 = vmatpush1.msra.mxu0 %v15126_v28  ;;  %v15133_v48 = vand.u32 4294901760, %v15132_v22  ;;  %15134 = vst [vmem:[#allocation125_spill] sm:$0xff] %v11645_v44  ;;  %v4556_v29 = vmax.f32 %v15135_v10, 0.0  ;;  %v15137_v28 = vld [vmem:[#allocation111_spill] sm:$0xff]  ;;  %v15144_v22 = vld [vmem:[#allocation109_spill] sm:$0xff]  ;;  %v11660_v10 = vand.u32 4294901760, %v4555_v45 }
 0x3e0   : > { %5790 = vmatpush1.msra.mxu1 %v15131_v14  ;;  %v4566_v14 = vmax.f32 %v15142_v20, 0.0  ;;  %v11662_v39 = vand.u32 4294901760, %v4560_v57  ;;  %v15151_v12 = vld [vmem:[#allocation84_spill] sm:$0xff]  ;;  %v15153_v63 = vand.u32 4294901760, %v15152_v16  ;;  %v11670_v20 = vand.u32 4294901760, %v4562_v31  ;;  %15171 = vst [vmem:[#allocation96_spill] sm:$0xff] %v11698_v13 }
 0x3e1   : > { %5577 = vmatprep.subr.mxu0 %v15133_v48  ;;  %5792 = vmatprep.subr.mxu1 %v15137_v28  ;;  %v15145_v48 = vld [vmem:[#allocation77_spill] sm:$0xff]  ;;  %15147 = vst [vmem:[#allocation91_spill] sm:$0xff] %v11660_v10  ;;  %v11664_v28 = vand.u32 4294901760, %v4561_v34  ;;  %v11672_v61 = vand.u32 4294901760, %v4563_v19  ;;  %v11686_v16 = vand.u32 4294901760, %v4565_v17  ;;  %v11691_v2 = vand.u32 4294901760, %v4558_v55 }
 0x3e2   : > { %5581 = vmatpush1.msra.mxu0 %v15139_v47  ;;  %5794 = vmatpush1.msra.mxu1 %v15144_v22  ;;  %v15146_v32 = vand.u32 4294901760, %v15145_v48  ;;  %15148 = vst [vmem:[#allocation102_spill] sm:$0xff] %v11662_v39  ;;  %v15150_v47 = vld [vmem:[#allocation21_spill] sm:$0xff]  ;;  %15154 = vst [vmem:[#allocation118_spill] sm:$0xff] %v11670_v20  ;;  %v11674_v22 = vand.u32 4294901760, %v4564_v27 }
 0x3e3   : > { %15149 = vst [vmem:[#allocation108_spill] sm:$0xff] %v11664_v28  ;;  %v4567_v6 = vmax.f32 %v15150_v47, 0.0  ;;  %5796 = vmatprep.subr.mxu1 %v15151_v12  ;;  %15155 = vst [vmem:[#allocation122_spill] sm:$0xff] %v11672_v61  ;;  %v15158_v48 = vld [vmem:[#allocation97_spill] sm:$0xff]  ;;  %v11682_v47 = vsub.f32 %v4554_v42, %v11645_v44  ;;  %v11684_v12 = vand.u32 4294901760, %v4556_v29  ;;  %v15172_v42 = vld [vmem:[#allocation80_spill] sm:$0xff]  ;;  %v11710_v23 = vsub.f32 %v4561_v34, %v11664_v28 }
 0x3e4   : > { %5585 = vmatprep.subr.mxu0 %v15146_v32  ;;  %15156 = vst [vmem:[#allocation112_spill] sm:$0xff] %v11674_v22  ;;  %v11676_v32 = vpop.f32.mrf.mxu0  ;;  %5798 = vmatpush1.msra.mxu1 %v15158_v48  ;;  %15163 = vst [vmem:[#allocation114_spill] sm:$0xff] %v11686_v16  ;;  %v11695_v48 = vand.u32 4294901760, %v4566_v14  ;;  %v15173_v44 = vld [vmem:[#allocation72_spill] sm:$0xff]  ;;  %v15185_v34 = vld [vmem:[#allocation82_spill] sm:$0xff] }
 0x3e5   : > { %5589 = vmatpush1.msra.mxu0 %v15153_v63  ;;  %15157 = vst [vmem:[#allocation106_spill] sm:$0xff] %v11676_v32  ;;  %15161 = vst [vmem:[#allocation124_spill] sm:$0xff] %v11682_v47  ;;  %v15164_v63 = vld [vmem:[#allocation86_spill] sm:$0xff]  ;;  %v11693_v32 = vand.u32 4294901760, %v4559_v5  ;;  %v15174_v46 = vand.u32 4294901760, %v15173_v44  ;;  %v11712_v56 = vand.u32 4294901760, %v4567_v6 }
 0x3e6   : > { %5593 = vmatprep.subr.mxu0 %v15160_v18  ;;  %15162 = vst [vmem:[#allocation103_spill] sm:$0xff] %v11684_v12  ;;  %5800 = vmatprep.subr.mxu1 %v15164_v63  ;;  %15167 = vst [vmem:[#allocation88_spill] sm:$0xff] %v11691_v2  ;;  %v4568_v18 = vmax.f32 %v15170_v25, 0.0  ;;  %v11704_v63 = vsub.f32 %v4555_v45, %v11660_v10  ;;  %v15180_v25 = vld [vmem:[#allocation74_spill] sm:$0xff]  ;;  %v11724_v45 = vsub.f32 %v4564_v27, %v11674_v22  ;;  %v15186_v44 = vld [vmem:[#allocation71_spill] sm:$0xff] }
 0x3e7   : > { %5597 = vmatpush1.msra.mxu0 %v15166_v7  ;;  %15168 = vst [vmem:[#allocation95_spill] sm:$0xff] %v11693_v32  ;;  %15169 = vst [vmem:[#allocation100_spill] sm:$0xff] %v11695_v48  ;;  %5802 = vmatpush1.msra.mxu1 %v15172_v42  ;;  %v11707_v7 = vsub.f32 %v4560_v57, %v11662_v39  ;;  %v15181_v13 = vand.u32 4294901760, %v15180_v25  ;;  %v11718_v42 = vsub.f32 %v4562_v31, %v11670_v20  ;;  %v11726_v57 = vpop.f32.mrf.mxu0  ;;  %v15189_v31 = vld [vmem:[#allocation13_spill] sm:$0xff]  ;;  %v15192_v27 = vld [vmem:[#allocation63_spill] sm:$0xff] }
 0x3e8   : > { %5601 = vmatprep.subr.mxu0 %v15174_v46  ;;  %15175 = vst [vmem:[#allocation11_spill] sm:$0xff] %v11704_v63  ;;  %15177 = vst [vmem:[#allocation85_spill] sm:$0xff] %v11710_v23  ;;  %5804 = vmatprep.subr.mxu1 %v15179_v49  ;;  %v11721_v46 = vsub.f32 %v4563_v19, %v11672_v61  ;;  %v15187_v10 = vand.u32 4294901760, %v15186_v44  ;;  %v4557_v25 = vmax.f32 %v15189_v31, 0.0  ;;  %v15191_v39 = vld [vmem:[#allocation81_spill] sm:$0xff]  ;;  %v15193_v28 = vand.u32 4294901760, %v15192_v27  ;;  %v11753_v31 = vpop.f32.mrf.mxu1 }
 0x3e9   : > { %15176 = vst [vmem:[#allocation87_spill] sm:$0xff] %v11707_v7  ;;  %15178 = vst [vmem:[#allocation90_spill] sm:$0xff] %v11712_v56  ;;  %5605 = vmatpush1.msra.mxu0 %v15181_v13  ;;  %5806 = vmatpush1.msra.mxu1 %v15185_v34  ;;  %v11733_v13 = vsub.f32 %v4556_v29, %v11684_v12  ;;  %v11737_v19 = vsub.f32 %v4565_v17, %v11686_v16  ;;  %v11751_v29 = vand.u32 4294901760, %v4568_v18  ;;  %v15199_v17 = vld [vmem:[#allocation73_spill] sm:$0xff]  ;;  %v15204_v12 = vld [vmem:[#allocation68_spill] sm:$0xff]  ;;  %v11770_v20 = vpop.f32.mrf.mxu0 }
 0x3ea   : > { %15182 = vst [vmem:[#allocation119_spill] sm:$0xff] %v11718_v42  ;;  %15183 = vst [vmem:[#allocation10_spill] sm:$0xff] %v11721_v46  ;;  %5609 = vmatprep.subr.mxu0 %v15187_v10  ;;  %5808 = vmatprep.subr.mxu1 %v15191_v39  ;;  %v11743_v34 = vsub.f32 %v4558_v55, %v11691_v2  ;;  %v11746_v10 = vsub.f32 %v4559_v5, %v11693_v32  ;;  %v15200_v49 = vld [vmem:[#allocation61_spill] sm:$0xff]  ;;  %v15217_v32 = vld [vmem:[#allocation76_spill] sm:$0xff] }
 0x3eb   : > { %15184 = vst [vmem:[#allocation14_spill] sm:$0xff] %v11724_v45  ;;  %15188 = vst [vmem:[#allocation144_spill] sm:$0xff] %v11733_v13  ;;  %5613 = vmatpush1.msra.mxu0 %v15193_v28  ;;  %v11749_v44 = vsub.f32 %v4566_v14, %v11695_v48  ;;  %5810 = vmatpush1.msra.mxu1 %v15199_v17  ;;  %v15201_v39 = vand.u32 4294901760, %v15200_v49  ;;  %v11760_v55 = vsub.f32 %v4567_v6, %v11712_v56  ;;  %v15203_v27 = vld [vmem:[#allocation17_spill] sm:$0xff]  ;;  %v15205_v14 = vld [vmem:[#allocation58_spill] sm:$0xff] }
 0x3ec   : > { %15190 = vst [vmem:[#allocation89_spill] sm:$0xff] %v11737_v19  ;;  %15194 = vst [vmem:[#allocation115_spill] sm:$0xff] %v11743_v34  ;;  %v4569_v5 = vmax.f32 %v15203_v27, 0.0  ;;  %5812 = vmatprep.subr.mxu1 %v15204_v12  ;;  %v15206_v2 = vand.u32 4294901760, %v15205_v14  ;;  %v15207_v49 = vld [vmem:[#allocation22_spill] sm:$0xff]  ;;  %v15209_v6 = vld [vmem:[#allocation57_spill] sm:$0xff]  ;;  %v11791_v12 = vsub.f32 %v4568_v18, %v11751_v29 }
 0x3ed   : > { %15195 = vst [vmem:[#allocation145_spill] sm:$0xff] %v11746_v10  ;;  %15196 = vst [vmem:[#allocation15_spill] sm:$0xff] %v11749_v44  ;;  %5617 = vmatprep.subr.mxu0 %v15201_v39  ;;  %v4570_v39 = vmax.f32 %v15207_v49, 0.0  ;;  %v15208_v28 = vld [vmem:[#allocation70_spill] sm:$0xff]  ;;  %v15210_v61 = vand.u32 4294901760, %v15209_v6  ;;  %v15211_v27 = vand.u32 4294901760, %v11682_v47 }
 0x3ee   : > { %15197 = vst [vmem:[#allocation18_spill] sm:$0xff] %v11751_v29  ;;  %15198 = vst [vmem:[#allocation99_spill] sm:$0xff] %v11753_v31  ;;  %5621 = vmatpush1.msra.mxu0 %v15206_v2  ;;  %5814 = vmatpush1.msra.mxu1 %v15208_v28  ;;  %v11782_v31 = vand.u32 4294901760, %v4557_v25  ;;  %v15213_v49 = vld [vmem:[#allocation51_spill] sm:$0xff]  ;;  %v15218_v14 = vand.u32 4294901760, %v15024_v33  ;;  %v15222_v18 = vld [vmem:[#allocation48_spill] sm:$0xff] }
 0x3ef   : > { %15202 = vst [vmem:[#allocation120_spill] sm:$0xff] %v11760_v55  ;;  %5625 = vmatprep.subr.mxu0 %v15210_v61  ;;  %v11779_v2 = vsub.f32 %v11682_v47, %v15211_v27  ;;  %5816 = vmatprep.subr.mxu1 %v15021_v41  ;;  %v15214_v17 = vand.u32 4294901760, %v15213_v49  ;;  %15215 = vst [vmem:[#allocation146_spill] sm:$0xff] %v11791_v12  ;;  %v11793_v27 = vpop.f32.mrf.mxu1  ;;  %v11804_v61 = vand.u32 4294901760, %v4569_v5  ;;  %v15223_v6 = vand.u32 4294901760, %v15222_v18  ;;  %v15232_v18 = vld [vmem:[#allocation64_spill] sm:$0xff] }
 0x3f0   : > { %15212 = vst [vmem:[#allocation141_spill] sm:$0xff] %v11782_v31  ;;  %15216 = vst [vmem:[#allocation111_spill] sm:$0xff] %v11793_v27  ;;  %5818 = vmatpush1.msra.mxu1 %v15217_v32  ;;  %v15224_v32 = vand.u32 4294901760, %v11710_v23  ;;  %v15233_v28 = vand.u32 4294901760, %v11116_v52  ;;  %v15424_v22 = vld [vmem:[#allocation130_spill] sm:$0xff]  ;;  %v15432_v16 = vld [vmem:[#allocation155_spill] sm:$0xff] }
 0x3f1   : > { %5629 = vmatpush1.msra.mxu0 %v15214_v17  ;;  %v15219_v17 = vand.u32 4294901760, %v11707_v7  ;;  %15221 = vst [vmem:[#allocation142_spill] sm:$0xff] %v11804_v61  ;;  %5820 = vmatprep.subr.mxu1 %v15027_v59  ;;  %v11825_v59 = vand.u32 4294901760, %v4570_v39 }
 0x3f2   : > { %5633 = vmatprep.subr.mxu0 %v15218_v14  ;;  %v11813_v33 = vsub.f32 %v11710_v23, %v15224_v32  ;;  %v15226_v14 = vand.u32 4294901760, %v11718_v42  ;;  %5822 = vmatpush1.msra.mxu1 %v15232_v18  ;;  %v15234_v32 = vand.u32 4294901760, %v11721_v46  ;;  %v15239_v18 = vld [vmem:[#allocation138_spill] sm:$0xff] }
 0x3f3   : > { %v11802_v49 = vsub.f32 %v11707_v7, %v15219_v17  ;;  %5637 = vmatpush1.msra.mxu0 %v15223_v6  ;;  %v15228_v17 = vand.u32 4294901760, %v11724_v45  ;;  %15230 = vst [vmem:[#allocation77_spill] sm:$0xff] %v11825_v59  ;;  %v11827_v6 = vpop.f32.mrf.mxu0  ;;  %5824 = vmatprep.subr.mxu1 %v15031_v51  ;;  %v15240_v52 = vand.u32 4294901760, %v15239_v18  ;;  %v15247_v18 = vld [vmem:[#allocation62_spill] sm:$0xff]  ;;  %v15252_v51 = vand.u32 4294901760, %v11760_v55 }
 0x3f4   : > { %15225 = vst [vmem:[#allocation143_spill] sm:$0xff] %v11813_v33  ;;  %v11818_v41 = vsub.f32 %v11718_v42, %v15226_v14  ;;  %15231 = vst [vmem:[#allocation21_spill] sm:$0xff] %v11827_v6  ;;  %5641 = vmatprep.subr.mxu0 %v15233_v28  ;;  %v11835_v7 = vsub.f32 %v11721_v46, %v15234_v32  ;;  %v15236_v14 = vand.u32 4294901760, %v11733_v13  ;;  %v15238_v42 = vld [vmem:[#allocation182_spill] sm:$0xff]  ;;  %v15241_v28 = vand.u32 4294901760, %v11737_v19  ;;  %v15418_v6 = vld [vmem:[#allocation33_spill] sm:$0xff] }
 0x3f5   : > { %15220 = vst [vmem:[#allocation79_spill] sm:$0xff] %v11802_v49  ;;  %v11823_v47 = vsub.f32 %v11724_v45, %v15228_v17  ;;  %v11843_v17 = vsub.f32 %v4557_v25, %v11782_v31  ;;  %v4571_v45 = vmax.f32 %v15238_v42, 0.0  ;;  %5645 = vmatpush2.msra.mxu0 %v15240_v52  ;;  %v15243_v46 = vand.u32 4294901760, %v11743_v34  ;;  %v11865_v42 = vpop.f32.mrf.mxu1  ;;  %5826 = vmatpush1.msra.mxu1 %v15247_v18 }
 0x3f6   : > { %15227 = vst [vmem:[#allocation16_spill] sm:$0xff] %v11818_v41  ;;  %15235 = vst [vmem:[#allocation84_spill] sm:$0xff] %v11835_v7  ;;  %v11840_v23 = vsub.f32 %v11733_v13, %v15236_v14  ;;  %v11852_v32 = vsub.f32 %v11737_v19, %v15241_v28  ;;  %v15244_v25 = vand.u32 4294901760, %v11749_v44  ;;  %v15248_v52 = vand.u32 4294901760, %v11078_v11  ;;  %5828 = vmatprep.subr.mxu1 %v15035_v35  ;;  %v15256_v35 = vld [vmem:[#allocation140_spill] sm:$0xff]  ;;  %v15259_v11 = vld [vmem:[#allocation181_spill] sm:$0xff] }
 0x3f7   : > { %15229 = vst [vmem:[#allocation109_spill] sm:$0xff] %v11823_v47  ;;  %15237 = vst [vmem:[#allocation78_spill] sm:$0xff] %v11843_v17  ;;  %v11857_v14 = vsub.f32 %v11743_v34, %v15243_v46  ;;  %v15249_v28 = vand.u32 4294901760, %v11746_v10  ;;  %v11876_v46 = vsub.f32 %v4569_v5, %v11804_v61  ;;  %v11884_v18 = vsub.f32 %v11760_v55, %v15252_v51  ;;  %v11891_v34 = vpop.f32.mrf.mxu0  ;;  %v15265_v51 = vld [vmem:[#allocation19_spill] sm:$0xff]  ;;  %v11917_v41 = vpop.f32.mrf.mxu1 }
 0x3f8   : > { %15242 = vst [vmem:[#allocation97_spill] sm:$0xff] %v11852_v32  ;;  %v11862_v13 = vsub.f32 %v11749_v44, %v15244_v25  ;;  %15246 = vst [vmem:[#allocation86_spill] sm:$0xff] %v11865_v42  ;;  %5649 = vmatprep.subr.mxu0 %v15248_v52  ;;  %v15251_v25 = vand.u32 4294901760, %v11083_v26  ;;  %5830 = vmatpush1.msra.mxu1 %v15037_v0  ;;  %v15257_v5 = vand.u32 4294901760, %v15256_v35  ;;  %v11901_v52 = vand.u32 4294901760, %v4571_v45  ;;  %v15266_v26 = vld [vmem:[#allocation183_spill] sm:$0xff] }
 0x3f9   : > { %v11873_v19 = vsub.f32 %v11746_v10, %v15249_v28  ;;  %15250 = vst [vmem:[#allocation98_spill] sm:$0xff] %v11876_v46  ;;  %15253 = vst [vmem:[#allocation147_spill] sm:$0xff] %v11884_v18  ;;  %v11889_v28 = vsub.f32 %v4570_v39, %v11825_v59  ;;  %v15258_v10 = vld [vmem:[#allocation148_spill] sm:$0xff]  ;;  %5832 = vmatprep.subr.mxu1 %v15039_v58  ;;  %v15262_v0 = vand.u32 4294901760, %v11103_v60  ;;  %v15270_v58 = vand.u32 4294901760, %v11113_v53  ;;  %v15272_v35 = vld [vmem:[#allocation93_spill] sm:$0xff]  ;;  %v11969_v32 = vpop.f32.mrf.mxu1 }
 0x3fa   : > { %15245 = vst [vmem:[#allocation101_spill] sm:$0xff] %v11862_v13  ;;  %5653 = vmatpush2.msra.mxu0 %v15251_v25  ;;  %15255 = vst [vmem:[#allocation72_spill] sm:$0xff] %v11891_v34  ;;  %v3826_v44 = vadd.f32 %v15259_v11, %v15258_v10  ;;  %v15261_v39 = vld [vmem:[#allocation184_spill] sm:$0xff]  ;;  %v3831_v49 = vadd.f32 %v15266_v26, %v15265_v51  ;;  %v15267_v10 = vld [vmem:[#allocation25_spill] sm:$0xff]  ;;  %5834 = vmatpush1.msra.mxu1 %v15041_v50  ;;  %v15274_v26 = vand.u32 4294901760, %v11124_v43 }
 0x3fb   : > { %15254 = vst [vmem:[#allocation80_spill] sm:$0xff] %v11889_v28  ;;  %5657 = vmatprep.subr.mxu0 %v15257_v5  ;;  %15260 = vst [vmem:[#allocation83_spill] sm:$0xff] %v11901_v52  ;;  %v15263_v5 = vand.u32 4294901760, %v11791_v12  ;;  %v15268_v11 = vld [vmem:[#allocation185_spill] sm:$0xff]  ;;  %5836 = vmatprep.subr.mxu1 %v15043_v4  ;;  %v15280_v43 = vand.u32 4294901760, %v11130_v54  ;;  %v11948_v4 = vsub.f32 %v4571_v45, %v11901_v52  ;;  %v15288_v54 = vld [vmem:[#allocation92_spill] sm:$0xff] }
 0x3fc   : > { %5661 = vmatpush2.msra.mxu0 %v15262_v0  ;;  %v3833_v33 = vadd.f32 %v15268_v11, %v15267_v10  ;;  %15269 = vst [vmem:[#allocation82_spill] sm:$0xff] %v11917_v41  ;;  %v15271_v0 = vld [vmem:[#allocation149_spill] sm:$0xff]  ;;  %v15275_v10 = vld [vmem:[#allocation20_spill] sm:$0xff]  ;;  %v15276_v11 = vld [vmem:[#allocation186_spill] sm:$0xff]  ;;  %5838 = vmatpush1.msra.mxu1 %v15044_v3  ;;  %v15287_v3 = vand.u32 4294901760, %v11121_v30  ;;  %v15335_v31 = vand.u32 4294901760, %v11889_v28 }
 0x3fd   : > { %v11911_v25 = vsub.f32 %v11791_v12, %v15263_v5  ;;  %5665 = vmatprep.subr.mxu0 %v15270_v58  ;;  %v3838_v55 = vadd.f32 %v15272_v35, %v15271_v0  ;;  %v15273_v5 = vld [vmem:[#allocation187_spill] sm:$0xff]  ;;  %v3840_v58 = vadd.f32 %v15276_v11, %v15275_v10  ;;  %v15277_v60 = vld [vmem:[#allocation189_spill] sm:$0xff]  ;;  %v11942_v0 = vpop.f32.mrf.mxu0  ;;  %15281 = vst [vmem:[#allocation13_spill] sm:$0xff] %v11948_v4  ;;  %v15284_v10 = vld [vmem:[#allocation26_spill] sm:$0xff] }
 0x3fe   : > { %v11926_v12 = vadd.f32 %v15273_v5, %v3826_v44  ;;  %5669 = vmatpush2.msra.mxu0 %v15274_v26  ;;  %v11937_v7 = vadd.f32 %v15277_v60, %v3831_v49  ;;  %v15278_v35 = vld [vmem:[#allocation191_spill] sm:$0xff]  ;;  %15279 = vst [vmem:[#allocation71_spill] sm:$0xff] %v11942_v0  ;;  %v15282_v5 = vmax.f32 %v15261_v39, 0.0  ;;  %v15285_v49 = vld [vmem:[#allocation188_spill] sm:$0xff]  ;;  %v15286_v11 = vld [vmem:[#allocation193_spill] sm:$0xff]  ;;  %5840 = vmatprep.subr.mxu1 %v15046_v38 }
 0x3ff   : > { %15264 = vst [vmem:[#allocation74_spill] sm:$0xff] %v11911_v25  ;;  %v11940_v44 = vadd.f32 %v15278_v35, %v3833_v33  ;;  %5673 = vmatprep.subr.mxu0 %v15280_v43  ;;  %v3845_v60 = vadd.f32 %v15285_v49, %v15284_v10  ;;  %v11957_v33 = vadd.f32 %v15286_v11, %v3838_v55  ;;  %v4573_v35 = vmax.f32 %v15288_v54, 0.0  ;;  %v15289_v43 = vld [vmem:[#allocation107_spill] sm:$0xff]  ;;  %v15290_v50 = vld [vmem:[#allocation150_spill] sm:$0xff]  ;;  %v15296_v10 = vld [vmem:[#allocation192_spill] sm:$0xff] }
 0x400   : > { %v11952_v26 = vand.u32 4294901760, %v15282_v5  ;;  %5677 = vmatpush2.msra.mxu0 %v15287_v3  ;;  %v4574_v45 = vmax.f32 %v15289_v43, 0.0  ;;  %v15291_v53 = vld [vmem:[#allocation190_spill] sm:$0xff]  ;;  %v15292_v5 = vld [vmem:[#allocation195_spill] sm:$0xff]  ;;  %15293 = vst [vmem:[#allocation63_spill] sm:$0xff] %v11969_v32  ;;  %5842 = vmatpush2.msra.mxu1 %v15047_v62  ;;  %v15294_v55 = vand.u32 4294901760, %v11148_v37 }
 0x401   : > { %v3847_v51 = vadd.f32 %v15291_v53, %v15290_v50  ;;  %v11967_v47 = vadd.f32 %v15292_v5, %v3840_v58  ;;  %v4575_v30 = vmax.f32 %v11926_v12, 0.0  ;;  %v15295_v38 = vld [vmem:[#allocation23_spill] sm:$0xff]  ;;  %v15297_v11 = vld [vmem:[#allocation28_spill] sm:$0xff]  ;;  %v15298_v3 = vld [vmem:[#allocation194_spill] sm:$0xff]  ;;  %5844 = vmatprep.subr.mxu1 %v15049_v36  ;;  %v15300_v53 = vand.u32 4294901760, %v11110_v9 }
 0x402   : > { %15283 = vst [vmem:[#allocation81_spill] sm:$0xff] %v11952_v26  ;;  %5681 = vmatprep.subr.mxu0 %v15294_v55  ;;  %v3852_v49 = vadd.f32 %v15296_v10, %v15295_v38  ;;  %v3854_v54 = vadd.f32 %v15298_v3, %v15297_v11  ;;  %v15299_v43 = vld [vmem:[#allocation197_spill] sm:$0xff]  ;;  %v4576_v62 = vmax.f32 %v11937_v7, 0.0  ;;  %v4577_v37 = vmax.f32 %v11940_v44, 0.0  ;;  %v15301_v58 = vld [vmem:[#allocation151_spill] sm:$0xff]  ;;  %v15302_v12 = vld [vmem:[#allocation196_spill] sm:$0xff]  ;;  %v11992_v10 = vpop.f32.mrf.mxu0  ;;  %5846 = vmatpush2.msra.mxu1 %v15050_v21 }
 0x403   : > { %v11980_v50 = vadd.f32 %v15299_v43, %v3845_v60  ;;  %5685 = vmatpush2.msra.mxu0 %v15300_v53  ;;  %v3859_v5 = vadd.f32 %v15302_v12, %v15301_v58  ;;  %v15303_v55 = vld [vmem:[#allocation199_spill] sm:$0xff]  ;;  %15304 = vst [vmem:[#allocation73_spill] sm:$0xff] %v11992_v10  ;;  %v15305_v60 = vand.u32 4294901760, %v11169_v24  ;;  %v4578_v9 = vmax.f32 %v11957_v33, 0.0  ;;  %v15306_v36 = vld [vmem:[#allocation200_spill] sm:$0xff]  ;;  %v15307_v7 = vld [vmem:[#allocation30_spill] sm:$0xff]  ;;  %5848 = vmatprep.subr.mxu1 %v15051_v40  ;;  %v12018_v53 = vpop.f32.mrf.mxu1 }
 0x404   : > { %v11990_v38 = vadd.f32 %v15303_v55, %v3847_v51  ;;  %v11999_v11 = vadd.f32 %v15306_v36, %v3852_v49  ;;  %v12002_v44 = vadd.f32 %v15307_v7, %v3854_v54  ;;  %v15308_v51 = vand.u32 4294901760, %v11029_v8  ;;  %v15312_v43 = vld [vmem:[#allocation152_spill] sm:$0xff]  ;;  %15313 = vst [vmem:[#allocation68_spill] sm:$0xff] %v12018_v53  ;;  %5850 = vmatpush2.msra.mxu1 %v15053_v15  ;;  %v15320_v36 = vld [vmem:[#allocation131_spill] sm:$0xff]  ;;  %v15371_v53 = vld [vmem:[#allocation169_spill] sm:$0xff] }
 0x405   : > { %5689 = vmatprep.subr.mxu0 %v15305_v60  ;;  %v15309_v3 = vand.u32 4294901760, %v11876_v46  ;;  %v12012_v24 = vand.u32 4294901760, %v4573_v35  ;;  %v4579_v33 = vmax.f32 %v11967_v47, 0.0  ;;  %v12016_v49 = vadd.f32 %v15312_v43, %v3859_v5  ;;  %v15317_v55 = vld [vmem:[#allocation24_spill] sm:$0xff]  ;;  %v15318_v47 = vld [vmem:[#allocation198_spill] sm:$0xff]  ;;  %v15347_v13 = vld [vmem:[#allocation179_spill] sm:$0xff] }
 0x406   : > { %5693 = vmatpush2.msra.mxu0 %v15308_v51  ;;  %v15314_v40 = vand.u32 4294901760, %v11026_v1  ;;  %v12024_v54 = vand.u32 4294901760, %v4574_v45  ;;  %v12026_v58 = vand.u32 4294901760, %v4575_v30  ;;  %v4580_v12 = vmax.f32 %v11980_v50, 0.0  ;;  %v15319_v5 = vld [vmem:[#allocation136_spill] sm:$0xff]  ;;  %v12044_v50 = vpop.f32.mrf.mxu0  ;;  %v15393_v0 = vld [vmem:[#allocation113_spill] sm:$0xff] }
 0x407   : > { %v12010_v21 = vsub.f32 %v11876_v46, %v15309_v3  ;;  %15311 = vst [vmem:[#allocation17_spill] sm:$0xff] %v12012_v24  ;;  %v3861_v60 = vadd.f32 %v15318_v47, %v15317_v55  ;;  %5852 = vmatprep.subr.mxu1 %v15319_v5  ;;  %v15321_v7 = vand.u32 4294901760, %v15320_v36  ;;  %v15322_v1 = vmax.f32 %v15261_v39, 0.0  ;;  %15326 = vst [vmem:[#allocation76_spill] sm:$0xff] %v12044_v50  ;;  %v15328_v55 = vld [vmem:[#allocation5_spill] sm:$0xff]  ;;  %v15332_v8 = vld [vmem:[#allocation12_spill] sm:$0xff] }
 0x408   : > { %5697 = vmatprep.subr.mxu0 %v15314_v40  ;;  %15315 = vst [vmem:[#allocation58_spill] sm:$0xff] %v12024_v54  ;;  %15316 = vst [vmem:[#allocation22_spill] sm:$0xff] %v12026_v58  ;;  %v12039_v51 = vand.u32 4294901760, %v4576_v62  ;;  %v12041_v3 = vand.u32 4294901760, %v4577_v37  ;;  %v4581_v43 = vmax.f32 %v11990_v38, 0.0  ;;  %v15327_v40 = vld [vmem:[#allocation133_spill] sm:$0xff] }
 0x409   : > { %15310 = vst [vmem:[#allocation61_spill] sm:$0xff] %v12010_v21  ;;  %5701 = vmatpush2.msra.mxu0 %v15321_v7  ;;  %v12037_v15 = vsub.f32 %v15322_v1, %v11952_v26  ;;  %5854 = vmatpush2.msra.mxu1 %v15327_v40  ;;  %v15329_v47 = vand.u32 4294901760, %v15328_v55  ;;  %v12049_v5 = vand.u32 4294901760, %v4578_v9  ;;  %v4582_v36 = vmax.f32 %v11999_v11, 0.0  ;;  %v15331_v7 = vld [vmem:[#allocation27_spill] sm:$0xff]  ;;  %v15333_v46 = vld [vmem:[#allocation177_spill] sm:$0xff]  ;;  %v12067_v11 = vpop.f32.mrf.mxu1 }
 0x40a   : > { %15324 = vst [vmem:[#allocation57_spill] sm:$0xff] %v12039_v51  ;;  %15325 = vst [vmem:[#allocation51_spill] sm:$0xff] %v12041_v3  ;;  %v4583_v39 = vmax.f32 %v12002_v44, 0.0  ;;  %v12054_v1 = vadd.f32 %v15331_v7, %v3861_v60  ;;  %5856 = vmatprep.subr.mxu1 %v15332_v8  ;;  %v15334_v38 = vand.u32 4294901760, %v15333_v46  ;;  %v12062_v40 = vsub.f32 %v11889_v28, %v15335_v31  ;;  %v15339_v44 = vld [vmem:[#allocation8_spill] sm:$0xff]  ;;  %v12096_v8 = vpop.f32.mrf.mxu0 }
 0x40b   : > { %15323 = vst [vmem:[#allocation70_spill] sm:$0xff] %v12037_v15  ;;  %5705 = vmatprep.subr.mxu0 %v15329_v47  ;;  %15330 = vst [vmem:[#allocation48_spill] sm:$0xff] %v12049_v5  ;;  %v12064_v55 = vand.u32 4294901760, %v4579_v33  ;;  %v4584_v47 = vmax.f32 %v12016_v49, 0.0  ;;  %5858 = vmatpush2.msra.mxu1 %v15339_v44  ;;  %v15340_v60 = vld [vmem:[#allocation176_spill] sm:$0xff]  ;;  %v12074_v46 = vsub.f32 %v4573_v35, %v12012_v24  ;;  %v12082_v28 = vand.u32 4294901760, %v4580_v12 }
 0x40c   : > { %5709 = vmatpush2.msra.mxu0 %v15334_v38  ;;  %15336 = vst [vmem:[#allocation64_spill] sm:$0xff] %v12062_v40  ;;  %15338 = vst [vmem:[#allocation138_spill] sm:$0xff] %v12067_v11  ;;  %v15341_v7 = vand.u32 4294901760, %v15340_v60  ;;  %v12077_v38 = vsub.f32 %v4574_v45, %v12024_v54  ;;  %v12080_v31 = vsub.f32 %v4575_v30, %v12026_v58  ;;  %v15346_v49 = vld [vmem:[#allocation139_spill] sm:$0xff]  ;;  %v15348_v44 = vand.u32 4294901760, %v15347_v13  ;;  %v15352_v30 = vld [vmem:[#allocation132_spill] sm:$0xff] }
 0x40d   : > { %15337 = vst [vmem:[#allocation182_spill] sm:$0xff] %v12064_v55  ;;  %15342 = vst [vmem:[#allocation62_spill] sm:$0xff] %v12074_v46  ;;  %5860 = vmatprep.subr.mxu1 %v15346_v49  ;;  %v12092_v35 = vsub.f32 %v4577_v37, %v12041_v3  ;;  %v12094_v45 = vand.u32 4294901760, %v4581_v43  ;;  %v15353_v18 = vld [vmem:[#allocation172_spill] sm:$0xff]  ;;  %v12102_v13 = vsub.f32 %v4578_v9, %v12049_v5  ;;  %v12104_v49 = vand.u32 4294901760, %v4582_v36  ;;  %v15358_v37 = vld [vmem:[#allocation6_spill] sm:$0xff] }
 0x40e   : > { %5713 = vmatprep.subr.mxu0 %v15341_v7  ;;  %15343 = vst [vmem:[#allocation140_spill] sm:$0xff] %v12077_v38  ;;  %15344 = vst [vmem:[#allocation148_spill] sm:$0xff] %v12080_v31  ;;  %v12089_v7 = vsub.f32 %v4576_v62, %v12039_v51  ;;  %5862 = vmatpush2.msra.mxu1 %v15352_v30  ;;  %v15354_v27 = vand.u32 4294901760, %v15353_v18  ;;  %v4585_v62 = vmax.f32 %v12054_v1, 0.0  ;;  %v15359_v60 = vld [vmem:[#allocation180_spill] sm:$0xff]  ;;  %v12115_v30 = vand.u32 4294901760, %v4584_v47 }
 0x40f   : > { %15345 = vst [vmem:[#allocation181_spill] sm:$0xff] %v12082_v28  ;;  %5717 = vmatpush2.msra.mxu0 %v15348_v44  ;;  %15350 = vst [vmem:[#allocation19_spill] sm:$0xff] %v12092_v35  ;;  %v12106_v44 = vand.u32 4294901760, %v4583_v39  ;;  %5864 = vmatprep.subr.mxu1 %v15358_v37  ;;  %v15360_v25 = vand.u32 4294901760, %v15359_v60  ;;  %v12113_v42 = vsub.f32 %v4579_v33, %v12064_v55  ;;  %v15364_v18 = vld [vmem:[#allocation175_spill] sm:$0xff]  ;;  %v15365_v9 = vld [vmem:[#allocation170_spill] sm:$0xff] }
 0x410   : > { %15349 = vst [vmem:[#allocation184_spill] sm:$0xff] %v12089_v7  ;;  %15351 = vst [vmem:[#allocation183_spill] sm:$0xff] %v12094_v45  ;;  %5721 = vmatprep.subr.mxu0 %v15354_v27  ;;  %v12117_v27 = vpop.f32.mrf.mxu1  ;;  %5866 = vmatpush2.msra.mxu1 %v15364_v18  ;;  %v15366_v41 = vand.u32 4294901760, %v15365_v9  ;;  %v15367_v32 = vand.u32 4294901760, %v11948_v4  ;;  %v12130_v33 = vsub.f32 %v4580_v12, %v12082_v28  ;;  %v15370_v37 = vld [vmem:[#allocation174_spill] sm:$0xff]  ;;  %v15372_v34 = vand.u32 4294901760, %v15371_v53  ;;  %v12146_v12 = vpop.f32.mrf.mxu0 }
 0x411   : > { %15355 = vst [vmem:[#allocation25_spill] sm:$0xff] %v12102_v13  ;;  %15356 = vst [vmem:[#allocation185_spill] sm:$0xff] %v12104_v49  ;;  %5725 = vmatpush2.msra.mxu0 %v15360_v25  ;;  %5868 = vmatprep.subr.mxu1 %v15370_v37  ;;  %v15373_v9 = vand.u32 4294901760, %v12037_v15  ;;  %v12144_v25 = vsub.f32 %v4581_v43, %v12094_v45  ;;  %v15376_v37 = vld [vmem:[#allocation168_spill] sm:$0xff]  ;;  %v15377_v53 = vld [vmem:[#allocation166_spill] sm:$0xff]  ;;  %v12159_v60 = vand.u32 4294901760, %v4585_v62 }
 0x412   : > { %15357 = vst [vmem:[#allocation149_spill] sm:$0xff] %v12106_v44  ;;  %15361 = vst [vmem:[#allocation93_spill] sm:$0xff] %v12113_v42  ;;  %5729 = vmatprep.subr.mxu0 %v15366_v41  ;;  %v12125_v1 = vsub.f32 %v11948_v4, %v15367_v32  ;;  %5870 = vmatpush2.msra.mxu1 %v15376_v37  ;;  %v12154_v4 = vsub.f32 %v4582_v36, %v12104_v49  ;;  %v15382_v43 = vld [vmem:[#allocation167_spill] sm:$0xff]  ;;  %v15388_v41 = vld [vmem:[#allocation121_spill] sm:$0xff]  ;;  %v15396_v18 = vand.u32 4294901760, %v12074_v46 }
 0x413   : > { %15362 = vst [vmem:[#allocation187_spill] sm:$0xff] %v12115_v30  ;;  %15363 = vst [vmem:[#allocation20_spill] sm:$0xff] %v12117_v27  ;;  %5733 = vmatpush2.msra.mxu0 %v15372_v34  ;;  %v12140_v32 = vsub.f32 %v12037_v15, %v15373_v9  ;;  %v15378_v34 = vand.u32 4294901760, %v15377_v53  ;;  %v12157_v9 = vsub.f32 %v4583_v39, %v12106_v44  ;;  %5872 = vmatprep.subr.mxu1 %v15382_v43  ;;  %v15383_v15 = vld [vmem:[#allocation4_spill] sm:$0xff]  ;;  %v12167_v53 = vpop.f32.mrf.mxu1  ;;  %v15420_v27 = vld [vmem:[#allocation2_spill] sm:$0xff] }
 0x414   : > { %15368 = vst [vmem:[#allocation186_spill] sm:$0xff] %v12125_v1  ;;  %15369 = vst [vmem:[#allocation189_spill] sm:$0xff] %v12130_v33  ;;  %v15384_v21 = vand.u32 4294901760, %v15383_v15  ;;  %v12165_v37 = vsub.f32 %v4584_v47, %v12115_v30  ;;  %v15389_v36 = vand.u32 4294901760, %v15388_v41  ;;  %v15390_v43 = vand.u32 4294901760, %v12077_v38  ;;  %v15392_v47 = vld [vmem:[#allocation55_spill] sm:$0xff]  ;;  %v12199_v15 = vpop.f32.mrf.mxu0 }
 0x415   : > { %15374 = vst [vmem:[#allocation191_spill] sm:$0xff] %v12140_v32  ;;  %15375 = vst [vmem:[#allocation26_spill] sm:$0xff] %v12144_v25  ;;  %5737 = vmatprep.subr.mxu0 %v15378_v34  ;;  %v15387_v34 = vld [vmem:[#allocation165_spill] sm:$0xff]  ;;  %v15395_v41 = vand.u32 4294901760, %v12080_v31  ;;  %v12192_v11 = vsub.f32 %v12074_v46, %v15396_v18  ;;  %v15403_v46 = vand.u32 4294901760, %v12102_v13  ;;  %v15435_v50 = vmax.f32 %v15418_v6, 0.0 }
 0x416   : > { %15379 = vst [vmem:[#allocation188_spill] sm:$0xff] %v12154_v4  ;;  %15380 = vst [vmem:[#allocation193_spill] sm:$0xff] %v12157_v9  ;;  %5741 = vmatpush2.msra.mxu0 %v15384_v21  ;;  %5874 = vmatpush2.msra.mxu1 %v15387_v34  ;;  %v12178_v21 = vsub.f32 %v12077_v38, %v15390_v43  ;;  %v15394_v34 = vand.u32 4294901760, %v15393_v0  ;;  %v15398_v43 = vand.u32 4294901760, %v12089_v7  ;;  %v15400_v0 = vld [vmem:[#allocation67_spill] sm:$0xff]  ;;  %v15402_v38 = vand.u32 4294901760, %v12092_v35 }
 0x417   : > { %15381 = vst [vmem:[#allocation92_spill] sm:$0xff] %v12159_v60  ;;  %15385 = vst [vmem:[#allocation107_spill] sm:$0xff] %v12165_v37  ;;  %5745 = vmatprep.subr.mxu0 %v15389_v36  ;;  %5876 = vmatprep.subr.mxu1 %v15392_v47  ;;  %v12187_v36 = vsub.f32 %v12080_v31, %v15395_v41  ;;  %v15399_v47 = vld [vmem:[#allocation173_spill] sm:$0xff]  ;;  %v15457_v6 = vand.u32 4294901760, %v11843_v17 }
 0x418   : > { %15386 = vst [vmem:[#allocation150_spill] sm:$0xff] %v12167_v53  ;;  %15391 = vst [vmem:[#allocation190_spill] sm:$0xff] %v12178_v21  ;;  %5749 = vmatpush2.msra.mxu0 %v15394_v34  ;;  %v12197_v39 = vsub.f32 %v12089_v7, %v15398_v43  ;;  %5878 = vmatpush2.msra.mxu1 %v15399_v47  ;;  %v15401_v34 = vand.u32 4294901760, %v15400_v0  ;;  %v12208_v31 = vsub.f32 %v12092_v35, %v15402_v38  ;;  %v15405_v0 = vld [vmem:[#allocation60_spill] sm:$0xff]  ;;  %v15408_v18 = vld [vmem:[#allocation153_spill] sm:$0xff] }
 0x419   : > { %15397 = vst [vmem:[#allocation195_spill] sm:$0xff] %v12192_v11  ;;  %v12214_v43 = vsub.f32 %v12102_v13, %v15403_v46  ;;  %v12218_v47 = vsub.f32 %v4585_v62, %v12159_v60  ;;  %5880 = vmatprep.subr.mxu1 %v15405_v0  ;;  %v4587_v40 = vmax.f32 %v15408_v18, 0.0  ;;  %v15409_v1 = vld [vmem:[#allocation29_spill] sm:$0xff]  ;;  %v12227_v46 = vpop.f32.mrf.mxu1  ;;  %v15410_v13 = vld [vmem:[#allocation171_spill] sm:$0xff]  ;;  %v15413_v0 = vand.u32 4294901760, %v12113_v42  ;;  %v15433_v21 = vld [vmem:[#allocation56_spill] sm:$0xff] }
 0x41a   : > { %5753 = vmatprep.subr.mxu0 %v15401_v34  ;;  %v15406_v34 = vld [vmem:[#allocation59_spill] sm:$0xff]  ;;  %v4588_v32 = vmax.f32 %v15409_v1, 0.0  ;;  %5882 = vmatpush2.msra.mxu1 %v15410_v13  ;;  %v15411_v7 = vld [vmem:[#allocation65_spill] sm:$0xff]  ;;  %v15416_v1 = vld [vmem:[#allocation94_spill] sm:$0xff] }
 0x41b   : > { %15404 = vst [vmem:[#allocation23_spill] sm:$0xff] %v12218_v47  ;;  %v15407_v41 = vand.u32 4294901760, %v15406_v34  ;;  %v15412_v62 = vand.u32 4294901760, %v15411_v7  ;;  %v12235_v34 = vsub.f32 %v12113_v42, %v15413_v0  ;;  %v15415_v18 = vld [vmem:[#allocation3_spill] sm:$0xff]  ;;  %v15417_v38 = vand.u32 4294901760, %v15416_v1  ;;  %v12249_v0 = vpop.f32.mrf.mxu0  ;;  %v15419_v42 = vld [vmem:[#allocation116_spill] sm:$0xff]  ;;  %v12283_v11 = vpop.f32.mrf.mxu1 }
 0x41c   : > { %5884 = vmatprep.subr.mxu1 %v15415_v18  ;;  %5767 = vmatprep.mubr.f32.mxu0 %v15419_v42  ;;  %v15422_v7 = vand.u32 4294901760, %v12154_v4  ;;  %v15423_v13 = vld [vmem:[#allocation117_spill] sm:$0xff]  ;;  %v15426_v1 = vand.u32 4294901760, %v12165_v37  ;;  %v15440_v53 = vld [vmem:[#allocation110_spill] sm:$0xff] }
 0x41d   : > { %5757 = vmatpush2.msra.mxu0 %v15407_v41  ;;  %v15414_v41 = vand.u32 4294901760, %v12130_v33  ;;  %5886 = vmatpush2.msra.mxu1 %v15420_v27  ;;  %v15430_v27 = vld [vmem:[#allocation75_spill] sm:$0xff] }
 0x41e   : > { %5761 = vmatprep.subr.mxu0 %v15412_v62  ;;  %v12263_v62 = vsub.f32 %v12154_v4, %v15422_v7  ;;  %5888 = vmatprep.subr.mxu1 %v15424_v22  ;;  %v12279_v7 = vand.u32 4294901760, %v4587_v40  ;;  %v12281_v4 = vand.u32 4294901760, %v4588_v32  ;;  %v15429_v22 = vld [vmem:[#allocation126_spill] sm:$0xff] }
 0x41f   : > { %v12240_v35 = vsub.f32 %v12130_v33, %v15414_v41  ;;  %5765 = vmatpush2.msra.mxu0 %v15417_v38  ;;  %v15421_v41 = vand.u32 4294901760, %v12144_v25  ;;  %v15425_v33 = vand.u32 4294901760, %v12157_v9  ;;  %5890 = vmatpush2.msra.mxu1 %v15429_v22  ;;  %v15431_v38 = vld [vmem:[#allocation34_spill] sm:$0xff]  ;;  %v15437_v22 = vld [vmem:[#allocation69_spill] sm:$0xff] }
 0x420   : > { %5769 = vmatmul.mubr.f32.vlgmr.msra.gmra.mxu0 %v15423_v13  ;;  %15427 = vst [vmem:[#allocation192_spill] sm:$0xff] %v12279_v7  ;;  %15428 = vst [vmem:[#allocation28_spill] sm:$0xff] %v12281_v4  ;;  %5913 = vmatprep.subr.mxu0 %v12159_v60  ;;  %v4591_v10 = vmax.f32 %v15431_v38, 0.0  ;;  %v12297_v60 = vand.u32 4294901760, %v15435_v50  ;;  %v4592_v48 = vmax.f32 %v15437_v22, 0.0  ;;  %v15438_v38 = vld [vmem:[#allocation104_spill] sm:$0xff] }
 0x421   : > { %v12256_v18 = vsub.f32 %v12144_v25, %v15421_v41  ;;  %v12271_v41 = vsub.f32 %v12157_v9, %v15425_v33  ;;  %v12277_v25 = vsub.f32 %v12165_v37, %v15426_v1  ;;  %v3901_v1 = vadd.f32 %v15433_v21, %v15432_v16  ;;  %5915 = vmatpush1.msra.mxu0 %v12115_v30  ;;  %v15434_v37 = vld [vmem:[#allocation129_spill] sm:$0xff]  ;;  %v12300_v33 = vpop.f32.mrf.mxu0  ;;  %v15439_v9 = vld [vmem:[#allocation52_spill] sm:$0xff] }
 0x422   : > { %5892 = vmatprep.subr.mxu1 %v15434_v37  ;;  %15436 = vst [vmem:[#allocation194_spill] sm:$0xff] %v12297_v60  ;;  %5917 = vmatprep.subr.mxu0 %v12106_v44  ;;  %v15441_v50 = vand.u32 4294901760, %v12218_v47  ;;  %v6079_v44 = vand.u32 4294901760, %v12263_v62  ;;  %v12320_v16 = vsub.f32 %v4588_v32, %v12281_v4  ;;  %v15447_v62 = vld [vmem:[#allocation54_spill] sm:$0xff]  ;;  %v15449_v32 = vld [vmem:[#allocation32_spill] sm:$0xff]  ;;  %v15455_v4 = vld [vmem:[#allocation31_spill] sm:$0xff] }
 0x423   : > { %5894 = vmatpush2.msra.mxu1 %v15438_v38  ;;  %v12307_v37 = vadd.f32 %v15439_v9, %v3901_v1  ;;  %5919 = vmatpush1.msra.mxu0 %v12104_v49  ;;  %v6073_v30 = vand.u32 4294901760, %v12271_v41  ;;  %v12317_v38 = vsub.f32 %v4587_v40, %v12279_v7  ;;  %v12322_v9 = vpop.f32.mrf.mxu1  ;;  %v15444_v1 = vld [vmem:[#allocation128_spill] sm:$0xff]  ;;  %v15445_v41 = vmax.f32 %v15430_v27, 0.0  ;;  %v15456_v40 = vld [vmem:[#allocation105_spill] sm:$0xff] }
 0x424   : > { %5896 = vmatprep.subr.mxu1 %v15440_v53  ;;  %v6060_v22 = vsub.f32 %v12218_v47, %v15441_v50  ;;  %15443 = vst [vmem:[#allocation151_spill] sm:$0xff] %v12320_v16  ;;  %5921 = vmatprep.subr.mxu0 %v12094_v45  ;;  %v6067_v53 = vand.u32 4294901760, %v12277_v25  ;;  %v12333_v49 = vand.u32 4294901760, %v4591_v10  ;;  %v15450_v47 = vld [vmem:[#allocation37_spill] sm:$0xff]  ;;  %v15451_v45 = vld [vmem:[#allocation127_spill] sm:$0xff]  ;;  %v15453_v25 = vld [vmem:[#allocation156_spill] sm:$0xff] }
 0x425   : > { %15442 = vst [vmem:[#allocation197_spill] sm:$0xff] %v12317_v38  ;;  %5898 = vmatpush2.msra.mxu1 %v15444_v1  ;;  %v12330_v21 = vand.u32 4294901760, %v15445_v41  ;;  %v3903_v7 = vadd.f32 %v15450_v47, %v15449_v32  ;;  %5923 = vmatpush1.msra.mxu0 %v12082_v28  ;;  %v12339_v1 = vand.u32 4294901760, %v4592_v48  ;;  %v15454_v38 = vld [vmem:[#allocation47_spill] sm:$0xff]  ;;  %v4595_v16 = vmax.f32 %v15455_v4, 0.0  ;;  %v3970_v41 = vpop.f32.mrf.mxu0  ;;  %v15458_v32 = vld [vmem:[#allocation154_spill] sm:$0xff] }
 0x426   : > { %15448 = vst [vmem:[#allocation199_spill] sm:$0xff] %v12333_v49  ;;  %5900 = vmatprep.subr.mxu1 %v15451_v45  ;;  %v3910_v50 = vadd.f32 %v15454_v38, %v15453_v25  ;;  %5925 = vmatprep.subr.mxu0 %v12064_v55  ;;  %v12349_v47 = vsub.f32 %v11843_v17, %v15457_v6  ;;  %v13922_v28 = vmax.f32 %v15458_v32, 0.0  ;;  %v4596_v45 = vmax.f32 %v12307_v37, 0.0  ;;  %v15459_v25 = vld [vmem:[#allocation38_spill] sm:$0xff]  ;;  %v15460_v55 = vld [vmem:[#allocation163_spill] sm:$0xff]  ;;  %v4485_v17 = vpop.f32.mrf.mxu1 }
 0x427   : > { %15446 = vst [vmem:[#allocation196_spill] sm:$0xff] %v12330_v21  ;;  %15452 = vst [vmem:[#allocation200_spill] sm:$0xff] %v12339_v1  ;;  %5902 = vmatpush2.msra.mxu1 %v15456_v40  ;;  %5904 = vmatprep.mubr.f32.mxu1 %v15419_v42  ;;  %v6061_v38 = vand.u32 4294901760, %v6060_v22  ;;  %v3908_v60 = vadd.f32 %v15460_v55, %v15459_v25  ;;  %v15461_v40 = vld [vmem:[#allocation164_spill] sm:$0xff]  ;;  %v15462_v21 = vld [vmem:[#allocation178_spill] sm:$0xff]  ;;  %v15463_v37 = vmax.f32 %v15447_v62, 0.0 }
 0x428   : > { %5927 = vmatpush1.msra.mxu0 %v12049_v5  ;;  %v12359_v27 = vadd.f32 %v15461_v40, %v3903_v7  ;;  %v12362_v6 = vadd.f32 %v15462_v21, %v3910_v50  ;;  %5906 = vmatmul.mubr.f32.vlgmr.msra.gmra.mxu1 %v15423_v13  ;;  %v12372_v4 = vsub.f32 %v4591_v10, %v12333_v49  ;;  %v15466_v55 = vld [vmem:[#allocation66_spill] sm:$0xff]  ;;  %v12380_v50 = vand.u32 4294901760, %v4595_v16  ;;  %v15469_v25 = vld [vmem:[#allocation53_spill] sm:$0xff]  ;;  %v15471_v42 = vld [vmem:[#allocation35_spill] sm:$0xff] }
 0x429   : > { %5929 = vmatprep.subr.mxu0 %v12041_v3  ;;  %v12369_v22 = vand.u32 4294901760, %v15463_v37  ;;  %6062 = vmatprep.subr.mxu1 %v6061_v38  ;;  %v12378_v13 = vsub.f32 %v4592_v48, %v12339_v1  ;;  %v12383_v40 = vadd.f32 %v15469_v25, %v3908_v60  ;;  %v3972_v37 = vpop.f32.mrf.mxu0  ;;  %v12389_v38 = vand.u32 4294901760, %v13922_v28  ;;  %v15472_v21 = vld [vmem:[#allocation137_spill] sm:$0xff]  ;;  %v4487_v3 = vpop.f32.mrf.mxu1  ;;  %v15481_v5 = vld [vmem:[#allocation134_spill] sm:$0xff] }
 0x42a   : > { %15465 = vst [vmem:[#allocation152_spill] sm:$0xff] %v12372_v4  ;;  %5931 = vmatpush1.msra.mxu0 %v12039_v51  ;;  %15468 = vst [vmem:[#allocation198_spill] sm:$0xff] %v12380_v50  ;;  %6068 = vmatpush1.msra.mxu1 %v6067_v53  ;;  %v3915_v7 = vadd.f32 %v15472_v21, %v15471_v42  ;;  %v12393_v48 = vand.u32 4294901760, %v4596_v45  ;;  %v15474_v60 = vand.u32 4294901760, %v11704_v63  ;;  %v15475_v25 = vld [vmem:[#allocation41_spill] sm:$0xff]  ;;  %v4599_v28 = vmax.f32 %v12362_v6, 0.0 }
 0x42b   : > { %15464 = vst [vmem:[#allocation30_spill] sm:$0xff] %v12369_v22  ;;  %15467 = vst [vmem:[#allocation24_spill] sm:$0xff] %v12378_v13  ;;  %5933 = vmatprep.subr.mxu0 %v12026_v58  ;;  %6074 = vmatprep.subr.mxu1 %v6073_v30  ;;  %v15476_v58 = vld [vmem:[#allocation7_spill] sm:$0xff]  ;;  %v15477_v42 = vmax.f32 %v15466_v55, 0.0  ;;  %v15483_v6 = vand.u32 4294901760, %v12256_v18  ;;  %v15485_v30 = vld [vmem:[#allocation36_spill] sm:$0xff] }
 0x42c   : > { %15470 = vst [vmem:[#allocation136_spill] sm:$0xff] %v12389_v38  ;;  %15473 = vst [vmem:[#allocation131_spill] sm:$0xff] %v12393_v48  ;;  %5935 = vmatpush1.msra.mxu0 %v12024_v54  ;;  %v12399_v53 = vsub.f32 %v11704_v63, %v15474_v60  ;;  %v3917_v10 = vadd.f32 %v15476_v58, %v15475_v25  ;;  %6080 = vmatpush1.msra.mxu1 %v6079_v44  ;;  %v15479_v54 = vld [vmem:[#allocation157_spill] sm:$0xff]  ;;  %v15482_v25 = vld [vmem:[#allocation162_spill] sm:$0xff] }
 0x42d   : > { %5937 = vmatprep.subr.mxu0 %v12012_v24  ;;  %v12409_v21 = vand.u32 4294901760, %v15477_v42  ;;  %v15480_v60 = vld [vmem:[#allocation9_spill] sm:$0xff]  ;;  %v12416_v58 = vadd.f32 %v15481_v5, %v3915_v7  ;;  %v3973_v51 = vadd.f32 %v3972_v37, %v15482_v25  ;;  %6086 = vmatprep.subr.mxu1 %v15483_v6  ;;  %v12423_v44 = vsub.f32 %v4595_v16, %v12380_v50  ;;  %v15486_v24 = vld [vmem:[#allocation106_spill] sm:$0xff] }
 0x42e   : > { %v12413_v63 = vadd.f32 %v15480_v60, %v15479_v54  ;;  %5939 = vmatpush1.msra.mxu0 %v11952_v26  ;;  %v13935_v42 = vmax.f32 %v12383_v40, 0.0  ;;  %v12428_v49 = vadd.f32 %v15486_v24, %v15485_v30  ;;  %v15487_v54 = vld [vmem:[#allocation50_spill] sm:$0xff]  ;;  %v15488_v5 = vand.u32 4294901760, %v12240_v35  ;;  %v15490_v7 = vld [vmem:[#allocation45_spill] sm:$0xff] }
 0x42f   : > { %15478 = vst [vmem:[#allocation133_spill] sm:$0xff] %v12409_v21  ;;  %15484 = vst [vmem:[#allocation5_spill] sm:$0xff] %v12423_v44  ;;  %v3971_v60 = vadd.f32 %v3970_v41, %v15487_v54  ;;  %5941 = vmatprep.subr.mxu0 %v11901_v52  ;;  %v12435_v18 = vsub.f32 %v4596_v45, %v12393_v48  ;;  %v3966_v16 = vadd.f32 %v12300_v33, %v15490_v7  ;;  %v15495_v45 = vld [vmem:[#allocation161_spill] sm:$0xff]  ;;  %v15524_v24 = vld [vmem:[#allocation138_spill] sm:$0xff] }
 0x430   : > { %6092 = vmatpush1.msra.mxu1 %v15488_v5  ;;  %v12439_v37 = vadd.f32 %v4487_v3, %v3973_v51  ;;  %v15491_v25 = vand.u32 4294901760, %v12235_v34  ;;  %5943 = vmatpush1.msra.mxu0 %v11825_v59  ;;  %v15492_v35 = vmax.f32 %v12359_v27, 0.0  ;;  %v12449_v30 = vand.u32 4294901760, %v4599_v28  ;;  %v15497_v3 = vld [vmem:[#allocation42_spill] sm:$0xff]  ;;  %v15498_v5 = vld [vmem:[#allocation49_spill] sm:$0xff] }
 0x431   : > { %15489 = vst [vmem:[#allocation27_spill] sm:$0xff] %v12435_v18  ;;  %v3964_v6 = vadd.f32 %v12249_v0, %v15495_v45  ;;  %v12453_v54 = vadd.f32 %v4485_v17, %v3971_v60  ;;  %v15496_v51 = vand.u32 4294901760, %v12214_v43  ;;  %5945 = vmatprep.subr.mxu0 %v11804_v61  ;;  %v12460_v34 = vadd.f32 %v11726_v57, %v15497_v3  ;;  %v15501_v0 = vld [vmem:[#allocation158_spill] sm:$0xff]  ;;  %v15502_v60 = vld [vmem:[#allocation43_spill] sm:$0xff]  ;;  %v15509_v3 = vld [vmem:[#allocation76_spill] sm:$0xff] }
 0x432   : > { %6098 = vmatprep.subr.mxu1 %v15491_v25  ;;  %v12447_v41 = vand.u32 4294901760, %v15492_v35  ;;  %15494 = vst [vmem:[#allocation177_spill] sm:$0xff] %v12449_v30  ;;  %v4600_v33 = vmax.f32 %v12416_v58, 0.0  ;;  %v3959_v7 = vadd.f32 %v12199_v15, %v15498_v5  ;;  %v12466_v25 = vadd.f32 %v12322_v9, %v3966_v16  ;;  %5947 = vmatpush1.msra.mxu0 %v11751_v29  ;;  %v15505_v35 = vld [vmem:[#allocation160_spill] sm:$0xff]  ;;  %v15510_v5 = vld [vmem:[#allocation150_spill] sm:$0xff] }
 0x433   : > { %6104 = vmatpush1.msra.mxu1 %v15496_v51  ;;  %v15499_v17 = vand.u32 4294901760, %v12208_v31  ;;  %v12473_v43 = vand.u32 4294901760, %v13935_v42  ;;  %v3931_v57 = vadd.f32 %v11770_v20, %v15501_v0  ;;  %v3957_v58 = vadd.f32 %v12146_v12, %v15502_v60  ;;  %5949 = vmatprep.subr.mxu0 %v11712_v56  ;;  %v15504_v31 = vld [vmem:[#allocation135_spill] sm:$0xff]  ;;  %v15514_v0 = vld [vmem:[#allocation40_spill] sm:$0xff]  ;;  %v15515_v60 = vld [vmem:[#allocation73_spill] sm:$0xff] }
 0x434   : > { %15493 = vst [vmem:[#allocation12_spill] sm:$0xff] %v12447_v41  ;;  %v12480_v15 = vadd.f32 %v12283_v11, %v3964_v6  ;;  %v15503_v9 = vand.u32 4294901760, %v12197_v39  ;;  %v12486_v16 = vadd.f32 %v15504_v31, %v3917_v10  ;;  %v3952_v45 = vadd.f32 %v12096_v8, %v15505_v35  ;;  %v15507_v11 = vld [vmem:[#allocation100_spill] sm:$0xff]  ;;  %v15508_v6 = vld [vmem:[#allocation46_spill] sm:$0xff]  ;;  %v15549_v56 = vld [vmem:[#allocation111_spill] sm:$0xff] }
 0x435   : > { %6110 = vmatprep.subr.mxu1 %v15499_v17  ;;  %15500 = vst [vmem:[#allocation8_spill] sm:$0xff] %v12473_v43  ;;  %v12491_v51 = vadd.f32 %v12227_v46, %v3959_v7  ;;  %v4617_v20 = vmax.f32 %v12439_v37, 0.0  ;;  %v15506_v12 = vand.u32 4294901760, %v12187_v36  ;;  %5951 = vmatpush1.msra.mxu0 %v15507_v11  ;;  %v12498_v39 = vsub.f32 %v4599_v28, %v12449_v30  ;;  %v15511_v46 = vld [vmem:[#allocation190_spill] sm:$0xff]  ;;  %v15516_v28 = vld [vmem:[#allocation20_spill] sm:$0xff] }
 0x436   : > { %6116 = vmatpush1.msra.mxu1 %v15503_v9  ;;  %v3950_v10 = vadd.f32 %v15509_v3, %v15508_v6  ;;  %v12503_v17 = vadd.f32 %v15510_v5, %v3957_v58  ;;  %v4616_v8 = vmax.f32 %v12453_v54, 0.0  ;;  %v15512_v7 = vand.u32 4294901760, %v15511_v46  ;;  %v15513_v37 = vld [vmem:[#allocation114_spill] sm:$0xff]  ;;  %v15519_v6 = vld [vmem:[#allocation112_spill] sm:$0xff]  ;;  %v15520_v54 = vld [vmem:[#allocation39_spill] sm:$0xff] }
 0x437   : > { %6122 = vmatprep.subr.mxu1 %v15506_v12  ;;  %5953 = vmatprep.subr.mxu0 %v15513_v37  ;;  %v12509_v36 = vand.u32 4294901760, %v4600_v33  ;;  %v3945_v9 = vadd.f32 %v15515_v60, %v15514_v0  ;;  %v12514_v31 = vadd.f32 %v15516_v28, %v3952_v45  ;;  %v4615_v35 = vmax.f32 %v12466_v25, 0.0  ;;  %v15517_v12 = vld [vmem:[#allocation195_spill] sm:$0xff]  ;;  %v15521_v3 = vld [vmem:[#allocation21_spill] sm:$0xff]  ;;  %v15527_v25 = vld [vmem:[#allocation122_spill] sm:$0xff] }
 0x438   : > { %6128 = vmatpush1.msra.mxu1 %v15512_v7  ;;  %v15518_v58 = vand.u32 4294901760, %v15517_v12  ;;  %5955 = vmatpush1.msra.mxu0 %v15519_v6  ;;  %v3936_v5 = vadd.f32 %v15521_v3, %v15520_v54  ;;  %v15522_v46 = vld [vmem:[#allocation159_spill] sm:$0xff]  ;;  %v12525_v37 = vadd.f32 %v15524_v24, %v3950_v10  ;;  %v4614_v0 = vmax.f32 %v12480_v15, 0.0  ;;  %v15528_v28 = vld [vmem:[#allocation44_spill] sm:$0xff]  ;;  %v15534_v10 = vld [vmem:[#allocation118_spill] sm:$0xff] }
 0x439   : > { %v15523_v7 = vld [vmem:[#allocation71_spill] sm:$0xff]  ;;  %5957 = vmatprep.subr.mxu0 %v15527_v25  ;;  %v15529_v12 = vld [vmem:[#allocation72_spill] sm:$0xff]  ;;  %v4613_v54 = vmax.f32 %v12491_v51, 0.0  ;;  %v12537_v3 = vand.u32 4294901760, %v4617_v20  ;;  %v4611_v15 = vmax.f32 %v12514_v31, 0.0  ;;  %v15543_v25 = vld [vmem:[#allocation102_spill] sm:$0xff] }
 0x43a   : > { %6134 = vmatprep.subr.mxu1 %v15518_v58  ;;  %v3943_v42 = vadd.f32 %v15523_v7, %v15522_v46  ;;  %v15525_v45 = vld [vmem:[#allocation191_spill] sm:$0xff]  ;;  %v3938_v58 = vadd.f32 %v15529_v12, %v15528_v28  ;;  %v15530_v6 = vld [vmem:[#allocation68_spill] sm:$0xff]  ;;  %v15532_v46 = vld [vmem:[#allocation186_spill] sm:$0xff]  ;;  %5959 = vmatpush1.msra.mxu0 %v15534_v10  ;;  %v12547_v28 = vand.u32 4294901760, %v4616_v8 }
 0x43b   : > { %v15526_v60 = vand.u32 4294901760, %v15525_v45  ;;  %v12534_v11 = vadd.f32 %v15530_v6, %v3945_v9  ;;  %15531 = vst [vmem:[#allocation176_spill] sm:$0xff] %v12537_v3  ;;  %v15533_v24 = vand.u32 4294901760, %v15532_v46  ;;  %v15535_v7 = vld [vmem:[#allocation63_spill] sm:$0xff]  ;;  %v15536_v9 = vld [vmem:[#allocation64_spill] sm:$0xff] }
 0x43c   : > { %v12544_v45 = vadd.f32 %v15535_v7, %v3943_v42  ;;  %v15537_v6 = vand.u32 4294901760, %v15536_v9  ;;  %v15538_v51 = vld [vmem:[#allocation108_spill] sm:$0xff]  ;;  %v15539_v12 = vld [vmem:[#allocation123_spill] sm:$0xff]  ;;  %v12560_v42 = vand.u32 4294901760, %v4615_v35  ;;  %v15541_v7 = vld [vmem:[#allocation61_spill] sm:$0xff]  ;;  %v12566_v9 = vsub.f32 %v4600_v33, %v12509_v36 }
 0x43d   : > { %6140 = vmatpush1.msra.mxu1 %v15526_v60  ;;  %v4612_v60 = vmax.f32 %v12503_v17, 0.0  ;;  %5961 = vmatprep.subr.mxu0 %v15538_v51  ;;  %v12554_v46 = vadd.f32 %v15539_v12, %v12413_v63  ;;  %v15542_v17 = vand.u32 4294901760, %v15541_v7  ;;  %v4610_v63 = vmax.f32 %v12525_v37, 0.0  ;;  %v15548_v31 = vld [vmem:[#allocation95_spill] sm:$0xff]  ;;  %v15554_v37 = vld [vmem:[#allocation88_spill] sm:$0xff] }
 0x43e   : > { %6146 = vmatprep.subr.mxu1 %v15533_v24  ;;  %v15540_v24 = vld [vmem:[#allocation82_spill] sm:$0xff]  ;;  %5963 = vmatpush1.msra.mxu0 %v15543_v25  ;;  %v12572_v12 = vand.u32 4294901760, %v4614_v0  ;;  %v12578_v7 = vadd.f32 %v15549_v56, %v3931_v57  ;;  %v12581_v25 = vand.u32 4294901760, %v4613_v54  ;;  %v12584_v33 = vsub.f32 %v4617_v20, %v12537_v3  ;;  %v15560_v20 = vld [vmem:[#allocation141_spill] sm:$0xff] }
 0x43f   : > { %6152 = vmatpush1.msra.mxu1 %v15537_v6  ;;  %v12557_v10 = vadd.f32 %v15540_v24, %v3938_v58  ;;  %v15544_v6 = vld [vmem:[#allocation86_spill] sm:$0xff]  ;;  %5965 = vmatprep.subr.mxu0 %v15548_v31  ;;  %v4608_v31 = vmax.f32 %v12544_v45, 0.0  ;;  %v12594_v56 = vand.u32 4294901760, %v4612_v60  ;;  %v12597_v57 = vsub.f32 %v4616_v8, %v12547_v28  ;;  %v15566_v8 = vld [vmem:[#allocation103_spill] sm:$0xff] }
 0x440   : > { %6158 = vmatprep.subr.mxu1 %v15542_v17  ;;  %v12569_v51 = vadd.f32 %v15544_v6, %v3936_v5  ;;  %15545 = vst [vmem:[#allocation139_spill] sm:$0xff] %v12572_v12  ;;  %v15546_v58 = vld [vmem:[#allocation74_spill] sm:$0xff]  ;;  %v4609_v17 = vmax.f32 %v12534_v11, 0.0  ;;  %15550 = vst [vmem:[#allocation179_spill] sm:$0xff] %v12581_v25  ;;  %v15552_v5 = vld [vmem:[#allocation147_spill] sm:$0xff]  ;;  %5967 = vmatpush1.msra.mxu0 %v15554_v37  ;;  %v12610_v45 = vsub.f32 %v4615_v35, %v12560_v42 }
 0x441   : > { %v15547_v24 = vand.u32 4294901760, %v15546_v58  ;;  %15551 = vst [vmem:[#allocation132_spill] sm:$0xff] %v12584_v33  ;;  %v15553_v6 = vand.u32 4294901760, %v15552_v5  ;;  %v15555_v58 = vld [vmem:[#allocation99_spill] sm:$0xff]  ;;  %15556 = vst [vmem:[#allocation172_spill] sm:$0xff] %v12594_v56  ;;  %v15558_v11 = vld [vmem:[#allocation101_spill] sm:$0xff]  ;;  %5969 = vmatprep.subr.mxu0 %v15560_v20 }
 0x442   : > { %15557 = vst [vmem:[#allocation6_spill] sm:$0xff] %v12597_v57  ;;  %v15559_v29 = vand.u32 4294901760, %v15558_v11  ;;  %v15561_v5 = vld [vmem:[#allocation96_spill] sm:$0xff]  ;;  %v4607_v37 = vmax.f32 %v12557_v10, 0.0  ;;  %15563 = vst [vmem:[#allocation175_spill] sm:$0xff] %v12610_v45  ;;  %5971 = vmatpush1.msra.mxu0 %v15566_v8  ;;  %v4606_v20 = vmax.f32 %v12569_v51, 0.0  ;;  %v12623_v10 = vsub.f32 %v4614_v0, %v12572_v12 }
 0x443   : > { %6164 = vmatpush1.msra.mxu1 %v15547_v24  ;;  %v12591_v24 = vadd.f32 %v15555_v58, %v12460_v34  ;;  %v12607_v34 = vand.u32 4294901760, %v4611_v15  ;;  %v15564_v58 = vld [vmem:[#allocation97_spill] sm:$0xff]  ;;  %v15571_v35 = vld [vmem:[#allocation91_spill] sm:$0xff]  ;;  %v12632_v8 = vsub.f32 %v4613_v54, %v12581_v25 }
 0x444   : > { %6170 = vmatprep.subr.mxu1 %v15553_v6  ;;  %v12604_v6 = vadd.f32 %v15561_v5, %v12428_v49  ;;  %v15565_v61 = vand.u32 4294901760, %v15564_v58  ;;  %v12620_v49 = vand.u32 4294901760, %v4610_v63  ;;  %15568 = vst [vmem:[#allocation170_spill] sm:$0xff] %v12623_v10  ;;  %v15569_v5 = vld [vmem:[#allocation109_spill] sm:$0xff]  ;;  %5973 = vmatprep.subr.mxu0 %v15571_v35  ;;  %v12629_v58 = vand.u32 4294901760, %v4609_v17  ;;  %v15576_v35 = vld [vmem:[#allocation16_spill] sm:$0xff] }
 0x445   : > { %6176 = vmatpush1.msra.mxu1 %v15559_v29  ;;  %15562 = vst [vmem:[#allocation180_spill] sm:$0xff] %v12607_v34  ;;  %v15567_v29 = vmax.f32 %v12486_v16, 0.0  ;;  %v15570_v59 = vand.u32 4294901760, %v15569_v5  ;;  %v15574_v51 = vld [vmem:[#allocation125_spill] sm:$0xff]  ;;  %v4604_v26 = vmax.f32 %v12591_v24, 0.0  ;;  %v12639_v5 = vand.u32 4294901760, %v4608_v31 }
 0x446   : > { %6182 = vmatprep.subr.mxu1 %v15565_v61  ;;  %v4605_v61 = vmax.f32 %v12578_v7, 0.0  ;;  %5975 = vmatpush1.msra.mxu0 %v15574_v51  ;;  %v15577_v4 = vand.u32 4294901760, %v15576_v35  ;;  %v12649_v54 = vand.u32 4294901760, %v4607_v37  ;;  %v15580_v24 = vld [vmem:[#allocation143_spill] sm:$0xff]  ;;  %v4602_v7 = vmax.f32 %v12554_v46, 0.0 }
 0x447   : > { %v12617_v11 = vand.u32 4294901760, %v15567_v29  ;;  %6188 = vmatpush1.msra.mxu1 %v15570_v59  ;;  %v15572_v29 = vld [vmem:[#allocation84_spill] sm:$0xff]  ;;  %15575 = vst [vmem:[#allocation174_spill] sm:$0xff] %v12639_v5  ;;  %v12642_v59 = vsub.f32 %v4612_v60, %v12594_v56  ;;  %5977 = vmatprep.subr.mxu0 %v12537_v3  ;;  %v15581_v0 = vand.u32 4294901760, %v15580_v24  ;;  %v12659_v35 = vand.u32 4294901760, %v4606_v20  ;;  %v15583_v3 = vld [vmem:[#allocation79_spill] sm:$0xff] }
 0x448   : > { %v15573_v52 = vand.u32 4294901760, %v15572_v29  ;;  %15578 = vst [vmem:[#allocation169_spill] sm:$0xff] %v12649_v54  ;;  %v12652_v29 = vsub.f32 %v4611_v15, %v12607_v34  ;;  %5979 = vmatpush2.msra.mxu0 %v12547_v28  ;;  %v15584_v51 = vand.u32 4294901760, %v15583_v3  ;;  %v12668_v15 = vand.u32 4294901760, %v4605_v61 }
 0x449   : > { %5981 = vmatprep.subr.mxu0 %v12560_v42  ;;  %v15587_v24 = vand.u32 4294901760, %v11873_v19  ;;  %v15588_v46 = vand.u32 4294901760, %v12584_v33  ;;  %v12680_v3 = vand.u32 4294901760, %v4604_v26 }
 0x44a   : > { %6194 = vmatprep.subr.mxu1 %v15573_v52  ;;  %v4603_v52 = vmax.f32 %v12604_v6, 0.0  ;;  %15579 = vst [vmem:[#allocation168_spill] sm:$0xff] %v12652_v29  ;;  %15585 = vst [vmem:[#allocation167_spill] sm:$0xff] %v12668_v15  ;;  %5983 = vmatpush2.msra.mxu0 %v12572_v12  ;;  %v15593_v6 = vand.u32 4294901760, %v12349_v47 }
 0x44b   : > { %6200 = vmatpush1.msra.mxu1 %v15577_v4  ;;  %v12662_v4 = vsub.f32 %v4610_v63, %v12620_v49  ;;  %v6252_v63 = vsub.f32 %v12584_v33, %v15588_v46  ;;  %15589 = vst [vmem:[#allocation165_spill] sm:$0xff] %v12680_v3  ;;  %5985 = vmatprep.subr.mxu0 %v12581_v25  ;;  %v15599_v25 = vand.u32 4294901760, %v12632_v8 }
 0x44c   : > { %6206 = vmatprep.subr.mxu1 %v15581_v0  ;;  %v12671_v0 = vsub.f32 %v4609_v17, %v12629_v58  ;;  %v15591_v17 = vand.u32 4294901760, %v12597_v57  ;;  %v12692_v12 = vand.u32 4294901760, %v4603_v52  ;;  %v12695_v46 = vsub.f32 %v4607_v37, %v12649_v54  ;;  %5987 = vmatpush2.msra.mxu0 %v12594_v56 }
 0x44d   : > { %15582 = vst [vmem:[#allocation166_spill] sm:$0xff] %v12662_v4  ;;  %6212 = vmatpush1.msra.mxu1 %v15584_v51  ;;  %v12683_v51 = vsub.f32 %v4608_v31, %v12639_v5  ;;  %v15594_v31 = vand.u32 4294901760, %v12610_v45  ;;  %v15595_v37 = vand.u32 4294901760, %v12623_v10  ;;  %5989 = vmatprep.subr.mxu0 %v12607_v34  ;;  %v6276_v56 = vsub.f32 %v12632_v8, %v15599_v25 }
 0x44e   : > { %15586 = vst [vmem:[#allocation4_spill] sm:$0xff] %v12671_v0  ;;  %6218 = vmatprep.subr.mxu1 %v15587_v24  ;;  %v6258_v19 = vsub.f32 %v12597_v57, %v15591_v17  ;;  %v15592_v24 = vand.u32 4294901760, %v11857_v14  ;;  %v12704_v14 = vand.u32 4294901760, %v4602_v7  ;;  %v15598_v17 = vand.u32 4294901760, %v12399_v53  ;;  %5991 = vmatpush2.msra.mxu0 %v12620_v49 }
 0x44f   : > { %15590 = vst [vmem:[#allocation121_spill] sm:$0xff] %v12683_v51  ;;  %v6264_v60 = vsub.f32 %v12610_v45, %v15594_v31  ;;  %v6270_v47 = vsub.f32 %v12623_v10, %v15595_v37  ;;  %v12717_v31 = vsub.f32 %v4605_v61, %v12668_v15  ;;  %v15601_v61 = vand.u32 4294901760, %v12642_v59  ;;  %5993 = vmatprep.subr.mxu0 %v12629_v58 }
 0x450   : > { %6224 = vmatpush1.msra.mxu1 %v15592_v24  ;;  %v12707_v24 = vsub.f32 %v4606_v20, %v12659_v35  ;;  %v6253_v20 = vand.u32 4294901760, %v6252_v63  ;;  %v15602_v53 = vand.u32 4294901760, %v11779_v2  ;;  %v6259_v63 = vand.u32 4294901760, %v6258_v19  ;;  %5995 = vmatpush2.msra.mxu0 %v12639_v5  ;;  %v4621_v2 = vld [vmem:[%s13277_s3 + $0x18] sm:$0xff] }
 0x451   : > { %6230 = vmatprep.subr.mxu1 %v15593_v6  ;;  %v15596_v6 = vand.u32 4294901760, %v11840_v23  ;;  %15597 = vst [vmem:[#allocation55_spill] sm:$0xff] %v12717_v31  ;;  %v12727_v23 = vsub.f32 %v4604_v26, %v12680_v3  ;;  %v6282_v34 = vsub.f32 %v12642_v59, %v15601_v61  ;;  %v6265_v26 = vand.u32 4294901760, %v6264_v60  ;;  %5997 = vmatprep.subr.mxu0 %v12649_v54 }
 0x452   : > { %v15603_v25 = vand.u32 4294901760, %v12652_v29  ;;  %v12748_v61 = vsub.f32 %v4602_v7, %v12704_v14  ;;  %v15605_v19 = vand.u32 4294901760, %v12662_v4  ;;  %v6271_v60 = vand.u32 4294901760, %v6270_v47  ;;  %5999 = vmatpush2.msra.mxu0 %v12659_v35 }
 0x453   : > { %6236 = vmatpush1.msra.mxu1 %v15596_v6  ;;  %15600 = vst [vmem:[#allocation113_spill] sm:$0xff] %v12727_v23  ;;  %v6277_v7 = vand.u32 4294901760, %v6276_v56  ;;  %v15609_v54 = vand.u32 4294901760, %v12683_v51  ;;  %6001 = vmatprep.subr.mxu0 %v12668_v15 }
 0x454   : > { %6242 = vmatprep.subr.mxu1 %v15598_v17  ;;  %v12737_v17 = vsub.f32 %v4603_v52, %v12692_v12  ;;  %v6288_v6 = vsub.f32 %v12652_v29, %v15603_v25  ;;  %15604 = vst [vmem:[#allocation173_spill] sm:$0xff] %v12748_v61  ;;  %v15606_v25 = vmax.f32 %v12486_v16, 0.0  ;;  %v15608_v52 = vand.u32 4294901760, %v12671_v0  ;;  %6003 = vmatpush2.msra.mxu0 %v12680_v3 }
 0x455   : > { %6248 = vmatpush1.msra.mxu1 %v15602_v53  ;;  %v4620_v53 = vld [vmem:[%s13277_s3 + $0x10] sm:$0xff]  ;;  %v6306_v5 = vsub.f32 %v12683_v51, %v15609_v54  ;;  %v6283_v16 = vand.u32 4294901760, %v6282_v34  ;;  %v15613_v54 = vmax.f32 %v12383_v40, 0.0  ;;  %6005 = vmatprep.subr.mxu0 %v12692_v12 }
 0x456   : > { %6254 = vmatprep.subr.mxu1 %v6253_v20  ;;  %v6294_v20 = vsub.f32 %v12662_v4, %v15605_v19  ;;  %v12761_v37 = vsub.f32 %v15606_v25, %v12617_v11  ;;  %v6289_v56 = vand.u32 4294901760, %v6288_v6  ;;  %v12780_v19 = vand.u32 4294901760, %v4620_v53  ;;  %6007 = vmatpush2.msra.mxu0 %v12704_v14 }
 0x457   : > { %6260 = vmatpush2.msra.mxu1 %v6259_v63  ;;  %v6300_v63 = vsub.f32 %v12671_v0, %v15608_v52  ;;  %v15611_v52 = vand.u32 4294901760, %v12695_v46  ;;  %6009 = vmatprep.subr.mxu0 %v12617_v11 }
 0x458   : > { %15607 = vst [vmem:[#allocation67_spill] sm:$0xff] %v12761_v37  ;;  %6266 = vmatprep.subr.mxu1 %v6265_v26  ;;  %v12773_v26 = vand.u32 4294901760, %v4621_v2  ;;  %15612 = vst [vmem:[#allocation59_spill] sm:$0xff] %v12780_v19  ;;  %v6295_v6 = vand.u32 4294901760, %v6294_v20  ;;  %6011 = vmatpush2.msra.mxu0 %v12509_v36  ;;  %v12816_v15 = vsub.f32 %v4620_v53, %v12780_v19 }
 0x459   : > { %6272 = vmatpush2.msra.mxu1 %v6271_v60  ;;  %v6312_v25 = vsub.f32 %v12695_v46, %v15611_v52  ;;  %v12785_v60 = vsub.f32 %v15613_v54, %v12473_v43  ;;  %v15615_v52 = vmax.f32 %v12359_v27, 0.0  ;;  %v6301_v40 = vand.u32 4294901760, %v6300_v63  ;;  %6013 = vmatprep.subr.mxu0 %v12449_v30 }
 0x45a   : > { %15610 = vst [vmem:[#allocation60_spill] sm:$0xff] %v12773_v26  ;;  %6278 = vmatprep.subr.mxu1 %v6277_v7  ;;  %v15614_v7 = vand.u32 4294901760, %v12707_v24  ;;  %v15616_v54 = vand.u32 4294901760, %v12717_v31  ;;  %v6307_v27 = vand.u32 4294901760, %v6306_v5  ;;  %15620 = vst [vmem:[#allocation29_spill] sm:$0xff] %v12816_v15  ;;  %6015 = vmatpush2.msra.mxu0 %v12473_v43 }
 0x45b   : > { %6284 = vmatpush2.msra.mxu1 %v6283_v16  ;;  %v12795_v47 = vsub.f32 %v15615_v52, %v12447_v41  ;;  %v6313_v63 = vand.u32 4294901760, %v6312_v25  ;;  %v15619_v52 = vand.u32 4294901760, %v12737_v17  ;;  %6017 = vmatprep.subr.mxu0 %v12447_v41  ;;  %v15639_v16 = vand.u32 4294901760, %v12816_v15 }
 0x45c   : > { %v6318_v3 = vsub.f32 %v12707_v24, %v15614_v7  ;;  %6290 = vmatprep.subr.mxu1 %v6289_v56  ;;  %v6324_v34 = vsub.f32 %v12717_v31, %v15616_v54  ;;  %v15617_v7 = vand.u32 4294901760, %v12727_v23  ;;  %v12808_v56 = vsub.f32 %v4621_v2, %v12773_v26  ;;  %6019 = vmatpush2.msra.mxu0 %v12393_v48  ;;  %v15633_v48 = vld [vmem:[#allocation75_spill] sm:$0xff] }
 0x45d   : > { %6296 = vmatpush2.msra.mxu1 %v6295_v6  ;;  %v6336_v54 = vsub.f32 %v12737_v17, %v15619_v52  ;;  %v15621_v6 = vmax.f32 %v15466_v55, 0.0  ;;  %v15624_v52 = vmax.f32 %v15458_v32, 0.0  ;;  %6021 = vmatprep.subr.mxu0 %v12380_v50 }
 0x45e   : > { %v6330_v20 = vsub.f32 %v12727_v23, %v15617_v7  ;;  %15618 = vst [vmem:[#allocation153_spill] sm:$0xff] %v12808_v56  ;;  %6302 = vmatprep.subr.mxu1 %v6301_v40  ;;  %v15623_v40 = vand.u32 4294901760, %v12748_v61  ;;  %v6319_v7 = vand.u32 4294901760, %v6318_v3  ;;  %v6325_v55 = vand.u32 4294901760, %v6324_v34  ;;  %6023 = vmatpush2.msra.mxu0 %v12409_v21 }
 0x45f   : > { %v12821_v5 = vsub.f32 %v15621_v6, %v12409_v21  ;;  %6308 = vmatpush2.msra.mxu1 %v6307_v27  ;;  %v12831_v53 = vsub.f32 %v15624_v52, %v12389_v38  ;;  %v15626_v6 = vand.u32 4294901760, %v12761_v37  ;;  %v6337_v34 = vand.u32 4294901760, %v6336_v54  ;;  %6025 = vmatprep.subr.mxu0 %v12389_v38  ;;  %v15641_v38 = vld [vmem:[#allocation194_spill] sm:$0xff] }
 0x460   : > { %v6342_v25 = vsub.f32 %v12748_v61, %v15623_v40  ;;  %6314 = vmatprep.subr.mxu1 %v6313_v63  ;;  %v15627_v40 = vand.u32 4294901760, %v12566_v9  ;;  %v6331_v32 = vand.u32 4294901760, %v6330_v20  ;;  %v15628_v52 = vand.u32 4294901760, %v12498_v39  ;;  %6027 = vmatpush2.msra.mxu0 %v12339_v1  ;;  %v15646_v1 = vld [vmem:[#allocation199_spill] sm:$0xff] }
 0x461   : > { %15622 = vst [vmem:[#allocation171_spill] sm:$0xff] %v12821_v5  ;;  %15625 = vst [vmem:[#allocation65_spill] sm:$0xff] %v12831_v53  ;;  %v6348_v2 = vsub.f32 %v12761_v37, %v15626_v6  ;;  %6320 = vmatpush2.msra.mxu1 %v6319_v7  ;;  %v15629_v7 = vmax.f32 %v15447_v62, 0.0  ;;  %v15634_v27 = vmax.f32 %v15633_v48, 0.0  ;;  %6029 = vmatprep.subr.mxu0 %v15646_v1  ;;  %v15647_v21 = vand.u32 4294901760, %v12831_v53  ;;  %v15652_v1 = vld [vmem:[#allocation197_spill] sm:$0xff] }
 0x462   : > { %v6354_v3 = vsub.f32 %v12566_v9, %v15627_v40  ;;  %6326 = vmatprep.subr.mxu1 %v6325_v55  ;;  %v6360_v6 = vsub.f32 %v12498_v39, %v15628_v52  ;;  %v15631_v55 = vand.u32 4294901760, %v12785_v60  ;;  %v6343_v54 = vand.u32 4294901760, %v6342_v25  ;;  %v15632_v52 = vld [vmem:[#allocation196_spill] sm:$0xff]  ;;  %6031 = vmatpush2.msra.mxu0 %v12369_v22 }
 0x463   : > { %v12853_v40 = vsub.f32 %v15629_v7, %v12369_v22  ;;  %6332 = vmatpush2.msra.mxu1 %v6331_v32  ;;  %v12863_v41 = vsub.f32 %v15634_v27, %v15632_v52  ;;  %v6349_v62 = vand.u32 4294901760, %v6348_v2  ;;  %v15635_v7 = vand.u32 4294901760, %v12795_v47  ;;  %6033 = vmatprep.subr.mxu0 %v15632_v52 }
 0x464   : > { %v6366_v63 = vsub.f32 %v12785_v60, %v15631_v55  ;;  %6338 = vmatprep.subr.mxu1 %v6337_v34  ;;  %v15636_v55 = vand.u32 4294901760, %v12435_v18  ;;  %v6355_v48 = vand.u32 4294901760, %v6354_v3  ;;  %v15637_v27 = vand.u32 4294901760, %v12808_v56  ;;  %v15642_v3 = vld [vmem:[#allocation33_spill] sm:$0xff]  ;;  %6442 = vmatprep.mubr.f32.mxu1 %v12773_v26 }
 0x465   : > { %15630 = vst [vmem:[#allocation3_spill] sm:$0xff] %v12853_v40  ;;  %v6372_v20 = vsub.f32 %v12795_v47, %v15635_v7  ;;  %6344 = vmatpush2.msra.mxu1 %v6343_v54  ;;  %v6361_v34 = vand.u32 4294901760, %v6360_v6  ;;  %v15638_v7 = vand.u32 4294901760, %v12423_v44  ;;  %v15640_v54 = vld [vmem:[#allocation152_spill] sm:$0xff]  ;;  %v15643_v50 = vmax.f32 %v15642_v3, 0.0  ;;  %v15679_v26 = vld [vmem:[#allocation13_spill] sm:$0xff] }
 0x466   : > { %v6378_v25 = vsub.f32 %v12435_v18, %v15636_v55  ;;  %v6043_v2 = vsub.f32 %v12808_v56, %v15637_v27  ;;  %6350 = vmatprep.subr.mxu1 %v6349_v62  ;;  %v6049_v55 = vsub.f32 %v12816_v15, %v15639_v16  ;;  %v15645_v27 = vand.u32 4294901760, %v12821_v5  ;;  %v15648_v15 = vld [vmem:[#allocation151_spill] sm:$0xff] }
 0x467   : > { %v6384_v32 = vsub.f32 %v12423_v44, %v15638_v7  ;;  %v12889_v43 = vsub.f32 %v15643_v50, %v15641_v38  ;;  %6356 = vmatpush2.msra.mxu1 %v6355_v48  ;;  %v6367_v7 = vand.u32 4294901760, %v6366_v63  ;;  %v6373_v16 = vand.u32 4294901760, %v6372_v20 }
 0x468   : > { %v6390_v6 = vsub.f32 %v12821_v5, %v15645_v27  ;;  %6362 = vmatprep.subr.mxu1 %v6361_v34  ;;  %v6396_v3 = vsub.f32 %v12831_v53, %v15647_v21  ;;  %v15649_v56 = vand.u32 4294901760, %v12378_v13  ;;  %v6379_v63 = vand.u32 4294901760, %v6378_v25  ;;  %v15650_v34 = vld [vmem:[#allocation28_spill] sm:$0xff] }
 0x469   : > { %15644 = vst [vmem:[#allocation94_spill] sm:$0xff] %v12889_v43  ;;  %6368 = vmatpush2.msra.mxu1 %v6367_v7  ;;  %v6044_v48 = vand.u32 4294901760, %v6043_v2  ;;  %6035 = vmatpush2.msra.mxu0 %v15650_v34  ;;  %v6385_v20 = vand.u32 4294901760, %v6384_v32  ;;  %v6050_v22 = vand.u32 4294901760, %v6049_v55  ;;  %v15651_v21 = vand.u32 4294901760, %v15640_v54  ;;  %v15654_v25 = vld [vmem:[#allocation192_spill] sm:$0xff] }
 0x46a   : > { %v6402_v27 = vsub.f32 %v12378_v13, %v15649_v56  ;;  %6374 = vmatprep.subr.mxu1 %v6373_v16  ;;  %v15653_v56 = vand.u32 4294901760, %v12853_v40  ;;  %6037 = vmatprep.subr.mxu0 %v15654_v25  ;;  %v6391_v2 = vand.u32 4294901760, %v6390_v6  ;;  %v6397_v32 = vand.u32 4294901760, %v6396_v3  ;;  %v15660_v25 = vld [vmem:[#allocation107_spill] sm:$0xff] }
 0x46b   : > { %v6408_v50 = vsub.f32 %v15640_v54, %v15651_v21  ;;  %6380 = vmatpush2.msra.mxu1 %v6379_v63  ;;  %6039 = vmatpush2.msra.mxu0 %v15641_v38  ;;  %v15655_v55 = vand.u32 4294901760, %v12863_v41  ;;  %v15656_v21 = vand.u32 4294901760, %v15648_v15  ;;  %v15657_v6 = vand.u32 4294901760, %v15652_v1  ;;  %v15659_v38 = vld [vmem:[#allocation23_spill] sm:$0xff] }
 0x46c   : > { %v6414_v7 = vsub.f32 %v12853_v40, %v15653_v56  ;;  %6386 = vmatprep.subr.mxu1 %v6385_v20  ;;  %6045 = vmatprep.mubr.f32.mxu0 %v6044_v48  ;;  %v6403_v62 = vand.u32 4294901760, %v6402_v27  ;;  %v15658_v3 = vand.u32 4294901760, %v12889_v43  ;;  %v15661_v27 = vld [vmem:[#allocation193_spill] sm:$0xff] }
 0x46d   : > { %v6420_v16 = vsub.f32 %v12863_v41, %v15655_v55  ;;  %v6426_v30 = vsub.f32 %v15648_v15, %v15656_v21  ;;  %6392 = vmatpush2.msra.mxu1 %v6391_v2  ;;  %6051 = vmatmul.mubr.f32.vlgmr.msra.gmra.mxu0 %v6050_v22  ;;  %v6409_v63 = vand.u32 4294901760, %v6408_v50  ;;  %v6432_v20 = vsub.f32 %v15652_v1, %v15657_v6  ;;  %v15662_v50 = vld [vmem:[#allocation188_spill] sm:$0xff]  ;;  %v15664_v6 = vld [vmem:[#allocation189_spill] sm:$0xff] }
 0x46e   : > { %6398 = vmatprep.subr.mxu1 %v6397_v32  ;;  %v6438_v56 = vsub.f32 %v12889_v43, %v15658_v3  ;;  %6452 = vmatprep.subr.mxu0 %v15659_v38  ;;  %v6415_v55 = vand.u32 4294901760, %v6414_v7  ;;  %v15663_v32 = vld [vmem:[#allocation26_spill] sm:$0xff]  ;;  %v15666_v7 = vld [vmem:[#allocation25_spill] sm:$0xff]  ;;  %v15671_v3 = vld [vmem:[#allocation148_spill] sm:$0xff] }
 0x46f   : > { %6404 = vmatpush2.msra.mxu1 %v6403_v62  ;;  %6455 = vmatpush1.msra.mxu0 %v15660_v25  ;;  %v6421_v48 = vand.u32 4294901760, %v6420_v16  ;;  %v6427_v22 = vand.u32 4294901760, %v6426_v30  ;;  %v6433_v2 = vand.u32 4294901760, %v6432_v20  ;;  %v15665_v62 = vld [vmem:[#allocation93_spill] sm:$0xff]  ;;  %v15667_v30 = vld [vmem:[#allocation19_spill] sm:$0xff]  ;;  %v15668_v16 = vld [vmem:[#allocation92_spill] sm:$0xff] }
 0x470   : > { %6410 = vmatprep.subr.mxu1 %v6409_v63  ;;  %6458 = vmatprep.subr.mxu0 %v15661_v27  ;;  %v6439_v21 = vand.u32 4294901760, %v6438_v56  ;;  %v15669_v63 = vld [vmem:[#allocation184_spill] sm:$0xff]  ;;  %v15670_v20 = vld [vmem:[#allocation187_spill] sm:$0xff]  ;;  %v15672_v56 = vld [vmem:[#allocation149_spill] sm:$0xff] }
 0x471   : > { %6416 = vmatpush2.msra.mxu1 %v6415_v55  ;;  %6461 = vmatpush1.msra.mxu0 %v15662_v50  ;;  %v15673_v55 = vld [vmem:[#allocation140_spill] sm:$0xff] }
 0x472   : > { %6422 = vmatprep.subr.mxu1 %v6421_v48  ;;  %6464 = vmatprep.subr.mxu0 %v15663_v32  ;;  %v15674_v48 = vld [vmem:[#allocation185_spill] sm:$0xff] }
 0x473   : > { %6428 = vmatpush2.msra.mxu1 %v6427_v22  ;;  %6467 = vmatpush1.msra.mxu0 %v15664_v6  ;;  %v15675_v22 = vld [vmem:[#allocation62_spill] sm:$0xff] }
 0x474   : > { %6434 = vmatprep.subr.mxu1 %v6433_v2  ;;  %6470 = vmatprep.subr.mxu0 %v15665_v62  ;;  %v15676_v2 = vld [vmem:[#allocation183_spill] sm:$0xff] }
 0x475   : > { %6440 = vmatpush2.msra.mxu1 %v6439_v21  ;;  %6473 = vmatpush1.msra.mxu0 %v15666_v7  ;;  %v15677_v21 = vld [vmem:[#allocation70_spill] sm:$0xff] }
 0x476   : > { %6444 = vmatmul.mubr.f32.vlgmr.msra.gmra.mxu1 %v12780_v19  ;;  %6476 = vmatprep.subr.mxu0 %v15667_v30  ;;  %v15678_v19 = vld [vmem:[#allocation181_spill] sm:$0xff] }
 0x477   : > { %6654 = vmatprep.subr.mxu1 %v15668_v16  ;;  %6479 = vmatpush1.msra.mxu0 %v15669_v63  ;;  %v15680_v63 = vld [vmem:[#allocation182_spill] sm:$0xff] }
 0x478   : > { %6656 = vmatpush1.msra.mxu1 %v15670_v20  ;;  %6482 = vmatprep.subr.mxu0 %v15671_v3  ;;  %v15681_v20 = vld [vmem:[#allocation80_spill] sm:$0xff] }
 0x479   : > { %6658 = vmatprep.subr.mxu1 %v15672_v56  ;;  %6485 = vmatpush1.msra.mxu0 %v15673_v55  ;;  %v15682_v3 = vld [vmem:[#allocation48_spill] sm:$0xff]  ;;  %v15683_v56 = vld [vmem:[#allocation98_spill] sm:$0xff]  ;;  %v15684_v55 = vld [vmem:[#allocation51_spill] sm:$0xff] }
 0x47a   : > { %6660 = vmatpush1.msra.mxu1 %v15674_v48  ;;  %6488 = vmatprep.subr.mxu0 %v15675_v22  ;;  %v15685_v48 = vld [vmem:[#allocation146_spill] sm:$0xff]  ;;  %v15686_v22 = vld [vmem:[#allocation57_spill] sm:$0xff] }
 0x47b   : > { %6662 = vmatprep.subr.mxu1 %v15676_v2  ;;  %6491 = vmatpush1.msra.mxu0 %v15677_v21  ;;  %v15687_v2 = vld [vmem:[#allocation120_spill] sm:$0xff]  ;;  %v15688_v21 = vld [vmem:[#allocation22_spill] sm:$0xff] }
 0x47c   : > { %6664 = vmatpush1.msra.mxu1 %v15678_v19  ;;  %6494 = vmatprep.subr.mxu0 %v15679_v26  ;;  %v15689_v19 = vld [vmem:[#allocation15_spill] sm:$0xff]  ;;  %v15690_v26 = vld [vmem:[#allocation58_spill] sm:$0xff] }
 0x47d   : > { %6666 = vmatprep.subr.mxu1 %v15680_v63  ;;  %6497 = vmatpush1.msra.mxu0 %v15681_v20  ;;  %v15691_v63 = vld [vmem:[#allocation89_spill] sm:$0xff] }
 0x47e   : > { %6668 = vmatpush1.msra.mxu1 %v15682_v3  ;;  %6500 = vmatprep.subr.mxu0 %v15683_v56  ;;  %v15692_v20 = vld [vmem:[#allocation17_spill] sm:$0xff]  ;;  %v15693_v3 = vld [vmem:[#allocation14_spill] sm:$0xff] }
 0x47f   : > { %6670 = vmatprep.subr.mxu1 %v15684_v55  ;;  %6503 = vmatpush1.msra.mxu0 %v15685_v48  ;;  %v15694_v56 = vld [vmem:[#allocation81_spill] sm:$0xff]  ;;  %v15695_v55 = vld [vmem:[#allocation10_spill] sm:$0xff]  ;;  %v15696_v48 = vld [vmem:[#allocation83_spill] sm:$0xff] }
 0x480   : > { %6672 = vmatpush1.msra.mxu1 %v15686_v22  ;;  %6506 = vmatprep.subr.mxu0 %v15687_v2  ;;  %v15697_v22 = vld [vmem:[#allocation119_spill] sm:$0xff]  ;;  %v15698_v2 = vld [vmem:[#allocation77_spill] sm:$0xff] }
 0x481   : > { %6674 = vmatprep.subr.mxu1 %v15688_v21  ;;  %6509 = vmatpush1.msra.mxu0 %v15689_v19  ;;  %v15699_v21 = vld [vmem:[#allocation85_spill] sm:$0xff]  ;;  %v15700_v19 = vld [vmem:[#allocation142_spill] sm:$0xff] }
 0x482   : > { %6676 = vmatpush1.msra.mxu1 %v15690_v26  ;;  %6512 = vmatprep.subr.mxu0 %v15691_v63  ;;  %v15701_v26 = vld [vmem:[#allocation87_spill] sm:$0xff]  ;;  %v15702_v63 = vld [vmem:[#allocation18_spill] sm:$0xff] }
 0x483   : > { %6678 = vmatprep.subr.mxu1 %v15692_v20  ;;  %6515 = vmatpush1.msra.mxu0 %v15693_v3  ;;  %v15703_v20 = vld [vmem:[#allocation145_spill] sm:$0xff]  ;;  %v15704_v3 = vld [vmem:[#allocation90_spill] sm:$0xff] }
 0x484   : > { %6680 = vmatpush1.msra.mxu1 %v15694_v56  ;;  %6518 = vmatprep.subr.mxu0 %v15695_v55  ;;  %v15705_v56 = vld [vmem:[#allocation115_spill] sm:$0xff]  ;;  %v15706_v55 = vld [vmem:[#allocation100_spill] sm:$0xff] }
 0x485   : > { %6682 = vmatprep.subr.mxu1 %v15696_v48  ;;  %6521 = vmatpush1.msra.mxu0 %v15697_v22  ;;  %v15707_v48 = vld [vmem:[#allocation78_spill] sm:$0xff] }
 0x486   : > { %6684 = vmatpush1.msra.mxu1 %v15698_v2  ;;  %6524 = vmatprep.subr.mxu0 %v15699_v21  ;;  %v15708_v22 = vld [vmem:[#allocation114_spill] sm:$0xff]  ;;  %v15709_v2 = vld [vmem:[#allocation144_spill] sm:$0xff] }
 0x487   : > { %6686 = vmatprep.subr.mxu1 %v15700_v19  ;;  %6527 = vmatpush1.msra.mxu0 %v15701_v26  ;;  %v15710_v21 = vld [vmem:[#allocation112_spill] sm:$0xff]  ;;  %v15711_v19 = vld [vmem:[#allocation11_spill] sm:$0xff]  ;;  %v15712_v26 = vld [vmem:[#allocation122_spill] sm:$0xff] }
 0x488   : > { %6688 = vmatpush1.msra.mxu1 %v15702_v63  ;;  %6530 = vmatprep.subr.mxu0 %v15703_v20  ;;  %v15713_v63 = vld [vmem:[#allocation124_spill] sm:$0xff]  ;;  %v15714_v20 = vld [vmem:[#allocation118_spill] sm:$0xff] }
 0x489   : > { %6690 = vmatprep.subr.mxu1 %v15704_v3  ;;  %6533 = vmatpush1.msra.mxu0 %v15705_v56  ;;  %v15715_v56 = vld [vmem:[#allocation108_spill] sm:$0xff] }
 0x48a   : > { %6692 = vmatpush1.msra.mxu1 %v15706_v55  ;;  %6536 = vmatprep.subr.mxu0 %v15707_v48  ;;  %v15716_v48 = vld [vmem:[#allocation102_spill] sm:$0xff] }
 0x48b   : > { %6694 = vmatprep.subr.mxu1 %v15708_v22  ;;  %6539 = vmatpush1.msra.mxu0 %v15709_v2  ;;  %v15717_v2 = vld [vmem:[#allocation95_spill] sm:$0xff] }
 0x48c   : > { %6696 = vmatpush1.msra.mxu1 %v15710_v21  ;;  %6542 = vmatprep.subr.mxu0 %v15711_v19  ;;  %v15718_v19 = vld [vmem:[#allocation88_spill] sm:$0xff] }
 0x48d   : > { %6698 = vmatprep.subr.mxu1 %v15712_v26  ;;  %6545 = vmatpush1.msra.mxu0 %v15713_v63  ;;  %v15719_v63 = vld [vmem:[#allocation141_spill] sm:$0xff] }
 0x48e   : > { %6700 = vmatpush1.msra.mxu1 %v15714_v20  ;;  %6548 = vmatprep.subr.mxu0 %v12584_v33  ;;  %v15720_v33 = vld [vmem:[#allocation103_spill] sm:$0xff] }
 0x48f   : > { %6702 = vmatprep.subr.mxu1 %v15715_v56  ;;  %6551 = vmatpush2.msra.mxu0 %v12597_v57  ;;  %v15721_v57 = vld [vmem:[#allocation91_spill] sm:$0xff] }
 0x490   : > { %6704 = vmatpush1.msra.mxu1 %v15716_v48  ;;  %6554 = vmatprep.subr.mxu0 %v12610_v45  ;;  %v15722_v45 = vld [vmem:[#allocation125_spill] sm:$0xff] }
 0x491   : > { %6706 = vmatprep.subr.mxu1 %v15717_v2  ;;  %6557 = vmatpush2.msra.mxu0 %v12623_v10  ;;  %v15723_v10 = vld [vmem:[#allocation176_spill] sm:$0xff] }
 0x492   : > { %6708 = vmatpush1.msra.mxu1 %v15718_v19  ;;  %6560 = vmatprep.subr.mxu0 %v12632_v8 }
 0x493   : > { %6710 = vmatprep.subr.mxu1 %v15719_v63  ;;  %6563 = vmatpush2.msra.mxu0 %v12642_v59 }
 0x494   : > { %6712 = vmatpush1.msra.mxu1 %v15720_v33  ;;  %6566 = vmatprep.subr.mxu0 %v12652_v29  ;;  %v15724_v29 = vld [vmem:[#allocation139_spill] sm:$0xff] }
 0x495   : > { %6714 = vmatprep.subr.mxu1 %v15721_v57  ;;  %6569 = vmatpush2.msra.mxu0 %v12662_v4  ;;  %v15725_v4 = vld [vmem:[#allocation179_spill] sm:$0xff] }
 0x496   : > { %6716 = vmatpush1.msra.mxu1 %v15722_v45  ;;  %6572 = vmatprep.subr.mxu0 %v12671_v0  ;;  %v15726_v0 = vld [vmem:[#allocation172_spill] sm:$0xff] }
 0x497   : > { %6718 = vmatprep.subr.mxu1 %v15723_v10  ;;  %6575 = vmatpush2.msra.mxu0 %v12683_v51  ;;  %v15727_v51 = vld [vmem:[#allocation180_spill] sm:$0xff] }
 0x498   : > { %6720 = vmatpush2.msra.mxu1 %v12547_v28  ;;  %6578 = vmatprep.subr.mxu0 %v12695_v46 }
 0x499   : > { %6722 = vmatprep.subr.mxu1 %v12560_v42  ;;  %6581 = vmatpush2.msra.mxu0 %v12707_v24 }
 0x49a   : > { %6724 = vmatpush2.msra.mxu1 %v15724_v29  ;;  %6584 = vmatprep.subr.mxu0 %v12717_v31  ;;  %v15728_v31 = vld [vmem:[#allocation174_spill] sm:$0xff] }
 0x49b   : > { %6726 = vmatprep.subr.mxu1 %v15725_v4  ;;  %6587 = vmatpush2.msra.mxu0 %v12727_v23  ;;  %v15729_v23 = vld [vmem:[#allocation169_spill] sm:$0xff] }
 0x49c   : > { %6728 = vmatpush2.msra.mxu1 %v15726_v0  ;;  %6590 = vmatprep.subr.mxu0 %v12737_v17 }
 0x49d   : > { %6730 = vmatprep.subr.mxu1 %v15727_v51  ;;  %6593 = vmatpush2.msra.mxu0 %v12748_v61  ;;  %v15730_v61 = vld [vmem:[#allocation167_spill] sm:$0xff] }
 0x49e   : > { %6732 = vmatpush2.msra.mxu1 %v12620_v49  ;;  %6596 = vmatprep.subr.mxu0 %v12761_v37  ;;  %v15731_v37 = vld [vmem:[#allocation165_spill] sm:$0xff] }
 0x49f   : > { %6734 = vmatprep.subr.mxu1 %v12629_v58  ;;  %6599 = vmatpush2.msra.mxu0 %v12566_v9 }
 0x4a0   : > { %6736 = vmatpush2.msra.mxu1 %v15728_v31  ;;  %6602 = vmatprep.subr.mxu0 %v12498_v39 }
 0x4a1   : > { %6738 = vmatprep.subr.mxu1 %v15729_v23  ;;  %6605 = vmatpush2.msra.mxu0 %v12785_v60 }
 0x4a2   : > { %6740 = vmatpush2.msra.mxu1 %v12659_v35  ;;  %6608 = vmatprep.subr.mxu0 %v12795_v47 }
 0x4a3   : > { %6742 = vmatprep.subr.mxu1 %v15730_v61  ;;  %6611 = vmatpush2.msra.mxu0 %v12435_v18  ;;  %v15732_v18 = vld [vmem:[#allocation177_spill] sm:$0xff] }
 0x4a4   : > { %6744 = vmatpush2.msra.mxu1 %v15731_v37  ;;  %6614 = vmatprep.subr.mxu0 %v12423_v44  ;;  %v15733_v44 = vld [vmem:[#allocation8_spill] sm:$0xff] }
 0x4a5   : > { %6746 = vmatprep.subr.mxu1 %v12692_v12  ;;  %6617 = vmatpush2.msra.mxu0 %v12821_v5  ;;  %v15734_v5 = vld [vmem:[#allocation12_spill] sm:$0xff] }
 0x4a6   : > { %6748 = vmatpush2.msra.mxu1 %v12704_v14  ;;  %6620 = vmatprep.subr.mxu0 %v12831_v53  ;;  %v15735_v53 = vld [vmem:[#allocation131_spill] sm:$0xff] }
 0x4a7   : > { %6750 = vmatprep.subr.mxu1 %v12617_v11  ;;  %6623 = vmatpush2.msra.mxu0 %v12378_v13  ;;  %v15736_v13 = vld [vmem:[#allocation198_spill] sm:$0xff] }
 0x4a8   : > { %6752 = vmatpush2.msra.mxu1 %v12509_v36  ;;  %6626 = vmatprep.subr.mxu0 %v15640_v54  ;;  %v15737_v54 = vld [vmem:[#allocation153_spill] sm:$0xff] }
 0x4a9   : > { %6754 = vmatprep.subr.mxu1 %v15732_v18  ;;  %6629 = vmatpush2.msra.mxu0 %v12853_v40  ;;  %v15738_v18 = vld [vmem:[#allocation133_spill] sm:$0xff] }
 0x4aa   : > { %6756 = vmatpush2.msra.mxu1 %v15733_v44  ;;  %6632 = vmatprep.subr.mxu0 %v12863_v41  ;;  %v15739_v40 = vld [vmem:[#allocation29_spill] sm:$0xff]  ;;  %v15740_v44 = vld [vmem:[#allocation136_spill] sm:$0xff] }
 0x4ab   : > { %6758 = vmatprep.subr.mxu1 %v15734_v5  ;;  %6635 = vmatpush2.msra.mxu0 %v15648_v15  ;;  %v15741_v5 = vand.u32 4294901760, %v15659_v38  ;;  %v15742_v15 = vld [vmem:[#allocation200_spill] sm:$0xff]  ;;  %v15748_v38 = vand.u32 4294901760, %v15663_v32  ;;  %v15756_v32 = vand.u32 4294901760, %v15667_v30 }
 0x4ac   : > { %6760 = vmatpush2.msra.mxu1 %v15735_v53  ;;  %6638 = vmatprep.subr.mxu0 %v15652_v1  ;;  %v15743_v53 = vand.u32 4294901760, %v15660_v25  ;;  %v15744_v1 = vld [vmem:[#allocation199_spill] sm:$0xff]  ;;  %v15751_v25 = vand.u32 4294901760, %v15665_v62 }
 0x4ad   : > { %6762 = vmatprep.subr.mxu1 %v15736_v13  ;;  %6641 = vmatpush2.msra.mxu0 %v12889_v43  ;;  %v15745_v43 = vand.u32 4294901760, %v15661_v27  ;;  %v15746_v13 = vld [vmem:[#allocation30_spill] sm:$0xff]  ;;  %v15753_v27 = vand.u32 4294901760, %v15737_v54  ;;  %v15759_v62 = vld [vmem:[#allocation187_spill] sm:$0xff] }
 0x4ae   : > { %6644 = vmatprep.mubr.f32.mxu0 %v15737_v54  ;;  %6764 = vmatpush2.msra.mxu1 %v15738_v18  ;;  %v15747_v18 = vand.u32 4294901760, %v15662_v50  ;;  %v15755_v50 = vand.u32 4294901760, %v15739_v40  ;;  %v15762_v54 = vld [vmem:[#allocation149_spill] sm:$0xff] }
 0x4af   : > { %6647 = vmatmul.mubr.f32.vlgmr.msra.gmra.mxu0 %v15739_v40  ;;  %6766 = vmatprep.subr.mxu1 %v15740_v44  ;;  %v15765_v40 = vld [vmem:[#allocation185_spill] sm:$0xff] }
 0x4b0   : > { %6797 = vmatprep.subr.mxu0 %v15741_v5  ;;  %6768 = vmatpush2.msra.mxu1 %v15742_v15  ;;  %v15749_v5 = vand.u32 4294901760, %v15664_v6  ;;  %v15757_v6 = vld [vmem:[#allocation184_spill] sm:$0xff] }
 0x4b1   : > { %6801 = vmatpush1.msra.mxu0 %v15743_v53  ;;  %6770 = vmatprep.subr.mxu1 %v15744_v1  ;;  %v15750_v53 = vld [vmem:[#allocation192_spill] sm:$0xff] }
 0x4b2   : > { %6805 = vmatprep.subr.mxu0 %v15745_v43  ;;  %6772 = vmatpush2.msra.mxu1 %v15746_v13  ;;  %v15752_v43 = vld [vmem:[#allocation194_spill] sm:$0xff] }
 0x4b3   : > { %6809 = vmatpush1.msra.mxu0 %v15747_v18  ;;  %6774 = vmatprep.subr.mxu1 %v15632_v52  ;;  %v15754_v18 = vand.u32 4294901760, %v15666_v7  ;;  %v15763_v7 = vld [vmem:[#allocation140_spill] sm:$0xff] }
 0x4b4   : > { %6813 = vmatprep.subr.mxu0 %v15748_v38  ;;  %6776 = vmatpush2.msra.mxu1 %v15650_v34  ;;  %v15758_v38 = vand.u32 4294901760, %v15757_v6  ;;  %v15771_v6 = vld [vmem:[#allocation181_spill] sm:$0xff] }
 0x4b5   : > { %6817 = vmatpush1.msra.mxu0 %v15749_v5  ;;  %6778 = vmatprep.subr.mxu1 %v15750_v53  ;;  %v15760_v5 = vld [vmem:[#allocation148_spill] sm:$0xff] }
 0x4b6   : > { %6821 = vmatprep.subr.mxu0 %v15751_v25  ;;  %6780 = vmatpush2.msra.mxu1 %v15752_v43  ;;  %v15761_v25 = vand.u32 4294901760, %v15760_v5  ;;  %v15774_v5 = vld [vmem:[#allocation182_spill] sm:$0xff] }
 0x4b7   : > { %6784 = vmatprep.mubr.f32.mxu1 %v15753_v27  ;;  %6825 = vmatpush1.msra.mxu0 %v15754_v18  ;;  %v15764_v27 = vand.u32 4294901760, %v15763_v7  ;;  %v15766_v18 = vld [vmem:[#allocation62_spill] sm:$0xff]  ;;  %v15777_v7 = vld [vmem:[#allocation48_spill] sm:$0xff] }
 0x4b8   : > { %6788 = vmatmul.mubr.f32.vlgmr.msra.gmra.mxu1 %v15755_v50  ;;  %6829 = vmatprep.subr.mxu0 %v15756_v32  ;;  %v15767_v30 = vand.u32 4294901760, %v15766_v18  ;;  %v15768_v50 = vld [vmem:[#allocation183_spill] sm:$0xff] }
 0x4b9   : > { %7060 = vmatprep.subr.mxu1 %v15668_v16  ;;  %6833 = vmatpush1.msra.mxu0 %v15758_v38  ;;  %v15769_v16 = vld [vmem:[#allocation70_spill] sm:$0xff]  ;;  %v15772_v38 = vld [vmem:[#allocation13_spill] sm:$0xff]  ;;  %v15780_v18 = vld [vmem:[#allocation51_spill] sm:$0xff] }
 0x4ba   : > { %7062 = vmatpush1.msra.mxu1 %v15759_v62  ;;  %6837 = vmatprep.subr.mxu0 %v15761_v25  ;;  %v15770_v32 = vand.u32 4294901760, %v15769_v16  ;;  %v15773_v62 = vand.u32 4294901760, %v15772_v38  ;;  %v15775_v25 = vld [vmem:[#allocation80_spill] sm:$0xff]  ;;  %v15783_v16 = vld [vmem:[#allocation57_spill] sm:$0xff]  ;;  %v15786_v38 = vld [vmem:[#allocation22_spill] sm:$0xff] }
 0x4bb   : > { %7064 = vmatprep.subr.mxu1 %v15762_v54  ;;  %6841 = vmatpush1.msra.mxu0 %v15764_v27  ;;  %v15776_v54 = vand.u32 4294901760, %v15775_v25  ;;  %v15778_v27 = vld [vmem:[#allocation98_spill] sm:$0xff] }
 0x4bc   : > { %7066 = vmatpush1.msra.mxu1 %v15765_v40  ;;  %6845 = vmatprep.subr.mxu0 %v15767_v30  ;;  %v15779_v40 = vand.u32 4294901760, %v15778_v27  ;;  %v15781_v30 = vld [vmem:[#allocation146_spill] sm:$0xff]  ;;  %v15792_v27 = vld [vmem:[#allocation17_spill] sm:$0xff] }
 0x4bd   : > { %7068 = vmatprep.subr.mxu1 %v15768_v50  ;;  %6849 = vmatpush1.msra.mxu0 %v15770_v32  ;;  %v15782_v50 = vand.u32 4294901760, %v15781_v30  ;;  %v15784_v32 = vld [vmem:[#allocation120_spill] sm:$0xff]  ;;  %v15789_v25 = vld [vmem:[#allocation58_spill] sm:$0xff]  ;;  %v15795_v30 = vld [vmem:[#allocation81_spill] sm:$0xff] }
 0x4be   : > { %7070 = vmatpush1.msra.mxu1 %v15771_v6  ;;  %6853 = vmatprep.subr.mxu0 %v15773_v62  ;;  %v15785_v6 = vand.u32 4294901760, %v15784_v32  ;;  %v15787_v62 = vld [vmem:[#allocation15_spill] sm:$0xff] }
 0x4bf   : > { %7072 = vmatprep.subr.mxu1 %v15774_v5  ;;  %6857 = vmatpush1.msra.mxu0 %v15776_v54  ;;  %v15788_v5 = vand.u32 4294901760, %v15787_v62  ;;  %v15790_v54 = vld [vmem:[#allocation89_spill] sm:$0xff]  ;;  %v15798_v32 = vld [vmem:[#allocation83_spill] sm:$0xff] }
 0x4c0   : > { %7074 = vmatpush1.msra.mxu1 %v15777_v7  ;;  %6861 = vmatprep.subr.mxu0 %v15779_v40  ;;  %v15791_v7 = vand.u32 4294901760, %v15790_v54  ;;  %v15793_v40 = vld [vmem:[#allocation14_spill] sm:$0xff]  ;;  %v15801_v62 = vld [vmem:[#allocation77_spill] sm:$0xff] }
 0x4c1   : > { %7076 = vmatprep.subr.mxu1 %v15780_v18  ;;  %6865 = vmatpush1.msra.mxu0 %v15782_v50  ;;  %v15794_v18 = vand.u32 4294901760, %v15793_v40  ;;  %v15796_v50 = vld [vmem:[#allocation10_spill] sm:$0xff] }
 0x4c2   : > { %7078 = vmatpush1.msra.mxu1 %v15783_v16  ;;  %6869 = vmatprep.subr.mxu0 %v15785_v6  ;;  %v15797_v16 = vand.u32 4294901760, %v15796_v50  ;;  %v15799_v6 = vld [vmem:[#allocation119_spill] sm:$0xff]  ;;  %v15804_v54 = vld [vmem:[#allocation142_spill] sm:$0xff] }
 0x4c3   : > { %7080 = vmatprep.subr.mxu1 %v15786_v38  ;;  %6873 = vmatpush1.msra.mxu0 %v15788_v5  ;;  %v15800_v38 = vand.u32 4294901760, %v15799_v6  ;;  %v15802_v5 = vld [vmem:[#allocation85_spill] sm:$0xff]  ;;  %v15807_v40 = vld [vmem:[#allocation18_spill] sm:$0xff]  ;;  %v15810_v50 = vld [vmem:[#allocation115_spill] sm:$0xff] }
 0x4c4   : > { %7082 = vmatpush1.msra.mxu1 %v15789_v25  ;;  %6877 = vmatprep.subr.mxu0 %v15791_v7  ;;  %v15803_v25 = vand.u32 4294901760, %v15802_v5  ;;  %v15805_v7 = vld [vmem:[#allocation87_spill] sm:$0xff] }
 0x4c5   : > { %7084 = vmatprep.subr.mxu1 %v15792_v27  ;;  %6881 = vmatpush1.msra.mxu0 %v15794_v18  ;;  %v15806_v27 = vand.u32 4294901760, %v15805_v7  ;;  %v15808_v18 = vld [vmem:[#allocation145_spill] sm:$0xff]  ;;  %v15816_v5 = vld [vmem:[#allocation11_spill] sm:$0xff] }
 0x4c6   : > { %7086 = vmatpush1.msra.mxu1 %v15795_v30  ;;  %6885 = vmatprep.subr.mxu0 %v15797_v16  ;;  %v15809_v30 = vand.u32 4294901760, %v15808_v18  ;;  %v15811_v16 = vand.u32 4294901760, %v15810_v50 }
 0x4c7   : > { %7088 = vmatprep.subr.mxu1 %v15798_v32  ;;  %6889 = vmatpush1.msra.mxu0 %v15800_v38  ;;  %v15812_v32 = vld [vmem:[#allocation78_spill] sm:$0xff]  ;;  %v15814_v38 = vld [vmem:[#allocation144_spill] sm:$0xff] }
 0x4c8   : > { %7090 = vmatpush1.msra.mxu1 %v15801_v62  ;;  %6893 = vmatprep.subr.mxu0 %v15803_v25  ;;  %v15813_v6 = vand.u32 4294901760, %v15812_v32  ;;  %v15815_v62 = vand.u32 4294901760, %v15814_v38  ;;  %v15817_v25 = vand.u32 4294901760, %v15816_v5  ;;  %v15865_v38 = vld [vmem:[#allocation177_spill] sm:$0xff]  ;;  %v15868_v5 = vld [vmem:[#allocation8_spill] sm:$0xff] }
 0x4c9   : > { %7092 = vmatprep.subr.mxu1 %v15804_v54  ;;  %6897 = vmatpush1.msra.mxu0 %v15806_v27 }
 0x4ca   : > { %7094 = vmatpush1.msra.mxu1 %v15807_v40  ;;  %6901 = vmatprep.subr.mxu0 %v15809_v30 }
 0x4cb   : > { %7096 = vmatprep.subr.mxu1 %v15704_v3  ;;  %6905 = vmatpush1.msra.mxu0 %v15811_v16  ;;  %v15818_v3 = vld [vmem:[#allocation124_spill] sm:$0xff] }
 0x4cc   : > { %7098 = vmatpush1.msra.mxu1 %v15706_v55  ;;  %6909 = vmatprep.subr.mxu0 %v15813_v6  ;;  %v15819_v54 = vand.u32 4294901760, %v15818_v3  ;;  %v15820_v55 = vld [vmem:[#allocation132_spill] sm:$0xff] }
 0x4cd   : > { %7100 = vmatprep.subr.mxu1 %v15708_v22  ;;  %6913 = vmatpush1.msra.mxu0 %v15815_v62  ;;  %v15821_v7 = vand.u32 4294901760, %v15820_v55  ;;  %v15822_v22 = vld [vmem:[#allocation6_spill] sm:$0xff] }
 0x4ce   : > { %7102 = vmatpush1.msra.mxu1 %v15710_v21  ;;  %6917 = vmatprep.subr.mxu0 %v15817_v25  ;;  %v15823_v27 = vand.u32 4294901760, %v15822_v22  ;;  %v15824_v21 = vld [vmem:[#allocation175_spill] sm:$0xff]  ;;  %v15870_v25 = vld [vmem:[#allocation12_spill] sm:$0xff]  ;;  %v15877_v22 = vld [vmem:[#allocation94_spill] sm:$0xff] }
 0x4cf   : > { %7104 = vmatprep.subr.mxu1 %v15712_v26  ;;  %6921 = vmatpush1.msra.mxu0 %v15819_v54  ;;  %v15825_v40 = vand.u32 4294901760, %v15824_v21  ;;  %v15826_v26 = vld [vmem:[#allocation170_spill] sm:$0xff]  ;;  %v15873_v54 = vld [vmem:[#allocation131_spill] sm:$0xff]  ;;  %v15879_v21 = vld [vmem:[#allocation60_spill] sm:$0xff] }
 0x4d0   : > { %7106 = vmatpush1.msra.mxu1 %v15714_v20  ;;  %6925 = vmatprep.subr.mxu0 %v15821_v7  ;;  %v15827_v18 = vand.u32 4294901760, %v15826_v26  ;;  %v15828_v20 = vand.u32 4294901760, %v12632_v8  ;;  %v15876_v7 = vld [vmem:[#allocation198_spill] sm:$0xff]  ;;  %v4768_v26 = vpop.f32.mrf.mxu0 }
 0x4d1   : > { %7108 = vmatprep.subr.mxu1 %v15715_v56  ;;  %6929 = vmatpush2.msra.mxu0 %v15823_v27  ;;  %v15829_v56 = vand.u32 4294901760, %v12642_v59  ;;  %v15878_v27 = vand.u32 4294901760, %v15877_v22 }
 0x4d2   : > { %7110 = vmatpush1.msra.mxu1 %v15716_v48  ;;  %6933 = vmatprep.subr.mxu0 %v15825_v40  ;;  %v15830_v48 = vld [vmem:[#allocation168_spill] sm:$0xff]  ;;  %v15880_v40 = vld [vmem:[#allocation133_spill] sm:$0xff] }
 0x4d3   : > { %7112 = vmatprep.subr.mxu1 %v15717_v2  ;;  %6937 = vmatpush2.msra.mxu0 %v15827_v18  ;;  %v15831_v30 = vand.u32 4294901760, %v15830_v48  ;;  %v15832_v2 = vld [vmem:[#allocation166_spill] sm:$0xff]  ;;  %v5161_v18 = vpop.f32.mrf.mxu1 }
 0x4d4   : > { %7114 = vmatpush1.msra.mxu1 %v15718_v19  ;;  %6941 = vmatprep.subr.mxu0 %v15828_v20  ;;  %v15833_v50 = vand.u32 4294901760, %v15832_v2  ;;  %v15834_v19 = vld [vmem:[#allocation4_spill] sm:$0xff] }
 0x4d5   : > { %7116 = vmatprep.subr.mxu1 %v15719_v63  ;;  %6945 = vmatpush2.msra.mxu0 %v15829_v56  ;;  %v15835_v8 = vand.u32 4294901760, %v15834_v19  ;;  %v15836_v63 = vld [vmem:[#allocation121_spill] sm:$0xff]  ;;  %v5163_v20 = vpop.f32.mrf.mxu1 }
 0x4d6   : > { %7118 = vmatpush1.msra.mxu1 %v15720_v33  ;;  %6949 = vmatprep.subr.mxu0 %v15831_v30  ;;  %v15837_v59 = vand.u32 4294901760, %v15836_v63  ;;  %v15838_v33 = vand.u32 4294901760, %v12695_v46  ;;  %v4626_v30 = vpop.permute.xlu0 %4625 }
 0x4d7   : > { %7120 = vmatprep.subr.mxu1 %v15721_v57  ;;  %6953 = vmatpush2.msra.mxu0 %v15833_v50  ;;  %v15839_v57 = vand.u32 4294901760, %v12707_v24  ;;  %v5505_v48 = vpop.f32.mrf.mxu1  ;;  %v4769_v2 = vadd.f32 %v4768_v26, %v4626_v30 }
 0x4d8   : > { %7122 = vmatpush1.msra.mxu1 %v15722_v45  ;;  %6957 = vmatprep.subr.mxu0 %v15835_v8  ;;  %v15840_v45 = vld [vmem:[#allocation55_spill] sm:$0xff] }
 0x4d9   : > { %7124 = vmatprep.subr.mxu1 %v15723_v10  ;;  %6961 = vmatpush2.msra.mxu0 %v15837_v59  ;;  %v15841_v16 = vand.u32 4294901760, %v15840_v45  ;;  %v15842_v10 = vld [vmem:[#allocation113_spill] sm:$0xff]  ;;  %v5162_v19 = vadd.f32 %v5161_v18, %v4769_v2 }
 0x4da   : > { %7126 = vmatpush2.msra.mxu1 %v12547_v28  ;;  %6965 = vmatprep.subr.mxu0 %v15838_v33  ;;  %v15843_v32 = vand.u32 4294901760, %v15842_v10  ;;  %v15844_v28 = vand.u32 4294901760, %v12737_v17 }
 0x4db   : > { %7128 = vmatprep.subr.mxu1 %v12560_v42  ;;  %6969 = vmatpush2.msra.mxu0 %v15839_v57  ;;  %v15845_v42 = vld [vmem:[#allocation173_spill] sm:$0xff] }
 0x4dc   : > { %7130 = vmatpush2.msra.mxu1 %v15724_v29  ;;  %6973 = vmatprep.subr.mxu0 %v15841_v16  ;;  %v15846_v46 = vand.u32 4294901760, %v15845_v42  ;;  %v15847_v29 = vld [vmem:[#allocation67_spill] sm:$0xff] }
 0x4dd   : > { %7132 = vmatprep.subr.mxu1 %v15725_v4  ;;  %6977 = vmatpush2.msra.mxu0 %v15843_v32  ;;  %v15848_v24 = vand.u32 4294901760, %v15847_v29  ;;  %v15849_v4 = vand.u32 4294901760, %v12566_v9 }
 0x4de   : > { %7134 = vmatpush2.msra.mxu1 %v15726_v0  ;;  %6981 = vmatprep.subr.mxu0 %v15844_v28  ;;  %v15850_v0 = vand.u32 4294901760, %v12498_v39 }
 0x4df   : > { %7136 = vmatprep.subr.mxu1 %v15727_v51  ;;  %6985 = vmatpush2.msra.mxu0 %v15846_v46  ;;  %v15851_v51 = vand.u32 4294901760, %v12785_v60 }
 0x4e0   : > { %7138 = vmatpush2.msra.mxu1 %v12620_v49  ;;  %6989 = vmatprep.subr.mxu0 %v15848_v24  ;;  %v15852_v49 = vand.u32 4294901760, %v12795_v47 }
 0x4e1   : > { %7140 = vmatprep.subr.mxu1 %v12629_v58  ;;  %6993 = vmatpush2.msra.mxu0 %v15849_v4  ;;  %v15853_v58 = vld [vmem:[#allocation27_spill] sm:$0xff] }
 0x4e2   : > { %7142 = vmatpush2.msra.mxu1 %v15728_v31  ;;  %6997 = vmatprep.subr.mxu0 %v15850_v0  ;;  %v15854_v9 = vand.u32 4294901760, %v15853_v58  ;;  %v15855_v31 = vld [vmem:[#allocation5_spill] sm:$0xff] }
 0x4e3   : > { %7144 = vmatprep.subr.mxu1 %v15729_v23  ;;  %7001 = vmatpush2.msra.mxu0 %v15851_v51  ;;  %v15856_v39 = vand.u32 4294901760, %v15855_v31  ;;  %v15857_v23 = vld [vmem:[#allocation171_spill] sm:$0xff] }
 0x4e4   : > { %7146 = vmatpush2.msra.mxu1 %v12659_v35  ;;  %7005 = vmatprep.subr.mxu0 %v15852_v49  ;;  %v15858_v17 = vand.u32 4294901760, %v15857_v23  ;;  %v15859_v35 = vld [vmem:[#allocation65_spill] sm:$0xff] }
 0x4e5   : > { %7148 = vmatprep.subr.mxu1 %v15730_v61  ;;  %7009 = vmatpush2.msra.mxu0 %v15854_v9  ;;  %v15860_v47 = vand.u32 4294901760, %v15859_v35  ;;  %v15861_v61 = vld [vmem:[#allocation24_spill] sm:$0xff] }
 0x4e6   : > { %7150 = vmatpush2.msra.mxu1 %v15731_v37  ;;  %7013 = vmatprep.subr.mxu0 %v15856_v39  ;;  %v15862_v60 = vand.u32 4294901760, %v15861_v61  ;;  %v15863_v37 = vld [vmem:[#allocation152_spill] sm:$0xff] }
 0x4e7   : > { %7152 = vmatprep.subr.mxu1 %v12692_v12  ;;  %7017 = vmatpush2.msra.mxu0 %v15858_v17  ;;  %v15864_v6 = vand.u32 4294901760, %v15863_v37  ;;  %v15866_v12 = vld [vmem:[#allocation3_spill] sm:$0xff] }
 0x4e8   : > { %7154 = vmatpush2.msra.mxu1 %v12704_v14  ;;  %7021 = vmatprep.subr.mxu0 %v15860_v47  ;;  %v15867_v62 = vand.u32 4294901760, %v15866_v12  ;;  %v15869_v14 = vand.u32 4294901760, %v12863_v41  ;;  %v15881_v41 = vld [vmem:[#allocation59_spill] sm:$0xff] }
 0x4e9   : > { %7156 = vmatprep.subr.mxu1 %v12617_v11  ;;  %7025 = vmatpush2.msra.mxu0 %v15862_v60  ;;  %v15871_v11 = vld [vmem:[#allocation151_spill] sm:$0xff] }
 0x4ea   : > { %7158 = vmatpush2.msra.mxu1 %v12509_v36  ;;  %7029 = vmatprep.subr.mxu0 %v15864_v6  ;;  %v15872_v3 = vand.u32 4294901760, %v15871_v11  ;;  %v15874_v36 = vld [vmem:[#allocation197_spill] sm:$0xff] }
 0x4eb   : > { %7160 = vmatprep.subr.mxu1 %v15865_v38  ;;  %7033 = vmatpush2.msra.mxu0 %v15867_v62  ;;  %v15875_v55 = vand.u32 4294901760, %v15874_v36 }
 0x4ec   : > { %7162 = vmatpush2.msra.mxu1 %v15868_v5  ;;  %7037 = vmatprep.subr.mxu0 %v15869_v14 }
 0x4ed   : > { %7164 = vmatprep.subr.mxu1 %v15870_v25  ;;  %7041 = vmatpush2.msra.mxu0 %v15872_v3 }
 0x4ee   : > { %7166 = vmatpush2.msra.mxu1 %v15873_v54  ;;  %7045 = vmatprep.subr.mxu0 %v15875_v55 }
 0x4ef   : > { %7168 = vmatprep.subr.mxu1 %v15876_v7  ;;  %7049 = vmatpush2.msra.mxu0 %v15878_v27 }
 0x4f0   : > { %7051 = vmatprep.mubr.f32.mxu0 %v15879_v21  ;;  %7170 = vmatpush2.msra.mxu1 %v15880_v40 }
 0x4f1   : > { %7053 = vmatmul.mubr.f32.vlgmr.msra.gmra.mxu0 %v15881_v41  ;;  %7172 = vmatprep.subr.mxu1 %v15740_v44  ;;  %v4770_v44 = vpop.f32.mrf.mxu0 }
 0x4f2   : > { %7174 = vmatpush2.msra.mxu1 %v15742_v15  ;;  %7188 = vmatprep.mubr.f32.mxu1 %v15879_v21 }
 0x4f3   : > { %7176 = vmatprep.subr.mxu1 %v15744_v1  ;;  %v5364_v15 = vpop.f32.mrf.mxu0 }
 0x4f4   : > { %7178 = vmatpush2.msra.mxu1 %v15746_v13  ;;  %v5507_v13 = vpop.f32.mrf.mxu1 }
 0x4f5   : > { %7180 = vmatprep.subr.mxu1 %v15632_v52  ;;  %v5366_v56 = vpop.f32.mrf.mxu0 }
 0x4f6   : > { %7182 = vmatpush2.msra.mxu1 %v15650_v34  ;;  %v5907_v50 = vpop.f32.mrf.mxu1  ;;  %v4771_v34 = vadd.f32 %v4770_v44, %v4626_v30 }
 0x4f7   : > { %7184 = vmatprep.subr.mxu1 %v15750_v53  ;;  %v5770_v1 = vpop.f32.mrf.mxu0 }
 0x4f8   : > { %7186 = vmatpush2.msra.mxu1 %v15752_v43  ;;  %v5164_v8 = vadd.f32 %v5163_v20, %v4771_v34  ;;  %v5365_v43 = vadd.f32 %v5364_v15, %v5162_v19  ;;  %v5909_v63 = vpop.f32.mrf.mxu1  ;;  %v7218_v20 = vpop.permute.xlu1 %7217 }
 0x4f9   : > { %7190 = vmatmul.mubr.f32.vlgmr.msra.gmra.mxu1 %v15881_v41  ;;  %v5772_v52 = vpop.f32.mrf.mxu0 }
 0x4fa   : > { %v5367_v59 = vadd.f32 %v5366_v56, %v5164_v8  ;;  %v5506_v33 = vadd.f32 %v5505_v48, %v5365_v43 }
 0x4fc   : > { %v5508_v16 = vadd.f32 %v5507_v13, %v5367_v59  ;;  %v5771_v10 = vadd.f32 %v5770_v1, %v5506_v33 }
 0x4fe   : > { %v5773_v28 = vadd.f32 %v5772_v52, %v5508_v16  ;;  %v5908_v42 = vadd.f32 %v5907_v50, %v5771_v10 }
 0x500   : > { %v5910_v29 = vadd.f32 %v5909_v63, %v5773_v28  ;;  %v7429_v28 = vmov 1966171168  }
 0x52d   : > { %v6052_v53 = vpop.f32.mrf.mxu0 }
 0x52e   : > { %v6053_v24 = vadd.f32 %v6052_v53, %v5908_v42  ;;  %v7254_v42 = vunpack.c.l.s4 %v7429_v28 }
 0x52f   : > { %v6054_v57 = vpop.f32.mrf.mxu0 }
 0x530   : > { %v6055_v51 = vadd.f32 %v6054_v57, %v5910_v29 }
 0x536   : > { %v6445_v45 = vpop.f32.mrf.mxu1 }
 0x537   : > { %v6446_v49 = vadd.f32 %v6445_v45, %v6053_v24 }
 0x538   : > { %v6447_v46 = vpop.f32.mrf.mxu1 }
 0x539   : > { %v6448_v9 = vadd.f32 %v6447_v46, %v6055_v51  ;;  %v7256_v46 = vlaneseq }
 0x53b   : > { %vm7270_vm2 = vcmp.lt.s32.totalorder %v7256_v46, 256 }
 0x56f   : > { %v6648_v32 = vpop.f32.mrf.mxu0 }
 0x570   : > { %v6649_v31 = vadd.f32 %v6648_v32, %v6446_v49 }
 0x571   : > { %v6650_v4 = vpop.f32.mrf.mxu0 }
 0x572   : > { %v6651_v23 = vadd.f32 %v6650_v4, %v6448_v9  ;;  %v7255_v4 = vunpack.c.0.s8 %v7254_v42 }
 0x578   : > { %v6789_v0 = vpop.f32.mrf.mxu1 }
 0x579   : > { %v6790_v17 = vadd.f32 %v6789_v0, %v6649_v31  ;;  %v7257_v0 = vshrl.u32 %v7256_v46, 7 }
 0x57a   : > { %v6791_v39 = vpop.f32.mrf.mxu1 }
 0x57b   : > { %v6792_v47 = vadd.f32 %v6791_v39, %v6651_v23  ;;  %v7258_v23 = vsub.s32 %v7255_v4, %v7257_v0 }
 0x5b1   : > { %v7054_v58 = vpop.f32.mrf.mxu0 }
 0x5b2   : > { %v7055_v61 = vadd.f32 %v7054_v58, %v6790_v17 }
 0x5b3   : > { %v7056_v35 = vpop.f32.mrf.mxu0 }
 0x5b4   : > { %v7057_v37 = vadd.f32 %v7056_v35, %v6792_v47 }
 0x5b9   : > { %v7191_v60 = vpop.f32.mrf.mxu1 }
 0x5ba   : > { %v7192_v6 = vadd.f32 %v7191_v60, %v7055_v61 }
 0x5bb   : > { %v7193_v38 = vpop.f32.mrf.mxu1 }
 0x5bc   : > { %v7196_v12 = vrot.slane %v7192_v6, 4  ;;  %v7194_v62 = vadd.f32 %v7193_v38, %v7057_v37 }
 0x5be   : > { %v7197_v5 = vmax.f32 %v7192_v6, %v7196_v12  ;;  %v7202_v14 = vrot.slane %v7194_v62, 4 }
 0x5c0   : > { %v7198_v25 = vrot.slane %v7197_v5, 2  ;;  %v7203_v11 = vmax.f32 %v7194_v62, %v7202_v14 }
 0x5c2   : > { %v7199_v3 = vmax.f32 %v7197_v5, %v7198_v25  ;;  %v7204_v54 = vrot.slane %v7203_v11, 2 }
 0x5c4   : > { %v7200_v36 = vrot.slane %v7199_v3, 1  ;;  %v7205_v55 = vmax.f32 %v7203_v11, %v7204_v54 }
 0x5c6   : > { %v7201_v7 = vmax.f32 %v7199_v3, %v7200_v36  ;;  %v7206_v22 = vrot.slane %v7205_v55, 1 }
 0x5c8   : > { %v7208_v27 = vsub.f32 %v7192_v6, %v7201_v7  ;;  %v7207_v21 = vmax.f32 %v7205_v55, %v7206_v22 }
 0x5ca   : > { %v7210_v40 = vmul.f32 1.442695, %v7208_v27  ;;  %v7209_v41 = vsub.f32 %v7194_v62, %v7207_v21 }
 0x5cc   : > { %7395 = vpow2.f32 %v7210_v40  ;;  %v7212_v26 = vmul.f32 1.442695, %v7209_v41 }
 0x5ce   : > { %7397 = vpow2.f32 %v7212_v26 }
 0x5d9   : > { %v7396_v44 = vpop.eup %7395 }
 0x5da   : > { %v7234_v18 = vrot.slane %v7396_v44, 4  ;;  %v7220_v56 = vmul.f32 %v7396_v44, %v7218_v20 }
 0x5db   : > { %v7398_v15 = vpop.eup %7397 }
 0x5dc   : > { %v7235_v48 = vadd.f32 %v7396_v44, %v7234_v18  ;;  %v7221_v1 = vmul.f32 %v7398_v15, %v7218_v20  ;;  %v7240_v30 = vrot.slane %v7398_v15, 4  ;;  %v7222_v52 = vrot.slane %v7220_v56, 4 }
 0x5de   : > { %v7236_v13 = vrot.slane %v7235_v48, 2  ;;  %v7241_v2 = vadd.f32 %v7398_v15, %v7240_v30  ;;  %v7228_v34 = vrot.slane %v7221_v1, 4  ;;  %v7223_v43 = vadd.f32 %v7222_v52, %v7220_v56 }
 0x5e0   : > { %v7237_v50 = vadd.f32 %v7236_v13, %v7235_v48  ;;  %v7242_v19 = vrot.slane %v7241_v2, 2  ;;  %v7229_v59 = vadd.f32 %v7228_v34, %v7221_v1  ;;  %v7224_v45 = vrot.slane %v7223_v43, 2 }
 0x5e2   : > { %v7238_v53 = vrot.slane %v7237_v50, 1  ;;  %v7243_v8 = vadd.f32 %v7242_v19, %v7241_v2  ;;  %v7230_v16 = vrot.slane %v7229_v59, 2  ;;  %v7225_v10 = vadd.f32 %v7224_v45, %v7223_v43 }
 0x5e4   : > { %v7239_v63 = vadd.f32 %v7238_v53, %v7237_v50  ;;  %v7244_v33 = vrot.slane %v7243_v8, 1  ;;  %v7231_v32 = vadd.f32 %v7230_v16, %v7229_v59  ;;  %v7226_v29 = vrot.slane %v7225_v10, 1 }
 0x5e6   : > { %7399 = vrcp.f32 %v7239_v63  ;;  %v7245_v57 = vadd.f32 %v7244_v33, %v7243_v8  ;;  %v7232_v24 = vrot.slane %v7231_v32, 1  ;;  %v7227_v49 = vadd.f32 %v7226_v29, %v7225_v10 }
 0x5e8   : > { %7401 = vrcp.f32 %v7245_v57  ;;  %v7233_v58 = vadd.f32 %v7232_v24, %v7231_v32 }
 0x5f3   : > { %v7400_v51 = vpop.eup %7399 }
 0x5f4   : > { %v7247_v31 = vmul.f32 %v7400_v51, %v7227_v49 }
 0x5f5   : > { %v7402_v9 = vpop.eup %7401 }
 0x5f6   : > { %v7249_v39 = vmul.f32 %v7402_v9, %v7233_v58 }
 0x5f8   : > { %v7252_v17 = vcombine.low %v7247_v31, %v7249_v39 }
 0x5fa   : > { %v7259_v35 = vrot.slane %v7252_v17, %v7258_v23 }
 0x5fc   : > { %v7266_v47 = vrot.slane %v7259_v35, %v7258_v23 }
 0x5fe   : > { %7272 = vst.msk [vmem:[%s287_s16] sm:$0x3] %vm7270_vm2, %v7266_v47 }
 0x5ff PF: > { %s16_s23 = sadd.s32 1, %s7425_s23   ;;  %s15882_s21 = smov %s7421_s22 }
 0x600   : > { %p13_p5 = scmp.ge.s32.totalorder %s16_s23, 4   ;;  %s15883_s22 = smov %s15885_s24 }
 0x602   :  { %15 = sbr.rel (!%p13_p5) target bundleno = 2 (0x2), region = 74 }

</bundles_post_ra>
